<compile_context>
chip_gen: v5e
topology: v5e:2x2
jax: 0.10.0
libtpu: 0.0.40
codegen_flags: <defaults>
</compile_context>

<pallas_src>
import functools

import jax
import jax.numpy as jnp
from jax.experimental import pallas as pl
from jax.experimental.pallas import tpu as pltpu

NEG_SLOPE = 0.01


def _round_up(x, m):
    return ((x + m - 1) // m) * m


# ----------------------------------------------------------------------------
# Pallas kernels
# ----------------------------------------------------------------------------
def _linear_act_kernel(x_ref, w_ref, b_ref, o_ref, *, act, neg_slope):
    y = jnp.dot(x_ref[...], w_ref[...], preferred_element_type=jnp.float32)
    y = y + b_ref[...]
    if act == "leaky":
        y = jnp.where(y >= 0.0, y, neg_slope * y)
    elif act == "sigmoid":
        y = 1.0 / (1.0 + jnp.exp(-y))
    elif act == "tanh":
        y = jnp.tanh(y)
    # act == "none": identity
    o_ref[...] = y.astype(o_ref.dtype)


def _cluster_kernel(x_ref, wt_ref, w2_ref, o_ref, *, alpha):
    x = x_ref[...]                                                   # (tm, K)
    x2 = jnp.sum(x * x, axis=-1, keepdims=True)                      # (tm, 1)
    cross = jnp.dot(x, wt_ref[...], preferred_element_type=jnp.float32)  # (tm, Kc)
    d = jnp.maximum(x2 + w2_ref[...] - 2.0 * cross, 0.0)             # ||x - w||^2
    q = 1.0 / (1.0 + d / alpha)
    power = (alpha + 1.0) / 2.0
    if abs(power - 1.0) > 1e-12:
        q = jnp.exp(power * jnp.log(q))
    q = q / jnp.sum(q, axis=-1, keepdims=True)
    o_ref[...] = q.astype(o_ref.dtype)


# ----------------------------------------------------------------------------
# Pallas wrappers
# ----------------------------------------------------------------------------
def linear(x, w, b, act="none", neg_slope=NEG_SLOPE, tm_max=512):
    """y = act(x @ w + b) with a batch-row grid. x: (M,K), w: (K,N), b: (N,)."""
    M, K = x.shape
    Kw, N = w.shape
    assert K == Kw, (K, Kw)
    tm = min(tm_max, _round_up(M, 8))
    grid = (pl.cdiv(M, tm),)
    kernel = functools.partial(_linear_act_kernel, act=act, neg_slope=neg_slope)
    return pl.pallas_call(
        kernel,
        out_shape=jax.ShapeDtypeStruct((M, N), jnp.float32),
        grid=grid,
        in_specs=[
            pl.BlockSpec((tm, K), lambda i: (i, 0)),   # streaming rows
            pl.BlockSpec((K, N), lambda i: (0, 0)),    # weight: resident
            pl.BlockSpec((1, N), lambda i: (0, 0)),    # bias: resident
        ],
        out_specs=pl.BlockSpec((tm, N), lambda i: (i, 0)),
        compiler_params=pltpu.CompilerParams(dimension_semantics=("parallel",)),
    )(x, w, b.reshape(1, N))


def clustering(x, w, alpha=1.0, tm_max=512):
    """Student-t soft assignment. x: (B, K), w: (Kc, K) -> (B, Kc)."""
    B, K = x.shape
    Kc = w.shape[0]
    wt = jnp.transpose(w)                        # (K, Kc)
    w2 = jnp.sum(w * w, axis=1).reshape(1, Kc)   # (1, Kc)
    tm = min(tm_max, _round_up(B, 8))
    grid = (pl.cdiv(B, tm),)
    kernel = functools.partial(_cluster_kernel, alpha=alpha)
    return pl.pallas_call(
        kernel,
        out_shape=jax.ShapeDtypeStruct((B, Kc), jnp.float32),
        grid=grid,
        in_specs=[
            pl.BlockSpec((tm, K), lambda i: (i, 0)),
            pl.BlockSpec((K, Kc), lambda i: (0, 0)),
            pl.BlockSpec((1, Kc), lambda i: (0, 0)),
        ],
        out_specs=pl.BlockSpec((tm, Kc), lambda i: (i, 0)),
        compiler_params=pltpu.CompilerParams(dimension_semantics=("parallel",)),
    )(x, wt, w2)


# ----------------------------------------------------------------------------
# Conv / ConvTranspose as im2col + Pallas matmul
# ----------------------------------------------------------------------------
def conv2d(x, w, b, stride, pad, act, neg_slope=NEG_SLOPE):
    """x: (B,H,W,Cin) NHWC; w: (KH,KW,Cin,Cout); b: (Cout,)."""
    B, H, W, Cin = x.shape
    KH, KW, _, Cout = w.shape
    xp = jnp.pad(x, ((0, 0), (pad, pad), (pad, pad), (0, 0)))
    Ho = (H + 2 * pad - KH) // stride + 1
    Wo = (W + 2 * pad - KW) // stride + 1
    cols = []
    for i in range(KH):
        for j in range(KW):
            cols.append(xp[:, i:i + stride * (Ho - 1) + 1:stride,
                           j:j + stride * (Wo - 1) + 1:stride, :])
    patches = jnp.concatenate(cols, axis=-1).reshape(B * Ho * Wo, KH * KW * Cin)
    y = linear(patches, w.reshape(KH * KW * Cin, Cout), b, act=act,
               neg_slope=neg_slope)
    return y.reshape(B, Ho, Wo, Cout)


def deconv2d(x, w, b, stride, pad, out_pad, act, neg_slope=NEG_SLOPE):
    """ConvTranspose2d as zero-dilation + padded stride-1 conv.
    w is stored directly as the equivalent stride-1 conv weight (KH,KW,Cin,Cout)."""
    B, H, W, Cin = x.shape
    KH, KW, _, Cout = w.shape
    if stride > 1:
        xd = jnp.zeros((B, (H - 1) * stride + 1, (W - 1) * stride + 1, Cin), x.dtype)
        xd = xd.at[:, ::stride, ::stride, :].set(x)
    else:
        xd = x
    lo = KH - 1 - pad
    hi = KH - 1 - pad + out_pad
    xp = jnp.pad(xd, ((0, 0), (lo, hi), (lo, hi), (0, 0)))
    Hp, Wp = xp.shape[1], xp.shape[2]
    Ho, Wo = Hp - KH + 1, Wp - KW + 1
    cols = []
    for i in range(KH):
        for j in range(KW):
            cols.append(xp[:, i:i + Ho, j:j + Wo, :])
    patches = jnp.concatenate(cols, axis=-1).reshape(B * Ho * Wo, KH * KW * Cin)
    y = linear(patches, w.reshape(KH * KW * Cin, Cout), b, act=act,
               neg_slope=neg_slope)
    return y.reshape(B, Ho, Wo, Cout)


# ----------------------------------------------------------------------------
# Full CAE_4 forward (Pallas path)
# ----------------------------------------------------------------------------
def cae4_forward(x_nchw, params, *, input_shape, filters,
                 neg_slope=NEG_SLOPE, activations=False):
    x = jnp.transpose(x_nchw, (0, 2, 3, 1))  # NCHW -> NHWC

    x = conv2d(x, params["conv1_w"], params["conv1_b"], 2, 2, "leaky", neg_slope)
    x = conv2d(x, params["conv2_w"], params["conv2_b"], 2, 2, "leaky", neg_slope)
    x = conv2d(x, params["conv3_w"], params["conv3_b"], 2, 2, "leaky", neg_slope)
    act4 = "sigmoid" if activations else "leaky"
    x = conv2d(x, params["conv4_w"], params["conv4_b"], 2, 0, act4, neg_slope)

    B = x.shape[0]
    side = (input_shape[0] // 2 // 2 // 2 - 1) // 2
    assert x.shape[1] == side and x.shape[2] == side, x.shape

    # PyTorch flattens NCHW -> (B, C*h*w); reproduce that ordering exactly.
    x_flat = jnp.transpose(x, (0, 3, 1, 2)).reshape(B, -1)
    emb = linear(x_flat, params["emb_w"], params["emb_b"], act="none")
    extra_out = emb
    clustering_out = clustering(emb, params["clu_w"], alpha=1.0)

    d = linear(emb, params["deemb_w"], params["deemb_b"], act="leaky",
               neg_slope=neg_slope)
    x = d.reshape(B, filters[3], side, side)
    x = jnp.transpose(x, (0, 2, 3, 1))  # back to NHWC

    out_pad4 = 1 if (input_shape[0] // 2 // 2 // 2) % 2 == 0 else 0
    x = deconv2d(x, params["deconv4_w"], params["deconv4_b"], 2, 0, out_pad4,
                 "leaky", neg_slope)
    out_pad3 = 1 if (input_shape[0] // 2 // 2) % 2 == 0 else 0
    x = deconv2d(x, params["deconv3_w"], params["deconv3_b"], 2, 2, out_pad3,
                 "leaky", neg_slope)
    out_pad2 = 1 if (input_shape[0] // 2) % 2 == 0 else 0
    x = deconv2d(x, params["deconv2_w"], params["deconv2_b"], 2, 2, out_pad2,
                 "leaky", neg_slope)
    out_pad1 = 1 if input_shape[0] % 2 == 0 else 0
    final_act = "tanh" if activations else "none"
    x = deconv2d(x, params["deconv1_w"], params["deconv1_b"], 2, 2, out_pad1,
                 final_act, neg_slope)

    recon = jnp.transpose(x, (0, 3, 1, 2))  # NHWC -> NCHW
    return recon, clustering_out, extra_out


# ----------------------------------------------------------------------------
# Synthetic parameters (weights stored as (KH,KW,Cin,Cout) / (in,out))
# ----------------------------------------------------------------------------
def init_params(key, input_shape, filters, num_clusters):
    c_in = input_shape[2]
    side = (input_shape[0] // 2 // 2 // 2 - 1) // 2
    lin = side * side * filters[3]
    ks = jax.random.split(key, 21)

    def w(k, shape, fan_in):
        return jax.random.normal(k, shape, jnp.float32) / jnp.sqrt(float(fan_in))

    def b(k, n):
        return 0.01 * jax.random.normal(k, (n,), jnp.float32)

    p = {
        "conv1_w": w(ks[0], (5, 5, c_in, filters[0]), 5 * 5 * c_in),
        "conv1_b": b(ks[1], filters[0]),
        "conv2_w": w(ks[2], (5, 5, filters[0], filters[1]), 5 * 5 * filters[0]),
        "conv2_b": b(ks[3], filters[1]),
        "conv3_w": w(ks[4], (5, 5, filters[1], filters[2]), 5 * 5 * filters[1]),
        "conv3_b": b(ks[5], filters[2]),
        "conv4_w": w(ks[6], (3, 3, filters[2], filters[3]), 3 * 3 * filters[2]),
        "conv4_b": b(ks[7], filters[3]),
        "emb_w": w(ks[8], (lin, num_clusters), lin),
        "emb_b": b(ks[9], num_clusters),
        "deemb_w": w(ks[10], (num_clusters, lin), num_clusters),
        "deemb_b": b(ks[11], lin),
        "deconv4_w": w(ks[12], (3, 3, filters[3], filters[2]), 3 * 3 * filters[3]),
        "deconv4_b": b(ks[13], filters[2]),
        "deconv3_w": w(ks[14], (5, 5, filters[2], filters[1]), 5 * 5 * filters[2]),
        "deconv3_b": b(ks[15], filters[1]),
        "deconv2_w": w(ks[16], (5, 5, filters[1], filters[0]), 5 * 5 * filters[1]),
        "deconv2_b": b(ks[17], filters[0]),
        "deconv1_w": w(ks[18], (5, 5, filters[0], c_in), 5 * 5 * filters[0]),
        "deconv1_b": b(ks[19], c_in),
        "clu_w": 0.5 * jax.random.normal(ks[20], (num_clusters, num_clusters),
                                         jnp.float32),
    }
    return p


# ----------------------------------------------------------------------------
# Pure-JAX/XLA reference (independent path) for correctness checking
# ----------------------------------------------------------------------------
def _ref_forward(x_nchw, params, *, input_shape, filters,
                 neg_slope=NEG_SLOPE, activations=False):
    lrelu = lambda v: jnp.where(v >= 0.0, v, neg_slope * v)
    dn = ("NHWC", "HWIO", "NHWC")

    def conv(x, w, b, stride, pad):
        y = jax.lax.conv_general_dilated(x, w, (stride, stride),
                                         [(pad, pad), (pad, pad)],
                                         dimension_numbers=dn)
        return y + b

    def deconv(x, w, b, stride, pad, out_pad):
        k = w.shape[0]
        lo, hi = k - 1 - pad, k - 1 - pad + out_pad
        y = jax.lax.conv_general_dilated(x, w, (1, 1), [(lo, hi), (lo, hi)],
                                         lhs_dilation=(stride, stride),
                                         dimension_numbers=dn)
        return y + b

    x = jnp.transpose(x_nchw, (0, 2, 3, 1))
    x = lrelu(conv(x, params["conv1_w"], params["conv1_b"], 2, 2))
    x = lrelu(conv(x, params["conv2_w"], params["conv2_b"], 2, 2))
    x = lrelu(conv(x, params["conv3_w"], params["conv3_b"], 2, 2))
    x = conv(x, params["conv4_w"], params["conv4_b"], 2, 0)
    x = jax.nn.sigmoid(x) if activations else lrelu(x)

    B = x.shape[0]
    side = (input_shape[0] // 2 // 2 // 2 - 1) // 2
    x_flat = jnp.transpose(x, (0, 3, 1, 2)).reshape(B, -1)
    emb = x_flat @ params["emb_w"] + params["emb_b"]

    wc = params["clu_w"]
    diff = emb[:, None, :] - wc[None, :, :]
    q = jnp.sum(diff * diff, axis=2)
    q = 1.0 / (1.0 + q / 1.0)
    q = q ** ((1.0 + 1.0) / 2.0)
    clu = q / jnp.sum(q, axis=1, keepdims=True)

    d = lrelu(emb @ params["deemb_w"] + params["deemb_b"])
    x = jnp.transpose(d.reshape(B, filters[3], side, side), (0, 2, 3, 1))

    op4 = 1 if (input_shape[0] // 8) % 2 == 0 else 0
    x = lrelu(deconv(x, params["deconv4_w"], params["deconv4_b"], 2, 0, op4))
    op3 = 1 if (input_shape[0] // 4) % 2 == 0 else 0
    x = lrelu(deconv(x, params["deconv3_w"], params["deconv3_b"], 2, 2, op3))
    op2 = 1 if (input_shape[0] // 2) % 2 == 0 else 0
    x = lrelu(deconv(x, params["deconv2_w"], params["deconv2_b"], 2, 2, op2))
    op1 = 1 if input_shape[0] % 2 == 0 else 0
    x = deconv(x, params["deconv1_w"], params["deconv1_b"], 2, 2, op1)
    if activations:
        x = jnp.tanh(x)
    return jnp.transpose(x, (0, 3, 1, 2)), clu, emb


if __name__ == "__main__":
    key = jax.random.PRNGKey(0)
    kx, kp = jax.random.split(key)

    input_shape = (32, 32, 3)   # small, but satisfies the architecture constraints
    filters = (8, 16, 32, 64)   # scaled-down filter counts
    num_clusters = 10
    B = 2

    x = jax.random.normal(kx, (B, input_shape[2], input_shape[0], input_shape[1]),
                          jnp.float32)
    params = init_params(kp, input_shape, filters, num_clusters)

    fwd = jax.jit(functools.partial(cae4_forward,
                                    input_shape=input_shape, filters=filters))
    recon, clu, emb = fwd(x, params)
    jax.block_until_ready((recon, clu, emb))

    recon_r, clu_r, emb_r = _ref_forward(x, params, input_shape=input_shape,
                                         filters=filters)

    assert recon.shape == (B, input_shape[2], input_shape[0], input_shape[1]), recon.shape
    assert clu.shape == (B, num_clusters), clu.shape
    assert emb.shape == (B, num_clusters), emb.shape
    assert jnp.allclose(emb, emb_r, atol=1e-3, rtol=1e-3), (emb, emb_r)
    assert jnp.allclose(clu, clu_r, atol=1e-4, rtol=1e-3), (clu, clu_r)
    assert jnp.allclose(recon, recon_r, atol=1e-3, rtol=1e-3), (recon, recon_r)

    print("KERNEL_OK")
</pallas_src>

<mosaic_0001>
module attributes {stable_mosaic.version = 11 : i64} {
  func.func @_linear_act_kernel(%arg0: i32, %arg1: memref<512x75xf32, #tpu.memory_space<vmem>>, %arg2: memref<75x8xf32, #tpu.memory_space<vmem>>, %arg3: memref<1x8xf32, #tpu.memory_space<vmem>>, %arg4: memref<512x8xf32, #tpu.memory_space<vmem>>) attributes {dimension_semantics = [#tpu.dimension_semantics<parallel>], iteration_bounds = array<i64: 1>, scalar_prefetch = 0 : i64, scratch_operands = 0 : i64, tpu.core_type = #tpu.core_type<tc>, window_params = [{transform_indices = @transform_0, window_bounds = array<i64: 512, 75>}, {pipeline_mode = #tpu.pipeline_mode<synchronous>, transform_indices = @transform_1, window_bounds = array<i64: 75, 8>}, {pipeline_mode = #tpu.pipeline_mode<synchronous>, transform_indices = @transform_2, window_bounds = array<i64: 1, 8>}, {transform_indices = @transform_3, window_bounds = array<i64: 512, 8>}]} {
    %c0 = arith.constant 0 : index
    %c0_0 = arith.constant 0 : index
    %0 = vector.load %arg1[%c0, %c0_0] : memref<512x75xf32, #tpu.memory_space<vmem>>, vector<512x75xf32>
    %c0_1 = arith.constant 0 : index
    %c0_2 = arith.constant 0 : index
    %1 = vector.load %arg2[%c0_1, %c0_2] : memref<75x8xf32, #tpu.memory_space<vmem>>, vector<75x8xf32>
    %cst = arith.constant dense<0.000000e+00> : vector<512x8xf32>
    %2 = tpu.matmul %0, %1, %cst {dimension_numbers = #tpu.dot_dimension_numbers<[1], [0], [0], [1], [0, 0, 1, 1], [], []>} : vector<512x75xf32>, vector<75x8xf32>, vector<512x8xf32> -> vector<512x8xf32>
    %c0_3 = arith.constant 0 : index
    %c0_4 = arith.constant 0 : index
    %3 = vector.load %arg3[%c0_3, %c0_4] : memref<1x8xf32, #tpu.memory_space<vmem>>, vector<1x8xf32>
    %4 = vector.broadcast %3 : vector<1x8xf32> to vector<512x8xf32>
    %5 = arith.addf %2, %4 : vector<512x8xf32>
    %cst_5 = arith.constant 0.000000e+00 : f32
    %6 = vector.broadcast %cst_5 : f32 to vector<512x8xf32>
    %7 = arith.cmpf oge, %5, %6 : vector<512x8xf32>
    %cst_6 = arith.constant 0.00999999977 : f32
    %8 = vector.broadcast %cst_6 : f32 to vector<512x8xf32>
    %9 = arith.mulf %8, %5 : vector<512x8xf32>
    %10 = arith.select %7, %5, %9 : vector<512x8xi1>, vector<512x8xf32>
    %c0_7 = arith.constant 0 : index
    %c0_8 = arith.constant 0 : index
    %11 = vector.load %arg4[%c0_7, %c0_8] : memref<512x8xf32, #tpu.memory_space<vmem>>, vector<512x8xf32>
    tpu.vector_store %arg4[%c0_7, %c0_8], %10 {strides = array<i32>} : memref<512x8xf32, #tpu.memory_space<vmem>>, vector<512x8xf32>,
    return
  }
  func.func @transform_0(%arg0: i32) -> (i32, i32) {
    %c0_i32 = arith.constant 0 : i32
    %c0_i32_0 = arith.constant 0 : i32
    return %arg0, %c0_i32 : i32, i32
  }
  func.func @transform_1(%arg0: i32) -> (i32, i32) {
    %c0_i32 = arith.constant 0 : i32
    %c0_i32_0 = arith.constant 0 : i32
    %c0_i32_1 = arith.constant 0 : i32
    return %c0_i32, %c0_i32_0 : i32, i32
  }
  func.func @transform_2(%arg0: i32) -> (i32, i32) {
    %c0_i32 = arith.constant 0 : i32
    %c0_i32_0 = arith.constant 0 : i32
    %c0_i32_1 = arith.constant 0 : i32
    return %c0_i32, %c0_i32_0 : i32, i32
  }
  func.func @transform_3(%arg0: i32) -> (i32, i32) {
    %c0_i32 = arith.constant 0 : i32
    %c0_i32_0 = arith.constant 0 : i32
    return %arg0, %c0_i32 : i32, i32
  }
}

module attributes {stable_mosaic.version = 11 : i64} {
  func.func @_linear_act_kernel(%arg0: i32, %arg1: memref<128x200xf32, #tpu.memory_space<vmem>>, %arg2: memref<200x16xf32, #tpu.memory_space<vmem>>, %arg3: memref<1x16xf32, #tpu.memory_space<vmem>>, %arg4: memref<128x16xf32, #tpu.memory_space<vmem>>) attributes {dimension_semantics = [#tpu.dimension_semantics<parallel>], iteration_bounds = array<i64: 1>, scalar_prefetch = 0 : i64, scratch_operands = 0 : i64, tpu.core_type = #tpu.core_type<tc>, window_params = [{transform_indices = @transform_0, window_bounds = array<i64: 128, 200>}, {pipeline_mode = #tpu.pipeline_mode<synchronous>, transform_indices = @transform_1, window_bounds = array<i64: 200, 16>}, {pipeline_mode = #tpu.pipeline_mode<synchronous>, transform_indices = @transform_2, window_bounds = array<i64: 1, 16>}, {transform_indices = @transform_3, window_bounds = array<i64: 128, 16>}]} {
    %c0 = arith.constant 0 : index
    %c0_0 = arith.constant 0 : index
    %0 = vector.load %arg1[%c0, %c0_0] : memref<128x200xf32, #tpu.memory_space<vmem>>, vector<128x200xf32>
    %c0_1 = arith.constant 0 : index
    %c0_2 = arith.constant 0 : index
    %1 = vector.load %arg2[%c0_1, %c0_2] : memref<200x16xf32, #tpu.memory_space<vmem>>, vector<200x16xf32>
    %cst = arith.constant dense<0.000000e+00> : vector<128x16xf32>
    %2 = tpu.matmul %0, %1, %cst {dimension_numbers = #tpu.dot_dimension_numbers<[1], [0], [0], [1], [0, 0, 1, 1], [], []>} : vector<128x200xf32>, vector<200x16xf32>, vector<128x16xf32> -> vector<128x16xf32>
    %c0_3 = arith.constant 0 : index
    %c0_4 = arith.constant 0 : index
    %3 = vector.load %arg3[%c0_3, %c0_4] : memref<1x16xf32, #tpu.memory_space<vmem>>, vector<1x16xf32>
    %4 = vector.broadcast %3 : vector<1x16xf32> to vector<128x16xf32>
    %5 = arith.addf %2, %4 : vector<128x16xf32>
    %cst_5 = arith.constant 0.000000e+00 : f32
    %6 = vector.broadcast %cst_5 : f32 to vector<128x16xf32>
    %7 = arith.cmpf oge, %5, %6 : vector<128x16xf32>
    %cst_6 = arith.constant 0.00999999977 : f32
    %8 = vector.broadcast %cst_6 : f32 to vector<128x16xf32>
    %9 = arith.mulf %8, %5 : vector<128x16xf32>
    %10 = arith.select %7, %5, %9 : vector<128x16xi1>, vector<128x16xf32>
    %c0_7 = arith.constant 0 : index
    %c0_8 = arith.constant 0 : index
    %11 = vector.load %arg4[%c0_7, %c0_8] : memref<128x16xf32, #tpu.memory_space<vmem>>, vector<128x16xf32>
    tpu.vector_store %arg4[%c0_7, %c0_8], %10 {strides = array<i32>} : memref<128x16xf32, #tpu.memory_space<vmem>>, vector<128x16xf32>,
    return
  }
  func.func @transform_0(%arg0: i32) -> (i32, i32) {
    %c0_i32 = arith.constant 0 : i32
    %c0_i32_0 = arith.constant 0 : i32
    return %arg0, %c0_i32 : i32, i32
  }
  func.func @transform_1(%arg0: i32) -> (i32, i32) {
    %c0_i32 = arith.constant 0 : i32
    %c0_i32_0 = arith.constant 0 : i32
    %c0_i32_1 = arith.constant 0 : i32
    return %c0_i32, %c0_i32_0 : i32, i32
  }
  func.func @transform_2(%arg0: i32) -> (i32, i32) {
    %c0_i32 = arith.constant 0 : i32
    %c0_i32_0 = arith.constant 0 : i32
    %c0_i32_1 = arith.constant 0 : i32
    return %c0_i32, %c0_i32_0 : i32, i32
  }
  func.func @transform_3(%arg0: i32) -> (i32, i32) {
    %c0_i32 = arith.constant 0 : i32
    %c0_i32_0 = arith.constant 0 : i32
    return %arg0, %c0_i32 : i32, i32
  }
}

module attributes {stable_mosaic.version = 11 : i64} {
  func.func @_linear_act_kernel(%arg0: i32, %arg1: memref<32x400xf32, #tpu.memory_space<vmem>>, %arg2: memref<400x32xf32, #tpu.memory_space<vmem>>, %arg3: memref<1x32xf32, #tpu.memory_space<vmem>>, %arg4: memref<32x32xf32, #tpu.memory_space<vmem>>) attributes {dimension_semantics = [#tpu.dimension_semantics<parallel>], iteration_bounds = array<i64: 1>, scalar_prefetch = 0 : i64, scratch_operands = 0 : i64, tpu.core_type = #tpu.core_type<tc>, window_params = [{transform_indices = @transform_0, window_bounds = array<i64: 32, 400>}, {pipeline_mode = #tpu.pipeline_mode<synchronous>, transform_indices = @transform_1, window_bounds = array<i64: 400, 32>}, {pipeline_mode = #tpu.pipeline_mode<synchronous>, transform_indices = @transform_2, window_bounds = array<i64: 1, 32>}, {transform_indices = @transform_3, window_bounds = array<i64: 32, 32>}]} {
    %c0 = arith.constant 0 : index
    %c0_0 = arith.constant 0 : index
    %0 = vector.load %arg1[%c0, %c0_0] : memref<32x400xf32, #tpu.memory_space<vmem>>, vector<32x400xf32>
    %c0_1 = arith.constant 0 : index
    %c0_2 = arith.constant 0 : index
    %1 = vector.load %arg2[%c0_1, %c0_2] : memref<400x32xf32, #tpu.memory_space<vmem>>, vector<400x32xf32>
    %cst = arith.constant dense<0.000000e+00> : vector<32x32xf32>
    %2 = tpu.matmul %0, %1, %cst {dimension_numbers = #tpu.dot_dimension_numbers<[1], [0], [0], [1], [0, 0, 1, 1], [], []>} : vector<32x400xf32>, vector<400x32xf32>, vector<32x32xf32> -> vector<32x32xf32>
    %c0_3 = arith.constant 0 : index
    %c0_4 = arith.constant 0 : index
    %3 = vector.load %arg3[%c0_3, %c0_4] : memref<1x32xf32, #tpu.memory_space<vmem>>, vector<1x32xf32>
    %4 = vector.broadcast %3 : vector<1x32xf32> to vector<32x32xf32>
    %5 = arith.addf %2, %4 : vector<32x32xf32>
    %cst_5 = arith.constant 0.000000e+00 : f32
    %6 = vector.broadcast %cst_5 : f32 to vector<32x32xf32>
    %7 = arith.cmpf oge, %5, %6 : vector<32x32xf32>
    %cst_6 = arith.constant 0.00999999977 : f32
    %8 = vector.broadcast %cst_6 : f32 to vector<32x32xf32>
    %9 = arith.mulf %8, %5 : vector<32x32xf32>
    %10 = arith.select %7, %5, %9 : vector<32x32xi1>, vector<32x32xf32>
    %c0_7 = arith.constant 0 : index
    %c0_8 = arith.constant 0 : index
    %11 = vector.load %arg4[%c0_7, %c0_8] : memref<32x32xf32, #tpu.memory_space<vmem>>, vector<32x32xf32>
    tpu.vector_store %arg4[%c0_7, %c0_8], %10 {strides = array<i32>} : memref<32x32xf32, #tpu.memory_space<vmem>>, vector<32x32xf32>,
    return
  }
  func.func @transform_0(%arg0: i32) -> (i32, i32) {
    %c0_i32 = arith.constant 0 : i32
    %c0_i32_0 = arith.constant 0 : i32
    return %arg0, %c0_i32 : i32, i32
  }
  func.func @transform_1(%arg0: i32) -> (i32, i32) {
    %c0_i32 = arith.constant 0 : i32
    %c0_i32_0 = arith.constant 0 : i32
    %c0_i32_1 = arith.constant 0 : i32
    return %c0_i32, %c0_i32_0 : i32, i32
  }
  func.func @transform_2(%arg0: i32) -> (i32, i32) {
    %c0_i32 = arith.constant 0 : i32
    %c0_i32_0 = arith.constant 0 : i32
    %c0_i32_1 = arith.constant 0 : i32
    return %c0_i32, %c0_i32_0 : i32, i32
  }
  func.func @transform_3(%arg0: i32) -> (i32, i32) {
    %c0_i32 = arith.constant 0 : i32
    %c0_i32_0 = arith.constant 0 : i32
    return %arg0, %c0_i32 : i32, i32
  }
}

module attributes {stable_mosaic.version = 11 : i64} {
  func.func @_linear_act_kernel(%arg0: i32, %arg1: memref<8x288xf32, #tpu.memory_space<vmem>>, %arg2: memref<288x64xf32, #tpu.memory_space<vmem>>, %arg3: memref<1x64xf32, #tpu.memory_space<vmem>>, %arg4: memref<8x64xf32, #tpu.memory_space<vmem>>) attributes {dimension_semantics = [#tpu.dimension_semantics<parallel>], iteration_bounds = array<i64: 1>, scalar_prefetch = 0 : i64, scratch_operands = 0 : i64, tpu.core_type = #tpu.core_type<tc>, window_params = [{transform_indices = @transform_0, window_bounds = array<i64: 8, 288>}, {pipeline_mode = #tpu.pipeline_mode<synchronous>, transform_indices = @transform_1, window_bounds = array<i64: 288, 64>}, {pipeline_mode = #tpu.pipeline_mode<synchronous>, transform_indices = @transform_2, window_bounds = array<i64: 1, 64>}, {transform_indices = @transform_3, window_bounds = array<i64: 8, 64>}]} {
    %c0 = arith.constant 0 : index
    %c0_0 = arith.constant 0 : index
    %0 = vector.load %arg1[%c0, %c0_0] : memref<8x288xf32, #tpu.memory_space<vmem>>, vector<8x288xf32>
    %c0_1 = arith.constant 0 : index
    %c0_2 = arith.constant 0 : index
    %1 = vector.load %arg2[%c0_1, %c0_2] : memref<288x64xf32, #tpu.memory_space<vmem>>, vector<288x64xf32>
    %cst = arith.constant dense<0.000000e+00> : vector<8x64xf32>
    %2 = tpu.matmul %0, %1, %cst {dimension_numbers = #tpu.dot_dimension_numbers<[1], [0], [0], [1], [0, 0, 1, 1], [], []>} : vector<8x288xf32>, vector<288x64xf32>, vector<8x64xf32> -> vector<8x64xf32>
    %c0_3 = arith.constant 0 : index
    %c0_4 = arith.constant 0 : index
    %3 = vector.load %arg3[%c0_3, %c0_4] : memref<1x64xf32, #tpu.memory_space<vmem>>, vector<1x64xf32>
    %4 = vector.broadcast %3 : vector<1x64xf32> to vector<8x64xf32>
    %5 = arith.addf %2, %4 : vector<8x64xf32>
    %cst_5 = arith.constant 0.000000e+00 : f32
    %6 = vector.broadcast %cst_5 : f32 to vector<8x64xf32>
    %7 = arith.cmpf oge, %5, %6 : vector<8x64xf32>
    %cst_6 = arith.constant 0.00999999977 : f32
    %8 = vector.broadcast %cst_6 : f32 to vector<8x64xf32>
    %9 = arith.mulf %8, %5 : vector<8x64xf32>
    %10 = arith.select %7, %5, %9 : vector<8x64xi1>, vector<8x64xf32>
    %c0_7 = arith.constant 0 : index
    %c0_8 = arith.constant 0 : index
    %11 = vector.load %arg4[%c0_7, %c0_8] : memref<8x64xf32, #tpu.memory_space<vmem>>, vector<8x64xf32>
    tpu.vector_store %arg4[%c0_7, %c0_8], %10 {strides = array<i32>} : memref<8x64xf32, #tpu.memory_space<vmem>>, vector<8x64xf32>,
    return
  }
  func.func @transform_0(%arg0: i32) -> (i32, i32) {
    %c0_i32 = arith.constant 0 : i32
    %c0_i32_0 = arith.constant 0 : i32
    return %arg0, %c0_i32 : i32, i32
  }
  func.func @transform_1(%arg0: i32) -> (i32, i32) {
    %c0_i32 = arith.constant 0 : i32
    %c0_i32_0 = arith.constant 0 : i32
    %c0_i32_1 = arith.constant 0 : i32
    return %c0_i32, %c0_i32_0 : i32, i32
  }
  func.func @transform_2(%arg0: i32) -> (i32, i32) {
    %c0_i32 = arith.constant 0 : i32
    %c0_i32_0 = arith.constant 0 : i32
    %c0_i32_1 = arith.constant 0 : i32
    return %c0_i32, %c0_i32_0 : i32, i32
  }
  func.func @transform_3(%arg0: i32) -> (i32, i32) {
    %c0_i32 = arith.constant 0 : i32
    %c0_i32_0 = arith.constant 0 : i32
    return %arg0, %c0_i32 : i32, i32
  }
}

module attributes {stable_mosaic.version = 11 : i64} {
  func.func @_linear_act_kernel(%arg0: i32, %arg1: memref<8x64xf32, #tpu.memory_space<vmem>>, %arg2: memref<64x10xf32, #tpu.memory_space<vmem>>, %arg3: memref<1x10xf32, #tpu.memory_space<vmem>>, %arg4: memref<8x10xf32, #tpu.memory_space<vmem>>) attributes {dimension_semantics = [#tpu.dimension_semantics<parallel>], iteration_bounds = array<i64: 1>, scalar_prefetch = 0 : i64, scratch_operands = 0 : i64, tpu.core_type = #tpu.core_type<tc>, window_params = [{transform_indices = @transform_0, window_bounds = array<i64: 8, 64>}, {pipeline_mode = #tpu.pipeline_mode<synchronous>, transform_indices = @transform_1, window_bounds = array<i64: 64, 10>}, {pipeline_mode = #tpu.pipeline_mode<synchronous>, transform_indices = @transform_2, window_bounds = array<i64: 1, 10>}, {transform_indices = @transform_3, window_bounds = array<i64: 8, 10>}]} {
    %c0 = arith.constant 0 : index
    %c0_0 = arith.constant 0 : index
    %0 = vector.load %arg1[%c0, %c0_0] : memref<8x64xf32, #tpu.memory_space<vmem>>, vector<8x64xf32>
    %c0_1 = arith.constant 0 : index
    %c0_2 = arith.constant 0 : index
    %1 = vector.load %arg2[%c0_1, %c0_2] : memref<64x10xf32, #tpu.memory_space<vmem>>, vector<64x10xf32>
    %cst = arith.constant dense<0.000000e+00> : vector<8x10xf32>
    %2 = tpu.matmul %0, %1, %cst {dimension_numbers = #tpu.dot_dimension_numbers<[1], [0], [0], [1], [0, 0, 1, 1], [], []>} : vector<8x64xf32>, vector<64x10xf32>, vector<8x10xf32> -> vector<8x10xf32>
    %c0_3 = arith.constant 0 : index
    %c0_4 = arith.constant 0 : index
    %3 = vector.load %arg3[%c0_3, %c0_4] : memref<1x10xf32, #tpu.memory_space<vmem>>, vector<1x10xf32>
    %4 = vector.broadcast %3 : vector<1x10xf32> to vector<8x10xf32>
    %5 = arith.addf %2, %4 : vector<8x10xf32>
    %c0_5 = arith.constant 0 : index
    %c0_6 = arith.constant 0 : index
    %6 = vector.load %arg4[%c0_5, %c0_6] : memref<8x10xf32, #tpu.memory_space<vmem>>, vector<8x10xf32>
    tpu.vector_store %arg4[%c0_5, %c0_6], %5 {strides = array<i32>} : memref<8x10xf32, #tpu.memory_space<vmem>>, vector<8x10xf32>,
    return
  }
  func.func @transform_0(%arg0: i32) -> (i32, i32) {
    %c0_i32 = arith.constant 0 : i32
    %c0_i32_0 = arith.constant 0 : i32
    return %arg0, %c0_i32 : i32, i32
  }
  func.func @transform_1(%arg0: i32) -> (i32, i32) {
    %c0_i32 = arith.constant 0 : i32
    %c0_i32_0 = arith.constant 0 : i32
    %c0_i32_1 = arith.constant 0 : i32
    return %c0_i32, %c0_i32_0 : i32, i32
  }
  func.func @transform_2(%arg0: i32) -> (i32, i32) {
    %c0_i32 = arith.constant 0 : i32
    %c0_i32_0 = arith.constant 0 : i32
    %c0_i32_1 = arith.constant 0 : i32
    return %c0_i32, %c0_i32_0 : i32, i32
  }
  func.func @transform_3(%arg0: i32) -> (i32, i32) {
    %c0_i32 = arith.constant 0 : i32
    %c0_i32_0 = arith.constant 0 : i32
    return %arg0, %c0_i32 : i32, i32
  }
}

module attributes {stable_mosaic.version = 11 : i64} {
  func.func @_linear_act_kernel(%arg0: i32, %arg1: memref<8x10xf32, #tpu.memory_space<vmem>>, %arg2: memref<10x64xf32, #tpu.memory_space<vmem>>, %arg3: memref<1x64xf32, #tpu.memory_space<vmem>>, %arg4: memref<8x64xf32, #tpu.memory_space<vmem>>) attributes {dimension_semantics = [#tpu.dimension_semantics<parallel>], iteration_bounds = array<i64: 1>, scalar_prefetch = 0 : i64, scratch_operands = 0 : i64, tpu.core_type = #tpu.core_type<tc>, window_params = [{transform_indices = @transform_0, window_bounds = array<i64: 8, 10>}, {pipeline_mode = #tpu.pipeline_mode<synchronous>, transform_indices = @transform_1, window_bounds = array<i64: 10, 64>}, {pipeline_mode = #tpu.pipeline_mode<synchronous>, transform_indices = @transform_2, window_bounds = array<i64: 1, 64>}, {transform_indices = @transform_3, window_bounds = array<i64: 8, 64>}]} {
    %c0 = arith.constant 0 : index
    %c0_0 = arith.constant 0 : index
    %0 = vector.load %arg1[%c0, %c0_0] : memref<8x10xf32, #tpu.memory_space<vmem>>, vector<8x10xf32>
    %c0_1 = arith.constant 0 : index
    %c0_2 = arith.constant 0 : index
    %1 = vector.load %arg2[%c0_1, %c0_2] : memref<10x64xf32, #tpu.memory_space<vmem>>, vector<10x64xf32>
    %cst = arith.constant dense<0.000000e+00> : vector<8x64xf32>
    %2 = tpu.matmul %0, %1, %cst {dimension_numbers = #tpu.dot_dimension_numbers<[1], [0], [0], [1], [0, 0, 1, 1], [], []>} : vector<8x10xf32>, vector<10x64xf32>, vector<8x64xf32> -> vector<8x64xf32>
    %c0_3 = arith.constant 0 : index
    %c0_4 = arith.constant 0 : index
    %3 = vector.load %arg3[%c0_3, %c0_4] : memref<1x64xf32, #tpu.memory_space<vmem>>, vector<1x64xf32>
    %4 = vector.broadcast %3 : vector<1x64xf32> to vector<8x64xf32>
    %5 = arith.addf %2, %4 : vector<8x64xf32>
    %cst_5 = arith.constant 0.000000e+00 : f32
    %6 = vector.broadcast %cst_5 : f32 to vector<8x64xf32>
    %7 = arith.cmpf oge, %5, %6 : vector<8x64xf32>
    %cst_6 = arith.constant 0.00999999977 : f32
    %8 = vector.broadcast %cst_6 : f32 to vector<8x64xf32>
    %9 = arith.mulf %8, %5 : vector<8x64xf32>
    %10 = arith.select %7, %5, %9 : vector<8x64xi1>, vector<8x64xf32>
    %c0_7 = arith.constant 0 : index
    %c0_8 = arith.constant 0 : index
    %11 = vector.load %arg4[%c0_7, %c0_8] : memref<8x64xf32, #tpu.memory_space<vmem>>, vector<8x64xf32>
    tpu.vector_store %arg4[%c0_7, %c0_8], %10 {strides = array<i32>} : memref<8x64xf32, #tpu.memory_space<vmem>>, vector<8x64xf32>,
    return
  }
  func.func @transform_0(%arg0: i32) -> (i32, i32) {
    %c0_i32 = arith.constant 0 : i32
    %c0_i32_0 = arith.constant 0 : i32
    return %arg0, %c0_i32 : i32, i32
  }
  func.func @transform_1(%arg0: i32) -> (i32, i32) {
    %c0_i32 = arith.constant 0 : i32
    %c0_i32_0 = arith.constant 0 : i32
    %c0_i32_1 = arith.constant 0 : i32
    return %c0_i32, %c0_i32_0 : i32, i32
  }
  func.func @transform_2(%arg0: i32) -> (i32, i32) {
    %c0_i32 = arith.constant 0 : i32
    %c0_i32_0 = arith.constant 0 : i32
    %c0_i32_1 = arith.constant 0 : i32
    return %c0_i32, %c0_i32_0 : i32, i32
  }
  func.func @transform_3(%arg0: i32) -> (i32, i32) {
    %c0_i32 = arith.constant 0 : i32
    %c0_i32_0 = arith.constant 0 : i32
    return %arg0, %c0_i32 : i32, i32
  }
}

module attributes {stable_mosaic.version = 11 : i64} {
  func.func @_linear_act_kernel(%arg0: i32, %arg1: memref<32x576xf32, #tpu.memory_space<vmem>>, %arg2: memref<576x32xf32, #tpu.memory_space<vmem>>, %arg3: memref<1x32xf32, #tpu.memory_space<vmem>>, %arg4: memref<32x32xf32, #tpu.memory_space<vmem>>) attributes {dimension_semantics = [#tpu.dimension_semantics<parallel>], iteration_bounds = array<i64: 1>, scalar_prefetch = 0 : i64, scratch_operands = 0 : i64, tpu.core_type = #tpu.core_type<tc>, window_params = [{transform_indices = @transform_0, window_bounds = array<i64: 32, 576>}, {pipeline_mode = #tpu.pipeline_mode<synchronous>, transform_indices = @transform_1, window_bounds = array<i64: 576, 32>}, {pipeline_mode = #tpu.pipeline_mode<synchronous>, transform_indices = @transform_2, window_bounds = array<i64: 1, 32>}, {transform_indices = @transform_3, window_bounds = array<i64: 32, 32>}]} {
    %c0 = arith.constant 0 : index
    %c0_0 = arith.constant 0 : index
    %0 = vector.load %arg1[%c0, %c0_0] : memref<32x576xf32, #tpu.memory_space<vmem>>, vector<32x576xf32>
    %c0_1 = arith.constant 0 : index
    %c0_2 = arith.constant 0 : index
    %1 = vector.load %arg2[%c0_1, %c0_2] : memref<576x32xf32, #tpu.memory_space<vmem>>, vector<576x32xf32>
    %cst = arith.constant dense<0.000000e+00> : vector<32x32xf32>
    %2 = tpu.matmul %0, %1, %cst {dimension_numbers = #tpu.dot_dimension_numbers<[1], [0], [0], [1], [0, 0, 1, 1], [], []>} : vector<32x576xf32>, vector<576x32xf32>, vector<32x32xf32> -> vector<32x32xf32>
    %c0_3 = arith.constant 0 : index
    %c0_4 = arith.constant 0 : index
    %3 = vector.load %arg3[%c0_3, %c0_4] : memref<1x32xf32, #tpu.memory_space<vmem>>, vector<1x32xf32>
    %4 = vector.broadcast %3 : vector<1x32xf32> to vector<32x32xf32>
    %5 = arith.addf %2, %4 : vector<32x32xf32>
    %cst_5 = arith.constant 0.000000e+00 : f32
    %6 = vector.broadcast %cst_5 : f32 to vector<32x32xf32>
    %7 = arith.cmpf oge, %5, %6 : vector<32x32xf32>
    %cst_6 = arith.constant 0.00999999977 : f32
    %8 = vector.broadcast %cst_6 : f32 to vector<32x32xf32>
    %9 = arith.mulf %8, %5 : vector<32x32xf32>
    %10 = arith.select %7, %5, %9 : vector<32x32xi1>, vector<32x32xf32>
    %c0_7 = arith.constant 0 : index
    %c0_8 = arith.constant 0 : index
    %11 = vector.load %arg4[%c0_7, %c0_8] : memref<32x32xf32, #tpu.memory_space<vmem>>, vector<32x32xf32>
    tpu.vector_store %arg4[%c0_7, %c0_8], %10 {strides = array<i32>} : memref<32x32xf32, #tpu.memory_space<vmem>>, vector<32x32xf32>,
    return
  }
  func.func @transform_0(%arg0: i32) -> (i32, i32) {
    %c0_i32 = arith.constant 0 : i32
    %c0_i32_0 = arith.constant 0 : i32
    return %arg0, %c0_i32 : i32, i32
  }
  func.func @transform_1(%arg0: i32) -> (i32, i32) {
    %c0_i32 = arith.constant 0 : i32
    %c0_i32_0 = arith.constant 0 : i32
    %c0_i32_1 = arith.constant 0 : i32
    return %c0_i32, %c0_i32_0 : i32, i32
  }
  func.func @transform_2(%arg0: i32) -> (i32, i32) {
    %c0_i32 = arith.constant 0 : i32
    %c0_i32_0 = arith.constant 0 : i32
    %c0_i32_1 = arith.constant 0 : i32
    return %c0_i32, %c0_i32_0 : i32, i32
  }
  func.func @transform_3(%arg0: i32) -> (i32, i32) {
    %c0_i32 = arith.constant 0 : i32
    %c0_i32_0 = arith.constant 0 : i32
    return %arg0, %c0_i32 : i32, i32
  }
}

module attributes {stable_mosaic.version = 11 : i64} {
  func.func @_linear_act_kernel(%arg0: i32, %arg1: memref<128x800xf32, #tpu.memory_space<vmem>>, %arg2: memref<800x16xf32, #tpu.memory_space<vmem>>, %arg3: memref<1x16xf32, #tpu.memory_space<vmem>>, %arg4: memref<128x16xf32, #tpu.memory_space<vmem>>) attributes {dimension_semantics = [#tpu.dimension_semantics<parallel>], iteration_bounds = array<i64: 1>, scalar_prefetch = 0 : i64, scratch_operands = 0 : i64, tpu.core_type = #tpu.core_type<tc>, window_params = [{transform_indices = @transform_0, window_bounds = array<i64: 128, 800>}, {pipeline_mode = #tpu.pipeline_mode<synchronous>, transform_indices = @transform_1, window_bounds = array<i64: 800, 16>}, {pipeline_mode = #tpu.pipeline_mode<synchronous>, transform_indices = @transform_2, window_bounds = array<i64: 1, 16>}, {transform_indices = @transform_3, window_bounds = array<i64: 128, 16>}]} {
    %c0 = arith.constant 0 : index
    %c0_0 = arith.constant 0 : index
    %0 = vector.load %arg1[%c0, %c0_0] : memref<128x800xf32, #tpu.memory_space<vmem>>, vector<128x800xf32>
    %c0_1 = arith.constant 0 : index
    %c0_2 = arith.constant 0 : index
    %1 = vector.load %arg2[%c0_1, %c0_2] : memref<800x16xf32, #tpu.memory_space<vmem>>, vector<800x16xf32>
    %cst = arith.constant dense<0.000000e+00> : vector<128x16xf32>
    %2 = tpu.matmul %0, %1, %cst {dimension_numbers = #tpu.dot_dimension_numbers<[1], [0], [0], [1], [0, 0, 1, 1], [], []>} : vector<128x800xf32>, vector<800x16xf32>, vector<128x16xf32> -> vector<128x16xf32>
    %c0_3 = arith.constant 0 : index
    %c0_4 = arith.constant 0 : index
    %3 = vector.load %arg3[%c0_3, %c0_4] : memref<1x16xf32, #tpu.memory_space<vmem>>, vector<1x16xf32>
    %4 = vector.broadcast %3 : vector<1x16xf32> to vector<128x16xf32>
    %5 = arith.addf %2, %4 : vector<128x16xf32>
    %cst_5 = arith.constant 0.000000e+00 : f32
    %6 = vector.broadcast %cst_5 : f32 to vector<128x16xf32>
    %7 = arith.cmpf oge, %5, %6 : vector<128x16xf32>
    %cst_6 = arith.constant 0.00999999977 : f32
    %8 = vector.broadcast %cst_6 : f32 to vector<128x16xf32>
    %9 = arith.mulf %8, %5 : vector<128x16xf32>
    %10 = arith.select %7, %5, %9 : vector<128x16xi1>, vector<128x16xf32>
    %c0_7 = arith.constant 0 : index
    %c0_8 = arith.constant 0 : index
    %11 = vector.load %arg4[%c0_7, %c0_8] : memref<128x16xf32, #tpu.memory_space<vmem>>, vector<128x16xf32>
    tpu.vector_store %arg4[%c0_7, %c0_8], %10 {strides = array<i32>} : memref<128x16xf32, #tpu.memory_space<vmem>>, vector<128x16xf32>,
    return
  }
  func.func @transform_0(%arg0: i32) -> (i32, i32) {
    %c0_i32 = arith.constant 0 : i32
    %c0_i32_0 = arith.constant 0 : i32
    return %arg0, %c0_i32 : i32, i32
  }
  func.func @transform_1(%arg0: i32) -> (i32, i32) {
    %c0_i32 = arith.constant 0 : i32
    %c0_i32_0 = arith.constant 0 : i32
    %c0_i32_1 = arith.constant 0 : i32
    return %c0_i32, %c0_i32_0 : i32, i32
  }
  func.func @transform_2(%arg0: i32) -> (i32, i32) {
    %c0_i32 = arith.constant 0 : i32
    %c0_i32_0 = arith.constant 0 : i32
    %c0_i32_1 = arith.constant 0 : i32
    return %c0_i32, %c0_i32_0 : i32, i32
  }
  func.func @transform_3(%arg0: i32) -> (i32, i32) {
    %c0_i32 = arith.constant 0 : i32
    %c0_i32_0 = arith.constant 0 : i32
    return %arg0, %c0_i32 : i32, i32
  }
}

module attributes {stable_mosaic.version = 11 : i64} {
  func.func @_linear_act_kernel(%arg0: i32, %arg1: memref<512x400xf32, #tpu.memory_space<vmem>>, %arg2: memref<400x8xf32, #tpu.memory_space<vmem>>, %arg3: memref<1x8xf32, #tpu.memory_space<vmem>>, %arg4: memref<512x8xf32, #tpu.memory_space<vmem>>) attributes {dimension_semantics = [#tpu.dimension_semantics<parallel>], iteration_bounds = array<i64: 1>, scalar_prefetch = 0 : i64, scratch_operands = 0 : i64, tpu.core_type = #tpu.core_type<tc>, window_params = [{transform_indices = @transform_0, window_bounds = array<i64: 512, 400>}, {pipeline_mode = #tpu.pipeline_mode<synchronous>, transform_indices = @transform_1, window_bounds = array<i64: 400, 8>}, {pipeline_mode = #tpu.pipeline_mode<synchronous>, transform_indices = @transform_2, window_bounds = array<i64: 1, 8>}, {transform_indices = @transform_3, window_bounds = array<i64: 512, 8>}]} {
    %c0 = arith.constant 0 : index
    %c0_0 = arith.constant 0 : index
    %0 = vector.load %arg1[%c0, %c0_0] : memref<512x400xf32, #tpu.memory_space<vmem>>, vector<512x400xf32>
    %c0_1 = arith.constant 0 : index
    %c0_2 = arith.constant 0 : index
    %1 = vector.load %arg2[%c0_1, %c0_2] : memref<400x8xf32, #tpu.memory_space<vmem>>, vector<400x8xf32>
    %cst = arith.constant dense<0.000000e+00> : vector<512x8xf32>
    %2 = tpu.matmul %0, %1, %cst {dimension_numbers = #tpu.dot_dimension_numbers<[1], [0], [0], [1], [0, 0, 1, 1], [], []>} : vector<512x400xf32>, vector<400x8xf32>, vector<512x8xf32> -> vector<512x8xf32>
    %c0_3 = arith.constant 0 : index
    %c0_4 = arith.constant 0 : index
    %3 = vector.load %arg3[%c0_3, %c0_4] : memref<1x8xf32, #tpu.memory_space<vmem>>, vector<1x8xf32>
    %4 = vector.broadcast %3 : vector<1x8xf32> to vector<512x8xf32>
    %5 = arith.addf %2, %4 : vector<512x8xf32>
    %cst_5 = arith.constant 0.000000e+00 : f32
    %6 = vector.broadcast %cst_5 : f32 to vector<512x8xf32>
    %7 = arith.cmpf oge, %5, %6 : vector<512x8xf32>
    %cst_6 = arith.constant 0.00999999977 : f32
    %8 = vector.broadcast %cst_6 : f32 to vector<512x8xf32>
    %9 = arith.mulf %8, %5 : vector<512x8xf32>
    %10 = arith.select %7, %5, %9 : vector<512x8xi1>, vector<512x8xf32>
    %c0_7 = arith.constant 0 : index
    %c0_8 = arith.constant 0 : index
    %11 = vector.load %arg4[%c0_7, %c0_8] : memref<512x8xf32, #tpu.memory_space<vmem>>, vector<512x8xf32>
    tpu.vector_store %arg4[%c0_7, %c0_8], %10 {strides = array<i32>} : memref<512x8xf32, #tpu.memory_space<vmem>>, vector<512x8xf32>,
    return
  }
  func.func @transform_0(%arg0: i32) -> (i32, i32) {
    %c0_i32 = arith.constant 0 : i32
    %c0_i32_0 = arith.constant 0 : i32
    return %arg0, %c0_i32 : i32, i32
  }
  func.func @transform_1(%arg0: i32) -> (i32, i32) {
    %c0_i32 = arith.constant 0 : i32
    %c0_i32_0 = arith.constant 0 : i32
    %c0_i32_1 = arith.constant 0 : i32
    return %c0_i32, %c0_i32_0 : i32, i32
  }
  func.func @transform_2(%arg0: i32) -> (i32, i32) {
    %c0_i32 = arith.constant 0 : i32
    %c0_i32_0 = arith.constant 0 : i32
    %c0_i32_1 = arith.constant 0 : i32
    return %c0_i32, %c0_i32_0 : i32, i32
  }
  func.func @transform_3(%arg0: i32) -> (i32, i32) {
    %c0_i32 = arith.constant 0 : i32
    %c0_i32_0 = arith.constant 0 : i32
    return %arg0, %c0_i32 : i32, i32
  }
}

module attributes {stable_mosaic.version = 11 : i64} {
  func.func @_linear_act_kernel(%arg0: i32, %arg1: memref<512x200xf32, #tpu.memory_space<vmem>>, %arg2: memref<200x3xf32, #tpu.memory_space<vmem>>, %arg3: memref<1x3xf32, #tpu.memory_space<vmem>>, %arg4: memref<512x3xf32, #tpu.memory_space<vmem>>) attributes {dimension_semantics = [#tpu.dimension_semantics<parallel>], iteration_bounds = array<i64: 4>, scalar_prefetch = 0 : i64, scratch_operands = 0 : i64, tpu.core_type = #tpu.core_type<tc>, window_params = [{transform_indices = @transform_0, window_bounds = array<i64: 512, 200>}, {pipeline_mode = #tpu.pipeline_mode<synchronous>, transform_indices = @transform_1, window_bounds = array<i64: 200, 3>}, {pipeline_mode = #tpu.pipeline_mode<synchronous>, transform_indices = @transform_2, window_bounds = array<i64: 1, 3>}, {transform_indices = @transform_3, window_bounds = array<i64: 512, 3>}]} {
    %c0 = arith.constant 0 : index
    %c0_0 = arith.constant 0 : index
    %0 = vector.load %arg1[%c0, %c0_0] : memref<512x200xf32, #tpu.memory_space<vmem>>, vector<512x200xf32>
    %c0_1 = arith.constant 0 : index
    %c0_2 = arith.constant 0 : index
    %1 = vector.load %arg2[%c0_1, %c0_2] : memref<200x3xf32, #tpu.memory_space<vmem>>, vector<200x3xf32>
    %cst = arith.constant dense<0.000000e+00> : vector<512x3xf32>
    %2 = tpu.matmul %0, %1, %cst {dimension_numbers = #tpu.dot_dimension_numbers<[1], [0], [0], [1], [0, 0, 1, 1], [], []>} : vector<512x200xf32>, vector<200x3xf32>, vector<512x3xf32> -> vector<512x3xf32>
    %c0_3 = arith.constant 0 : index
    %c0_4 = arith.constant 0 : index
    %3 = vector.load %arg3[%c0_3, %c0_4] : memref<1x3xf32, #tpu.memory_space<vmem>>, vector<1x3xf32>
    %4 = vector.broadcast %3 : vector<1x3xf32> to vector<512x3xf32>
    %5 = arith.addf %2, %4 : vector<512x3xf32>
    %c0_5 = arith.constant 0 : index
    %c0_6 = arith.constant 0 : index
    %6 = vector.load %arg4[%c0_5, %c0_6] : memref<512x3xf32, #tpu.memory_space<vmem>>, vector<512x3xf32>
    tpu.vector_store %arg4[%c0_5, %c0_6], %5 {strides = array<i32>} : memref<512x3xf32, #tpu.memory_space<vmem>>, vector<512x3xf32>,
    return
  }
  func.func @transform_0(%arg0: i32) -> (i32, i32) {
    %c0_i32 = arith.constant 0 : i32
    %c0_i32_0 = arith.constant 0 : i32
    return %arg0, %c0_i32 : i32, i32
  }
  func.func @transform_1(%arg0: i32) -> (i32, i32) {
    %c0_i32 = arith.constant 0 : i32
    %c0_i32_0 = arith.constant 0 : i32
    %c0_i32_1 = arith.constant 0 : i32
    return %c0_i32, %c0_i32_0 : i32, i32
  }
  func.func @transform_2(%arg0: i32) -> (i32, i32) {
    %c0_i32 = arith.constant 0 : i32
    %c0_i32_0 = arith.constant 0 : i32
    %c0_i32_1 = arith.constant 0 : i32
    return %c0_i32, %c0_i32_0 : i32, i32
  }
  func.func @transform_3(%arg0: i32) -> (i32, i32) {
    %c0_i32 = arith.constant 0 : i32
    %c0_i32_0 = arith.constant 0 : i32
    return %arg0, %c0_i32 : i32, i32
  }
}

module attributes {stable_mosaic.version = 11 : i64} {
  func.func @_cluster_kernel(%arg0: i32, %arg1: memref<8x10xf32, #tpu.memory_space<vmem>>, %arg2: memref<10x10xf32, #tpu.memory_space<vmem>>, %arg3: memref<1x10xf32, #tpu.memory_space<vmem>>, %arg4: memref<8x10xf32, #tpu.memory_space<vmem>>) attributes {dimension_semantics = [#tpu.dimension_semantics<parallel>], iteration_bounds = array<i64: 1>, scalar_prefetch = 0 : i64, scratch_operands = 0 : i64, tpu.core_type = #tpu.core_type<tc>, window_params = [{transform_indices = @transform_0, window_bounds = array<i64: 8, 10>}, {pipeline_mode = #tpu.pipeline_mode<synchronous>, transform_indices = @transform_1, window_bounds = array<i64: 10, 10>}, {pipeline_mode = #tpu.pipeline_mode<synchronous>, transform_indices = @transform_2, window_bounds = array<i64: 1, 10>}, {transform_indices = @transform_3, window_bounds = array<i64: 8, 10>}]} {
    %c0 = arith.constant 0 : index
    %c0_0 = arith.constant 0 : index
    %0 = vector.load %arg1[%c0, %c0_0] : memref<8x10xf32, #tpu.memory_space<vmem>>, vector<8x10xf32>
    %1 = arith.mulf %0, %0 : vector<8x10xf32>
    %cst = arith.constant dense<0.000000e+00> : vector<8xf32>
    %2 = vector.multi_reduction <add>, %1, %cst [1] : vector<8x10xf32> to vector<8xf32>
    %3 = vector.shape_cast %2 : vector<8xf32> to vector<8x1xf32>
    %c0_1 = arith.constant 0 : index
    %c0_2 = arith.constant 0 : index
    %4 = vector.load %arg2[%c0_1, %c0_2] : memref<10x10xf32, #tpu.memory_space<vmem>>, vector<10x10xf32>
    %cst_3 = arith.constant dense<0.000000e+00> : vector<8x10xf32>
    %5 = tpu.matmul %0, %4, %cst_3 {dimension_numbers = #tpu.dot_dimension_numbers<[1], [0], [0], [1], [0, 0, 1, 1], [], []>} : vector<8x10xf32>, vector<10x10xf32>, vector<8x10xf32> -> vector<8x10xf32>
    %c0_4 = arith.constant 0 : index
    %c0_5 = arith.constant 0 : index
    %6 = vector.load %arg3[%c0_4, %c0_5] : memref<1x10xf32, #tpu.memory_space<vmem>>, vector<1x10xf32>
    %7 = vector.broadcast %3 : vector<8x1xf32> to vector<8x10xf32>
    %8 = vector.broadcast %6 : vector<1x10xf32> to vector<8x10xf32>
    %9 = arith.addf %7, %8 : vector<8x10xf32>
    %cst_6 = arith.constant 2.000000e+00 : f32
    %10 = vector.broadcast %cst_6 : f32 to vector<8x10xf32>
    %11 = arith.mulf %10, %5 : vector<8x10xf32>
    %12 = arith.subf %9, %11 : vector<8x10xf32>
    %cst_7 = arith.constant 0.000000e+00 : f32
    %13 = vector.broadcast %cst_7 : f32 to vector<8x10xf32>
    %14 = arith.maximumf %12, %13 : vector<8x10xf32>
    %cst_8 = arith.constant 1.000000e+00 : f32
    %15 = vector.broadcast %cst_8 : f32 to vector<8x10xf32>
    %16 = arith.divf %14, %15 : vector<8x10xf32>
    %cst_9 = arith.constant 1.000000e+00 : f32
    %17 = vector.broadcast %cst_9 : f32 to vector<8x10xf32>
    %18 = arith.addf %17, %16 : vector<8x10xf32>
    %cst_10 = arith.constant 1.000000e+00 : f32
    %19 = vector.broadcast %cst_10 : f32 to vector<8x10xf32>
    %20 = arith.divf %19, %18 : vector<8x10xf32>
    %cst_11 = arith.constant dense<0.000000e+00> : vector<8xf32>
    %21 = vector.multi_reduction <add>, %20, %cst_11 [1] : vector<8x10xf32> to vector<8xf32>
    %22 = vector.shape_cast %21 : vector<8xf32> to vector<8x1xf32>
    %23 = vector.broadcast %22 : vector<8x1xf32> to vector<8x10xf32>
    %24 = arith.divf %20, %23 : vector<8x10xf32>
    %c0_12 = arith.constant 0 : index
    %c0_13 = arith.constant 0 : index
    %25 = vector.load %arg4[%c0_12, %c0_13] : memref<8x10xf32, #tpu.memory_space<vmem>>, vector<8x10xf32>
    tpu.vector_store %arg4[%c0_12, %c0_13], %24 {strides = array<i32>} : memref<8x10xf32, #tpu.memory_space<vmem>>, vector<8x10xf32>,
    return
  }
  func.func @transform_0(%arg0: i32) -> (i32, i32) {
    %c0_i32 = arith.constant 0 : i32
    %c0_i32_0 = arith.constant 0 : i32
    return %arg0, %c0_i32 : i32, i32
  }
  func.func @transform_1(%arg0: i32) -> (i32, i32) {
    %c0_i32 = arith.constant 0 : i32
    %c0_i32_0 = arith.constant 0 : i32
    %c0_i32_1 = arith.constant 0 : i32
    return %c0_i32, %c0_i32_0 : i32, i32
  }
  func.func @transform_2(%arg0: i32) -> (i32, i32) {
    %c0_i32 = arith.constant 0 : i32
    %c0_i32_0 = arith.constant 0 : i32
    %c0_i32_1 = arith.constant 0 : i32
    return %c0_i32, %c0_i32_0 : i32, i32
  }
  func.func @transform_3(%arg0: i32) -> (i32, i32) {
    %c0_i32 = arith.constant 0 : i32
    %c0_i32_0 = arith.constant 0 : i32
    return %arg0, %c0_i32 : i32, i32
  }
}

</mosaic_0001>

<bundles_post_ra>
// kernel: cae4_forward.11
= control target key start
LH: loop header
LB: loop body
LE: loop exit
PB: predicated region body
PF: predicated region fallthrough
CT: control target
= control target key end

     0   :  { %vm285_vm0 = vcmask 1042432   ;;  %vm92_vm1 = vcmask 613376   ;;  %vm690_vm2 = vcmask 64512   ;;  %s1486_s1 = inlined_call_operand.vmem [shape: f32[75,8], index: 1, kind: input, shape index: {}]   ;;  %s1487_s0 = inlined_call_operand.vmem [shape: f32[512,75], index: 0, kind: input, shape index: {}]   ;;  %s1488_s2 = inlined_call_operand.vmem [shape: f32[1,8], index: 2, kind: input, shape index: {}]   ;;  %s1489_s3 = inlined_call_operand.vmem [shape: f32[512,8], index: 3, kind: output, shape index: {}]  }
   0x1   :  { %v87_v0 = vld [vmem:[%s1486_s1 + $0x48] sm:$0x7]  ;;  %v86_v1 = vld [vmem:[%s1486_s1 + $0x40] sm:$0xff]  ;;  %v85_v2 = vld [vmem:[%s1486_s1 + $0x38] sm:$0xff] }
   0x2   :  { %825 = vmatpush.msk.msra.mxu2 %vm285_vm0, %v87_v0  ;;  %826 = vmatpush.msk.msra.mxu3 %vm285_vm0, %v87_v0  ;;  %v84_v3 = vld [vmem:[%s1486_s1 + $0x30] sm:$0xff]  ;;  %v83_v4 = vld [vmem:[%s1486_s1 + $0x28] sm:$0xff]  ;;  %v82_v5 = vld [vmem:[%s1486_s1 + $0x20] sm:$0xff] }
   0x3   :  { %759 = vmatpush.msk.msra.mxu0 %vm285_vm0, %v87_v0  ;;  %824 = vmatpush.msk.msra.mxu1 %vm285_vm0, %v87_v0  ;;  %v81_v6 = vld [vmem:[%s1486_s1 + $0x18] sm:$0xff]  ;;  %v80_v7 = vld [vmem:[%s1486_s1 + $0x10] sm:$0xff]  ;;  %v79_v8 = vld [vmem:[%s1486_s1 + $0x8] sm:$0xff] }
   0x4   :  { %828 = vmatpush.msra.mxu2 %v86_v1  ;;  %829 = vmatpush.msra.mxu3 %v86_v1  ;;  %v78_v9 = vld [vmem:[%s1486_s1] sm:$0xff]  ;;  %v47_v14 = vld [vmem:[%s1487_s0 + $0x108] sm:$0xff]  ;;  %v48_v18 = vld [vmem:[%s1487_s0 + $0x110] sm:$0xff] }
   0x5   :  { %296 = vmatpush.msra.mxu0 %v86_v1  ;;  %827 = vmatpush.msra.mxu1 %v86_v1  ;;  %v46_v10 = vld [vmem:[%s1487_s0 + $0x100] sm:$0xff]  ;;  %v63_v15 = vld [vmem:[%s1487_s0 + $0x188] sm:$0xff]  ;;  %v64_v19 = vld [vmem:[%s1487_s0 + $0x190] sm:$0xff] }
   0x6   :  { %831 = vmatpush.msra.mxu2 %v85_v2  ;;  %832 = vmatpush.msra.mxu3 %v85_v2  ;;  %v62_v11 = vld [vmem:[%s1487_s0 + $0x180] sm:$0xff]  ;;  %v15_v16 = vld [vmem:[%s1487_s0 + $0x8] sm:$0xff]  ;;  %v16_v20 = vld [vmem:[%s1487_s0 + $0x10] sm:$0xff] }
   0x7   :  { %297 = vmatpush.msra.mxu0 %v85_v2  ;;  %830 = vmatpush.msra.mxu1 %v85_v2  ;;  %v14_v12 = vld [vmem:[%s1487_s0] sm:$0xff]  ;;  %v31_v17 = vld [vmem:[%s1487_s0 + $0x88] sm:$0xff]  ;;  %v32_v21 = vld [vmem:[%s1487_s0 + $0x90] sm:$0xff] }
   0x8   :  { %834 = vmatpush.msra.mxu2 %v84_v3  ;;  %835 = vmatpush.msra.mxu3 %v84_v3  ;;  %v30_v13 = vld [vmem:[%s1487_s0 + $0x80] sm:$0xff]  ;;  %v49_v22 = vld [vmem:[%s1487_s0 + $0x118] sm:$0xff]  ;;  %v51_v30 = vld [vmem:[%s1487_s0 + $0x128] sm:$0xff] }
   0x9   :  { %298 = vmatpush.msra.mxu0 %v84_v3  ;;  %833 = vmatpush.msra.mxu1 %v84_v3  ;;  %v65_v23 = vld [vmem:[%s1487_s0 + $0x198] sm:$0xff]  ;;  %v50_v26 = vld [vmem:[%s1487_s0 + $0x120] sm:$0xff]  ;;  %v67_v31 = vld [vmem:[%s1487_s0 + $0x1a8] sm:$0xff] }
   0xa   :  { %837 = vmatpush.msra.mxu2 %v83_v4  ;;  %838 = vmatpush.msra.mxu3 %v83_v4  ;;  %v17_v24 = vld [vmem:[%s1487_s0 + $0x18] sm:$0xff]  ;;  %v66_v27 = vld [vmem:[%s1487_s0 + $0x1a0] sm:$0xff]  ;;  %v19_v32 = vld [vmem:[%s1487_s0 + $0x28] sm:$0xff] }
   0xb   :  { %299 = vmatpush.msra.mxu0 %v83_v4  ;;  %836 = vmatpush.msra.mxu1 %v83_v4  ;;  %v33_v25 = vld [vmem:[%s1487_s0 + $0x98] sm:$0xff]  ;;  %v18_v28 = vld [vmem:[%s1487_s0 + $0x20] sm:$0xff]  ;;  %v35_v33 = vld [vmem:[%s1487_s0 + $0xa8] sm:$0xff] }
   0xc   :  { %840 = vmatpush.msra.mxu2 %v82_v5  ;;  %841 = vmatpush.msra.mxu3 %v82_v5  ;;  %v34_v29 = vld [vmem:[%s1487_s0 + $0xa0] sm:$0xff]  ;;  %v52_v34 = vld [vmem:[%s1487_s0 + $0x130] sm:$0xff]  ;;  %v53_v38 = vld [vmem:[%s1487_s0 + $0x138] sm:$0xff] }
   0xd   :  { %300 = vmatpush.msra.mxu0 %v82_v5  ;;  %839 = vmatpush.msra.mxu1 %v82_v5  ;;  %v68_v35 = vld [vmem:[%s1487_s0 + $0x1b0] sm:$0xff]  ;;  %v69_v39 = vld [vmem:[%s1487_s0 + $0x1b8] sm:$0xff]  ;;  %v54_v42 = vld [vmem:[%s1487_s0 + $0x140] sm:$0xff] }
   0xe   :  { %843 = vmatpush.msra.mxu2 %v81_v6  ;;  %844 = vmatpush.msra.mxu3 %v81_v6  ;;  %v20_v36 = vld [vmem:[%s1487_s0 + $0x30] sm:$0xff]  ;;  %v21_v40 = vld [vmem:[%s1487_s0 + $0x38] sm:$0xff]  ;;  %v70_v43 = vld [vmem:[%s1487_s0 + $0x1c0] sm:$0xff] }
   0xf   :  { %301 = vmatpush.msra.mxu0 %v81_v6  ;;  %842 = vmatpush.msra.mxu1 %v81_v6  ;;  %v36_v37 = vld [vmem:[%s1487_s0 + $0xb0] sm:$0xff]  ;;  %v37_v41 = vld [vmem:[%s1487_s0 + $0xb8] sm:$0xff]  ;;  %v22_v44 = vld [vmem:[%s1487_s0 + $0x40] sm:$0xff] }
  0x10   :  { %846 = vmatpush.msra.mxu2 %v80_v7  ;;  %847 = vmatpush.msra.mxu3 %v80_v7  ;;  %v38_v45 = vld [vmem:[%s1487_s0 + $0xc0] sm:$0xff]  ;;  %v55_v46 = vld [vmem:[%s1487_s0 + $0x148] sm:$0xff]  ;;  %v56_v50 = vld [vmem:[%s1487_s0 + $0x150] sm:$0xff] }
  0x11   :  { %302 = vmatpush.msra.mxu0 %v80_v7  ;;  %845 = vmatpush.msra.mxu1 %v80_v7  ;;  %v71_v47 = vld [vmem:[%s1487_s0 + $0x1c8] sm:$0xff]  ;;  %v72_v51 = vld [vmem:[%s1487_s0 + $0x1d0] sm:$0xff]  ;;  %v57_v54 = vld [vmem:[%s1487_s0 + $0x158] sm:$0xff] }
  0x12   :  { %849 = vmatpush.msra.mxu2 %v79_v8  ;;  %850 = vmatpush.msra.mxu3 %v79_v8  ;;  %v23_v48 = vld [vmem:[%s1487_s0 + $0x48] sm:$0xff]  ;;  %v24_v52 = vld [vmem:[%s1487_s0 + $0x50] sm:$0xff]  ;;  %v73_v55 = vld [vmem:[%s1487_s0 + $0x1d8] sm:$0xff] }
  0x13   :  { %303 = vmatpush.msra.mxu0 %v79_v8  ;;  %848 = vmatpush.msra.mxu1 %v79_v8  ;;  %v39_v49 = vld [vmem:[%s1487_s0 + $0xc8] sm:$0xff]  ;;  %v40_v53 = vld [vmem:[%s1487_s0 + $0xd0] sm:$0xff]  ;;  %v25_v56 = vld [vmem:[%s1487_s0 + $0x58] sm:$0xff] }
  0x14   :  { %852 = vmatpush.msra.mxu2 %v78_v9  ;;  %853 = vmatpush.msra.mxu3 %v78_v9  ;;  %v41_v57 = vld [vmem:[%s1487_s0 + $0xd8] sm:$0xff]  ;;  %v58_v58 = vld [vmem:[%s1487_s0 + $0x160] sm:$0xff]  ;;  %v59_v62 = vld [vmem:[%s1487_s0 + $0x168] sm:$0xff] }
  0x15   :  { %792 = vmatmul.msk.f32.vlgmr.msra.gmra.mxu2 %vm92_vm1, %v46_v10  ;;  %808 = vmatmul.msk.f32.vlgmr.msra.gmra.mxu3 %vm92_vm1, %v62_v11  ;;  %v74_v59 = vld [vmem:[%s1487_s0 + $0x1e0] sm:$0xff]  ;;  %v75_v63 = vld [vmem:[%s1487_s0 + $0x1e8] sm:$0xff]  ;;  %v60_v2 = vld [vmem:[%s1487_s0 + $0x170] sm:$0xff] }
  0x16   :  { %304 = vmatpush.msra.mxu0 %v78_v9  ;;  %851 = vmatpush.msra.mxu1 %v78_v9  ;;  %v26_v60 = vld [vmem:[%s1487_s0 + $0x60] sm:$0xff]  ;;  %v27_v0 = vld [vmem:[%s1487_s0 + $0x68] sm:$0xff]  ;;  %v76_v3 = vld [vmem:[%s1487_s0 + $0x1f0] sm:$0xff] }
  0x17   :  { %760 = vmatmul.msk.f32.vlgmr.msra.gmra.mxu0 %vm92_vm1, %v14_v12  ;;  %776 = vmatmul.msk.f32.vlgmr.msra.gmra.mxu1 %vm92_vm1, %v30_v13  ;;  %v42_v61 = vld [vmem:[%s1487_s0 + $0xe0] sm:$0xff]  ;;  %v43_v1 = vld [vmem:[%s1487_s0 + $0xe8] sm:$0xff]  ;;  %v28_v4 = vld [vmem:[%s1487_s0 + $0x70] sm:$0xff] }
  0x18   :  { %v44_v5 = vld [vmem:[%s1487_s0 + $0xf0] sm:$0xff]  ;;  %v61_v6 = vld [vmem:[%s1487_s0 + $0x178] sm:$0xff]  ;;  %v1164_v10 = vld [vmem:[%s1488_s2] ss:$0 sm:$0xff] }
  0x19   :  { %v77_v7 = vld [vmem:[%s1487_s0 + $0x1f8] sm:$0xff] }
  0x1a   :  { %v29_v8 = vld [vmem:[%s1487_s0 + $0x78] sm:$0xff] }
  0x1b   :  { %v45_v9 = vld [vmem:[%s1487_s0 + $0xf8] sm:$0xff] }
  0x1d   :  { %793 = vmatmul.msk.f32.gmra.mxu2 %vm92_vm1, %v47_v14  ;;  %809 = vmatmul.msk.f32.gmra.mxu3 %vm92_vm1, %v63_v15 }
  0x1f   :  { %761 = vmatmul.msk.f32.gmra.mxu0 %vm92_vm1, %v15_v16  ;;  %777 = vmatmul.msk.f32.gmra.mxu1 %vm92_vm1, %v31_v17 }
  0x25   :  { %794 = vmatmul.msk.f32.gmra.mxu2 %vm92_vm1, %v48_v18  ;;  %810 = vmatmul.msk.f32.gmra.mxu3 %vm92_vm1, %v64_v19 }
  0x27   :  { %762 = vmatmul.msk.f32.gmra.mxu0 %vm92_vm1, %v16_v20  ;;  %778 = vmatmul.msk.f32.gmra.mxu1 %vm92_vm1, %v32_v21 }
  0x2d   :  { %795 = vmatmul.msk.f32.gmra.mxu2 %vm92_vm1, %v49_v22  ;;  %811 = vmatmul.msk.f32.gmra.mxu3 %vm92_vm1, %v65_v23 }
  0x2f   :  { %763 = vmatmul.msk.f32.gmra.mxu0 %vm92_vm1, %v17_v24  ;;  %779 = vmatmul.msk.f32.gmra.mxu1 %vm92_vm1, %v33_v25 }
  0x35   :  { %796 = vmatmul.msk.f32.gmra.mxu2 %vm92_vm1, %v50_v26  ;;  %812 = vmatmul.msk.f32.gmra.mxu3 %vm92_vm1, %v66_v27 }
  0x37   :  { %764 = vmatmul.msk.f32.gmra.mxu0 %vm92_vm1, %v18_v28  ;;  %780 = vmatmul.msk.f32.gmra.mxu1 %vm92_vm1, %v34_v29 }
  0x3d   :  { %797 = vmatmul.msk.f32.gmra.mxu2 %vm92_vm1, %v51_v30  ;;  %813 = vmatmul.msk.f32.gmra.mxu3 %vm92_vm1, %v67_v31 }
  0x3f   :  { %765 = vmatmul.msk.f32.gmra.mxu0 %vm92_vm1, %v19_v32  ;;  %781 = vmatmul.msk.f32.gmra.mxu1 %vm92_vm1, %v35_v33 }
  0x45   :  { %798 = vmatmul.msk.f32.gmra.mxu2 %vm92_vm1, %v52_v34  ;;  %814 = vmatmul.msk.f32.gmra.mxu3 %vm92_vm1, %v68_v35 }
  0x47   :  { %766 = vmatmul.msk.f32.gmra.mxu0 %vm92_vm1, %v20_v36  ;;  %782 = vmatmul.msk.f32.gmra.mxu1 %vm92_vm1, %v36_v37 }
  0x4d   :  { %799 = vmatmul.msk.f32.gmra.mxu2 %vm92_vm1, %v53_v38  ;;  %815 = vmatmul.msk.f32.gmra.mxu3 %vm92_vm1, %v69_v39 }
  0x4f   :  { %767 = vmatmul.msk.f32.gmra.mxu0 %vm92_vm1, %v21_v40  ;;  %783 = vmatmul.msk.f32.gmra.mxu1 %vm92_vm1, %v37_v41 }
  0x55   :  { %800 = vmatmul.msk.f32.gmra.mxu2 %vm92_vm1, %v54_v42  ;;  %816 = vmatmul.msk.f32.gmra.mxu3 %vm92_vm1, %v70_v43 }
  0x57   :  { %768 = vmatmul.msk.f32.gmra.mxu0 %vm92_vm1, %v22_v44  ;;  %784 = vmatmul.msk.f32.gmra.mxu1 %vm92_vm1, %v38_v45 }
  0x5d   :  { %801 = vmatmul.msk.f32.gmra.mxu2 %vm92_vm1, %v55_v46  ;;  %817 = vmatmul.msk.f32.gmra.mxu3 %vm92_vm1, %v71_v47 }
  0x5f   :  { %769 = vmatmul.msk.f32.gmra.mxu0 %vm92_vm1, %v23_v48  ;;  %785 = vmatmul.msk.f32.gmra.mxu1 %vm92_vm1, %v39_v49 }
  0x65   :  { %802 = vmatmul.msk.f32.gmra.mxu2 %vm92_vm1, %v56_v50  ;;  %818 = vmatmul.msk.f32.gmra.mxu3 %vm92_vm1, %v72_v51 }
  0x67   :  { %770 = vmatmul.msk.f32.gmra.mxu0 %vm92_vm1, %v24_v52  ;;  %786 = vmatmul.msk.f32.gmra.mxu1 %vm92_vm1, %v40_v53 }
  0x6d   :  { %803 = vmatmul.msk.f32.gmra.mxu2 %vm92_vm1, %v57_v54  ;;  %819 = vmatmul.msk.f32.gmra.mxu3 %vm92_vm1, %v73_v55 }
  0x6f   :  { %771 = vmatmul.msk.f32.gmra.mxu0 %vm92_vm1, %v25_v56  ;;  %787 = vmatmul.msk.f32.gmra.mxu1 %vm92_vm1, %v41_v57 }
  0x75   :  { %804 = vmatmul.msk.f32.gmra.mxu2 %vm92_vm1, %v58_v58  ;;  %820 = vmatmul.msk.f32.gmra.mxu3 %vm92_vm1, %v74_v59 }
  0x77   :  { %772 = vmatmul.msk.f32.gmra.mxu0 %vm92_vm1, %v26_v60  ;;  %788 = vmatmul.msk.f32.gmra.mxu1 %vm92_vm1, %v42_v61 }
  0x7d   :  { %805 = vmatmul.msk.f32.gmra.mxu2 %vm92_vm1, %v59_v62  ;;  %821 = vmatmul.msk.f32.gmra.mxu3 %vm92_vm1, %v75_v63 }
  0x7f   :  { %773 = vmatmul.msk.f32.gmra.mxu0 %vm92_vm1, %v27_v0  ;;  %789 = vmatmul.msk.f32.gmra.mxu1 %vm92_vm1, %v43_v1 }
  0x85   :  { %806 = vmatmul.msk.f32.gmra.mxu2 %vm92_vm1, %v60_v2  ;;  %822 = vmatmul.msk.f32.gmra.mxu3 %vm92_vm1, %v76_v3 }
  0x87   :  { %774 = vmatmul.msk.f32.gmra.mxu0 %vm92_vm1, %v28_v4  ;;  %790 = vmatmul.msk.f32.gmra.mxu1 %vm92_vm1, %v44_v5 }
  0x8d   :  { %807 = vmatmul.msk.f32.gmra.mxu2 %vm92_vm1, %v61_v6  ;;  %823 = vmatmul.msk.f32.gmra.mxu3 %vm92_vm1, %v77_v7 }
  0x8f   :  { %775 = vmatmul.msk.f32.gmra.mxu0 %vm92_vm1, %v29_v8  ;;  %791 = vmatmul.msk.f32.gmra.mxu1 %vm92_vm1, %v45_v9 }
  0x94   :  { %v306_v11 = vpop.f32.mrf.mxu0  ;;  %v354_v12 = vpop.f32.mrf.mxu1 }
  0x95   :  { %v307_v13 = vadd.f32 %v1164_v10, %v306_v11  ;;  %v355_v14 = vadd.f32 %v1164_v10, %v354_v12 }
  0x97   :  { %vm498_vm3 = vcmp.ge.f32.partialorder %v307_v13, 0.0  ;;  %v562_v15 = vmul.f32 0.01, %v307_v13  ;;  %vm514_vm4 = vcmp.ge.f32.partialorder %v355_v14, 0.0  ;;  %v578_v16 = vmul.f32 0.01, %v355_v14 }
  0x98   :  { %v402_v17 = vpop.f32.mrf.mxu2  ;;  %v450_v18 = vpop.f32.mrf.mxu3 }
  0x99   :  { %v626_v19 = vsel %vm498_vm3, %v307_v13, %v562_v15  ;;  %v642_v20 = vsel %vm514_vm4, %v355_v14, %v578_v16  ;;  %v403_v21 = vadd.f32 %v1164_v10, %v402_v17  ;;  %v451_v22 = vadd.f32 %v1164_v10, %v450_v18 }
  0x9a   :  { %691 = vst.msk [vmem:[%s1489_s3] sm:$0xff] %vm690_vm2, %v626_v19 }
  0x9b   :  { %707 = vst.msk [vmem:[%s1489_s3 + $0x80] sm:$0xff] %vm690_vm2, %v642_v20  ;;  %vm530_vm5 = vcmp.ge.f32.partialorder %v403_v21, 0.0  ;;  %v594_v23 = vmul.f32 0.01, %v403_v21  ;;  %vm546_vm6 = vcmp.ge.f32.partialorder %v451_v22, 0.0 }
  0x9c   :  { %v610_v24 = vmul.f32 0.01, %v451_v22  ;;  %v309_v25 = vpop.f32.mrf.mxu0  ;;  %v357_v26 = vpop.f32.mrf.mxu1 }
  0x9d   :  { %v658_v27 = vsel %vm530_vm5, %v403_v21, %v594_v23  ;;  %v310_v28 = vadd.f32 %v1164_v10, %v309_v25  ;;  %v358_v29 = vadd.f32 %v1164_v10, %v357_v26 }
  0x9e   :  { %723 = vst.msk [vmem:[%s1489_s3 + $0x100] sm:$0xff] %vm690_vm2, %v658_v27  ;;  %v674_v30 = vsel %vm546_vm6, %v451_v22, %v610_v24 }
  0x9f   :  { %739 = vst.msk [vmem:[%s1489_s3 + $0x180] sm:$0xff] %vm690_vm2, %v674_v30  ;;  %vm499_vm7 = vcmp.ge.f32.partialorder %v310_v28, 0.0  ;;  %v563_v31 = vmul.f32 0.01, %v310_v28  ;;  %vm515_vm8 = vcmp.ge.f32.partialorder %v358_v29, 0.0 }
  0xa0   :  { %v579_v32 = vmul.f32 0.01, %v358_v29  ;;  %v405_v33 = vpop.f32.mrf.mxu2  ;;  %v453_v34 = vpop.f32.mrf.mxu3 }
  0xa1   :  { %v627_v35 = vsel %vm499_vm7, %v310_v28, %v563_v31  ;;  %v406_v36 = vadd.f32 %v1164_v10, %v405_v33  ;;  %v454_v37 = vadd.f32 %v1164_v10, %v453_v34 }
  0xa2   :  { %692 = vst.msk [vmem:[%s1489_s3 + $0x8] sm:$0xff] %vm690_vm2, %v627_v35  ;;  %v643_v38 = vsel %vm515_vm8, %v358_v29, %v579_v32 }
  0xa3   :  { %708 = vst.msk [vmem:[%s1489_s3 + $0x88] sm:$0xff] %vm690_vm2, %v643_v38  ;;  %vm531_vm9 = vcmp.ge.f32.partialorder %v406_v36, 0.0  ;;  %v595_v39 = vmul.f32 0.01, %v406_v36  ;;  %vm547_vm10 = vcmp.ge.f32.partialorder %v454_v37, 0.0 }
  0xa4   :  { %v611_v40 = vmul.f32 0.01, %v454_v37  ;;  %v312_v41 = vpop.f32.mrf.mxu0  ;;  %v360_v42 = vpop.f32.mrf.mxu1 }
  0xa5   :  { %v659_v43 = vsel %vm531_vm9, %v406_v36, %v595_v39  ;;  %v313_v44 = vadd.f32 %v1164_v10, %v312_v41  ;;  %v361_v45 = vadd.f32 %v1164_v10, %v360_v42 }
  0xa6   :  { %724 = vst.msk [vmem:[%s1489_s3 + $0x108] sm:$0xff] %vm690_vm2, %v659_v43  ;;  %v675_v46 = vsel %vm547_vm10, %v454_v37, %v611_v40 }
  0xa7   :  { %740 = vst.msk [vmem:[%s1489_s3 + $0x188] sm:$0xff] %vm690_vm2, %v675_v46  ;;  %vm500_vm11 = vcmp.ge.f32.partialorder %v313_v44, 0.0  ;;  %v564_v47 = vmul.f32 0.01, %v313_v44  ;;  %vm516_vm12 = vcmp.ge.f32.partialorder %v361_v45, 0.0 }
  0xa8   :  { %v580_v48 = vmul.f32 0.01, %v361_v45  ;;  %v408_v49 = vpop.f32.mrf.mxu2  ;;  %v456_v50 = vpop.f32.mrf.mxu3 }
  0xa9   :  { %v628_v51 = vsel %vm500_vm11, %v313_v44, %v564_v47  ;;  %v409_v52 = vadd.f32 %v1164_v10, %v408_v49  ;;  %v457_v53 = vadd.f32 %v1164_v10, %v456_v50 }
  0xaa   :  { %693 = vst.msk [vmem:[%s1489_s3 + $0x10] sm:$0xff] %vm690_vm2, %v628_v51  ;;  %v644_v54 = vsel %vm516_vm12, %v361_v45, %v580_v48 }
  0xab   :  { %709 = vst.msk [vmem:[%s1489_s3 + $0x90] sm:$0xff] %vm690_vm2, %v644_v54  ;;  %vm532_vm13 = vcmp.ge.f32.partialorder %v409_v52, 0.0  ;;  %v596_v55 = vmul.f32 0.01, %v409_v52  ;;  %vm548_vm14 = vcmp.ge.f32.partialorder %v457_v53, 0.0 }
  0xac   :  { %v612_v56 = vmul.f32 0.01, %v457_v53  ;;  %v315_v57 = vpop.f32.mrf.mxu0  ;;  %v363_v58 = vpop.f32.mrf.mxu1 }
  0xad   :  { %v660_v59 = vsel %vm532_vm13, %v409_v52, %v596_v55  ;;  %v316_v60 = vadd.f32 %v1164_v10, %v315_v57  ;;  %v364_v61 = vadd.f32 %v1164_v10, %v363_v58 }
  0xae   :  { %725 = vst.msk [vmem:[%s1489_s3 + $0x110] sm:$0xff] %vm690_vm2, %v660_v59  ;;  %v676_v62 = vsel %vm548_vm14, %v457_v53, %v612_v56 }
  0xaf   :  { %741 = vst.msk [vmem:[%s1489_s3 + $0x190] sm:$0xff] %vm690_vm2, %v676_v62  ;;  %vm501_vm15 = vcmp.ge.f32.partialorder %v316_v60, 0.0  ;;  %v565_v63 = vmul.f32 0.01, %v316_v60  ;;  %vm517_vm0 = vcmp.ge.f32.partialorder %v364_v61, 0.0 }
  0xb0   :  { %v581_v0 = vmul.f32 0.01, %v364_v61  ;;  %v411_v1 = vpop.f32.mrf.mxu2  ;;  %v459_v2 = vpop.f32.mrf.mxu3 }
  0xb1   :  { %v629_v3 = vsel %vm501_vm15, %v316_v60, %v565_v63  ;;  %v412_v4 = vadd.f32 %v1164_v10, %v411_v1  ;;  %v460_v5 = vadd.f32 %v1164_v10, %v459_v2 }
  0xb2   :  { %694 = vst.msk [vmem:[%s1489_s3 + $0x18] sm:$0xff] %vm690_vm2, %v629_v3  ;;  %v645_v6 = vsel %vm517_vm0, %v364_v61, %v581_v0 }
  0xb3   :  { %710 = vst.msk [vmem:[%s1489_s3 + $0x98] sm:$0xff] %vm690_vm2, %v645_v6  ;;  %vm533_vm1 = vcmp.ge.f32.partialorder %v412_v4, 0.0  ;;  %v597_v7 = vmul.f32 0.01, %v412_v4  ;;  %vm549_vm3 = vcmp.ge.f32.partialorder %v460_v5, 0.0 }
  0xb4   :  { %v613_v8 = vmul.f32 0.01, %v460_v5  ;;  %v318_v9 = vpop.f32.mrf.mxu0  ;;  %v366_v11 = vpop.f32.mrf.mxu1 }
  0xb5   :  { %v661_v12 = vsel %vm533_vm1, %v412_v4, %v597_v7  ;;  %v319_v13 = vadd.f32 %v1164_v10, %v318_v9  ;;  %v367_v14 = vadd.f32 %v1164_v10, %v366_v11 }
  0xb6   :  { %726 = vst.msk [vmem:[%s1489_s3 + $0x118] sm:$0xff] %vm690_vm2, %v661_v12  ;;  %v677_v15 = vsel %vm549_vm3, %v460_v5, %v613_v8 }
  0xb7   :  { %742 = vst.msk [vmem:[%s1489_s3 + $0x198] sm:$0xff] %vm690_vm2, %v677_v15  ;;  %vm502_vm4 = vcmp.ge.f32.partialorder %v319_v13, 0.0  ;;  %v566_v16 = vmul.f32 0.01, %v319_v13  ;;  %vm518_vm5 = vcmp.ge.f32.partialorder %v367_v14, 0.0 }
  0xb8   :  { %v582_v17 = vmul.f32 0.01, %v367_v14  ;;  %v414_v18 = vpop.f32.mrf.mxu2  ;;  %v462_v19 = vpop.f32.mrf.mxu3 }
  0xb9   :  { %v630_v20 = vsel %vm502_vm4, %v319_v13, %v566_v16  ;;  %v415_v21 = vadd.f32 %v1164_v10, %v414_v18  ;;  %v463_v22 = vadd.f32 %v1164_v10, %v462_v19 }
  0xba   :  { %695 = vst.msk [vmem:[%s1489_s3 + $0x20] sm:$0xff] %vm690_vm2, %v630_v20  ;;  %v646_v23 = vsel %vm518_vm5, %v367_v14, %v582_v17 }
  0xbb   :  { %711 = vst.msk [vmem:[%s1489_s3 + $0xa0] sm:$0xff] %vm690_vm2, %v646_v23  ;;  %vm534_vm6 = vcmp.ge.f32.partialorder %v415_v21, 0.0  ;;  %v598_v24 = vmul.f32 0.01, %v415_v21  ;;  %vm550_vm7 = vcmp.ge.f32.partialorder %v463_v22, 0.0 }
  0xbc   :  { %v614_v25 = vmul.f32 0.01, %v463_v22  ;;  %v321_v26 = vpop.f32.mrf.mxu0  ;;  %v369_v27 = vpop.f32.mrf.mxu1 }
  0xbd   :  { %v662_v28 = vsel %vm534_vm6, %v415_v21, %v598_v24  ;;  %v322_v29 = vadd.f32 %v1164_v10, %v321_v26  ;;  %v370_v30 = vadd.f32 %v1164_v10, %v369_v27 }
  0xbe   :  { %727 = vst.msk [vmem:[%s1489_s3 + $0x120] sm:$0xff] %vm690_vm2, %v662_v28  ;;  %v678_v31 = vsel %vm550_vm7, %v463_v22, %v614_v25 }
  0xbf   :  { %743 = vst.msk [vmem:[%s1489_s3 + $0x1a0] sm:$0xff] %vm690_vm2, %v678_v31  ;;  %vm503_vm8 = vcmp.ge.f32.partialorder %v322_v29, 0.0  ;;  %v567_v32 = vmul.f32 0.01, %v322_v29  ;;  %vm519_vm9 = vcmp.ge.f32.partialorder %v370_v30, 0.0 }
  0xc0   :  { %v583_v33 = vmul.f32 0.01, %v370_v30  ;;  %v417_v34 = vpop.f32.mrf.mxu2  ;;  %v465_v35 = vpop.f32.mrf.mxu3 }
  0xc1   :  { %v631_v36 = vsel %vm503_vm8, %v322_v29, %v567_v32  ;;  %v418_v37 = vadd.f32 %v1164_v10, %v417_v34  ;;  %v466_v38 = vadd.f32 %v1164_v10, %v465_v35 }
  0xc2   :  { %696 = vst.msk [vmem:[%s1489_s3 + $0x28] sm:$0xff] %vm690_vm2, %v631_v36  ;;  %v647_v39 = vsel %vm519_vm9, %v370_v30, %v583_v33 }
  0xc3   :  { %712 = vst.msk [vmem:[%s1489_s3 + $0xa8] sm:$0xff] %vm690_vm2, %v647_v39  ;;  %vm535_vm10 = vcmp.ge.f32.partialorder %v418_v37, 0.0  ;;  %v599_v40 = vmul.f32 0.01, %v418_v37  ;;  %vm551_vm11 = vcmp.ge.f32.partialorder %v466_v38, 0.0 }
  0xc4   :  { %v615_v41 = vmul.f32 0.01, %v466_v38  ;;  %v324_v42 = vpop.f32.mrf.mxu0  ;;  %v372_v43 = vpop.f32.mrf.mxu1 }
  0xc5   :  { %v663_v44 = vsel %vm535_vm10, %v418_v37, %v599_v40  ;;  %v325_v45 = vadd.f32 %v1164_v10, %v324_v42  ;;  %v373_v46 = vadd.f32 %v1164_v10, %v372_v43 }
  0xc6   :  { %728 = vst.msk [vmem:[%s1489_s3 + $0x128] sm:$0xff] %vm690_vm2, %v663_v44  ;;  %v679_v47 = vsel %vm551_vm11, %v466_v38, %v615_v41 }
  0xc7   :  { %744 = vst.msk [vmem:[%s1489_s3 + $0x1a8] sm:$0xff] %vm690_vm2, %v679_v47  ;;  %vm504_vm12 = vcmp.ge.f32.partialorder %v325_v45, 0.0  ;;  %v568_v48 = vmul.f32 0.01, %v325_v45  ;;  %vm520_vm13 = vcmp.ge.f32.partialorder %v373_v46, 0.0 }
  0xc8   :  { %v584_v49 = vmul.f32 0.01, %v373_v46  ;;  %v420_v50 = vpop.f32.mrf.mxu2  ;;  %v468_v51 = vpop.f32.mrf.mxu3 }
  0xc9   :  { %v632_v52 = vsel %vm504_vm12, %v325_v45, %v568_v48  ;;  %v421_v53 = vadd.f32 %v1164_v10, %v420_v50  ;;  %v469_v54 = vadd.f32 %v1164_v10, %v468_v51 }
  0xca   :  { %697 = vst.msk [vmem:[%s1489_s3 + $0x30] sm:$0xff] %vm690_vm2, %v632_v52  ;;  %v648_v55 = vsel %vm520_vm13, %v373_v46, %v584_v49 }
  0xcb   :  { %713 = vst.msk [vmem:[%s1489_s3 + $0xb0] sm:$0xff] %vm690_vm2, %v648_v55  ;;  %vm536_vm14 = vcmp.ge.f32.partialorder %v421_v53, 0.0  ;;  %v600_v56 = vmul.f32 0.01, %v421_v53  ;;  %vm552_vm15 = vcmp.ge.f32.partialorder %v469_v54, 0.0 }
  0xcc   :  { %v616_v57 = vmul.f32 0.01, %v469_v54  ;;  %v327_v58 = vpop.f32.mrf.mxu0  ;;  %v375_v59 = vpop.f32.mrf.mxu1 }
  0xcd   :  { %v664_v60 = vsel %vm536_vm14, %v421_v53, %v600_v56  ;;  %v328_v61 = vadd.f32 %v1164_v10, %v327_v58  ;;  %v376_v62 = vadd.f32 %v1164_v10, %v375_v59 }
  0xce   :  { %729 = vst.msk [vmem:[%s1489_s3 + $0x130] sm:$0xff] %vm690_vm2, %v664_v60  ;;  %v680_v63 = vsel %vm552_vm15, %v469_v54, %v616_v57 }
  0xcf   :  { %745 = vst.msk [vmem:[%s1489_s3 + $0x1b0] sm:$0xff] %vm690_vm2, %v680_v63  ;;  %vm505_vm0 = vcmp.ge.f32.partialorder %v328_v61, 0.0  ;;  %v569_v0 = vmul.f32 0.01, %v328_v61  ;;  %vm521_vm1 = vcmp.ge.f32.partialorder %v376_v62, 0.0 }
  0xd0   :  { %v585_v1 = vmul.f32 0.01, %v376_v62  ;;  %v423_v2 = vpop.f32.mrf.mxu2  ;;  %v471_v3 = vpop.f32.mrf.mxu3 }
  0xd1   :  { %v633_v4 = vsel %vm505_vm0, %v328_v61, %v569_v0  ;;  %v424_v5 = vadd.f32 %v1164_v10, %v423_v2  ;;  %v472_v6 = vadd.f32 %v1164_v10, %v471_v3 }
  0xd2   :  { %698 = vst.msk [vmem:[%s1489_s3 + $0x38] sm:$0xff] %vm690_vm2, %v633_v4  ;;  %v649_v7 = vsel %vm521_vm1, %v376_v62, %v585_v1 }
  0xd3   :  { %714 = vst.msk [vmem:[%s1489_s3 + $0xb8] sm:$0xff] %vm690_vm2, %v649_v7  ;;  %vm537_vm3 = vcmp.ge.f32.partialorder %v424_v5, 0.0  ;;  %v601_v8 = vmul.f32 0.01, %v424_v5  ;;  %vm553_vm4 = vcmp.ge.f32.partialorder %v472_v6, 0.0 }
  0xd4   :  { %v617_v9 = vmul.f32 0.01, %v472_v6  ;;  %v330_v11 = vpop.f32.mrf.mxu0  ;;  %v378_v12 = vpop.f32.mrf.mxu1 }
  0xd5   :  { %v665_v13 = vsel %vm537_vm3, %v424_v5, %v601_v8  ;;  %v331_v14 = vadd.f32 %v1164_v10, %v330_v11  ;;  %v379_v15 = vadd.f32 %v1164_v10, %v378_v12 }
  0xd6   :  { %730 = vst.msk [vmem:[%s1489_s3 + $0x138] sm:$0xff] %vm690_vm2, %v665_v13  ;;  %v681_v16 = vsel %vm553_vm4, %v472_v6, %v617_v9 }
  0xd7   :  { %746 = vst.msk [vmem:[%s1489_s3 + $0x1b8] sm:$0xff] %vm690_vm2, %v681_v16  ;;  %vm506_vm5 = vcmp.ge.f32.partialorder %v331_v14, 0.0  ;;  %v570_v17 = vmul.f32 0.01, %v331_v14  ;;  %vm522_vm6 = vcmp.ge.f32.partialorder %v379_v15, 0.0 }
  0xd8   :  { %v586_v18 = vmul.f32 0.01, %v379_v15  ;;  %v426_v19 = vpop.f32.mrf.mxu2  ;;  %v474_v20 = vpop.f32.mrf.mxu3 }
  0xd9   :  { %v634_v21 = vsel %vm506_vm5, %v331_v14, %v570_v17  ;;  %v427_v22 = vadd.f32 %v1164_v10, %v426_v19  ;;  %v475_v23 = vadd.f32 %v1164_v10, %v474_v20 }
  0xda   :  { %699 = vst.msk [vmem:[%s1489_s3 + $0x40] sm:$0xff] %vm690_vm2, %v634_v21  ;;  %v650_v24 = vsel %vm522_vm6, %v379_v15, %v586_v18 }
  0xdb   :  { %715 = vst.msk [vmem:[%s1489_s3 + $0xc0] sm:$0xff] %vm690_vm2, %v650_v24  ;;  %vm538_vm7 = vcmp.ge.f32.partialorder %v427_v22, 0.0  ;;  %v602_v25 = vmul.f32 0.01, %v427_v22  ;;  %vm554_vm8 = vcmp.ge.f32.partialorder %v475_v23, 0.0 }
  0xdc   :  { %v618_v26 = vmul.f32 0.01, %v475_v23  ;;  %v333_v27 = vpop.f32.mrf.mxu0  ;;  %v381_v28 = vpop.f32.mrf.mxu1 }
  0xdd   :  { %v666_v29 = vsel %vm538_vm7, %v427_v22, %v602_v25  ;;  %v334_v30 = vadd.f32 %v1164_v10, %v333_v27  ;;  %v382_v31 = vadd.f32 %v1164_v10, %v381_v28 }
  0xde   :  { %731 = vst.msk [vmem:[%s1489_s3 + $0x140] sm:$0xff] %vm690_vm2, %v666_v29  ;;  %v682_v32 = vsel %vm554_vm8, %v475_v23, %v618_v26 }
  0xdf   :  { %747 = vst.msk [vmem:[%s1489_s3 + $0x1c0] sm:$0xff] %vm690_vm2, %v682_v32  ;;  %vm507_vm9 = vcmp.ge.f32.partialorder %v334_v30, 0.0  ;;  %v571_v33 = vmul.f32 0.01, %v334_v30  ;;  %vm523_vm10 = vcmp.ge.f32.partialorder %v382_v31, 0.0 }
  0xe0   :  { %v587_v34 = vmul.f32 0.01, %v382_v31  ;;  %v429_v35 = vpop.f32.mrf.mxu2  ;;  %v477_v36 = vpop.f32.mrf.mxu3 }
  0xe1   :  { %v635_v37 = vsel %vm507_vm9, %v334_v30, %v571_v33  ;;  %v430_v38 = vadd.f32 %v1164_v10, %v429_v35  ;;  %v478_v39 = vadd.f32 %v1164_v10, %v477_v36 }
  0xe2   :  { %700 = vst.msk [vmem:[%s1489_s3 + $0x48] sm:$0xff] %vm690_vm2, %v635_v37  ;;  %v651_v40 = vsel %vm523_vm10, %v382_v31, %v587_v34 }
  0xe3   :  { %716 = vst.msk [vmem:[%s1489_s3 + $0xc8] sm:$0xff] %vm690_vm2, %v651_v40  ;;  %vm539_vm11 = vcmp.ge.f32.partialorder %v430_v38, 0.0  ;;  %v603_v41 = vmul.f32 0.01, %v430_v38  ;;  %vm555_vm12 = vcmp.ge.f32.partialorder %v478_v39, 0.0 }
  0xe4   :  { %v619_v42 = vmul.f32 0.01, %v478_v39  ;;  %v336_v43 = vpop.f32.mrf.mxu0  ;;  %v384_v44 = vpop.f32.mrf.mxu1 }
  0xe5   :  { %v667_v45 = vsel %vm539_vm11, %v430_v38, %v603_v41  ;;  %v337_v46 = vadd.f32 %v1164_v10, %v336_v43  ;;  %v385_v47 = vadd.f32 %v1164_v10, %v384_v44 }
  0xe6   :  { %732 = vst.msk [vmem:[%s1489_s3 + $0x148] sm:$0xff] %vm690_vm2, %v667_v45  ;;  %v683_v48 = vsel %vm555_vm12, %v478_v39, %v619_v42 }
  0xe7   :  { %748 = vst.msk [vmem:[%s1489_s3 + $0x1c8] sm:$0xff] %vm690_vm2, %v683_v48  ;;  %vm508_vm13 = vcmp.ge.f32.partialorder %v337_v46, 0.0  ;;  %v572_v49 = vmul.f32 0.01, %v337_v46  ;;  %vm524_vm14 = vcmp.ge.f32.partialorder %v385_v47, 0.0 }
  0xe8   :  { %v588_v50 = vmul.f32 0.01, %v385_v47  ;;  %v432_v51 = vpop.f32.mrf.mxu2  ;;  %v480_v52 = vpop.f32.mrf.mxu3 }
  0xe9   :  { %v636_v53 = vsel %vm508_vm13, %v337_v46, %v572_v49  ;;  %v433_v54 = vadd.f32 %v1164_v10, %v432_v51  ;;  %v481_v55 = vadd.f32 %v1164_v10, %v480_v52 }
  0xea   :  { %701 = vst.msk [vmem:[%s1489_s3 + $0x50] sm:$0xff] %vm690_vm2, %v636_v53  ;;  %v652_v56 = vsel %vm524_vm14, %v385_v47, %v588_v50 }
  0xeb   :  { %717 = vst.msk [vmem:[%s1489_s3 + $0xd0] sm:$0xff] %vm690_vm2, %v652_v56  ;;  %vm540_vm15 = vcmp.ge.f32.partialorder %v433_v54, 0.0  ;;  %v604_v57 = vmul.f32 0.01, %v433_v54  ;;  %vm556_vm0 = vcmp.ge.f32.partialorder %v481_v55, 0.0 }
  0xec   :  { %v620_v58 = vmul.f32 0.01, %v481_v55  ;;  %v339_v59 = vpop.f32.mrf.mxu0  ;;  %v387_v60 = vpop.f32.mrf.mxu1 }
  0xed   :  { %v668_v61 = vsel %vm540_vm15, %v433_v54, %v604_v57  ;;  %v340_v62 = vadd.f32 %v1164_v10, %v339_v59  ;;  %v388_v63 = vadd.f32 %v1164_v10, %v387_v60 }
  0xee   :  { %733 = vst.msk [vmem:[%s1489_s3 + $0x150] sm:$0xff] %vm690_vm2, %v668_v61  ;;  %v684_v0 = vsel %vm556_vm0, %v481_v55, %v620_v58 }
  0xef   :  { %749 = vst.msk [vmem:[%s1489_s3 + $0x1d0] sm:$0xff] %vm690_vm2, %v684_v0  ;;  %vm509_vm1 = vcmp.ge.f32.partialorder %v340_v62, 0.0  ;;  %v573_v1 = vmul.f32 0.01, %v340_v62  ;;  %vm525_vm3 = vcmp.ge.f32.partialorder %v388_v63, 0.0 }
  0xf0   :  { %v589_v2 = vmul.f32 0.01, %v388_v63  ;;  %v435_v3 = vpop.f32.mrf.mxu2  ;;  %v483_v4 = vpop.f32.mrf.mxu3 }
  0xf1   :  { %v637_v5 = vsel %vm509_vm1, %v340_v62, %v573_v1  ;;  %v436_v6 = vadd.f32 %v1164_v10, %v435_v3  ;;  %v484_v7 = vadd.f32 %v1164_v10, %v483_v4 }
  0xf2   :  { %702 = vst.msk [vmem:[%s1489_s3 + $0x58] sm:$0xff] %vm690_vm2, %v637_v5  ;;  %v653_v8 = vsel %vm525_vm3, %v388_v63, %v589_v2 }
  0xf3   :  { %718 = vst.msk [vmem:[%s1489_s3 + $0xd8] sm:$0xff] %vm690_vm2, %v653_v8  ;;  %vm541_vm4 = vcmp.ge.f32.partialorder %v436_v6, 0.0  ;;  %v605_v9 = vmul.f32 0.01, %v436_v6  ;;  %vm557_vm5 = vcmp.ge.f32.partialorder %v484_v7, 0.0 }
  0xf4   :  { %v621_v11 = vmul.f32 0.01, %v484_v7  ;;  %v342_v12 = vpop.f32.mrf.mxu0  ;;  %v390_v13 = vpop.f32.mrf.mxu1 }
  0xf5   :  { %v669_v14 = vsel %vm541_vm4, %v436_v6, %v605_v9  ;;  %v343_v15 = vadd.f32 %v1164_v10, %v342_v12  ;;  %v391_v16 = vadd.f32 %v1164_v10, %v390_v13 }
  0xf6   :  { %734 = vst.msk [vmem:[%s1489_s3 + $0x158] sm:$0xff] %vm690_vm2, %v669_v14  ;;  %v685_v17 = vsel %vm557_vm5, %v484_v7, %v621_v11 }
  0xf7   :  { %750 = vst.msk [vmem:[%s1489_s3 + $0x1d8] sm:$0xff] %vm690_vm2, %v685_v17  ;;  %vm510_vm6 = vcmp.ge.f32.partialorder %v343_v15, 0.0  ;;  %v574_v18 = vmul.f32 0.01, %v343_v15  ;;  %vm526_vm7 = vcmp.ge.f32.partialorder %v391_v16, 0.0 }
  0xf8   :  { %v590_v19 = vmul.f32 0.01, %v391_v16  ;;  %v438_v20 = vpop.f32.mrf.mxu2  ;;  %v486_v21 = vpop.f32.mrf.mxu3 }
  0xf9   :  { %v638_v22 = vsel %vm510_vm6, %v343_v15, %v574_v18  ;;  %v439_v23 = vadd.f32 %v1164_v10, %v438_v20  ;;  %v487_v24 = vadd.f32 %v1164_v10, %v486_v21 }
  0xfa   :  { %703 = vst.msk [vmem:[%s1489_s3 + $0x60] sm:$0xff] %vm690_vm2, %v638_v22  ;;  %v654_v25 = vsel %vm526_vm7, %v391_v16, %v590_v19 }
  0xfb   :  { %719 = vst.msk [vmem:[%s1489_s3 + $0xe0] sm:$0xff] %vm690_vm2, %v654_v25  ;;  %vm542_vm8 = vcmp.ge.f32.partialorder %v439_v23, 0.0  ;;  %v606_v26 = vmul.f32 0.01, %v439_v23  ;;  %vm558_vm9 = vcmp.ge.f32.partialorder %v487_v24, 0.0 }
  0xfc   :  { %v622_v27 = vmul.f32 0.01, %v487_v24  ;;  %v345_v28 = vpop.f32.mrf.mxu0  ;;  %v393_v29 = vpop.f32.mrf.mxu1 }
  0xfd   :  { %v670_v30 = vsel %vm542_vm8, %v439_v23, %v606_v26  ;;  %v346_v31 = vadd.f32 %v1164_v10, %v345_v28  ;;  %v394_v32 = vadd.f32 %v1164_v10, %v393_v29 }
  0xfe   :  { %735 = vst.msk [vmem:[%s1489_s3 + $0x160] sm:$0xff] %vm690_vm2, %v670_v30  ;;  %v686_v33 = vsel %vm558_vm9, %v487_v24, %v622_v27 }
  0xff   :  { %751 = vst.msk [vmem:[%s1489_s3 + $0x1e0] sm:$0xff] %vm690_vm2, %v686_v33  ;;  %vm511_vm10 = vcmp.ge.f32.partialorder %v346_v31, 0.0  ;;  %v575_v34 = vmul.f32 0.01, %v346_v31  ;;  %vm527_vm11 = vcmp.ge.f32.partialorder %v394_v32, 0.0 }
 0x100   :  { %v591_v35 = vmul.f32 0.01, %v394_v32  ;;  %v441_v36 = vpop.f32.mrf.mxu2  ;;  %v489_v37 = vpop.f32.mrf.mxu3 }
 0x101   :  { %v639_v38 = vsel %vm511_vm10, %v346_v31, %v575_v34  ;;  %v442_v39 = vadd.f32 %v1164_v10, %v441_v36  ;;  %v490_v40 = vadd.f32 %v1164_v10, %v489_v37 }
 0x102   :  { %704 = vst.msk [vmem:[%s1489_s3 + $0x68] sm:$0xff] %vm690_vm2, %v639_v38  ;;  %v655_v41 = vsel %vm527_vm11, %v394_v32, %v591_v35 }
 0x103   :  { %720 = vst.msk [vmem:[%s1489_s3 + $0xe8] sm:$0xff] %vm690_vm2, %v655_v41  ;;  %vm543_vm12 = vcmp.ge.f32.partialorder %v442_v39, 0.0  ;;  %v607_v42 = vmul.f32 0.01, %v442_v39  ;;  %vm559_vm13 = vcmp.ge.f32.partialorder %v490_v40, 0.0 }
 0x104   :  { %v623_v43 = vmul.f32 0.01, %v490_v40  ;;  %v348_v44 = vpop.f32.mrf.mxu0  ;;  %v396_v45 = vpop.f32.mrf.mxu1 }
 0x105   :  { %v671_v46 = vsel %vm543_vm12, %v442_v39, %v607_v42  ;;  %v349_v47 = vadd.f32 %v1164_v10, %v348_v44  ;;  %v397_v48 = vadd.f32 %v1164_v10, %v396_v45 }
 0x106   :  { %736 = vst.msk [vmem:[%s1489_s3 + $0x168] sm:$0xff] %vm690_vm2, %v671_v46  ;;  %v687_v49 = vsel %vm559_vm13, %v490_v40, %v623_v43 }
 0x107   :  { %752 = vst.msk [vmem:[%s1489_s3 + $0x1e8] sm:$0xff] %vm690_vm2, %v687_v49  ;;  %vm512_vm14 = vcmp.ge.f32.partialorder %v349_v47, 0.0  ;;  %v576_v50 = vmul.f32 0.01, %v349_v47  ;;  %vm528_vm15 = vcmp.ge.f32.partialorder %v397_v48, 0.0 }
 0x108   :  { %v592_v51 = vmul.f32 0.01, %v397_v48  ;;  %v444_v52 = vpop.f32.mrf.mxu2  ;;  %v492_v53 = vpop.f32.mrf.mxu3 }
 0x109   :  { %v640_v54 = vsel %vm512_vm14, %v349_v47, %v576_v50  ;;  %v445_v55 = vadd.f32 %v1164_v10, %v444_v52  ;;  %v493_v56 = vadd.f32 %v1164_v10, %v492_v53 }
 0x10a   :  { %705 = vst.msk [vmem:[%s1489_s3 + $0x70] sm:$0xff] %vm690_vm2, %v640_v54  ;;  %v656_v57 = vsel %vm528_vm15, %v397_v48, %v592_v51 }
 0x10b   :  { %721 = vst.msk [vmem:[%s1489_s3 + $0xf0] sm:$0xff] %vm690_vm2, %v656_v57  ;;  %vm544_vm0 = vcmp.ge.f32.partialorder %v445_v55, 0.0  ;;  %v608_v58 = vmul.f32 0.01, %v445_v55  ;;  %vm560_vm1 = vcmp.ge.f32.partialorder %v493_v56, 0.0 }
 0x10c   :  { %v624_v59 = vmul.f32 0.01, %v493_v56  ;;  %v351_v60 = vpop.f32.mrf.mxu0  ;;  %v399_v61 = vpop.f32.mrf.mxu1 }
 0x10d   :  { %v672_v62 = vsel %vm544_vm0, %v445_v55, %v608_v58  ;;  %v352_v63 = vadd.f32 %v1164_v10, %v351_v60  ;;  %v400_v0 = vadd.f32 %v1164_v10, %v399_v61 }
 0x10e   :  { %737 = vst.msk [vmem:[%s1489_s3 + $0x170] sm:$0xff] %vm690_vm2, %v672_v62  ;;  %v688_v1 = vsel %vm560_vm1, %v493_v56, %v624_v59 }
 0x10f   :  { %753 = vst.msk [vmem:[%s1489_s3 + $0x1f0] sm:$0xff] %vm690_vm2, %v688_v1  ;;  %vm513_vm3 = vcmp.ge.f32.partialorder %v352_v63, 0.0  ;;  %v577_v2 = vmul.f32 0.01, %v352_v63  ;;  %vm529_vm4 = vcmp.ge.f32.partialorder %v400_v0, 0.0 }
 0x110   :  { %v593_v3 = vmul.f32 0.01, %v400_v0  ;;  %v447_v4 = vpop.f32.mrf.mxu2  ;;  %v495_v5 = vpop.f32.mrf.mxu3 }
 0x111   :  { %v641_v6 = vsel %vm513_vm3, %v352_v63, %v577_v2  ;;  %v448_v7 = vadd.f32 %v1164_v10, %v447_v4  ;;  %v496_v8 = vadd.f32 %v1164_v10, %v495_v5 }
 0x112   :  { %706 = vst.msk [vmem:[%s1489_s3 + $0x78] sm:$0xff] %vm690_vm2, %v641_v6  ;;  %v657_v9 = vsel %vm529_vm4, %v400_v0, %v593_v3 }
 0x113   :  { %722 = vst.msk [vmem:[%s1489_s3 + $0xf8] sm:$0xff] %vm690_vm2, %v657_v9  ;;  %vm545_vm5 = vcmp.ge.f32.partialorder %v448_v7, 0.0  ;;  %v609_v11 = vmul.f32 0.01, %v448_v7  ;;  %vm561_vm6 = vcmp.ge.f32.partialorder %v496_v8, 0.0 }
 0x114   :  { %v625_v12 = vmul.f32 0.01, %v496_v8 }
 0x115   :  { %v673_v13 = vsel %vm545_vm5, %v448_v7, %v609_v11 }
 0x116   :  { %738 = vst.msk [vmem:[%s1489_s3 + $0x178] sm:$0xff] %vm690_vm2, %v673_v13  ;;  %v689_v10 = vsel %vm561_vm6, %v496_v8, %v625_v12 }
 0x117   :  { %754 = vst.msk [vmem:[%s1489_s3 + $0x1f8] sm:$0xff] %vm690_vm2, %v689_v10 }

// kernel: cae4_forward.12
= control target key start
LH: loop header
LB: loop body
LE: loop exit
PB: predicated region body
PF: predicated region fallthrough
CT: control target
= control target key end

     0   :  { %vm75_vm0 = vcmask 588800   ;;  %vm302_vm2 = vcmask 130048   ;;  %s660_s1 = inlined_call_operand.vmem [shape: f32[200,16], index: 1, kind: input, shape index: {}]   ;;  %s661_s0 = inlined_call_operand.vmem [shape: f32[128,200], index: 0, kind: input, shape index: {}]   ;;  %s662_s2 = inlined_call_operand.vmem [shape: f32[1,16], index: 2, kind: input, shape index: {}]   ;;  %s663_s3 = inlined_call_operand.vmem [shape: f32[128,16], index: 3, kind: output, shape index: {}]  }
   0x1   :  { %v61_v0 = vld [vmem:[%s660_s1 + $0x78] sm:$0xff]  ;;  %v70_v1 = vld [vmem:[%s660_s1 + $0xc0] sm:$0xff]  ;;  %v60_v2 = vld [vmem:[%s660_s1 + $0x70] sm:$0xff] }
   0x2   :  { %339 = vmatpush.msra.mxu2 %v61_v0  ;;  %196 = vmatpush.msra.mxu1 %v70_v1  ;;  %v69_v3 = vld [vmem:[%s660_s1 + $0xb8] sm:$0xff]  ;;  %v59_v4 = vld [vmem:[%s660_s1 + $0x68] sm:$0xff]  ;;  %v68_v5 = vld [vmem:[%s660_s1 + $0xb0] sm:$0xff] }
   0x3   :  { %124 = vmatpush.msra.mxu0 %v61_v0  ;;  %355 = vmatpush.msra.mxu3 %v70_v1  ;;  %v58_v6 = vld [vmem:[%s660_s1 + $0x60] sm:$0xff]  ;;  %v67_v7 = vld [vmem:[%s660_s1 + $0xa8] sm:$0xff]  ;;  %v57_v8 = vld [vmem:[%s660_s1 + $0x58] sm:$0xff] }
   0x4   :  { %340 = vmatpush.msra.mxu2 %v60_v2  ;;  %197 = vmatpush.msra.mxu1 %v69_v3  ;;  %v66_v9 = vld [vmem:[%s660_s1 + $0xa0] sm:$0xff]  ;;  %v56_v10 = vld [vmem:[%s660_s1 + $0x50] sm:$0xff]  ;;  %v65_v11 = vld [vmem:[%s660_s1 + $0x98] sm:$0xff] }
   0x5   :  { %125 = vmatpush.msra.mxu0 %v60_v2  ;;  %356 = vmatpush.msra.mxu3 %v69_v3  ;;  %v55_v12 = vld [vmem:[%s660_s1 + $0x48] sm:$0xff]  ;;  %v64_v13 = vld [vmem:[%s660_s1 + $0x90] sm:$0xff]  ;;  %v54_v14 = vld [vmem:[%s660_s1 + $0x40] sm:$0xff] }
   0x6   :  { %341 = vmatpush.msra.mxu2 %v59_v4  ;;  %198 = vmatpush.msra.mxu1 %v68_v5  ;;  %v63_v15 = vld [vmem:[%s660_s1 + $0x88] sm:$0xff]  ;;  %v53_v16 = vld [vmem:[%s660_s1 + $0x38] sm:$0xff]  ;;  %v62_v17 = vld [vmem:[%s660_s1 + $0x80] sm:$0xff] }
   0x7   :  { %126 = vmatpush.msra.mxu0 %v59_v4  ;;  %357 = vmatpush.msra.mxu3 %v68_v5  ;;  %v15_v18 = vld [vmem:[%s661_s0 + $0x8] sm:$0xff]  ;;  %v52_v19 = vld [vmem:[%s660_s1 + $0x30] sm:$0xff]  ;;  %v33_v20 = vld [vmem:[%s661_s0 + $0x98] sm:$0xff] }
   0x8   :  { %342 = vmatpush.msra.mxu2 %v58_v6  ;;  %199 = vmatpush.msra.mxu1 %v67_v7  ;;  %v51_v21 = vld [vmem:[%s660_s1 + $0x28] sm:$0xff]  ;;  %v50_v22 = vld [vmem:[%s660_s1 + $0x20] sm:$0xff]  ;;  %v49_v23 = vld [vmem:[%s660_s1 + $0x18] sm:$0xff] }
   0x9   :  { %127 = vmatpush.msra.mxu0 %v58_v6  ;;  %358 = vmatpush.msra.mxu3 %v67_v7  ;;  %v17_v24 = vld [vmem:[%s661_s0 + $0x18] sm:$0xff]  ;;  %v48_v25 = vld [vmem:[%s660_s1 + $0x10] sm:$0xff]  ;;  %v35_v26 = vld [vmem:[%s661_s0 + $0xa8] sm:$0xff] }
   0xa   :  { %343 = vmatpush.msra.mxu2 %v57_v8  ;;  %200 = vmatpush.msra.mxu1 %v66_v9  ;;  %v47_v27 = vld [vmem:[%s660_s1 + $0x8] sm:$0xff]  ;;  %v46_v28 = vld [vmem:[%s660_s1] sm:$0xff]  ;;  %v28_v29 = vld [vmem:[%s661_s0 + $0x70] sm:$0xff] }
   0xb   :  { %128 = vmatpush.msra.mxu0 %v57_v8  ;;  %359 = vmatpush.msra.mxu3 %v66_v9  ;;  %v14_v30 = vld [vmem:[%s661_s0] sm:$0xff]  ;;  %v19_v31 = vld [vmem:[%s661_s0 + $0x28] sm:$0xff]  ;;  %v37_v32 = vld [vmem:[%s661_s0 + $0xb8] sm:$0xff] }
   0xc   :  { %344 = vmatpush.msra.mxu2 %v56_v10  ;;  %201 = vmatpush.msra.mxu1 %v65_v11  ;;  %v30_v33 = vld [vmem:[%s661_s0 + $0x80] sm:$0xff]  ;;  %v16_v34 = vld [vmem:[%s661_s0 + $0x10] sm:$0xff]  ;;  %v21_v35 = vld [vmem:[%s661_s0 + $0x38] sm:$0xff] }
   0xd   :  { %129 = vmatpush.msra.mxu0 %v56_v10  ;;  %360 = vmatpush.msra.mxu3 %v65_v11  ;;  %v39_v36 = vld [vmem:[%s661_s0 + $0xc8] sm:$0xff]  ;;  %v32_v37 = vld [vmem:[%s661_s0 + $0x90] sm:$0xff]  ;;  %v18_v38 = vld [vmem:[%s661_s0 + $0x20] sm:$0xff] }
   0xe   :  { %345 = vmatpush.msra.mxu2 %v55_v12  ;;  %202 = vmatpush.msra.mxu1 %v64_v13  ;;  %v23_v39 = vld [vmem:[%s661_s0 + $0x48] sm:$0xff]  ;;  %v41_v40 = vld [vmem:[%s661_s0 + $0xd8] sm:$0xff]  ;;  %v34_v41 = vld [vmem:[%s661_s0 + $0xa0] sm:$0xff] }
   0xf   :  { %130 = vmatpush.msra.mxu0 %v55_v12  ;;  %361 = vmatpush.msra.mxu3 %v64_v13  ;;  %v20_v42 = vld [vmem:[%s661_s0 + $0x30] sm:$0xff]  ;;  %v25_v43 = vld [vmem:[%s661_s0 + $0x58] sm:$0xff]  ;;  %v43_v44 = vld [vmem:[%s661_s0 + $0xe8] sm:$0xff] }
  0x10   :  { %346 = vmatpush.msra.mxu2 %v54_v14  ;;  %203 = vmatpush.msra.mxu1 %v63_v15  ;;  %v36_v45 = vld [vmem:[%s661_s0 + $0xb0] sm:$0xff]  ;;  %v22_v46 = vld [vmem:[%s661_s0 + $0x40] sm:$0xff]  ;;  %v27_v47 = vld [vmem:[%s661_s0 + $0x68] sm:$0xff] }
  0x11   :  { %131 = vmatpush.msra.mxu0 %v54_v14  ;;  %362 = vmatpush.msra.mxu3 %v63_v15  ;;  %v45_v48 = vld [vmem:[%s661_s0 + $0xf8] sm:$0xff]  ;;  %v38_v49 = vld [vmem:[%s661_s0 + $0xc0] sm:$0xff]  ;;  %v24_v50 = vld [vmem:[%s661_s0 + $0x50] sm:$0xff] }
  0x12   :  { %347 = vmatpush.msra.mxu2 %v53_v16  ;;  %204 = vmatpush.msra.mxu1 %v62_v17  ;;  %v29_v51 = vld [vmem:[%s661_s0 + $0x78] sm:$0xff]  ;;  %v40_v52 = vld [vmem:[%s661_s0 + $0xd0] sm:$0xff]  ;;  %v26_v53 = vld [vmem:[%s661_s0 + $0x60] sm:$0xff] }
  0x13   :  { %323 = vmatmul.msk.f32.vlgmr.msra.gmra.mxu1 %vm75_vm0, %v15_v18  ;;  %132 = vmatpush.msra.mxu0 %v53_v16  ;;  %v31_v54 = vld [vmem:[%s661_s0 + $0x88] sm:$0xff]  ;;  %v42_v55 = vld [vmem:[%s661_s0 + $0xe0] sm:$0xff]  ;;  %v44_v56 = vld [vmem:[%s661_s0 + $0xf0] sm:$0xff] }
  0x14   :  { %348 = vmatpush.msra.mxu2 %v52_v19  ;;  %363 = vmatpush.msra.mxu3 %v62_v17  ;;  %v575_v59 = vld [vmem:[%s662_s2] ss:$0 sm:$0xff] }
  0x15   :  { %133 = vmatpush.msra.mxu0 %v52_v19  ;;  %332 = vmatmul.msk.f32.vlgmr.msra.gmra.mxu3 %vm75_vm0, %v33_v20 }
  0x16   :  { %349 = vmatpush.msra.mxu2 %v51_v21 }
  0x17   :  { %134 = vmatpush.msra.mxu0 %v51_v21 }
  0x18   :  { %350 = vmatpush.msra.mxu2 %v50_v22 }
  0x19   :  { %135 = vmatpush.msra.mxu0 %v50_v22 }
  0x1a   :  { %351 = vmatpush.msra.mxu2 %v49_v23 }
  0x1b   :  { %324 = vmatmul.msk.f32.gmra.mxu1 %vm75_vm0, %v17_v24  ;;  %136 = vmatpush.msra.mxu0 %v49_v23 }
  0x1c   :  { %352 = vmatpush.msra.mxu2 %v48_v25 }
  0x1d   :  { %137 = vmatpush.msra.mxu0 %v48_v25  ;;  %333 = vmatmul.msk.f32.gmra.mxu3 %vm75_vm0, %v35_v26 }
  0x1e   :  { %353 = vmatpush.msra.mxu2 %v47_v27 }
  0x1f   :  { %138 = vmatpush.msra.mxu0 %v47_v27 }
  0x20   :  { %354 = vmatpush.msra.mxu2 %v46_v28 }
  0x21   :  { %161 = vmatmul.f32.vlgmr.msra.gmra.mxu2 %v28_v29  ;;  %139 = vmatpush.msra.mxu0 %v46_v28 }
  0x22   :  { %140 = vmatmul.f32.vlgmr.msra.gmra.mxu0 %v14_v30 }
  0x23   :  { %325 = vmatmul.msk.f32.gmra.mxu1 %vm75_vm0, %v19_v31 }
  0x25   :  { %334 = vmatmul.msk.f32.gmra.mxu3 %vm75_vm0, %v37_v32 }
  0x29   :  { %164 = vmatmul.f32.gmra.mxu2 %v30_v33 }
  0x2a   :  { %143 = vmatmul.f32.gmra.mxu0 %v16_v34 }
  0x2b   :  { %326 = vmatmul.msk.f32.gmra.mxu1 %vm75_vm0, %v21_v35 }
  0x2d   :  { %335 = vmatmul.msk.f32.gmra.mxu3 %vm75_vm0, %v39_v36 }
  0x31   :  { %167 = vmatmul.f32.gmra.mxu2 %v32_v37 }
  0x32   :  { %146 = vmatmul.f32.gmra.mxu0 %v18_v38 }
  0x33   :  { %327 = vmatmul.msk.f32.gmra.mxu1 %vm75_vm0, %v23_v39 }
  0x35   :  { %336 = vmatmul.msk.f32.gmra.mxu3 %vm75_vm0, %v41_v40 }
  0x39   :  { %170 = vmatmul.f32.gmra.mxu2 %v34_v41 }
  0x3a   :  { %149 = vmatmul.f32.gmra.mxu0 %v20_v42 }
  0x3b   :  { %328 = vmatmul.msk.f32.gmra.mxu1 %vm75_vm0, %v25_v43 }
  0x3d   :  { %337 = vmatmul.msk.f32.gmra.mxu3 %vm75_vm0, %v43_v44 }
  0x41   :  { %173 = vmatmul.f32.gmra.mxu2 %v36_v45 }
  0x42   :  { %152 = vmatmul.f32.gmra.mxu0 %v22_v46 }
  0x43   :  { %329 = vmatmul.msk.f32.gmra.mxu1 %vm75_vm0, %v27_v47 }
  0x45   :  { %338 = vmatmul.msk.f32.gmra.mxu3 %vm75_vm0, %v45_v48 }
  0x49   :  { %176 = vmatmul.f32.gmra.mxu2 %v38_v49 }
  0x4a   :  { %155 = vmatmul.f32.gmra.mxu0 %v24_v50 }
  0x4b   :  { %330 = vmatmul.msk.f32.gmra.mxu1 %vm75_vm0, %v29_v51 }
  0x51   :  { %179 = vmatmul.f32.gmra.mxu2 %v40_v52 }
  0x52   :  { %158 = vmatmul.f32.gmra.mxu0 %v26_v53 }
  0x53   :  { %331 = vmatmul.msk.f32.gmra.mxu1 %vm75_vm0, %v31_v54 }
  0x59   :  { %182 = vmatmul.f32.gmra.mxu2 %v42_v55 }
  0x61   :  { %185 = vmatmul.f32.gmra.mxu2 %v44_v56 }
  0x90   :  { %v206_v57 = vpop.f32.mrf.mxu1 }
  0x98   :  { %v209_v58 = vpop.f32.mrf.mxu1  ;;  %v233_v6 = vpop.f32.mrf.mxu3 }
  0x9f   :  { %v141_v60 = vpop.f32.mrf.mxu0 }
  0xa0   :  { %v212_v61 = vpop.f32.mrf.mxu1  ;;  %v142_v62 = vadd.f32 %v575_v59, %v141_v60  ;;  %v236_v15 = vpop.f32.mrf.mxu3 }
  0xa2   :  { %v207_v63 = vadd.f32 %v206_v57, %v142_v62 }
  0xa4   :  { %vm254_vm1 = vcmp.ge.f32.partialorder %v207_v63, 0.0  ;;  %v270_v0 = vmul.f32 0.01, %v207_v63  ;;  %v162_v1 = vpop.f32.mrf.mxu2 }
  0xa5   :  { %v163_v44 = vadd.f32 %v575_v59, %v162_v1 }
  0xa6   :  { %v286_v2 = vsel %vm254_vm1, %v207_v63, %v270_v0 }
  0xa7   :  { %303 = vst.msk [vmem:[%s663_s3] sm:$0xff] %vm302_vm2, %v286_v2  ;;  %v144_v3 = vpop.f32.mrf.mxu0 }
  0xa8   :  { %v215_v4 = vpop.f32.mrf.mxu1  ;;  %v145_v5 = vadd.f32 %v575_v59, %v144_v3  ;;  %v239_v29 = vpop.f32.mrf.mxu3 }
  0xaa   :  { %v210_v7 = vadd.f32 %v209_v58, %v145_v5 }
  0xac   :  { %vm255_vm3 = vcmp.ge.f32.partialorder %v210_v7, 0.0  ;;  %v271_v8 = vmul.f32 0.01, %v210_v7  ;;  %v583_v9 = vpop.f32.mrf.mxu2 }
  0xad   :  { %v166_v60 = vadd.f32 %v575_v59, %v583_v9 }
  0xae   :  { %v287_v10 = vsel %vm255_vm3, %v210_v7, %v271_v8 }
  0xaf   :  { %304 = vst.msk [vmem:[%s663_s3 + $0x8] sm:$0xff] %vm302_vm2, %v287_v10  ;;  %v147_v11 = vpop.f32.mrf.mxu0 }
  0xb0   :  { %v218_v12 = vpop.f32.mrf.mxu1  ;;  %v148_v13 = vadd.f32 %v575_v59, %v147_v11  ;;  %v242_v43 = vpop.f32.mrf.mxu3 }
  0xb2   :  { %v213_v14 = vadd.f32 %v212_v61, %v148_v13 }
  0xb4   :  { %vm256_vm4 = vcmp.ge.f32.partialorder %v213_v14, 0.0  ;;  %v272_v16 = vmul.f32 0.01, %v213_v14  ;;  %v168_v17 = vpop.f32.mrf.mxu2 }
  0xb5   :  { %v169_v18 = vadd.f32 %v575_v59, %v168_v17 }
  0xb6   :  { %v288_v19 = vsel %vm256_vm4, %v213_v14, %v272_v16 }
  0xb7   :  { %305 = vst.msk [vmem:[%s663_s3 + $0x10] sm:$0xff] %vm302_vm2, %v288_v19  ;;  %v234_v20 = vadd.f32 %v233_v6, %v169_v18  ;;  %v150_v21 = vpop.f32.mrf.mxu0 }
  0xb8   :  { %v221_v22 = vpop.f32.mrf.mxu1  ;;  %v151_v23 = vadd.f32 %v575_v59, %v150_v21  ;;  %v245_v1 = vpop.f32.mrf.mxu3 }
  0xb9   :  { %vm263_vm5 = vcmp.ge.f32.partialorder %v234_v20, 0.0  ;;  %v279_v24 = vmul.f32 0.01, %v234_v20 }
  0xba   :  { %v216_v25 = vadd.f32 %v215_v4, %v151_v23 }
  0xbb   :  { %v295_v26 = vsel %vm263_vm5, %v234_v20, %v279_v24 }
  0xbc   :  { %312 = vst.msk [vmem:[%s663_s3 + $0x48] sm:$0xff] %vm302_vm2, %v295_v26  ;;  %vm257_vm6 = vcmp.ge.f32.partialorder %v216_v25, 0.0  ;;  %v273_v27 = vmul.f32 0.01, %v216_v25  ;;  %v171_v28 = vpop.f32.mrf.mxu2 }
  0xbd   :  { %v172_v30 = vadd.f32 %v575_v59, %v171_v28 }
  0xbe   :  { %v289_v31 = vsel %vm257_vm6, %v216_v25, %v273_v27 }
  0xbf   :  { %306 = vst.msk [vmem:[%s663_s3 + $0x18] sm:$0xff] %vm302_vm2, %v289_v31  ;;  %v237_v32 = vadd.f32 %v236_v15, %v172_v30  ;;  %v153_v33 = vpop.f32.mrf.mxu0 }
  0xc0   :  { %v224_v34 = vpop.f32.mrf.mxu1  ;;  %v154_v35 = vadd.f32 %v575_v59, %v153_v33  ;;  %v248_v14 = vpop.f32.mrf.mxu3 }
  0xc1   :  { %vm264_vm7 = vcmp.ge.f32.partialorder %v237_v32, 0.0  ;;  %v280_v36 = vmul.f32 0.01, %v237_v32 }
  0xc2   :  { %v219_v37 = vadd.f32 %v218_v12, %v154_v35 }
  0xc3   :  { %v296_v38 = vsel %vm264_vm7, %v237_v32, %v280_v36 }
  0xc4   :  { %313 = vst.msk [vmem:[%s663_s3 + $0x50] sm:$0xff] %vm302_vm2, %v296_v38  ;;  %vm258_vm8 = vcmp.ge.f32.partialorder %v219_v37, 0.0  ;;  %v274_v39 = vmul.f32 0.01, %v219_v37  ;;  %v174_v40 = vpop.f32.mrf.mxu2 }
  0xc5   :  { %v175_v41 = vadd.f32 %v575_v59, %v174_v40 }
  0xc6   :  { %v290_v42 = vsel %vm258_vm8, %v219_v37, %v274_v39 }
  0xc7   :  { %307 = vst.msk [vmem:[%s663_s3 + $0x20] sm:$0xff] %vm302_vm2, %v290_v42  ;;  %v240_v45 = vadd.f32 %v239_v29, %v175_v41  ;;  %v156_v46 = vpop.f32.mrf.mxu0 }
  0xc8   :  { %v227_v47 = vpop.f32.mrf.mxu1  ;;  %v157_v48 = vadd.f32 %v575_v59, %v156_v46 }
  0xc9   :  { %vm265_vm9 = vcmp.ge.f32.partialorder %v240_v45, 0.0  ;;  %v281_v49 = vmul.f32 0.01, %v240_v45  ;;  %v228_v50 = vadd.f32 %v227_v47, %v163_v44 }
  0xca   :  { %v222_v51 = vadd.f32 %v221_v22, %v157_v48  ;;  %v251_v22 = vpop.f32.mrf.mxu3 }
  0xcb   :  { %v297_v52 = vsel %vm265_vm9, %v240_v45, %v281_v49  ;;  %vm261_vm10 = vcmp.ge.f32.partialorder %v228_v50, 0.0  ;;  %v277_v53 = vmul.f32 0.01, %v228_v50 }
  0xcc   :  { %314 = vst.msk [vmem:[%s663_s3 + $0x58] sm:$0xff] %vm302_vm2, %v297_v52  ;;  %vm259_vm11 = vcmp.ge.f32.partialorder %v222_v51, 0.0  ;;  %v275_v54 = vmul.f32 0.01, %v222_v51  ;;  %v177_v55 = vpop.f32.mrf.mxu2 }
  0xcd   :  { %v293_v56 = vsel %vm261_vm10, %v228_v50, %v277_v53  ;;  %v178_v57 = vadd.f32 %v575_v59, %v177_v55 }
  0xce   :  { %310 = vst.msk [vmem:[%s663_s3 + $0x38] sm:$0xff] %vm302_vm2, %v293_v56  ;;  %v291_v58 = vsel %vm259_vm11, %v222_v51, %v275_v54 }
  0xcf   :  { %308 = vst.msk [vmem:[%s663_s3 + $0x28] sm:$0xff] %vm302_vm2, %v291_v58  ;;  %v243_v61 = vadd.f32 %v242_v43, %v178_v57  ;;  %v159_v62 = vpop.f32.mrf.mxu0 }
  0xd0   :  { %v230_v63 = vpop.f32.mrf.mxu1  ;;  %v160_v0 = vadd.f32 %v575_v59, %v159_v62 }
  0xd1   :  { %vm266_vm12 = vcmp.ge.f32.partialorder %v243_v61, 0.0  ;;  %v282_v2 = vmul.f32 0.01, %v243_v61  ;;  %v231_v3 = vadd.f32 %v230_v63, %v166_v60 }
  0xd2   :  { %v225_v4 = vadd.f32 %v224_v34, %v160_v0 }
  0xd3   :  { %v298_v5 = vsel %vm266_vm12, %v243_v61, %v282_v2  ;;  %vm262_vm13 = vcmp.ge.f32.partialorder %v231_v3, 0.0  ;;  %v278_v6 = vmul.f32 0.01, %v231_v3 }
  0xd4   :  { %315 = vst.msk [vmem:[%s663_s3 + $0x60] sm:$0xff] %vm302_vm2, %v298_v5  ;;  %vm260_vm14 = vcmp.ge.f32.partialorder %v225_v4, 0.0  ;;  %v276_v7 = vmul.f32 0.01, %v225_v4  ;;  %v180_v8 = vpop.f32.mrf.mxu2 }
  0xd5   :  { %v294_v9 = vsel %vm262_vm13, %v231_v3, %v278_v6  ;;  %v181_v10 = vadd.f32 %v575_v59, %v180_v8 }
  0xd6   :  { %311 = vst.msk [vmem:[%s663_s3 + $0x40] sm:$0xff] %vm302_vm2, %v294_v9  ;;  %v292_v11 = vsel %vm260_vm14, %v225_v4, %v276_v7 }
  0xd7   :  { %309 = vst.msk [vmem:[%s663_s3 + $0x30] sm:$0xff] %vm302_vm2, %v292_v11  ;;  %v246_v12 = vadd.f32 %v245_v1, %v181_v10 }
  0xd9   :  { %vm267_vm15 = vcmp.ge.f32.partialorder %v246_v12, 0.0  ;;  %v283_v13 = vmul.f32 0.01, %v246_v12 }
  0xdb   :  { %v299_v15 = vsel %vm267_vm15, %v246_v12, %v283_v13 }
  0xdc   :  { %316 = vst.msk [vmem:[%s663_s3 + $0x68] sm:$0xff] %vm302_vm2, %v299_v15  ;;  %v183_v16 = vpop.f32.mrf.mxu2 }
  0xdd   :  { %v184_v17 = vadd.f32 %v575_v59, %v183_v16 }
  0xdf   :  { %v249_v18 = vadd.f32 %v248_v14, %v184_v17 }
  0xe1   :  { %vm268_vm0 = vcmp.ge.f32.partialorder %v249_v18, 0.0  ;;  %v284_v19 = vmul.f32 0.01, %v249_v18 }
  0xe3   :  { %v300_v20 = vsel %vm268_vm0, %v249_v18, %v284_v19 }
  0xe4   :  { %317 = vst.msk [vmem:[%s663_s3 + $0x70] sm:$0xff] %vm302_vm2, %v300_v20  ;;  %v186_v21 = vpop.f32.mrf.mxu2 }
  0xe5   :  { %v187_v23 = vadd.f32 %v575_v59, %v186_v21 }
  0xe7   :  { %v252_v24 = vadd.f32 %v251_v22, %v187_v23 }
  0xe9   :  { %vm269_vm1 = vcmp.ge.f32.partialorder %v252_v24, 0.0  ;;  %v285_v25 = vmul.f32 0.01, %v252_v24 }
  0xeb   :  { %v301_v26 = vsel %vm269_vm1, %v252_v24, %v285_v25 }
  0xec   :  { %318 = vst.msk [vmem:[%s663_s3 + $0x78] sm:$0xff] %vm302_vm2, %v301_v26 }

// kernel: cae4_forward.13
= control target key start
LH: loop header
LB: loop body
LE: loop exit
PB: predicated region body
PF: predicated region fallthrough
CT: control target
= control target key end

     0   :  { %vm84_vm0 = vcmask 130048   ;;  %vm225_vm2 = vcmask 261120   ;;  %s480_s1 = inlined_call_operand.vmem [shape: f32[400,32], index: 1, kind: input, shape index: {}]   ;;  %s481_s0 = inlined_call_operand.vmem [shape: f32[32,400], index: 0, kind: input, shape index: {}]   ;;  %s482_s2 = inlined_call_operand.vmem [shape: f32[1,32], index: 2, kind: input, shape index: {}]   ;;  %s483_s3 = inlined_call_operand.vmem [shape: f32[32,32], index: 3, kind: output, shape index: {}]  }
   0x1   :  { %v77_v0 = vld [vmem:[%s480_s1 + $0x178] sm:$0xff]  ;;  %v76_v2 = vld [vmem:[%s480_s1 + $0x170] sm:$0xff]  ;;  %v75_v5 = vld [vmem:[%s480_s1 + $0x168] sm:$0xff] }
   0x2   :  { %v45_v1 = vld [vmem:[%s480_s1 + $0x78] sm:$0xff]  ;;  %155 = vmatpush.msra.mxu2 %v77_v0  ;;  %v44_v3 = vld [vmem:[%s480_s1 + $0x70] sm:$0xff]  ;;  %v43_v6 = vld [vmem:[%s480_s1 + $0x68] sm:$0xff] }
   0x3   :  { %97 = vmatpush.msra.mxu0 %v45_v1  ;;  %v61_v4 = vld [vmem:[%s480_s1 + $0xf8] sm:$0xff]  ;;  %v60_v7 = vld [vmem:[%s480_s1 + $0xf0] sm:$0xff]  ;;  %v59_v8 = vld [vmem:[%s480_s1 + $0xe8] sm:$0xff] }
   0x4   :  { %126 = vmatpush.msra.mxu1 %v61_v4  ;;  %156 = vmatpush.msra.mxu2 %v76_v2  ;;  %v74_v9 = vld [vmem:[%s480_s1 + $0x160] sm:$0xff]  ;;  %v73_v12 = vld [vmem:[%s480_s1 + $0x158] sm:$0xff]  ;;  %v72_v15 = vld [vmem:[%s480_s1 + $0x150] sm:$0xff] }
   0x5   :  { %98 = vmatpush.msra.mxu0 %v44_v3  ;;  %v42_v10 = vld [vmem:[%s480_s1 + $0x60] sm:$0xff]  ;;  %v41_v13 = vld [vmem:[%s480_s1 + $0x58] sm:$0xff]  ;;  %v40_v16 = vld [vmem:[%s480_s1 + $0x50] sm:$0xff] }
   0x6   :  { %127 = vmatpush.msra.mxu1 %v60_v7  ;;  %157 = vmatpush.msra.mxu2 %v75_v5  ;;  %v58_v11 = vld [vmem:[%s480_s1 + $0xe0] sm:$0xff]  ;;  %v57_v14 = vld [vmem:[%s480_s1 + $0xd8] sm:$0xff]  ;;  %v56_v17 = vld [vmem:[%s480_s1 + $0xd0] sm:$0xff] }
   0x7   :  { %99 = vmatpush.msra.mxu0 %v43_v6  ;;  %v71_v18 = vld [vmem:[%s480_s1 + $0x148] sm:$0xff]  ;;  %v70_v21 = vld [vmem:[%s480_s1 + $0x140] sm:$0xff]  ;;  %v69_v24 = vld [vmem:[%s480_s1 + $0x138] sm:$0xff] }
   0x8   :  { %128 = vmatpush.msra.mxu1 %v59_v8  ;;  %158 = vmatpush.msra.mxu2 %v74_v9  ;;  %v39_v19 = vld [vmem:[%s480_s1 + $0x48] sm:$0xff]  ;;  %v38_v22 = vld [vmem:[%s480_s1 + $0x40] sm:$0xff]  ;;  %v37_v25 = vld [vmem:[%s480_s1 + $0x38] sm:$0xff] }
   0x9   :  { %100 = vmatpush.msra.mxu0 %v42_v10  ;;  %v55_v20 = vld [vmem:[%s480_s1 + $0xc8] sm:$0xff]  ;;  %v54_v23 = vld [vmem:[%s480_s1 + $0xc0] sm:$0xff]  ;;  %v53_v26 = vld [vmem:[%s480_s1 + $0xb8] sm:$0xff] }
   0xa   :  { %129 = vmatpush.msra.mxu1 %v58_v11  ;;  %159 = vmatpush.msra.mxu2 %v73_v12  ;;  %v79_v27 = vld [vmem:[%s480_s1 + $0x188] sm:$0xff]  ;;  %v68_v28 = vld [vmem:[%s480_s1 + $0x130] sm:$0xff]  ;;  %v78_v30 = vld [vmem:[%s480_s1 + $0x180] sm:$0xff] }
   0xb   :  { %101 = vmatpush.msra.mxu0 %v41_v13  ;;  %v36_v29 = vld [vmem:[%s480_s1 + $0x30] sm:$0xff]  ;;  %198 = vmatpush.msra.mxu3 %v79_v27  ;;  %v17_v32 = vld [vmem:[%s481_s0 + $0x18] sm:$0xff]  ;;  %v67_v33 = vld [vmem:[%s480_s1 + $0x128] sm:$0xff] }
   0xc   :  { %130 = vmatpush.msra.mxu1 %v57_v14  ;;  %160 = vmatpush.msra.mxu2 %v72_v15  ;;  %v52_v31 = vld [vmem:[%s480_s1 + $0xb0] sm:$0xff]  ;;  %v35_v34 = vld [vmem:[%s480_s1 + $0x28] sm:$0xff]  ;;  %v66_v36 = vld [vmem:[%s480_s1 + $0x120] sm:$0xff] }
   0xd   :  { %102 = vmatpush.msra.mxu0 %v40_v16  ;;  %199 = vmatpush.msra.mxu3 %v78_v30  ;;  %v51_v35 = vld [vmem:[%s480_s1 + $0xa8] sm:$0xff]  ;;  %v34_v37 = vld [vmem:[%s480_s1 + $0x20] sm:$0xff]  ;;  %v65_v39 = vld [vmem:[%s480_s1 + $0x118] sm:$0xff] }
   0xe   :  { %131 = vmatpush.msra.mxu1 %v56_v17  ;;  %161 = vmatpush.msra.mxu2 %v71_v18  ;;  %v50_v38 = vld [vmem:[%s480_s1 + $0xa0] sm:$0xff]  ;;  %v33_v40 = vld [vmem:[%s480_s1 + $0x18] sm:$0xff]  ;;  %v64_v42 = vld [vmem:[%s480_s1 + $0x110] sm:$0xff] }
   0xf   :  { %103 = vmatpush.msra.mxu0 %v39_v19  ;;  %234 = vmatmul.msk.f32.vlgmr.msra.gmra.mxu3 %vm84_vm0, %v17_v32  ;;  %v49_v41 = vld [vmem:[%s480_s1 + $0x98] sm:$0xff]  ;;  %v32_v43 = vld [vmem:[%s480_s1 + $0x10] sm:$0xff]  ;;  %v63_v46 = vld [vmem:[%s480_s1 + $0x108] sm:$0xff] }
  0x10   :  { %132 = vmatpush.msra.mxu1 %v55_v20  ;;  %162 = vmatpush.msra.mxu2 %v70_v21  ;;  %v48_v44 = vld [vmem:[%s480_s1 + $0x90] sm:$0xff]  ;;  %v21_v45 = vld [vmem:[%s481_s0 + $0x38] sm:$0xff]  ;;  %v31_v47 = vld [vmem:[%s480_s1 + $0x8] sm:$0xff] }
  0x11   :  { %104 = vmatpush.msra.mxu0 %v38_v22  ;;  %v47_v48 = vld [vmem:[%s480_s1 + $0x88] sm:$0xff]  ;;  %v62_v49 = vld [vmem:[%s480_s1 + $0x100] sm:$0xff]  ;;  %v16_v51 = vld [vmem:[%s481_s0 + $0x10] sm:$0xff] }
  0x12   :  { %133 = vmatpush.msra.mxu1 %v54_v23  ;;  %163 = vmatpush.msra.mxu2 %v69_v24  ;;  %v30_v50 = vld [vmem:[%s480_s1] sm:$0xff]  ;;  %v15_v54 = vld [vmem:[%s481_s0 + $0x8] sm:$0xff]  ;;  %v25_v55 = vld [vmem:[%s481_s0 + $0x58] sm:$0xff] }
  0x13   :  { %105 = vmatpush.msra.mxu0 %v37_v25  ;;  %v14_v52 = vld [vmem:[%s481_s0] sm:$0xff]  ;;  %v20_v56 = vld [vmem:[%s481_s0 + $0x30] sm:$0xff]  ;;  %v19_v58 = vld [vmem:[%s481_s0 + $0x28] sm:$0xff] }
  0x14   :  { %134 = vmatpush.msra.mxu1 %v53_v26  ;;  %164 = vmatpush.msra.mxu2 %v68_v28  ;;  %v46_v53 = vld [vmem:[%s480_s1 + $0x80] sm:$0xff]  ;;  %v29_v59 = vld [vmem:[%s481_s0 + $0x78] sm:$0xff]  ;;  %v24_v60 = vld [vmem:[%s481_s0 + $0x50] sm:$0xff] }
  0x15   :  { %106 = vmatpush.msra.mxu0 %v36_v29  ;;  %v18_v57 = vld [vmem:[%s481_s0 + $0x20] sm:$0xff]  ;;  %v23_v62 = vld [vmem:[%s481_s0 + $0x48] sm:$0xff]  ;;  %v28_v63 = vld [vmem:[%s481_s0 + $0x70] sm:$0xff] }
  0x16   :  { %135 = vmatpush.msra.mxu1 %v52_v31  ;;  %165 = vmatpush.msra.mxu2 %v67_v33  ;;  %v22_v61 = vld [vmem:[%s481_s0 + $0x40] sm:$0xff]  ;;  %v27_v1 = vld [vmem:[%s481_s0 + $0x68] sm:$0xff] }
  0x17   :  { %107 = vmatpush.msra.mxu0 %v35_v34  ;;  %235 = vmatmul.msk.f32.gmra.mxu3 %vm84_vm0, %v21_v45  ;;  %v26_v0 = vld [vmem:[%s481_s0 + $0x60] sm:$0xff] }
  0x18   :  { %136 = vmatpush.msra.mxu1 %v51_v35  ;;  %166 = vmatpush.msra.mxu2 %v66_v36  ;;  %v238_v2 = vld [vmem:[%s482_s2] ss:$0 sm:$0xff] }
  0x19   :  { %108 = vmatpush.msra.mxu0 %v34_v37 }
  0x1a   :  { %137 = vmatpush.msra.mxu1 %v50_v38  ;;  %167 = vmatpush.msra.mxu2 %v65_v39 }
  0x1b   :  { %109 = vmatpush.msra.mxu0 %v33_v40 }
  0x1c   :  { %138 = vmatpush.msra.mxu1 %v49_v41  ;;  %168 = vmatpush.msra.mxu2 %v64_v42 }
  0x1d   :  { %110 = vmatpush.msra.mxu0 %v32_v43 }
  0x1e   :  { %139 = vmatpush.msra.mxu1 %v48_v44  ;;  %169 = vmatpush.msra.mxu2 %v63_v46 }
  0x1f   :  { %111 = vmatpush.msra.mxu0 %v31_v47  ;;  %236 = vmatmul.msk.f32.gmra.mxu3 %vm84_vm0, %v25_v55 }
  0x20   :  { %140 = vmatpush.msra.mxu1 %v47_v48  ;;  %170 = vmatpush.msra.mxu2 %v62_v49 }
  0x21   :  { %112 = vmatpush.msra.mxu0 %v30_v50  ;;  %171 = vmatmul.f32.vlgmr.msra.gmra.mxu2 %v16_v51 }
  0x22   :  { %113 = vmatmul.f32.vlgmr.msra.gmra.mxu0 %v14_v52  ;;  %141 = vmatpush.msra.mxu1 %v46_v53 }
  0x23   :  { %142 = vmatmul.f32.vlgmr.msra.gmra.mxu1 %v15_v54 }
  0x27   :  { %237 = vmatmul.msk.f32.gmra.mxu3 %vm84_vm0, %v29_v59 }
  0x29   :  { %174 = vmatmul.f32.gmra.mxu2 %v20_v56 }
  0x2a   :  { %116 = vmatmul.f32.gmra.mxu0 %v18_v57 }
  0x2b   :  { %145 = vmatmul.f32.gmra.mxu1 %v19_v58 }
  0x31   :  { %177 = vmatmul.f32.gmra.mxu2 %v24_v60 }
  0x32   :  { %119 = vmatmul.f32.gmra.mxu0 %v22_v61 }
  0x33   :  { %148 = vmatmul.f32.gmra.mxu1 %v23_v62 }
  0x39   :  { %180 = vmatmul.f32.gmra.mxu2 %v28_v63 }
  0x3a   :  { %122 = vmatmul.f32.gmra.mxu0 %v26_v0 }
  0x3b   :  { %151 = vmatmul.f32.gmra.mxu1 %v27_v1 }
  0x92   :  { %v201_v4 = vpop.f32.mrf.mxu3 }
  0x9a   :  { %v204_v14 = vpop.f32.mrf.mxu3 }
  0x9f   :  { %v114_v3 = vpop.f32.mrf.mxu0 }
  0xa0   :  { %v115_v5 = vadd.f32 %v238_v2, %v114_v3  ;;  %v143_v6 = vpop.f32.mrf.mxu1 }
  0xa2   :  { %v144_v7 = vadd.f32 %v143_v6, %v115_v5  ;;  %v207_v26 = vpop.f32.mrf.mxu3 }
  0xa4   :  { %v172_v8 = vpop.f32.mrf.mxu2 }
  0xa5   :  { %v173_v9 = vadd.f32 %v172_v8, %v144_v7 }
  0xa7   :  { %v117_v10 = vpop.f32.mrf.mxu0  ;;  %v202_v11 = vadd.f32 %v201_v4, %v173_v9 }
  0xa8   :  { %v118_v12 = vadd.f32 %v238_v2, %v117_v10  ;;  %v146_v13 = vpop.f32.mrf.mxu1 }
  0xa9   :  { %vm213_vm1 = vcmp.ge.f32.partialorder %v202_v11, 0.0  ;;  %v217_v15 = vmul.f32 0.01, %v202_v11 }
  0xaa   :  { %v147_v16 = vadd.f32 %v146_v13, %v118_v12  ;;  %v210_v38 = vpop.f32.mrf.mxu3 }
  0xab   :  { %v221_v17 = vsel %vm213_vm1, %v202_v11, %v217_v15 }
  0xac   :  { %226 = vst.msk [vmem:[%s483_s3] sm:$0xff] %vm225_vm2, %v221_v17  ;;  %v175_v18 = vpop.f32.mrf.mxu2 }
  0xad   :  { %v176_v19 = vadd.f32 %v175_v18, %v147_v16 }
  0xaf   :  { %v120_v20 = vpop.f32.mrf.mxu0  ;;  %v205_v21 = vadd.f32 %v204_v14, %v176_v19 }
  0xb0   :  { %v121_v22 = vadd.f32 %v238_v2, %v120_v20  ;;  %v149_v23 = vpop.f32.mrf.mxu1 }
  0xb1   :  { %vm214_vm3 = vcmp.ge.f32.partialorder %v205_v21, 0.0  ;;  %v218_v24 = vmul.f32 0.01, %v205_v21 }
  0xb2   :  { %v150_v25 = vadd.f32 %v149_v23, %v121_v22 }
  0xb3   :  { %v222_v27 = vsel %vm214_vm3, %v205_v21, %v218_v24 }
  0xb4   :  { %227 = vst.msk [vmem:[%s483_s3 + $0x8] sm:$0xff] %vm225_vm2, %v222_v27  ;;  %v178_v28 = vpop.f32.mrf.mxu2 }
  0xb5   :  { %v179_v29 = vadd.f32 %v178_v28, %v150_v25 }
  0xb7   :  { %v123_v30 = vpop.f32.mrf.mxu0  ;;  %v208_v31 = vadd.f32 %v207_v26, %v179_v29 }
  0xb8   :  { %v124_v32 = vadd.f32 %v238_v2, %v123_v30  ;;  %v152_v33 = vpop.f32.mrf.mxu1 }
  0xb9   :  { %vm215_vm4 = vcmp.ge.f32.partialorder %v208_v31, 0.0  ;;  %v219_v34 = vmul.f32 0.01, %v208_v31 }
  0xba   :  { %v153_v35 = vadd.f32 %v152_v33, %v124_v32 }
  0xbb   :  { %v223_v36 = vsel %vm215_vm4, %v208_v31, %v219_v34 }
  0xbc   :  { %228 = vst.msk [vmem:[%s483_s3 + $0x10] sm:$0xff] %vm225_vm2, %v223_v36  ;;  %v181_v37 = vpop.f32.mrf.mxu2 }
  0xbd   :  { %v182_v39 = vadd.f32 %v181_v37, %v153_v35 }
  0xbf   :  { %v211_v40 = vadd.f32 %v210_v38, %v182_v39 }
  0xc1   :  { %vm216_vm5 = vcmp.ge.f32.partialorder %v211_v40, 0.0  ;;  %v220_v41 = vmul.f32 0.01, %v211_v40 }
  0xc3   :  { %v224_v42 = vsel %vm216_vm5, %v211_v40, %v220_v41 }
  0xc4   :  { %229 = vst.msk [vmem:[%s483_s3 + $0x18] sm:$0xff] %vm225_vm2, %v224_v42 }

// kernel: cae4_forward.14
= control target key start
LH: loop header
LB: loop body
LE: loop exit
PB: predicated region body
PF: predicated region fallthrough
CT: control target
= control target key end

     0   :  { %vm74_vm0 = vcmask 261120   ;;  %vm140_vm2 = vcmask 523264   ;;  %s331_s0 = inlined_call_operand.vmem [shape: f32[2,288], index: 0, kind: input, shape index: {}]   ;;  %s332_s1 = inlined_call_operand.vmem [shape: f32[288,64], index: 1, kind: input, shape index: {}]   ;;  %s333_s2 = inlined_call_operand.vmem [shape: f32[1,64], index: 2, kind: input, shape index: {}]   ;;  %s334_s3 = inlined_call_operand.vmem [shape: f32[2,64], index: 3, kind: output, shape index: {}]  }
   0x1   :  { %v33_v0 = vld [vmem:[%s332_s1 + $0x78] sm:$0xff]  ;;  %v32_v1 = vld [vmem:[%s332_s1 + $0x70] sm:$0xff]  ;;  %v31_v4 = vld [vmem:[%s332_s1 + $0x68] sm:$0xff] }
   0x2   :  { %v49_v2 = vld [vmem:[%s332_s1 + $0xf8] sm:$0xff]  ;;  %77 = vmatpush.msra.mxu0 %v33_v0  ;;  %v48_v3 = vld [vmem:[%s332_s1 + $0xf0] sm:$0xff]  ;;  %v47_v5 = vld [vmem:[%s332_s1 + $0xe8] sm:$0xff] }
   0x3   :  { %97 = vmatpush.msra.mxu1 %v49_v2  ;;  %v30_v6 = vld [vmem:[%s332_s1 + $0x60] sm:$0xff]  ;;  %v29_v8 = vld [vmem:[%s332_s1 + $0x58] sm:$0xff]  ;;  %v28_v11 = vld [vmem:[%s332_s1 + $0x50] sm:$0xff] }
   0x4   :  { %78 = vmatpush.msra.mxu0 %v32_v1  ;;  %v46_v7 = vld [vmem:[%s332_s1 + $0xe0] sm:$0xff]  ;;  %v45_v9 = vld [vmem:[%s332_s1 + $0xd8] sm:$0xff]  ;;  %v44_v12 = vld [vmem:[%s332_s1 + $0xd0] sm:$0xff] }
   0x5   :  { %98 = vmatpush.msra.mxu1 %v48_v3  ;;  %v53_v10 = vld [vmem:[%s332_s1 + $0x118] sm:$0xff]  ;;  %v52_v13 = vld [vmem:[%s332_s1 + $0x110] sm:$0xff]  ;;  %v51_v14 = vld [vmem:[%s332_s1 + $0x108] sm:$0xff] }
   0x6   :  { %79 = vmatpush.msra.mxu0 %v31_v4  ;;  %129 = vmatpush.msra.mxu2 %v53_v10  ;;  %v27_v15 = vld [vmem:[%s332_s1 + $0x48] sm:$0xff]  ;;  %v50_v17 = vld [vmem:[%s332_s1 + $0x100] sm:$0xff]  ;;  %v17_v23 = vld [vmem:[%s331_s0 + $0x12] sm:$0x3f] }
   0x7   :  { %99 = vmatpush.msra.mxu1 %v47_v5  ;;  %v43_v16 = vld [vmem:[%s332_s1 + $0xc8] sm:$0xff]  ;;  %v14_v18 = vld [vmem:[%s331_s0] sm:$0x3f]  ;;  %v25_v24 = vld [vmem:[%s332_s1 + $0x38] sm:$0xff]  ;;  %68 = vst [vmem:[#allocation1 + $0x3] ss:$4 sm:$0xff] %v17_v23 }
   0x8   :  { %80 = vmatpush.msra.mxu0 %v30_v6  ;;  %130 = vmatpush.msra.mxu2 %v52_v13  ;;  %v15_v19 = vld [vmem:[%s331_s0 + $0x6] sm:$0x3f]  ;;  %v16_v20 = vld [vmem:[%s331_s0 + $0xc] sm:$0x3f]  ;;  %62 = vst [vmem:[#allocation1] ss:$4 sm:$0xff] %v14_v18 }
   0x9   :  { %100 = vmatpush.msra.mxu1 %v46_v7  ;;  %v26_v21 = vld [vmem:[%s332_s1 + $0x40] sm:$0xff]  ;;  %64 = vst [vmem:[#allocation1 + $0x1] ss:$4 sm:$0xff] %v15_v19  ;;  %v41_v25 = vld [vmem:[%s332_s1 + $0xb8] sm:$0xff]  ;;  %v24_v26 = vld [vmem:[%s332_s1 + $0x30] sm:$0xff] }
   0xa   :  { %81 = vmatpush.msra.mxu0 %v29_v8  ;;  %v42_v22 = vld [vmem:[%s332_s1 + $0xc0] sm:$0xff]  ;;  %131 = vmatpush.msra.mxu2 %v51_v14  ;;  %66 = vst [vmem:[#allocation1 + $0x2] ss:$4 sm:$0xff] %v16_v20  ;;  %v40_v27 = vld [vmem:[%s332_s1 + $0xb0] sm:$0xff]  ;;  %v23_v28 = vld [vmem:[%s332_s1 + $0x28] sm:$0xff] }
   0xb   :  { %101 = vmatpush.msra.mxu1 %v45_v9  ;;  %v39_v29 = vld [vmem:[%s332_s1 + $0xa8] sm:$0xff]  ;;  %v22_v30 = vld [vmem:[%s332_s1 + $0x20] sm:$0xff]  ;;  %v21_v32 = vld [vmem:[%s332_s1 + $0x18] sm:$0xff] }
   0xc   :  { %82 = vmatpush.msra.mxu0 %v28_v11  ;;  %132 = vmatpush.msra.mxu2 %v50_v17  ;;  %v38_v31 = vld [vmem:[%s332_s1 + $0xa0] sm:$0xff]  ;;  %v37_v33 = vld [vmem:[%s332_s1 + $0x98] sm:$0xff]  ;;  %v20_v35 = vld [vmem:[%s332_s1 + $0x10] sm:$0xff] }
   0xd   :  { %102 = vmatpush.msra.mxu1 %v44_v12  ;;  %v36_v36 = vld [vmem:[%s332_s1 + $0x90] sm:$0xff]  ;;  %v19_v37 = vld [vmem:[%s332_s1 + $0x8] sm:$0xff]  ;;  %v18_v39 = vld [vmem:[%s332_s1] sm:$0xff] }
   0xe   :  { %83 = vmatpush.msra.mxu0 %v27_v15  ;;  %v35_v38 = vld [vmem:[%s332_s1 + $0x88] sm:$0xff]  ;;  %v34_v40 = vld [vmem:[%s332_s1 + $0x80] sm:$0xff] }
   0xf   :  { %103 = vmatpush.msra.mxu1 %v43_v16  ;;  %v184_v43 = vld [vmem:[%s333_s2] ss:$0 sm:$0xff] }
  0x10   :  { %84 = vmatpush.msra.mxu0 %v26_v21 }
  0x11   :  { %104 = vmatpush.msra.mxu1 %v42_v22  ;;  %v71_v34 = vld.sshfl [vmem:[#allocation1 + $0x10] sm:$0xff pattern:$0x73625140]  ;;  %v69_v41 = vld.sshfl [vmem:[#allocation1] sm:$0xff pattern:$0x73625140] }
  0x12   :  { %85 = vmatpush.msra.mxu0 %v25_v24  ;;  %183 = vmatmul.msk.f32.vlgmr.msra.gmra.mxu2 %vm74_vm0, %v71_v34  ;;  %v70_v42 = vld.sshfl [vmem:[#allocation1 + $0x8] sm:$0xff pattern:$0x73625140] }
  0x13   :  { %105 = vmatpush.msra.mxu1 %v41_v25 }
  0x14   :  { %86 = vmatpush.msra.mxu0 %v24_v26 }
  0x15   :  { %106 = vmatpush.msra.mxu1 %v40_v27 }
  0x16   :  { %87 = vmatpush.msra.mxu0 %v23_v28 }
  0x17   :  { %107 = vmatpush.msra.mxu1 %v39_v29 }
  0x18   :  { %88 = vmatpush.msra.mxu0 %v22_v30 }
  0x19   :  { %108 = vmatpush.msra.mxu1 %v38_v31 }
  0x1a   :  { %89 = vmatpush.msra.mxu0 %v21_v32 }
  0x1b   :  { %109 = vmatpush.msra.mxu1 %v37_v33 }
  0x1c   :  { %90 = vmatpush.msra.mxu0 %v20_v35 }
  0x1d   :  { %110 = vmatpush.msra.mxu1 %v36_v36 }
  0x1e   :  { %91 = vmatpush.msra.mxu0 %v19_v37 }
  0x1f   :  { %111 = vmatpush.msra.mxu1 %v35_v38 }
  0x20   :  { %92 = vmatpush.msra.mxu0 %v18_v39 }
  0x21   :  { %112 = vmatpush.msra.mxu1 %v34_v40  ;;  %93 = vmatmul.f32.vlgmr.msra.gmra.mxu0 %v69_v41 }
  0x22   :  { %113 = vmatmul.f32.vlgmr.msra.gmra.mxu1 %v70_v42 }
  0x95   :  { %v134_v47 = vpop.f32.mrf.mxu2 }
  0x9e   :  { %v94_v44 = vpop.f32.mrf.mxu0 }
  0x9f   :  { %v114_v45 = vpop.f32.mrf.mxu1  ;;  %v95_v46 = vadd.f32 %v184_v43, %v94_v44 }
  0xa1   :  { %v115_v48 = vadd.f32 %v114_v45, %v95_v46 }
  0xa3   :  { %v135_v49 = vadd.f32 %v134_v47, %v115_v48 }
  0xa5   :  { %vm137_vm1 = vcmp.ge.f32.partialorder %v135_v49, 0.0  ;;  %v138_v50 = vmul.f32 0.01, %v135_v49 }
  0xa7   :  { %v139_v51 = vsel %vm137_vm1, %v135_v49, %v138_v50 }
  0xa8   :  { %141 = vst.msk [vmem:[#allocation2] sm:$0xff] %vm140_vm2, %v139_v51 }
  0xaf   :  { %v160_v52 = vld [vmem:[#allocation2] sm:$0x3] }
  0xb0   :  { %161 = vst [vmem:[%s334_s3] sm:$0x3] %v160_v52 }

// kernel: cae4_forward.15
= control target key start
LH: loop header
LB: loop body
LE: loop exit
PB: predicated region body
PF: predicated region fallthrough
CT: control target
= control target key end

     0   :  { %vm27_vm0 = vcmask 523264   ;;  %vm51_vm1 = vcmask 80896   ;;  %s149_s0 = inlined_call_operand.vmem [shape: f32[2,64], index: 0, kind: input, shape index: {}]   ;;  %s150_s1 = inlined_call_operand.vmem [shape: f32[64,10], index: 1, kind: input, shape index: {}]   ;;  %s151_s2 = inlined_call_operand.vmem [shape: f32[1,10], index: 2, kind: input, shape index: {}]   ;;  %s152_s3 = inlined_call_operand.vmem [shape: f32[2,10], index: 3, kind: output, shape index: {}]  }
   0x1   :  { %v22_v0 = vld [vmem:[%s150_s1 + $0x38] sm:$0xff]  ;;  %v21_v1 = vld [vmem:[%s150_s1 + $0x30] sm:$0xff]  ;;  %v20_v2 = vld [vmem:[%s150_s1 + $0x28] sm:$0xff] }
   0x2   :  { %39 = vmatpush.msra.mxu0 %v22_v0  ;;  %v19_v3 = vld [vmem:[%s150_s1 + $0x20] sm:$0xff]  ;;  %v18_v4 = vld [vmem:[%s150_s1 + $0x18] sm:$0xff]  ;;  %v17_v5 = vld [vmem:[%s150_s1 + $0x10] sm:$0xff] }
   0x3   :  { %v16_v6 = vld [vmem:[%s150_s1 + $0x8] sm:$0xff]  ;;  %v15_v7 = vld [vmem:[%s150_s1] sm:$0xff] }
   0x4   :  { %40 = vmatpush.msra.mxu0 %v21_v1  ;;  %v14_v8 = vld [vmem:[%s149_s0] sm:$0xff] }
   0x5   :  { %v95_v9 = vld [vmem:[%s151_s2] ss:$0 sm:$0xff] }
   0x6   :  { %41 = vmatpush.msra.mxu0 %v20_v2 }
   0x8   :  { %42 = vmatpush.msra.mxu0 %v19_v3 }
   0xa   :  { %43 = vmatpush.msra.mxu0 %v18_v4 }
   0xc   :  { %44 = vmatpush.msra.mxu0 %v17_v5 }
   0xe   :  { %45 = vmatpush.msra.mxu0 %v16_v6 }
  0x10   :  { %46 = vmatpush.msra.mxu0 %v15_v7 }
  0x11   :  { %94 = vmatmul.msk.f32.vlgmr.msra.gmra.mxu0 %vm27_vm0, %v14_v8 }
  0x8e   :  { %v48_v10 = vpop.f32.mrf.mxu0 }
  0x8f   :  { %v49_v11 = vadd.f32 %v95_v9, %v48_v10 }
  0x91   :  { %52 = vst.msk [vmem:[#allocation2] sm:$0xff] %vm51_vm1, %v49_v11 }
  0x98   :  { %v71_v12 = vld [vmem:[#allocation2] sm:$0x3] }
  0x99   :  { %72 = vst [vmem:[%s152_s3] sm:$0x3] %v71_v12 }

// kernel: cae4_forward.17
= control target key start
LH: loop header
LB: loop body
LE: loop exit
PB: predicated region body
PF: predicated region fallthrough
CT: control target
= control target key end

     0   :  { %vm25_vm0 = vcmask 1041408   ;;  %vm21_vm1 = vcmask 80896   ;;  %vm52_vm3 = vcmask 523264   ;;  %s133_s0 = inlined_call_operand.vmem [shape: f32[2,10], index: 0, kind: input, shape index: {}]   ;;  %s134_s1 = inlined_call_operand.vmem [shape: f32[10,64], index: 1, kind: input, shape index: {}]   ;;  %s135_s2 = inlined_call_operand.vmem [shape: f32[1,64], index: 2, kind: input, shape index: {}]   ;;  %s136_s3 = inlined_call_operand.vmem [shape: f32[2,64], index: 3, kind: output, shape index: {}]  }
   0x1   :  { %v16_v0 = vld [vmem:[%s134_s1 + $0x8] sm:$0x3]  ;;  %v15_v1 = vld [vmem:[%s134_s1] sm:$0xff] }
   0x2   :  { %95 = vmatpush.msk.msra.mxu0 %vm25_vm0, %v16_v0  ;;  %v14_v2 = vld [vmem:[%s133_s0] sm:$0xff] }
   0x3   :  { %v97_v3 = vld [vmem:[%s135_s2] ss:$0 sm:$0xff] }
   0x4   :  { %44 = vmatpush.msra.mxu0 %v15_v1 }
   0x5   :  { %96 = vmatmul.msk.f32.vlgmr.msra.gmra.mxu0 %vm21_vm1, %v14_v2 }
  0x82   :  { %v46_v4 = vpop.f32.mrf.mxu0 }
  0x83   :  { %v47_v5 = vadd.f32 %v97_v3, %v46_v4 }
  0x85   :  { %vm49_vm2 = vcmp.ge.f32.partialorder %v47_v5, 0.0  ;;  %v50_v6 = vmul.f32 0.01, %v47_v5 }
  0x87   :  { %v51_v7 = vsel %vm49_vm2, %v47_v5, %v50_v6 }
  0x88   :  { %53 = vst.msk [vmem:[#allocation2] sm:$0xff] %vm52_vm3, %v51_v7 }
  0x8f   :  { %v72_v8 = vld [vmem:[#allocation2] sm:$0x3] }
  0x90   :  { %73 = vst [vmem:[%s136_s3] sm:$0x3] %v72_v8 }

// kernel: cae4_forward.18
= control target key start
LH: loop header
LB: loop body
LE: loop exit
PB: predicated region body
PF: predicated region fallthrough
CT: control target
= control target key end

     0   :  { %vm110_vm0 = vcmask 523264   ;;  %vm280_vm1 = vcmask 261120   ;;  %s633_s1 = inlined_call_operand.vmem [shape: f32[576,32], index: 1, kind: input, shape index: {}]   ;;  %s634_s0 = inlined_call_operand.vmem [shape: f32[32,576], index: 0, kind: input, shape index: {}]   ;;  %s635_s2 = inlined_call_operand.vmem [shape: f32[1,32], index: 2, kind: input, shape index: {}]   ;;  %s636_s3 = inlined_call_operand.vmem [shape: f32[32,32], index: 3, kind: output, shape index: {}]  }
   0x1   :  { %v49_v0 = vld [vmem:[%s633_s1 + $0x78] sm:$0xff]  ;;  %v48_v4 = vld [vmem:[%s633_s1 + $0x70] sm:$0xff]  ;;  %v47_v8 = vld [vmem:[%s633_s1 + $0x68] sm:$0xff] }
   0x2   :  { %v65_v1 = vld [vmem:[%s633_s1 + $0xf8] sm:$0xff]  ;;  %123 = vmatpush.msra.mxu0 %v49_v0  ;;  %v64_v5 = vld [vmem:[%s633_s1 + $0xf0] sm:$0xff]  ;;  %v63_v9 = vld [vmem:[%s633_s1 + $0xe8] sm:$0xff] }
   0x3   :  { %v81_v2 = vld [vmem:[%s633_s1 + $0x178] sm:$0xff]  ;;  %152 = vmatpush.msra.mxu1 %v65_v1  ;;  %v80_v6 = vld [vmem:[%s633_s1 + $0x170] sm:$0xff]  ;;  %v79_v10 = vld [vmem:[%s633_s1 + $0x168] sm:$0xff] }
   0x4   :  { %v97_v3 = vld [vmem:[%s633_s1 + $0x1f8] sm:$0xff]  ;;  %181 = vmatpush.msra.mxu2 %v81_v2  ;;  %v96_v7 = vld [vmem:[%s633_s1 + $0x1f0] sm:$0xff]  ;;  %124 = vmatpush.msra.mxu0 %v48_v4  ;;  %v95_v11 = vld [vmem:[%s633_s1 + $0x1e8] sm:$0xff] }
   0x5   :  { %210 = vmatpush.msra.mxu3 %v97_v3  ;;  %153 = vmatpush.msra.mxu1 %v64_v5  ;;  %v46_v12 = vld [vmem:[%s633_s1 + $0x60] sm:$0xff]  ;;  %v45_v16 = vld [vmem:[%s633_s1 + $0x58] sm:$0xff]  ;;  %v44_v20 = vld [vmem:[%s633_s1 + $0x50] sm:$0xff] }
   0x6   :  { %182 = vmatpush.msra.mxu2 %v80_v6  ;;  %v62_v13 = vld [vmem:[%s633_s1 + $0xe0] sm:$0xff]  ;;  %125 = vmatpush.msra.mxu0 %v47_v8  ;;  %v61_v17 = vld [vmem:[%s633_s1 + $0xd8] sm:$0xff]  ;;  %v60_v21 = vld [vmem:[%s633_s1 + $0xd0] sm:$0xff] }
   0x7   :  { %211 = vmatpush.msra.mxu3 %v96_v7  ;;  %154 = vmatpush.msra.mxu1 %v63_v9  ;;  %v78_v14 = vld [vmem:[%s633_s1 + $0x160] sm:$0xff]  ;;  %v77_v18 = vld [vmem:[%s633_s1 + $0x158] sm:$0xff]  ;;  %v76_v22 = vld [vmem:[%s633_s1 + $0x150] sm:$0xff] }
   0x8   :  { %v94_v15 = vld [vmem:[%s633_s1 + $0x1e0] sm:$0xff]  ;;  %183 = vmatpush.msra.mxu2 %v79_v10  ;;  %126 = vmatpush.msra.mxu0 %v46_v12  ;;  %v93_v19 = vld [vmem:[%s633_s1 + $0x1d8] sm:$0xff]  ;;  %v92_v23 = vld [vmem:[%s633_s1 + $0x1d0] sm:$0xff] }
   0x9   :  { %212 = vmatpush.msra.mxu3 %v95_v11  ;;  %155 = vmatpush.msra.mxu1 %v62_v13  ;;  %v43_v24 = vld [vmem:[%s633_s1 + $0x48] sm:$0xff]  ;;  %v42_v28 = vld [vmem:[%s633_s1 + $0x40] sm:$0xff]  ;;  %v41_v32 = vld [vmem:[%s633_s1 + $0x38] sm:$0xff] }
   0xa   :  { %184 = vmatpush.msra.mxu2 %v78_v14  ;;  %127 = vmatpush.msra.mxu0 %v45_v16  ;;  %v59_v25 = vld [vmem:[%s633_s1 + $0xc8] sm:$0xff]  ;;  %v58_v29 = vld [vmem:[%s633_s1 + $0xc0] sm:$0xff]  ;;  %v57_v33 = vld [vmem:[%s633_s1 + $0xb8] sm:$0xff] }
   0xb   :  { %213 = vmatpush.msra.mxu3 %v94_v15  ;;  %156 = vmatpush.msra.mxu1 %v61_v17  ;;  %v75_v26 = vld [vmem:[%s633_s1 + $0x148] sm:$0xff]  ;;  %v74_v30 = vld [vmem:[%s633_s1 + $0x140] sm:$0xff]  ;;  %v73_v34 = vld [vmem:[%s633_s1 + $0x138] sm:$0xff] }
   0xc   :  { %185 = vmatpush.msra.mxu2 %v77_v18  ;;  %128 = vmatpush.msra.mxu0 %v44_v20  ;;  %v91_v27 = vld [vmem:[%s633_s1 + $0x1c8] sm:$0xff]  ;;  %v90_v31 = vld [vmem:[%s633_s1 + $0x1c0] sm:$0xff]  ;;  %v89_v35 = vld [vmem:[%s633_s1 + $0x1b8] sm:$0xff] }
   0xd   :  { %214 = vmatpush.msra.mxu3 %v93_v19  ;;  %157 = vmatpush.msra.mxu1 %v60_v21  ;;  %v40_v36 = vld [vmem:[%s633_s1 + $0x30] sm:$0xff]  ;;  %v39_v40 = vld [vmem:[%s633_s1 + $0x28] sm:$0xff]  ;;  %v38_v44 = vld [vmem:[%s633_s1 + $0x20] sm:$0xff] }
   0xe   :  { %186 = vmatpush.msra.mxu2 %v76_v22  ;;  %129 = vmatpush.msra.mxu0 %v43_v24  ;;  %v56_v37 = vld [vmem:[%s633_s1 + $0xb0] sm:$0xff]  ;;  %v55_v41 = vld [vmem:[%s633_s1 + $0xa8] sm:$0xff]  ;;  %v54_v45 = vld [vmem:[%s633_s1 + $0xa0] sm:$0xff] }
   0xf   :  { %215 = vmatpush.msra.mxu3 %v92_v23  ;;  %158 = vmatpush.msra.mxu1 %v59_v25  ;;  %v72_v38 = vld [vmem:[%s633_s1 + $0x130] sm:$0xff]  ;;  %v71_v42 = vld [vmem:[%s633_s1 + $0x128] sm:$0xff]  ;;  %v70_v46 = vld [vmem:[%s633_s1 + $0x120] sm:$0xff] }
  0x10   :  { %187 = vmatpush.msra.mxu2 %v75_v26  ;;  %130 = vmatpush.msra.mxu0 %v42_v28  ;;  %v88_v39 = vld [vmem:[%s633_s1 + $0x1b0] sm:$0xff]  ;;  %v87_v43 = vld [vmem:[%s633_s1 + $0x1a8] sm:$0xff]  ;;  %v86_v47 = vld [vmem:[%s633_s1 + $0x1a0] sm:$0xff] }
  0x11   :  { %216 = vmatpush.msra.mxu3 %v91_v27  ;;  %159 = vmatpush.msra.mxu1 %v58_v29  ;;  %v37_v48 = vld [vmem:[%s633_s1 + $0x18] sm:$0xff]  ;;  %v36_v52 = vld [vmem:[%s633_s1 + $0x10] sm:$0xff]  ;;  %v35_v56 = vld [vmem:[%s633_s1 + $0x8] sm:$0xff] }
  0x12   :  { %188 = vmatpush.msra.mxu2 %v74_v30  ;;  %131 = vmatpush.msra.mxu0 %v41_v32  ;;  %v53_v49 = vld [vmem:[%s633_s1 + $0x98] sm:$0xff]  ;;  %v52_v53 = vld [vmem:[%s633_s1 + $0x90] sm:$0xff]  ;;  %v51_v57 = vld [vmem:[%s633_s1 + $0x88] sm:$0xff] }
  0x13   :  { %217 = vmatpush.msra.mxu3 %v90_v31  ;;  %160 = vmatpush.msra.mxu1 %v57_v33  ;;  %v69_v50 = vld [vmem:[%s633_s1 + $0x118] sm:$0xff]  ;;  %v68_v54 = vld [vmem:[%s633_s1 + $0x110] sm:$0xff]  ;;  %v67_v58 = vld [vmem:[%s633_s1 + $0x108] sm:$0xff] }
  0x14   :  { %189 = vmatpush.msra.mxu2 %v73_v34  ;;  %132 = vmatpush.msra.mxu0 %v40_v36  ;;  %v85_v51 = vld [vmem:[%s633_s1 + $0x198] sm:$0xff]  ;;  %v84_v55 = vld [vmem:[%s633_s1 + $0x190] sm:$0xff]  ;;  %v83_v59 = vld [vmem:[%s633_s1 + $0x188] sm:$0xff] }
  0x15   :  { %218 = vmatpush.msra.mxu3 %v89_v35  ;;  %161 = vmatpush.msra.mxu1 %v56_v37  ;;  %v34_v60 = vld [vmem:[%s633_s1] sm:$0xff]  ;;  %v15_v1 = vld [vmem:[%s634_s0 + $0x8] sm:$0xff]  ;;  %v16_v2 = vld [vmem:[%s634_s0 + $0x10] sm:$0xff] }
  0x16   :  { %190 = vmatpush.msra.mxu2 %v72_v38  ;;  %133 = vmatpush.msra.mxu0 %v39_v40  ;;  %v50_v61 = vld [vmem:[%s633_s1 + $0x80] sm:$0xff]  ;;  %v17_v3 = vld [vmem:[%s634_s0 + $0x18] sm:$0xff]  ;;  %v104_v5 = vld [vmem:[%s633_s1 + $0x230] sm:$0xff] }
  0x17   :  { %219 = vmatpush.msra.mxu3 %v88_v39  ;;  %162 = vmatpush.msra.mxu1 %v55_v41  ;;  %v66_v62 = vld [vmem:[%s633_s1 + $0x100] sm:$0xff]  ;;  %v105_v4 = vld [vmem:[%s633_s1 + $0x238] sm:$0xff]  ;;  %v103_v6 = vld [vmem:[%s633_s1 + $0x228] sm:$0xff] }
  0x18   :  { %191 = vmatpush.msra.mxu2 %v71_v42  ;;  %134 = vmatpush.msra.mxu0 %v38_v44  ;;  %v82_v63 = vld [vmem:[%s633_s1 + $0x180] sm:$0xff]  ;;  %v19_v7 = vld [vmem:[%s634_s0 + $0x28] sm:$0xff]  ;;  %v20_v8 = vld [vmem:[%s634_s0 + $0x30] sm:$0xff] }
  0x19   :  { %220 = vmatpush.msra.mxu3 %v87_v43  ;;  %163 = vmatpush.msra.mxu1 %v54_v45  ;;  %v14_v0 = vld [vmem:[%s634_s0] sm:$0xff]  ;;  %v21_v9 = vld [vmem:[%s634_s0 + $0x38] sm:$0xff]  ;;  %v100_v13 = vld [vmem:[%s633_s1 + $0x210] sm:$0xff] }
  0x1a   :  { %192 = vmatpush.msra.mxu2 %v70_v46  ;;  %135 = vmatpush.msra.mxu0 %v37_v48  ;;  %v22_v10 = vld [vmem:[%s634_s0 + $0x40] sm:$0xff]  ;;  %v101_v12 = vld [vmem:[%s633_s1 + $0x218] sm:$0xff]  ;;  %v24_v14 = vld [vmem:[%s634_s0 + $0x50] sm:$0xff] }
  0x1b   :  { %221 = vmatpush.msra.mxu3 %v86_v47  ;;  %164 = vmatpush.msra.mxu1 %v53_v49  ;;  %v102_v11 = vld [vmem:[%s633_s1 + $0x220] sm:$0xff]  ;;  %v25_v15 = vld [vmem:[%s634_s0 + $0x58] sm:$0xff]  ;;  %v27_v17 = vld [vmem:[%s634_s0 + $0x68] sm:$0xff] }
  0x1c   :  { %193 = vmatpush.msra.mxu2 %v69_v50  ;;  %136 = vmatpush.msra.mxu0 %v36_v52  ;;  %v26_v16 = vld [vmem:[%s634_s0 + $0x60] sm:$0xff]  ;;  %v99_v18 = vld [vmem:[%s633_s1 + $0x208] sm:$0xff]  ;;  %v29_v20 = vld [vmem:[%s634_s0 + $0x78] sm:$0xff] }
  0x1d   :  { %222 = vmatpush.msra.mxu3 %v85_v51  ;;  %165 = vmatpush.msra.mxu1 %v52_v53  ;;  %v98_v19 = vld [vmem:[%s633_s1 + $0x200] sm:$0xff]  ;;  %v31_v22 = vld [vmem:[%s634_s0 + $0x88] sm:$0xff]  ;;  %v32_v23 = vld [vmem:[%s634_s0 + $0x90] sm:$0xff] }
  0x1e   :  { %194 = vmatpush.msra.mxu2 %v68_v54  ;;  %137 = vmatpush.msra.mxu0 %v35_v56  ;;  %v30_v21 = vld [vmem:[%s634_s0 + $0x80] sm:$0xff]  ;;  %v23_v25 = vld [vmem:[%s634_s0 + $0x48] sm:$0xff]  ;;  %v28_v26 = vld [vmem:[%s634_s0 + $0x70] sm:$0xff] }
  0x1f   :  { %223 = vmatpush.msra.mxu3 %v84_v55  ;;  %166 = vmatpush.msra.mxu1 %v51_v57  ;;  %v18_v24 = vld [vmem:[%s634_s0 + $0x20] sm:$0xff]  ;;  %v33_v27 = vld [vmem:[%s634_s0 + $0x98] sm:$0xff] }
  0x20   :  { %195 = vmatpush.msra.mxu2 %v67_v58  ;;  %138 = vmatpush.msra.mxu0 %v34_v60  ;;  %v317_v34 = vld [vmem:[%s635_s2] ss:$0 sm:$0xff] }
  0x21   :  { %224 = vmatpush.msra.mxu3 %v83_v59  ;;  %167 = vmatpush.msra.mxu1 %v50_v61 }
  0x22   :  { %196 = vmatpush.msra.mxu2 %v66_v62  ;;  %139 = vmatmul.f32.vlgmr.msra.gmra.mxu0 %v14_v0 }
  0x23   :  { %225 = vmatpush.msra.mxu3 %v82_v63  ;;  %168 = vmatmul.f32.vlgmr.msra.gmra.mxu1 %v15_v1 }
  0x24   :  { %197 = vmatmul.f32.vlgmr.msra.gmra.mxu2 %v16_v2  ;;  %226 = vmatmul.f32.vlgmr.msra.gmra.mxu3 %v17_v3 }
  0x25   :  { %294 = vmatpush.msrb.mxu2 %v105_v4  ;;  %295 = vmatpush.msrb.mxu3 %v105_v4 }
  0x26   :  { %247 = vmatpush.msrb.mxu0 %v105_v4  ;;  %293 = vmatpush.msrb.mxu1 %v105_v4 }
  0x27   :  { %297 = vmatpush.msrb.mxu2 %v104_v5  ;;  %298 = vmatpush.msrb.mxu3 %v104_v5 }
  0x28   :  { %248 = vmatpush.msrb.mxu0 %v104_v5  ;;  %296 = vmatpush.msrb.mxu1 %v104_v5 }
  0x29   :  { %300 = vmatpush.msrb.mxu2 %v103_v6  ;;  %301 = vmatpush.msrb.mxu3 %v103_v6 }
  0x2a   :  { %249 = vmatpush.msrb.mxu0 %v103_v6  ;;  %299 = vmatpush.msrb.mxu1 %v103_v6 }
  0x2b   :  { %142 = vmatmul.f32.gmra.mxu0 %v19_v7  ;;  %171 = vmatmul.f32.gmra.mxu1 %v20_v8 }
  0x2c   :  { %200 = vmatmul.f32.gmra.mxu2 %v21_v9  ;;  %229 = vmatmul.f32.gmra.mxu3 %v22_v10 }
  0x2d   :  { %303 = vmatpush.msrb.mxu2 %v102_v11  ;;  %304 = vmatpush.msrb.mxu3 %v102_v11 }
  0x2e   :  { %250 = vmatpush.msrb.mxu0 %v102_v11  ;;  %302 = vmatpush.msrb.mxu1 %v102_v11 }
  0x2f   :  { %306 = vmatpush.msrb.mxu2 %v101_v12  ;;  %307 = vmatpush.msrb.mxu3 %v101_v12 }
  0x30   :  { %251 = vmatpush.msrb.mxu0 %v101_v12  ;;  %305 = vmatpush.msrb.mxu1 %v101_v12 }
  0x31   :  { %309 = vmatpush.msrb.mxu2 %v100_v13  ;;  %310 = vmatpush.msrb.mxu3 %v100_v13 }
  0x32   :  { %252 = vmatpush.msrb.mxu0 %v100_v13  ;;  %308 = vmatpush.msrb.mxu1 %v100_v13 }
  0x33   :  { %145 = vmatmul.f32.gmra.mxu0 %v24_v14  ;;  %174 = vmatmul.f32.gmra.mxu1 %v25_v15 }
  0x34   :  { %203 = vmatmul.f32.gmra.mxu2 %v26_v16  ;;  %232 = vmatmul.f32.gmra.mxu3 %v27_v17 }
  0x35   :  { %312 = vmatpush.msrb.mxu2 %v99_v18  ;;  %313 = vmatpush.msrb.mxu3 %v99_v18 }
  0x36   :  { %253 = vmatpush.msrb.mxu0 %v99_v18  ;;  %311 = vmatpush.msrb.mxu1 %v99_v18 }
  0x37   :  { %315 = vmatpush.msrb.mxu2 %v98_v19  ;;  %316 = vmatpush.msrb.mxu3 %v98_v19 }
  0x38   :  { %254 = vmatpush.msrb.mxu0 %v98_v19  ;;  %314 = vmatpush.msrb.mxu1 %v98_v19 }
  0x3b   :  { %148 = vmatmul.f32.gmra.mxu0 %v29_v20  ;;  %177 = vmatmul.f32.gmra.mxu1 %v30_v21 }
  0x3c   :  { %206 = vmatmul.f32.gmra.mxu2 %v31_v22  ;;  %235 = vmatmul.f32.gmra.mxu3 %v32_v23 }
  0x43   :  { %289 = vmatmul.msk.f32.vlgmr.msrb.gmra.mxu0 %vm110_vm0, %v18_v24  ;;  %290 = vmatmul.msk.f32.vlgmr.msrb.gmra.mxu1 %vm110_vm0, %v23_v25 }
  0x44   :  { %291 = vmatmul.msk.f32.vlgmr.msrb.gmra.mxu2 %vm110_vm0, %v28_v26  ;;  %292 = vmatmul.msk.f32.vlgmr.msrb.gmra.mxu3 %vm110_vm0, %v33_v27 }
  0x9f   :  { %v140_v28 = vpop.f32.mrf.mxu0 }
  0xa0   :  { %v169_v29 = vpop.f32.mrf.mxu1  ;;  %v141_v39 = vadd.f32 %v317_v34, %v140_v28 }
  0xa2   :  { %v170_v41 = vadd.f32 %v169_v29, %v141_v39 }
  0xa7   :  { %v198_v30 = vpop.f32.mrf.mxu2  ;;  %v227_v31 = vpop.f32.mrf.mxu3 }
  0xa8   :  { %v143_v32 = vpop.f32.mrf.mxu0  ;;  %v172_v33 = vpop.f32.mrf.mxu1  ;;  %v199_v49 = vadd.f32 %v198_v30, %v170_v41 }
  0xa9   :  { %v144_v40 = vadd.f32 %v317_v34, %v143_v32 }
  0xaa   :  { %v228_v53 = vadd.f32 %v227_v31, %v199_v49 }
  0xab   :  { %v173_v42 = vadd.f32 %v172_v33, %v144_v40 }
  0xaf   :  { %v201_v35 = vpop.f32.mrf.mxu2  ;;  %v230_v36 = vpop.f32.mrf.mxu3 }
  0xb0   :  { %v146_v37 = vpop.f32.mrf.mxu0  ;;  %v175_v38 = vpop.f32.mrf.mxu1  ;;  %v202_v50 = vadd.f32 %v201_v35, %v173_v42 }
  0xb1   :  { %v147_v47 = vadd.f32 %v317_v34, %v146_v37 }
  0xb2   :  { %v231_v54 = vadd.f32 %v230_v36, %v202_v50 }
  0xb3   :  { %v176_v51 = vadd.f32 %v175_v38, %v147_v47 }
  0xb7   :  { %v204_v43 = vpop.f32.mrf.mxu2  ;;  %v233_v44 = vpop.f32.mrf.mxu3 }
  0xb8   :  { %v149_v45 = vpop.f32.mrf.mxu0  ;;  %v178_v46 = vpop.f32.mrf.mxu1  ;;  %v205_v61 = vadd.f32 %v204_v43, %v176_v51 }
  0xb9   :  { %v150_v48 = vadd.f32 %v317_v34, %v149_v45 }
  0xba   :  { %v234_v3 = vadd.f32 %v233_v44, %v205_v61 }
  0xbb   :  { %v179_v52 = vadd.f32 %v178_v46, %v150_v48 }
  0xbf   :  { %v207_v55 = vpop.f32.mrf.mxu2  ;;  %v236_v56 = vpop.f32.mrf.mxu3 }
  0xc0   :  { %v256_v57 = vpop.f32.mrf.mxu0  ;;  %v259_v58 = vpop.f32.mrf.mxu1  ;;  %v208_v62 = vadd.f32 %v207_v55, %v179_v52 }
  0xc1   :  { %v257_v59 = vadd.f32 %v256_v57, %v228_v53  ;;  %v260_v60 = vadd.f32 %v259_v58, %v231_v54 }
  0xc2   :  { %v237_v4 = vadd.f32 %v236_v56, %v208_v62 }
  0xc3   :  { %vm268_vm2 = vcmp.ge.f32.partialorder %v257_v59, 0.0  ;;  %v272_v63 = vmul.f32 0.01, %v257_v59  ;;  %vm269_vm3 = vcmp.ge.f32.partialorder %v260_v60, 0.0  ;;  %v273_v0 = vmul.f32 0.01, %v260_v60 }
  0xc5   :  { %v276_v1 = vsel %vm268_vm2, %v257_v59, %v272_v63  ;;  %v277_v2 = vsel %vm269_vm3, %v260_v60, %v273_v0 }
  0xc6   :  { %281 = vst.msk [vmem:[%s636_s3] sm:$0xff] %vm280_vm1, %v276_v1 }
  0xc7   :  { %282 = vst.msk [vmem:[%s636_s3 + $0x8] sm:$0xff] %vm280_vm1, %v277_v2  ;;  %v262_v5 = vpop.f32.mrf.mxu2  ;;  %v265_v6 = vpop.f32.mrf.mxu3 }
  0xc8   :  { %v263_v7 = vadd.f32 %v262_v5, %v234_v3  ;;  %v266_v8 = vadd.f32 %v265_v6, %v237_v4 }
  0xca   :  { %vm270_vm4 = vcmp.ge.f32.partialorder %v263_v7, 0.0  ;;  %v274_v9 = vmul.f32 0.01, %v263_v7  ;;  %vm271_vm5 = vcmp.ge.f32.partialorder %v266_v8, 0.0  ;;  %v275_v10 = vmul.f32 0.01, %v266_v8 }
  0xcc   :  { %v278_v11 = vsel %vm270_vm4, %v263_v7, %v274_v9  ;;  %v279_v12 = vsel %vm271_vm5, %v266_v8, %v275_v10 }
  0xcd   :  { %283 = vst.msk [vmem:[%s636_s3 + $0x10] sm:$0xff] %vm280_vm1, %v278_v11 }
  0xce   :  { %284 = vst.msk [vmem:[%s636_s3 + $0x18] sm:$0xff] %vm280_vm1, %v279_v12 }

// kernel: cae4_forward.19
= control target key start
LH: loop header
LB: loop body
LE: loop exit
PB: predicated region body
PF: predicated region fallthrough
CT: control target
= control target key end

     0   :  { %vm230_vm0 = vcmask 261120   ;;  %vm782_vm2 = vcmask 130048   ;;  %s1822_s1 = inlined_call_operand.vmem [shape: f32[800,16], index: 1, kind: input, shape index: {}]   ;;  %s1823_s2 = inlined_call_operand.vmem [shape: f32[1,16], index: 2, kind: input, shape index: {}]   ;;  %s1824_s0 = inlined_call_operand.vmem [shape: f32[128,800], index: 0, kind: input, shape index: {}]   ;;  %s1825_s3 = inlined_call_operand.vmem [shape: f32[128,16], index: 3, kind: output, shape index: {}]  }
   0x1   :  { %v141_v0 = vld [vmem:[%s1822_s1 + $0x78] sm:$0xff]  ;;  %v140_v1 = vld [vmem:[%s1822_s1 + $0x70] sm:$0xff]  ;;  %v139_v4 = vld [vmem:[%s1822_s1 + $0x68] sm:$0xff] }
   0x2   :  { %279 = vmatpush.msra.mxu0 %v141_v0  ;;  %819 = vmatpush.msra.mxu3 %v141_v0  ;;  %v897_v2 = vld [vmem:[%s1822_s1 + $0x178] sm:$0xff]  ;;  %v902_v3 = vld [vmem:[%s1822_s1 + $0x170] sm:$0xff]  ;;  %v916_v6 = vld [vmem:[%s1822_s1 + $0x168] sm:$0xff] }
   0x3   :  { %851 = vmatpush.msra.mxu2 %v897_v2  ;;  %v911_v5 = vld [vmem:[%s1822_s1 + $0xf8] sm:$0xff]  ;;  %v921_v7 = vld [vmem:[%s1822_s1 + $0xf0] sm:$0xff]  ;;  %v138_v8 = vld [vmem:[%s1822_s1 + $0x60] sm:$0xff] }
   0x4   :  { %280 = vmatpush.msra.mxu0 %v140_v1  ;;  %820 = vmatpush.msra.mxu3 %v140_v1  ;;  %v931_v9 = vld [vmem:[%s1822_s1 + $0x160] sm:$0xff]  ;;  %v936_v10 = vld [vmem:[%s1822_s1 + $0xe8] sm:$0xff]  ;;  %v137_v11 = vld [vmem:[%s1822_s1 + $0x58] sm:$0xff] }
   0x5   :  { %852 = vmatpush.msra.mxu2 %v902_v3  ;;  %835 = vmatpush.msra.mxu1 %v911_v5  ;;  %v946_v12 = vld [vmem:[%s1822_s1 + $0x158] sm:$0xff]  ;;  %v951_v13 = vld [vmem:[%s1822_s1 + $0xe0] sm:$0xff]  ;;  %v136_v14 = vld [vmem:[%s1822_s1 + $0x50] sm:$0xff] }
   0x6   :  { %281 = vmatpush.msra.mxu0 %v139_v4  ;;  %821 = vmatpush.msra.mxu3 %v139_v4  ;;  %v961_v15 = vld [vmem:[%s1822_s1 + $0x150] sm:$0xff]  ;;  %v966_v16 = vld [vmem:[%s1822_s1 + $0xd8] sm:$0xff]  ;;  %v135_v17 = vld [vmem:[%s1822_s1 + $0x48] sm:$0xff] }
   0x7   :  { %853 = vmatpush.msra.mxu2 %v916_v6  ;;  %836 = vmatpush.msra.mxu1 %v921_v7  ;;  %v976_v18 = vld [vmem:[%s1822_s1 + $0x148] sm:$0xff]  ;;  %v981_v19 = vld [vmem:[%s1822_s1 + $0xd0] sm:$0xff]  ;;  %v134_v20 = vld [vmem:[%s1822_s1 + $0x40] sm:$0xff] }
   0x8   :  { %282 = vmatpush.msra.mxu0 %v138_v8  ;;  %822 = vmatpush.msra.mxu3 %v138_v8  ;;  %v991_v21 = vld [vmem:[%s1822_s1 + $0x140] sm:$0xff]  ;;  %v996_v22 = vld [vmem:[%s1822_s1 + $0xc8] sm:$0xff]  ;;  %v133_v23 = vld [vmem:[%s1822_s1 + $0x38] sm:$0xff] }
   0x9   :  { %854 = vmatpush.msra.mxu2 %v931_v9  ;;  %837 = vmatpush.msra.mxu1 %v936_v10  ;;  %v1006_v24 = vld [vmem:[%s1822_s1 + $0x138] sm:$0xff]  ;;  %v1011_v25 = vld [vmem:[%s1822_s1 + $0xc0] sm:$0xff]  ;;  %v132_v26 = vld [vmem:[%s1822_s1 + $0x30] sm:$0xff] }
   0xa   :  { %283 = vmatpush.msra.mxu0 %v137_v11  ;;  %823 = vmatpush.msra.mxu3 %v137_v11  ;;  %v1021_v27 = vld [vmem:[%s1822_s1 + $0x130] sm:$0xff]  ;;  %v1026_v28 = vld [vmem:[%s1822_s1 + $0xb8] sm:$0xff]  ;;  %v131_v29 = vld [vmem:[%s1822_s1 + $0x28] sm:$0xff] }
   0xb   :  { %855 = vmatpush.msra.mxu2 %v946_v12  ;;  %838 = vmatpush.msra.mxu1 %v951_v13  ;;  %v1036_v30 = vld [vmem:[%s1822_s1 + $0x128] sm:$0xff]  ;;  %v1041_v31 = vld [vmem:[%s1822_s1 + $0xb0] sm:$0xff]  ;;  %v130_v32 = vld [vmem:[%s1822_s1 + $0x20] sm:$0xff] }
   0xc   :  { %284 = vmatpush.msra.mxu0 %v136_v14  ;;  %824 = vmatpush.msra.mxu3 %v136_v14  ;;  %v1051_v33 = vld [vmem:[%s1822_s1 + $0x120] sm:$0xff]  ;;  %v1056_v34 = vld [vmem:[%s1822_s1 + $0xa8] sm:$0xff]  ;;  %v129_v35 = vld [vmem:[%s1822_s1 + $0x18] sm:$0xff] }
   0xd   :  { %856 = vmatpush.msra.mxu2 %v961_v15  ;;  %839 = vmatpush.msra.mxu1 %v966_v16  ;;  %v1066_v36 = vld [vmem:[%s1822_s1 + $0x118] sm:$0xff]  ;;  %v1071_v37 = vld [vmem:[%s1822_s1 + $0xa0] sm:$0xff]  ;;  %v128_v38 = vld [vmem:[%s1822_s1 + $0x10] sm:$0xff] }
   0xe   :  { %285 = vmatpush.msra.mxu0 %v135_v17  ;;  %825 = vmatpush.msra.mxu3 %v135_v17  ;;  %v1081_v39 = vld [vmem:[%s1822_s1 + $0x110] sm:$0xff]  ;;  %v1086_v40 = vld [vmem:[%s1822_s1 + $0x98] sm:$0xff]  ;;  %v127_v41 = vld [vmem:[%s1822_s1 + $0x8] sm:$0xff] }
   0xf   :  { %857 = vmatpush.msra.mxu2 %v976_v18  ;;  %840 = vmatpush.msra.mxu1 %v981_v19  ;;  %v1096_v42 = vld [vmem:[%s1822_s1 + $0x108] sm:$0xff]  ;;  %v1101_v43 = vld [vmem:[%s1822_s1 + $0x90] sm:$0xff]  ;;  %v126_v44 = vld [vmem:[%s1822_s1] sm:$0xff] }
  0x10   :  { %286 = vmatpush.msra.mxu0 %v134_v20  ;;  %826 = vmatpush.msra.mxu3 %v134_v20  ;;  %v14_v45 = vld [vmem:[%s1824_s0] sm:$0xff]  ;;  %v189_v47 = vld [vmem:[%s1822_s1 + $0x1f8] sm:$0xff]  ;;  %v1127_v49 = vld [vmem:[%s1822_s1 + $0x88] sm:$0xff] }
  0x11   :  { %858 = vmatpush.msra.mxu2 %v991_v21  ;;  %841 = vmatpush.msra.mxu1 %v996_v22  ;;  %v42_v46 = vld [vmem:[%s1824_s0 + $0xe0] sm:$0xff]  ;;  %v44_v50 = vld [vmem:[%s1824_s0 + $0xf0] sm:$0xff]  ;;  %v225_v52 = vld [vmem:[%s1822_s1 + $0x318] sm:$0xff] }
  0x12   :  { %287 = vmatpush.msra.mxu0 %v133_v23  ;;  %827 = vmatpush.msra.mxu3 %v133_v23  ;;  %v1122_v48 = vld [vmem:[%s1822_s1 + $0x100] sm:$0xff]  ;;  %v188_v51 = vld [vmem:[%s1822_s1 + $0x1f0] sm:$0xff]  ;;  %v43_v54 = vld [vmem:[%s1824_s0 + $0xe8] sm:$0xff] }
  0x13   :  { %859 = vmatpush.msra.mxu2 %v1006_v24  ;;  %842 = vmatpush.msra.mxu1 %v1011_v25  ;;  %v1144_v53 = vld [vmem:[%s1822_s1 + $0x80] sm:$0xff]  ;;  %v187_v55 = vld [vmem:[%s1822_s1 + $0x1e8] sm:$0xff]  ;;  %v221_v56 = vld [vmem:[%s1822_s1 + $0x2f8] sm:$0xff] }
  0x14   :  { %288 = vmatpush.msra.mxu0 %v132_v26  ;;  %828 = vmatpush.msra.mxu3 %v132_v26  ;;  %v21_v57 = vld [vmem:[%s1824_s0 + $0x38] sm:$0xff]  ;;  %v220_v59 = vld [vmem:[%s1822_s1 + $0x2f0] sm:$0xff]  ;;  %v186_v60 = vld [vmem:[%s1822_s1 + $0x1e0] sm:$0xff] }
  0x15   :  { %860 = vmatpush.msra.mxu2 %v1021_v27  ;;  %843 = vmatpush.msra.mxu1 %v1026_v28  ;;  %v49_v58 = vld [vmem:[%s1824_s0 + $0x118] sm:$0xff]  ;;  %v224_v61 = vld [vmem:[%s1822_s1 + $0x310] sm:$0xff]  ;;  %v51_v62 = vld [vmem:[%s1824_s0 + $0x128] sm:$0xff] }
  0x16   :  { %289 = vmatpush.msra.mxu0 %v131_v29  ;;  %829 = vmatpush.msra.mxu3 %v131_v29  ;;  %v219_v63 = vld [vmem:[%s1822_s1 + $0x2e8] sm:$0xff]  ;;  %v185_v0 = vld [vmem:[%s1822_s1 + $0x1d8] sm:$0xff]  ;;  %v50_v1 = vld [vmem:[%s1824_s0 + $0x120] sm:$0xff] }
  0x17   :  { %861 = vmatpush.msra.mxu2 %v1036_v30  ;;  %844 = vmatpush.msra.mxu1 %v1041_v31  ;;  %v184_v4 = vld [vmem:[%s1822_s1 + $0x1d0] sm:$0xff]  ;;  %v183_v11 = vld [vmem:[%s1822_s1 + $0x1c8] sm:$0xff]  ;;  %v57_v17 = vld [vmem:[%s1824_s0 + $0x158] sm:$0xff] }
  0x18   :  { %290 = vmatpush.msra.mxu0 %v130_v32  ;;  %830 = vmatpush.msra.mxu3 %v130_v32  ;;  %v56_v8 = vld [vmem:[%s1824_s0 + $0x150] sm:$0xff]  ;;  %v215_v20 = vld [vmem:[%s1822_s1 + $0x2c8] sm:$0xff]  ;;  %v65_v29 = vld [vmem:[%s1824_s0 + $0x198] sm:$0xff] }
  0x19   :  { %862 = vmatpush.msra.mxu2 %v1051_v33  ;;  %845 = vmatpush.msra.mxu1 %v1056_v34  ;;  %v216_v14 = vld [vmem:[%s1822_s1 + $0x2d0] sm:$0xff]  ;;  %v63_v23 = vld [vmem:[%s1824_s0 + $0x188] sm:$0xff] }
  0x1a   :  { %291 = vmatpush.msra.mxu0 %v129_v35  ;;  %831 = vmatpush.msra.mxu3 %v129_v35  ;;  %v180_v26 = vld [vmem:[%s1822_s1 + $0x1b0] sm:$0xff]  ;;  %v70_v35 = vld [vmem:[%s1824_s0 + $0x1c0] sm:$0xff] }
  0x1b   :  { %863 = vmatpush.msra.mxu2 %v1066_v36  ;;  %846 = vmatpush.msra.mxu1 %v1071_v37  ;;  %v64_v32 = vld [vmem:[%s1824_s0 + $0x190] sm:$0xff] }
  0x1c   :  { %292 = vmatpush.msra.mxu0 %v128_v38  ;;  %832 = vmatpush.msra.mxu3 %v128_v38  ;;  %v72_v38 = vld [vmem:[%s1824_s0 + $0x1d0] sm:$0xff] }
  0x1d   :  { %864 = vmatpush.msra.mxu2 %v1081_v39  ;;  %847 = vmatpush.msra.mxu1 %v1086_v40 }
  0x1e   :  { %293 = vmatpush.msra.mxu0 %v127_v41  ;;  %833 = vmatpush.msra.mxu3 %v127_v41  ;;  %v178_v41 = vld [vmem:[%s1822_s1 + $0x1a0] sm:$0xff] }
  0x1f   :  { %865 = vmatpush.msra.mxu2 %v1096_v42  ;;  %848 = vmatpush.msra.mxu1 %v1101_v43 }
  0x20   :  { %294 = vmatpush.msra.mxu0 %v126_v44  ;;  %834 = vmatpush.msra.mxu3 %v126_v44  ;;  %v211_v44 = vld [vmem:[%s1822_s1 + $0x2a8] sm:$0xff] }
  0x21   :  { %295 = vmatmul.f32.vlgmr.msra.gmra.mxu0 %v14_v45  ;;  %307 = vmatmul.f32.vlgmr.msra.gmra.mxu3 %v42_v46  ;;  %v79_v45 = vld [vmem:[%s1824_s0 + $0x208] sm:$0xff]  ;;  %v210_v46 = vld [vmem:[%s1822_s1 + $0x2a0] sm:$0xff] }
  0x22   :  { %474 = vmatpush.msrb.mxu3 %v189_v47  ;;  %344 = vmatpush.msrb.mxu0 %v911_v5  ;;  %v218_v5 = vld [vmem:[%s1822_s1 + $0x2e0] sm:$0xff]  ;;  %v176_v47 = vld [vmem:[%s1822_s1 + $0x190] sm:$0xff] }
  0x23   :  { %866 = vmatpush.msra.mxu2 %v1122_v48  ;;  %849 = vmatpush.msra.mxu1 %v1127_v49 }
  0x24   :  { %345 = vmatpush.msrb.mxu0 %v921_v7  ;;  %437 = vmatmul.f32.vlgmr.msra.gmra.mxu2 %v44_v50  ;;  %v28_v7 = vld [vmem:[%s1824_s0 + $0x70] sm:$0xff]  ;;  %v86_v50 = vld [vmem:[%s1824_s0 + $0x240] sm:$0xff] }
  0x25   :  { %475 = vmatpush.msrb.mxu3 %v188_v51  ;;  %681 = vmatpush.msrb.mxu2 %v225_v52  ;;  %v175_v51 = vld [vmem:[%s1822_s1 + $0x188] sm:$0xff] }
  0x26   :  { %346 = vmatpush.msrb.mxu0 %v936_v10  ;;  %850 = vmatpush.msra.mxu1 %v1144_v53  ;;  %v217_v10 = vld [vmem:[%s1822_s1 + $0x2d8] sm:$0xff]  ;;  %v91_v52 = vld [vmem:[%s1824_s0 + $0x268] sm:$0xff] }
  0x27   :  { %372 = vmatmul.f32.vlgmr.msra.gmra.mxu1 %v43_v54  ;;  %476 = vmatpush.msrb.mxu3 %v187_v55  ;;  %v207_v54 = vld [vmem:[%s1822_s1 + $0x288] sm:$0xff]  ;;  %v205_v55 = vld [vmem:[%s1822_s1 + $0x278] sm:$0xff] }
  0x28   :  { %347 = vmatpush.msrb.mxu0 %v951_v13  ;;  %604 = vmatpush.msrb.mxu1 %v221_v56  ;;  %v58_v13 = vld [vmem:[%s1824_s0 + $0x160] sm:$0xff]  ;;  %v204_v56 = vld [vmem:[%s1822_s1 + $0x270] sm:$0xff] }
  0x29   :  { %298 = vmatmul.f32.gmra.mxu0 %v21_v57  ;;  %310 = vmatmul.f32.gmra.mxu3 %v49_v58  ;;  %v206_v57 = vld [vmem:[%s1822_s1 + $0x280] sm:$0xff]  ;;  %v203_v58 = vld [vmem:[%s1822_s1 + $0x268] sm:$0xff] }
  0x2a   :  { %348 = vmatpush.msrb.mxu0 %v966_v16  ;;  %605 = vmatpush.msrb.mxu1 %v220_v59  ;;  %v182_v16 = vld [vmem:[%s1822_s1 + $0x1c0] sm:$0xff] }
  0x2b   :  { %477 = vmatpush.msrb.mxu3 %v186_v60  ;;  %682 = vmatpush.msrb.mxu2 %v224_v61  ;;  %v202_v59 = vld [vmem:[%s1822_s1 + $0x260] sm:$0xff]  ;;  %v105_v60 = vld [vmem:[%s1824_s0 + $0x2d8] sm:$0xff]  ;;  %v23_v61 = vld [vmem:[%s1824_s0 + $0x48] sm:$0xff] }
  0x2c   :  { %349 = vmatpush.msrb.mxu0 %v981_v19  ;;  %440 = vmatmul.f32.gmra.mxu2 %v51_v62  ;;  %v181_v19 = vld [vmem:[%s1822_s1 + $0x1b8] sm:$0xff] }
  0x2d   :  { %606 = vmatpush.msrb.mxu1 %v219_v63  ;;  %478 = vmatpush.msrb.mxu3 %v185_v0  ;;  %v201_v62 = vld [vmem:[%s1822_s1 + $0x258] sm:$0xff]  ;;  %v107_v63 = vld [vmem:[%s1824_s0 + $0x2e8] sm:$0xff]  ;;  %v200_v0 = vld [vmem:[%s1822_s1 + $0x250] sm:$0xff] }
  0x2e   :  { %350 = vmatpush.msrb.mxu0 %v996_v22  ;;  %v35_v22 = vld [vmem:[%s1824_s0 + $0xa8] sm:$0xff] }
  0x2f   :  { %375 = vmatmul.f32.gmra.mxu1 %v50_v1  ;;  %479 = vmatpush.msrb.mxu3 %v184_v4  ;;  %v199_v1 = vld [vmem:[%s1822_s1 + $0x248] sm:$0xff]  ;;  %v106_v4 = vld [vmem:[%s1824_s0 + $0x2e0] sm:$0xff] }
  0x30   :  { %351 = vmatpush.msrb.mxu0 %v1011_v25  ;;  %607 = vmatpush.msrb.mxu1 %v218_v5  ;;  %v214_v25 = vld [vmem:[%s1822_s1 + $0x2c0] sm:$0xff] }
  0x31   :  { %301 = vmatmul.f32.gmra.mxu0 %v28_v7  ;;  %313 = vmatmul.f32.gmra.mxu3 %v56_v8  ;;  %v198_v5 = vld [vmem:[%s1822_s1 + $0x240] sm:$0xff]  ;;  %v112_v7 = vld [vmem:[%s1824_s0 + $0x310] sm:$0xff] }
  0x32   :  { %352 = vmatpush.msrb.mxu0 %v1026_v28  ;;  %608 = vmatpush.msrb.mxu1 %v217_v10  ;;  %v223_v28 = vld [vmem:[%s1822_s1 + $0x308] sm:$0xff]  ;;  %v30_v8 = vld [vmem:[%s1824_s0 + $0x80] sm:$0xff]  ;;  %v197_v10 = vld [vmem:[%s1822_s1 + $0x238] sm:$0xff] }
  0x33   :  { %480 = vmatpush.msrb.mxu3 %v183_v11  ;;  %683 = vmatpush.msrb.mxu2 %v223_v28  ;;  %v114_v11 = vld [vmem:[%s1824_s0 + $0x320] sm:$0xff]  ;;  %v120_v28 = vld [vmem:[%s1824_s0 + $0x350] sm:$0xff] }
  0x34   :  { %353 = vmatpush.msrb.mxu0 %v1041_v31  ;;  %443 = vmatmul.f32.gmra.mxu2 %v58_v13  ;;  %v213_v31 = vld [vmem:[%s1822_s1 + $0x2b8] sm:$0xff]  ;;  %v196_v13 = vld [vmem:[%s1822_s1 + $0x230] sm:$0xff] }
  0x35   :  { %609 = vmatpush.msrb.mxu1 %v216_v14  ;;  %481 = vmatpush.msrb.mxu3 %v182_v16  ;;  %v195_v14 = vld [vmem:[%s1822_s1 + $0x228] sm:$0xff]  ;;  %v113_v16 = vld [vmem:[%s1824_s0 + $0x318] sm:$0xff] }
  0x36   :  { %354 = vmatpush.msrb.mxu0 %v1056_v34  ;;  %v179_v34 = vld [vmem:[%s1822_s1 + $0x1a8] sm:$0xff] }
  0x37   :  { %378 = vmatmul.f32.gmra.mxu1 %v57_v17  ;;  %482 = vmatpush.msrb.mxu3 %v181_v19  ;;  %v194_v17 = vld [vmem:[%s1822_s1 + $0x220] sm:$0xff]  ;;  %v119_v19 = vld [vmem:[%s1824_s0 + $0x348] sm:$0xff] }
  0x38   :  { %355 = vmatpush.msrb.mxu0 %v1071_v37  ;;  %610 = vmatpush.msrb.mxu1 %v215_v20  ;;  %v15_v37 = vld [vmem:[%s1824_s0 + $0x8] sm:$0xff]  ;;  %v37_v20 = vld [vmem:[%s1824_s0 + $0xb8] sm:$0xff] }
  0x39   :  { %304 = vmatmul.f32.gmra.mxu0 %v35_v22  ;;  %316 = vmatmul.f32.gmra.mxu3 %v63_v23  ;;  %v193_v22 = vld [vmem:[%s1822_s1 + $0x218] sm:$0xff] }
  0x3a   :  { %356 = vmatpush.msrb.mxu0 %v1086_v40  ;;  %611 = vmatpush.msrb.mxu1 %v214_v25  ;;  %v212_v40 = vld [vmem:[%s1822_s1 + $0x2b0] sm:$0xff]  ;;  %v121_v23 = vld [vmem:[%s1824_s0 + $0x358] sm:$0xff] }
  0x3b   :  { %483 = vmatpush.msrb.mxu3 %v180_v26  ;;  %v192_v25 = vld [vmem:[%s1822_s1 + $0x210] sm:$0xff]  ;;  %v191_v26 = vld [vmem:[%s1822_s1 + $0x208] sm:$0xff] }
  0x3c   :  { %357 = vmatpush.msrb.mxu0 %v1101_v43  ;;  %446 = vmatmul.f32.gmra.mxu2 %v65_v29  ;;  %v71_v43 = vld [vmem:[%s1824_s0 + $0x1c8] sm:$0xff]  ;;  %v190_v29 = vld [vmem:[%s1822_s1 + $0x200] sm:$0xff] }
  0x3d   :  { %612 = vmatpush.msrb.mxu1 %v213_v31  ;;  %484 = vmatpush.msrb.mxu3 %v179_v34  ;;  %v17_v31 = vld [vmem:[%s1824_s0 + $0x18] sm:$0xff]  ;;  %v20_v34 = vld [vmem:[%s1824_s0 + $0x30] sm:$0xff] }
  0x3e   :  { %358 = vmatpush.msrb.mxu0 %v1127_v49  ;;  %v29_v49 = vld [vmem:[%s1824_s0 + $0x78] sm:$0xff] }
  0x3f   :  { %381 = vmatmul.f32.gmra.mxu1 %v64_v32  ;;  %485 = vmatpush.msrb.mxu3 %v178_v41  ;;  %v18_v32 = vld [vmem:[%s1824_s0 + $0x20] sm:$0xff] }
  0x40   :  { %359 = vmatpush.msrb.mxu0 %v1144_v53  ;;  %613 = vmatpush.msrb.mxu1 %v212_v40  ;;  %v174_v53 = vld [vmem:[%s1822_s1 + $0x180] sm:$0xff]  ;;  %v27_v40 = vld [vmem:[%s1824_s0 + $0x68] sm:$0xff] }
  0x41   :  { %319 = vmatmul.f32.gmra.mxu3 %v70_v35  ;;  %360 = vmatmul.f32.vlgmr.msrb.gmra.mxu0 %v15_v37  ;;  %v19_v35 = vld [vmem:[%s1824_s0 + $0x28] sm:$0xff]  ;;  %v24_v37 = vld [vmem:[%s1824_s0 + $0x50] sm:$0xff]  ;;  %v26_v41 = vld [vmem:[%s1824_s0 + $0x60] sm:$0xff] }
  0x42   :  { %409 = vmatpush.msra.mxu0 %v897_v2  ;;  %614 = vmatpush.msrb.mxu1 %v211_v44  ;;  %v77_v2 = vld [vmem:[%s1824_s0 + $0x1f8] sm:$0xff]  ;;  %v32_v44 = vld [vmem:[%s1824_s0 + $0x90] sm:$0xff] }
  0x44   :  { %410 = vmatpush.msra.mxu0 %v902_v3  ;;  %449 = vmatmul.f32.gmra.mxu2 %v72_v38  ;;  %v22_v3 = vld [vmem:[%s1824_s0 + $0x40] sm:$0xff]  ;;  %v25_v38 = vld [vmem:[%s1824_s0 + $0x58] sm:$0xff] }
  0x45   :  { %615 = vmatpush.msrb.mxu1 %v210_v46  ;;  %v40_v46 = vld [vmem:[%s1824_s0 + $0xd0] sm:$0xff] }
  0x46   :  { %411 = vmatpush.msra.mxu0 %v916_v6  ;;  %v177_v6 = vld [vmem:[%s1822_s1 + $0x198] sm:$0xff] }
  0x47   :  { %384 = vmatmul.f32.gmra.mxu1 %v71_v43  ;;  %486 = vmatpush.msrb.mxu3 %v177_v6  ;;  %v31_v43 = vld [vmem:[%s1824_s0 + $0x88] sm:$0xff] }
  0x48   :  { %412 = vmatpush.msra.mxu0 %v931_v9  ;;  %v78_v9 = vld [vmem:[%s1824_s0 + $0x200] sm:$0xff]  ;;  %v39_v6 = vld [vmem:[%s1824_s0 + $0xc8] sm:$0xff] }
  0x49   :  { %322 = vmatmul.f32.gmra.mxu3 %v77_v2  ;;  %363 = vmatmul.f32.gmra.mxu0 %v22_v3  ;;  %v34_v2 = vld [vmem:[%s1824_s0 + $0xa0] sm:$0xff]  ;;  %v33_v3 = vld [vmem:[%s1824_s0 + $0x98] sm:$0xff] }
  0x4a   :  { %413 = vmatpush.msra.mxu0 %v946_v12  ;;  %487 = vmatpush.msrb.mxu3 %v176_v47  ;;  %v222_v12 = vld [vmem:[%s1822_s1 + $0x300] sm:$0xff] }
  0x4b   :  { %684 = vmatpush.msrb.mxu2 %v222_v12  ;;  %v45_v12 = vld [vmem:[%s1824_s0 + $0xf8] sm:$0xff] }
  0x4c   :  { %414 = vmatpush.msra.mxu0 %v961_v15  ;;  %452 = vmatmul.f32.gmra.mxu2 %v79_v45  ;;  %v84_v15 = vld [vmem:[%s1824_s0 + $0x230] sm:$0xff]  ;;  %v38_v45 = vld [vmem:[%s1824_s0 + $0xc0] sm:$0xff] }
  0x4d   :  { %488 = vmatpush.msrb.mxu3 %v175_v51  ;;  %v47_v51 = vld [vmem:[%s1824_s0 + $0x108] sm:$0xff] }
  0x4e   :  { %415 = vmatpush.msra.mxu0 %v976_v18  ;;  %v209_v18 = vld [vmem:[%s1822_s1 + $0x298] sm:$0xff] }
  0x4f   :  { %387 = vmatmul.f32.gmra.mxu1 %v78_v9  ;;  %489 = vmatpush.msrb.mxu3 %v174_v53  ;;  %v41_v9 = vld [vmem:[%s1824_s0 + $0xd8] sm:$0xff] }
  0x50   :  { %416 = vmatpush.msra.mxu0 %v991_v21  ;;  %616 = vmatpush.msrb.mxu1 %v209_v18  ;;  %v85_v21 = vld [vmem:[%s1824_s0 + $0x238] sm:$0xff] }
  0x51   :  { %325 = vmatmul.f32.gmra.mxu3 %v84_v15  ;;  %366 = vmatmul.f32.gmra.mxu0 %v29_v49  ;;  %v46_v15 = vld [vmem:[%s1824_s0 + $0x100] sm:$0xff] }
  0x52   :  { %417 = vmatpush.msra.mxu0 %v1006_v24  ;;  %v36_v24 = vld [vmem:[%s1824_s0 + $0xb0] sm:$0xff]  ;;  %v1523_v49 = vld [vmem:[%s1823_s2] ss:$0 sm:$0xff] }
  0x54   :  { %418 = vmatpush.msra.mxu0 %v1021_v27  ;;  %455 = vmatmul.f32.gmra.mxu2 %v86_v50  ;;  %v93_v27 = vld [vmem:[%s1824_s0 + $0x278] sm:$0xff]  ;;  %v48_v50 = vld [vmem:[%s1824_s0 + $0x110] sm:$0xff] }
  0x56   :  { %419 = vmatpush.msra.mxu0 %v1036_v30  ;;  %v208_v30 = vld [vmem:[%s1822_s1 + $0x290] sm:$0xff] }
  0x57   :  { %390 = vmatmul.f32.gmra.mxu1 %v85_v21 }
  0x58   :  { %420 = vmatpush.msra.mxu0 %v1051_v33  ;;  %617 = vmatpush.msrb.mxu1 %v208_v30  ;;  %v92_v33 = vld [vmem:[%s1824_s0 + $0x270] sm:$0xff]  ;;  %v53_v30 = vld [vmem:[%s1824_s0 + $0x138] sm:$0xff] }
  0x59   :  { %328 = vmatmul.f32.gmra.mxu3 %v91_v52  ;;  %369 = vmatmul.f32.gmra.mxu0 %v36_v24 }
  0x5a   :  { %421 = vmatpush.msra.mxu0 %v1066_v36  ;;  %618 = vmatpush.msrb.mxu1 %v207_v54  ;;  %v98_v36 = vld [vmem:[%s1824_s0 + $0x2a0] sm:$0xff] }
  0x5c   :  { %422 = vmatpush.msra.mxu0 %v1081_v39  ;;  %458 = vmatmul.f32.gmra.mxu2 %v93_v27  ;;  %v16_v39 = vld [vmem:[%s1824_s0 + $0x10] sm:$0xff] }
  0x5d   :  { %619 = vmatpush.msrb.mxu1 %v206_v57  ;;  %v52_v27 = vld [vmem:[%s1824_s0 + $0x130] sm:$0xff] }
  0x5e   :  { %423 = vmatpush.msra.mxu0 %v1096_v42  ;;  %v100_v42 = vld [vmem:[%s1824_s0 + $0x2b0] sm:$0xff] }
  0x5f   :  { %393 = vmatmul.f32.gmra.mxu1 %v92_v33 }
  0x60   :  { %424 = vmatpush.msra.mxu0 %v1122_v48  ;;  %v99_v48 = vld [vmem:[%s1824_s0 + $0x2a8] sm:$0xff] }
  0x61   :  { %331 = vmatmul.f32.gmra.mxu3 %v98_v36  ;;  %425 = vmatmul.f32.vlgmr.msra.gmra.mxu0 %v16_v39  ;;  %v55_v36 = vld [vmem:[%s1824_s0 + $0x148] sm:$0xff] }
  0x62   :  { %539 = vmatpush.msrb.mxu0 %v205_v55 }
  0x64   :  { %461 = vmatmul.f32.gmra.mxu2 %v100_v42  ;;  %540 = vmatpush.msrb.mxu0 %v204_v56  ;;  %v54_v42 = vld [vmem:[%s1824_s0 + $0x140] sm:$0xff] }
  0x66   :  { %541 = vmatpush.msrb.mxu0 %v203_v58  ;;  %v59_v58 = vld [vmem:[%s1824_s0 + $0x168] sm:$0xff] }
  0x67   :  { %396 = vmatmul.f32.gmra.mxu1 %v99_v48  ;;  %v60_v48 = vld [vmem:[%s1824_s0 + $0x170] sm:$0xff] }
  0x68   :  { %542 = vmatpush.msrb.mxu0 %v202_v59 }
  0x69   :  { %334 = vmatmul.f32.gmra.mxu3 %v105_v60  ;;  %428 = vmatmul.f32.gmra.mxu0 %v23_v61 }
  0x6a   :  { %543 = vmatpush.msrb.mxu0 %v201_v62  ;;  %v62_v62 = vld [vmem:[%s1824_s0 + $0x180] sm:$0xff] }
  0x6c   :  { %464 = vmatmul.f32.gmra.mxu2 %v107_v63  ;;  %544 = vmatpush.msrb.mxu0 %v200_v0 }
  0x6e   :  { %545 = vmatpush.msrb.mxu0 %v199_v1  ;;  %v61_v1 = vld [vmem:[%s1824_s0 + $0x178] sm:$0xff] }
  0x6f   :  { %399 = vmatmul.f32.gmra.mxu1 %v106_v4 }
  0x70   :  { %546 = vmatpush.msrb.mxu0 %v198_v5 }
  0x71   :  { %337 = vmatmul.f32.gmra.mxu3 %v112_v7  ;;  %431 = vmatmul.f32.gmra.mxu0 %v30_v8  ;;  %v66_v7 = vld [vmem:[%s1824_s0 + $0x1a0] sm:$0xff]  ;;  %v67_v8 = vld [vmem:[%s1824_s0 + $0x1a8] sm:$0xff] }
  0x72   :  { %547 = vmatpush.msrb.mxu0 %v197_v10 }
  0x74   :  { %467 = vmatmul.f32.gmra.mxu2 %v114_v11  ;;  %548 = vmatpush.msrb.mxu0 %v196_v13 }
  0x76   :  { %549 = vmatpush.msrb.mxu0 %v195_v14  ;;  %v69_v14 = vld [vmem:[%s1824_s0 + $0x1b8] sm:$0xff] }
  0x77   :  { %402 = vmatmul.f32.gmra.mxu1 %v113_v16 }
  0x78   :  { %550 = vmatpush.msrb.mxu0 %v194_v17 }
  0x79   :  { %340 = vmatmul.f32.gmra.mxu3 %v119_v19  ;;  %434 = vmatmul.f32.gmra.mxu0 %v37_v20  ;;  %v68_v19 = vld [vmem:[%s1824_s0 + $0x1b0] sm:$0xff] }
  0x7a   :  { %551 = vmatpush.msrb.mxu0 %v193_v22 }
  0x7c   :  { %470 = vmatmul.f32.gmra.mxu2 %v121_v23  ;;  %552 = vmatpush.msrb.mxu0 %v192_v25  ;;  %v73_v23 = vld [vmem:[%s1824_s0 + $0x1d8] sm:$0xff]  ;;  %v74_v25 = vld [vmem:[%s1824_s0 + $0x1e0] sm:$0xff] }
  0x7e   :  { %553 = vmatpush.msrb.mxu0 %v191_v26 }
  0x7f   :  { %405 = vmatmul.f32.gmra.mxu1 %v120_v28 }
  0x80   :  { %554 = vmatpush.msrb.mxu0 %v190_v29 }
  0x81   :  { %490 = vmatmul.f32.vlgmr.msrb.gmra.mxu3 %v17_v31  ;;  %555 = vmatmul.f32.vlgmr.msrb.gmra.mxu0 %v18_v32  ;;  %v76_v31 = vld [vmem:[%s1824_s0 + $0x1f0] sm:$0xff] }
  0x84   :  { %803 = vmatmul.msk.f32.vlgmr.msrb.gmra.mxu2 %vm230_vm0, %v20_v34 }
  0x87   :  { %620 = vmatmul.f32.vlgmr.msrb.gmra.mxu1 %v19_v35  ;;  %v75_v35 = vld [vmem:[%s1824_s0 + $0x1e8] sm:$0xff] }
  0x89   :  { %493 = vmatmul.f32.gmra.mxu3 %v24_v37  ;;  %558 = vmatmul.f32.gmra.mxu0 %v25_v38 }
  0x8c   :  { %804 = vmatmul.msk.f32.gmra.mxu2 %vm230_vm0, %v27_v40  ;;  %v80_v40 = vld [vmem:[%s1824_s0 + $0x210] sm:$0xff] }
  0x8f   :  { %623 = vmatmul.f32.gmra.mxu1 %v26_v41  ;;  %v81_v41 = vld [vmem:[%s1824_s0 + $0x218] sm:$0xff] }
  0x91   :  { %496 = vmatmul.f32.gmra.mxu3 %v31_v43  ;;  %561 = vmatmul.f32.gmra.mxu0 %v32_v44 }
  0x94   :  { %805 = vmatmul.msk.f32.gmra.mxu2 %vm230_vm0, %v34_v2 }
  0x97   :  { %626 = vmatmul.f32.gmra.mxu1 %v33_v3  ;;  %v83_v3 = vld [vmem:[%s1824_s0 + $0x228] sm:$0xff] }
  0x99   :  { %499 = vmatmul.f32.gmra.mxu3 %v38_v45  ;;  %564 = vmatmul.f32.gmra.mxu0 %v39_v6 }
  0x9c   :  { %806 = vmatmul.msk.f32.gmra.mxu2 %vm230_vm0, %v41_v9  ;;  %v82_v9 = vld [vmem:[%s1824_s0 + $0x220] sm:$0xff] }
  0x9e   :  { %v1512_v47 = vpop.f32.mrf.mxu0 }
  0x9f   :  { %629 = vmatmul.f32.gmra.mxu1 %v40_v46 }
  0xa1   :  { %502 = vmatmul.f32.gmra.mxu3 %v45_v12  ;;  %567 = vmatmul.f32.gmra.mxu0 %v46_v15  ;;  %v87_v15 = vld [vmem:[%s1824_s0 + $0x248] sm:$0xff] }
  0xa4   :  { %v308_v18 = vpop.f32.mrf.mxu3  ;;  %v373_v21 = vpop.f32.mrf.mxu1  ;;  %807 = vmatmul.msk.f32.gmra.mxu2 %vm230_vm0, %v48_v50  ;;  %v88_v50 = vld [vmem:[%s1824_s0 + $0x250] sm:$0xff] }
  0xa5   :  { %v309_v52 = vadd.f32 %v1523_v49, %v308_v18 }
  0xa6   :  { %v1533_v24 = vpop.f32.mrf.mxu0 }
  0xa7   :  { %v374_v53 = vadd.f32 %v373_v21, %v309_v52  ;;  %v438_v33 = vpop.f32.mrf.mxu2  ;;  %632 = vmatmul.f32.gmra.mxu1 %v47_v51  ;;  %v90_v52 = vld [vmem:[%s1824_s0 + $0x260] sm:$0xff] }
  0xa9   :  { %v1541_v54 = vadd.f32 %v438_v33, %v374_v53  ;;  %505 = vmatmul.f32.gmra.mxu3 %v52_v27  ;;  %570 = vmatmul.f32.gmra.mxu0 %v53_v30  ;;  %v89_v53 = vld [vmem:[%s1824_s0 + $0x258] sm:$0xff] }
  0xac   :  { %v311_v39 = vpop.f32.mrf.mxu3  ;;  %v376_v55 = vpop.f32.mrf.mxu1  ;;  %808 = vmatmul.msk.f32.gmra.mxu2 %vm230_vm0, %v55_v36 }
  0xad   :  { %v312_v56 = vadd.f32 %v1523_v49, %v311_v39  ;;  %v94_v39 = vld [vmem:[%s1824_s0 + $0x280] sm:$0xff] }
  0xae   :  { %v1551_v57 = vpop.f32.mrf.mxu0 }
  0xaf   :  { %v377_v59 = vadd.f32 %v376_v55, %v312_v56  ;;  %v441_v60 = vpop.f32.mrf.mxu2  ;;  %635 = vmatmul.f32.gmra.mxu1 %v54_v42  ;;  %v95_v55 = vld [vmem:[%s1824_s0 + $0x288] sm:$0xff] }
  0xb1   :  { %v1559_v61 = vadd.f32 %v441_v60, %v377_v59  ;;  %508 = vmatmul.f32.gmra.mxu3 %v59_v58  ;;  %573 = vmatmul.f32.gmra.mxu0 %v60_v48  ;;  %v97_v48 = vld [vmem:[%s1824_s0 + $0x298] sm:$0xff] }
  0xb4   :  { %v314_v63 = vpop.f32.mrf.mxu3  ;;  %v379_v0 = vpop.f32.mrf.mxu1  ;;  %809 = vmatmul.msk.f32.gmra.mxu2 %vm230_vm0, %v62_v62  ;;  %v96_v62 = vld [vmem:[%s1824_s0 + $0x290] sm:$0xff] }
  0xb5   :  { %v315_v4 = vadd.f32 %v1523_v49, %v314_v63 }
  0xb6   :  { %v1569_v5 = vpop.f32.mrf.mxu0 }
  0xb7   :  { %v380_v10 = vadd.f32 %v379_v0, %v315_v4  ;;  %v444_v11 = vpop.f32.mrf.mxu2  ;;  %638 = vmatmul.f32.gmra.mxu1 %v61_v1  ;;  %v101_v1 = vld [vmem:[%s1824_s0 + $0x2b8] sm:$0xff]  ;;  %v102_v4 = vld [vmem:[%s1824_s0 + $0x2c0] sm:$0xff] }
  0xb9   :  { %v1577_v13 = vadd.f32 %v444_v11, %v380_v10  ;;  %511 = vmatmul.f32.gmra.mxu3 %v66_v7  ;;  %576 = vmatmul.f32.gmra.mxu0 %v67_v8  ;;  %v104_v11 = vld [vmem:[%s1824_s0 + $0x2d0] sm:$0xff] }
  0xbc   :  { %v317_v16 = vpop.f32.mrf.mxu3  ;;  %v382_v17 = vpop.f32.mrf.mxu1  ;;  %810 = vmatmul.msk.f32.gmra.mxu2 %vm230_vm0, %v69_v14 }
  0xbd   :  { %v318_v20 = vadd.f32 %v1523_v49, %v317_v16 }
  0xbe   :  { %v1587_v22 = vpop.f32.mrf.mxu0 }
  0xbf   :  { %v383_v26 = vadd.f32 %v382_v17, %v318_v20  ;;  %v447_v28 = vpop.f32.mrf.mxu2  ;;  %641 = vmatmul.f32.gmra.mxu1 %v68_v19  ;;  %v103_v17 = vld [vmem:[%s1824_s0 + $0x2c8] sm:$0xff] }
  0xc1   :  { %v1595_v29 = vadd.f32 %v447_v28, %v383_v26  ;;  %514 = vmatmul.f32.gmra.mxu3 %v73_v23  ;;  %579 = vmatmul.f32.gmra.mxu0 %v74_v25  ;;  %v108_v23 = vld [vmem:[%s1824_s0 + $0x2f0] sm:$0xff]  ;;  %v109_v25 = vld [vmem:[%s1824_s0 + $0x2f8] sm:$0xff] }
  0xc4   :  { %v320_v32 = vpop.f32.mrf.mxu3  ;;  %v385_v34 = vpop.f32.mrf.mxu1  ;;  %811 = vmatmul.msk.f32.gmra.mxu2 %vm230_vm0, %v76_v31 }
  0xc5   :  { %v321_v37 = vadd.f32 %v1523_v49, %v320_v32  ;;  %v111_v32 = vld [vmem:[%s1824_s0 + $0x308] sm:$0xff] }
  0xc6   :  { %v1605_v38 = vpop.f32.mrf.mxu0 }
  0xc7   :  { %v386_v43 = vadd.f32 %v385_v34, %v321_v37  ;;  %v450_v44 = vpop.f32.mrf.mxu2  ;;  %644 = vmatmul.f32.gmra.mxu1 %v75_v35  ;;  %v110_v37 = vld [vmem:[%s1824_s0 + $0x300] sm:$0xff] }
  0xc9   :  { %v1613_v2 = vadd.f32 %v450_v44, %v386_v43  ;;  %517 = vmatmul.f32.gmra.mxu3 %v80_v40  ;;  %582 = vmatmul.f32.gmra.mxu0 %v81_v41  ;;  %v115_v43 = vld [vmem:[%s1824_s0 + $0x328] sm:$0xff]  ;;  %v116_v44 = vld [vmem:[%s1824_s0 + $0x330] sm:$0xff] }
  0xcc   :  { %v323_v45 = vpop.f32.mrf.mxu3  ;;  %v388_v6 = vpop.f32.mrf.mxu1  ;;  %812 = vmatmul.msk.f32.gmra.mxu2 %vm230_vm0, %v83_v3 }
  0xcd   :  { %v324_v46 = vadd.f32 %v1523_v49, %v323_v45 }
  0xce   :  { %v1623_v12 = vpop.f32.mrf.mxu0 }
  0xcf   :  { %v389_v18 = vadd.f32 %v388_v6, %v324_v46  ;;  %v453_v21 = vpop.f32.mrf.mxu2  ;;  %647 = vmatmul.f32.gmra.mxu1 %v82_v9  ;;  %v118_v9 = vld [vmem:[%s1824_s0 + $0x340] sm:$0xff] }
  0xd1   :  { %v1631_v51 = vadd.f32 %v453_v21, %v389_v18  ;;  %520 = vmatmul.f32.gmra.mxu3 %v87_v15  ;;  %585 = vmatmul.f32.gmra.mxu0 %v88_v50  ;;  %v117_v50 = vld [vmem:[%s1824_s0 + $0x338] sm:$0xff] }
  0xd4   :  { %v326_v27 = vpop.f32.mrf.mxu3  ;;  %v391_v30 = vpop.f32.mrf.mxu1  ;;  %813 = vmatmul.msk.f32.gmra.mxu2 %vm230_vm0, %v90_v52  ;;  %v122_v52 = vld [vmem:[%s1824_s0 + $0x360] sm:$0xff] }
  0xd5   :  { %v327_v33 = vadd.f32 %v1523_v49, %v326_v27  ;;  %v123_v27 = vld [vmem:[%s1824_s0 + $0x368] sm:$0xff] }
  0xd6   :  { %v1641_v36 = vpop.f32.mrf.mxu0 }
  0xd7   :  { %v392_v42 = vadd.f32 %v391_v30, %v327_v33  ;;  %v456_v56 = vpop.f32.mrf.mxu2  ;;  %650 = vmatmul.f32.gmra.mxu1 %v89_v53 }
  0xd9   :  { %v1649_v58 = vadd.f32 %v456_v56, %v392_v42  ;;  %523 = vmatmul.f32.gmra.mxu3 %v94_v39  ;;  %588 = vmatmul.f32.gmra.mxu0 %v95_v55  ;;  %v125_v39 = vld [vmem:[%s1824_s0 + $0x378] sm:$0xff]  ;;  %v124_v56 = vld [vmem:[%s1824_s0 + $0x370] sm:$0xff] }
  0xdc   :  { %v329_v59 = vpop.f32.mrf.mxu3  ;;  %v394_v60 = vpop.f32.mrf.mxu1  ;;  %814 = vmatmul.msk.f32.gmra.mxu2 %vm230_vm0, %v97_v48 }
  0xdd   :  { %v330_v63 = vadd.f32 %v1523_v49, %v329_v59 }
  0xde   :  { %v1659_v0 = vpop.f32.mrf.mxu0 }
  0xdf   :  { %v395_v7 = vadd.f32 %v394_v60, %v330_v63  ;;  %v459_v8 = vpop.f32.mrf.mxu2  ;;  %653 = vmatmul.f32.gmra.mxu1 %v96_v62  ;;  %v297_v60 = vadd.f32 %v1523_v49, %v1512_v47 }
  0xe1   :  { %v1667_v10 = vadd.f32 %v459_v8, %v395_v7  ;;  %526 = vmatmul.f32.gmra.mxu3 %v101_v1  ;;  %591 = vmatmul.f32.gmra.mxu0 %v102_v4  ;;  %v362_v1 = vadd.f32 %v1587_v22, %v297_v60 }
  0xe3   :  { %v427_v7 = vadd.f32 %v1659_v0, %v362_v1 }
  0xe4   :  { %v332_v14 = vpop.f32.mrf.mxu3  ;;  %v397_v16 = vpop.f32.mrf.mxu1  ;;  %815 = vmatmul.msk.f32.gmra.mxu2 %vm230_vm0, %v104_v11 }
  0xe5   :  { %v333_v19 = vadd.f32 %v1523_v49, %v332_v14 }
  0xe6   :  { %v429_v20 = vpop.f32.mrf.mxu0 }
  0xe7   :  { %v398_v26 = vadd.f32 %v397_v16, %v333_v19  ;;  %v462_v28 = vpop.f32.mrf.mxu2  ;;  %656 = vmatmul.f32.gmra.mxu1 %v103_v17  ;;  %v300_v17 = vadd.f32 %v1523_v49, %v1533_v24 }
  0xe9   :  { %v1683_v31 = vadd.f32 %v462_v28, %v398_v26  ;;  %529 = vmatmul.f32.gmra.mxu3 %v108_v23  ;;  %594 = vmatmul.f32.gmra.mxu0 %v109_v25  ;;  %v365_v47 = vadd.f32 %v1605_v38, %v300_v17 }
  0xeb   :  { %v430_v26 = vadd.f32 %v429_v20, %v365_v47 }
  0xec   :  { %v335_v34 = vpop.f32.mrf.mxu3  ;;  %v400_v35 = vpop.f32.mrf.mxu1  ;;  %816 = vmatmul.msk.f32.gmra.mxu2 %vm230_vm0, %v111_v32 }
  0xed   :  { %v336_v40 = vadd.f32 %v1523_v49, %v335_v34 }
  0xee   :  { %v1693_v41 = vpop.f32.mrf.mxu0 }
  0xef   :  { %v401_v3 = vadd.f32 %v400_v35, %v336_v40  ;;  %v465_v45 = vpop.f32.mrf.mxu2  ;;  %659 = vmatmul.f32.gmra.mxu1 %v110_v37  ;;  %v303_v37 = vadd.f32 %v1523_v49, %v1551_v57 }
  0xf1   :  { %v1701_v6 = vadd.f32 %v465_v45, %v401_v3  ;;  %532 = vmatmul.f32.gmra.mxu3 %v115_v43  ;;  %597 = vmatmul.f32.gmra.mxu0 %v116_v44  ;;  %v368_v38 = vadd.f32 %v1623_v12, %v303_v37 }
  0xf3   :  { %v433_v44 = vadd.f32 %v1693_v41, %v368_v38 }
  0xf4   :  { %v338_v46 = vpop.f32.mrf.mxu3  ;;  %v403_v15 = vpop.f32.mrf.mxu1  ;;  %817 = vmatmul.msk.f32.gmra.mxu2 %vm230_vm0, %v118_v9 }
  0xf5   :  { %v339_v18 = vadd.f32 %v1523_v49, %v338_v46 }
  0xf6   :  { %v1711_v21 = vpop.f32.mrf.mxu0 }
  0xf7   :  { %v404_v30 = vadd.f32 %v403_v15, %v339_v18  ;;  %v468_v53 = vpop.f32.mrf.mxu2  ;;  %662 = vmatmul.f32.gmra.mxu1 %v117_v50  ;;  %v306_v50 = vadd.f32 %v1523_v49, %v1569_v5 }
  0xf9   :  { %v1719_v33 = vadd.f32 %v468_v53, %v404_v30  ;;  %535 = vmatmul.f32.gmra.mxu3 %v122_v52  ;;  %600 = vmatmul.f32.gmra.mxu0 %v123_v27  ;;  %v371_v12 = vadd.f32 %v1641_v36, %v306_v50 }
  0xfb   :  { %v436_v30 = vadd.f32 %v1711_v21, %v371_v12 }
  0xfc   :  { %v341_v55 = vpop.f32.mrf.mxu3  ;;  %v406_v42 = vpop.f32.mrf.mxu1  ;;  %818 = vmatmul.msk.f32.gmra.mxu2 %vm230_vm0, %v125_v39 }
  0xfd   :  { %v342_v48 = vadd.f32 %v1523_v49, %v341_v55 }
  0xfe   :  { %v556_v59 = vpop.f32.mrf.mxu0 }
  0xff   :  { %v407_v62 = vadd.f32 %v406_v42, %v342_v48  ;;  %v471_v63 = vpop.f32.mrf.mxu2  ;;  %665 = vmatmul.f32.gmra.mxu1 %v124_v56 }
 0x101   :  { %v1732_v4 = vadd.f32 %v471_v63, %v407_v62 }
 0x104   :  { %v491_v8 = vpop.f32.mrf.mxu3  ;;  %v621_v11 = vpop.f32.mrf.mxu1 }
 0x105   :  { %v492_v14 = vadd.f32 %v491_v8, %v427_v7 }
 0x106   :  { %v559_v16 = vpop.f32.mrf.mxu0 }
 0x107   :  { %v557_v19 = vadd.f32 %v556_v59, %v492_v14  ;;  %v686_v23 = vpop.f32.mrf.mxu2 }
 0x109   :  { %v622_v25 = vadd.f32 %v621_v11, %v557_v19 }
 0x10b   :  { %v687_v28 = vadd.f32 %v686_v23, %v622_v25 }
 0x10c   :  { %v494_v32 = vpop.f32.mrf.mxu3  ;;  %v624_v22 = vpop.f32.mrf.mxu1 }
 0x10d   :  { %vm734_vm1 = vcmp.ge.f32.partialorder %v687_v28, 0.0  ;;  %v750_v34 = vmul.f32 0.01, %v687_v28  ;;  %v495_v0 = vadd.f32 %v494_v32, %v430_v26 }
 0x10e   :  { %v562_v35 = vpop.f32.mrf.mxu0 }
 0x10f   :  { %v766_v40 = vsel %vm734_vm1, %v687_v28, %v750_v34  ;;  %v560_v43 = vadd.f32 %v559_v16, %v495_v0  ;;  %v689_v24 = vpop.f32.mrf.mxu2 }
 0x110   :  { %783 = vst.msk [vmem:[%s1825_s3] sm:$0xff] %vm782_vm2, %v766_v40 }
 0x111   :  { %v625_v20 = vadd.f32 %v624_v22, %v560_v43 }
 0x113   :  { %v690_v3 = vadd.f32 %v689_v24, %v625_v20 }
 0x114   :  { %v497_v45 = vpop.f32.mrf.mxu3  ;;  %v627_v9 = vpop.f32.mrf.mxu1 }
 0x115   :  { %vm735_vm3 = vcmp.ge.f32.partialorder %v690_v3, 0.0  ;;  %v751_v46 = vmul.f32 0.01, %v690_v3  ;;  %v498_v15 = vadd.f32 %v497_v45, %v433_v44 }
 0x116   :  { %v565_v57 = vpop.f32.mrf.mxu0 }
 0x117   :  { %v767_v18 = vsel %vm735_vm3, %v690_v3, %v751_v46  ;;  %v563_v52 = vadd.f32 %v562_v35, %v498_v15  ;;  %v692_v27 = vpop.f32.mrf.mxu2 }
 0x118   :  { %784 = vst.msk [vmem:[%s1825_s3 + $0x8] sm:$0xff] %vm782_vm2, %v767_v18 }
 0x119   :  { %v628_v41 = vadd.f32 %v627_v9, %v563_v52 }
 0x11b   :  { %v693_v53 = vadd.f32 %v692_v27, %v628_v41 }
 0x11c   :  { %v500_v39 = vpop.f32.mrf.mxu3  ;;  %v630_v55 = vpop.f32.mrf.mxu1 }
 0x11d   :  { %vm736_vm4 = vcmp.ge.f32.partialorder %v693_v53, 0.0  ;;  %v752_v42 = vmul.f32 0.01, %v693_v53  ;;  %v501_v56 = vadd.f32 %v500_v39, %v436_v30 }
 0x11e   :  { %v568_v49 = vpop.f32.mrf.mxu0 }
 0x11f   :  { %v768_v5 = vsel %vm736_vm4, %v693_v53, %v752_v42  ;;  %v566_v48 = vadd.f32 %v565_v57, %v501_v56  ;;  %v695_v59 = vpop.f32.mrf.mxu2 }
 0x120   :  { %785 = vst.msk [vmem:[%s1825_s3 + $0x10] sm:$0xff] %vm782_vm2, %v768_v5 }
 0x121   :  { %v631_v60 = vadd.f32 %v630_v55, %v566_v48 }
 0x123   :  { %v696_v36 = vadd.f32 %v695_v59, %v631_v60 }
 0x124   :  { %v503_v62 = vpop.f32.mrf.mxu3  ;;  %v633_v63 = vpop.f32.mrf.mxu1 }
 0x125   :  { %vm737_vm5 = vcmp.ge.f32.partialorder %v696_v36, 0.0  ;;  %v753_v21 = vmul.f32 0.01, %v696_v36  ;;  %v504_v1 = vadd.f32 %v503_v62, %v1541_v54 }
 0x126   :  { %v571_v7 = vpop.f32.mrf.mxu0 }
 0x127   :  { %v769_v8 = vsel %vm737_vm5, %v696_v36, %v753_v21  ;;  %v569_v11 = vadd.f32 %v568_v49, %v504_v1  ;;  %v698_v14 = vpop.f32.mrf.mxu2 }
 0x128   :  { %786 = vst.msk [vmem:[%s1825_s3 + $0x18] sm:$0xff] %vm782_vm2, %v769_v8 }
 0x129   :  { %v634_v16 = vadd.f32 %v633_v63, %v569_v11 }
 0x12b   :  { %v699_v17 = vadd.f32 %v698_v14, %v634_v16 }
 0x12c   :  { %v506_v19 = vpop.f32.mrf.mxu3  ;;  %v636_v23 = vpop.f32.mrf.mxu1 }
 0x12d   :  { %vm738_vm6 = vcmp.ge.f32.partialorder %v699_v17, 0.0  ;;  %v754_v47 = vmul.f32 0.01, %v699_v17  ;;  %v507_v25 = vadd.f32 %v506_v19, %v1559_v61 }
 0x12e   :  { %v574_v26 = vpop.f32.mrf.mxu0 }
 0x12f   :  { %v770_v28 = vsel %vm738_vm6, %v699_v17, %v754_v47  ;;  %v572_v54 = vadd.f32 %v571_v7, %v507_v25  ;;  %v701_v32 = vpop.f32.mrf.mxu2 }
 0x130   :  { %787 = vst.msk [vmem:[%s1825_s3 + $0x20] sm:$0xff] %vm782_vm2, %v770_v28 }
 0x131   :  { %v637_v22 = vadd.f32 %v636_v23, %v572_v54 }
 0x133   :  { %v702_v34 = vadd.f32 %v701_v32, %v637_v22 }
 0x134   :  { %v509_v0 = vpop.f32.mrf.mxu3  ;;  %v639_v35 = vpop.f32.mrf.mxu1 }
 0x135   :  { %vm739_vm7 = vcmp.ge.f32.partialorder %v702_v34, 0.0  ;;  %v755_v37 = vmul.f32 0.01, %v702_v34  ;;  %v510_v40 = vadd.f32 %v509_v0, %v1577_v13 }
 0x136   :  { %v577_v43 = vpop.f32.mrf.mxu0 }
 0x137   :  { %v771_v24 = vsel %vm739_vm7, %v702_v34, %v755_v37  ;;  %v575_v61 = vadd.f32 %v574_v26, %v510_v40  ;;  %v704_v38 = vpop.f32.mrf.mxu2 }
 0x138   :  { %788 = vst.msk [vmem:[%s1825_s3 + $0x28] sm:$0xff] %vm782_vm2, %v771_v24 }
 0x139   :  { %v640_v20 = vadd.f32 %v639_v35, %v575_v61 }
 0x13b   :  { %v705_v44 = vadd.f32 %v704_v38, %v640_v20 }
 0x13c   :  { %v512_v3 = vpop.f32.mrf.mxu3  ;;  %v642_v45 = vpop.f32.mrf.mxu1 }
 0x13d   :  { %vm740_vm8 = vcmp.ge.f32.partialorder %v705_v44, 0.0  ;;  %v756_v9 = vmul.f32 0.01, %v705_v44  ;;  %v513_v46 = vadd.f32 %v512_v3, %v1595_v29 }
 0x13e   :  { %v580_v15 = vpop.f32.mrf.mxu0 }
 0x13f   :  { %v772_v57 = vsel %vm740_vm8, %v705_v44, %v756_v9  ;;  %v578_v13 = vadd.f32 %v577_v43, %v513_v46  ;;  %v707_v50 = vpop.f32.mrf.mxu2 }
 0x140   :  { %789 = vst.msk [vmem:[%s1825_s3 + $0x30] sm:$0xff] %vm782_vm2, %v772_v57 }
 0x141   :  { %v643_v18 = vadd.f32 %v642_v45, %v578_v13 }
 0x143   :  { %v708_v52 = vadd.f32 %v707_v50, %v643_v18 }
 0x144   :  { %v515_v27 = vpop.f32.mrf.mxu3  ;;  %v645_v12 = vpop.f32.mrf.mxu1 }
 0x145   :  { %vm741_vm9 = vcmp.ge.f32.partialorder %v708_v52, 0.0  ;;  %v757_v41 = vmul.f32 0.01, %v708_v52  ;;  %v516_v30 = vadd.f32 %v515_v27, %v1613_v2 }
 0x146   :  { %v583_v53 = vpop.f32.mrf.mxu0 }
 0x147   :  { %v773_v39 = vsel %vm741_vm9, %v708_v52, %v757_v41  ;;  %v581_v29 = vadd.f32 %v580_v15, %v516_v30  ;;  %v710_v55 = vpop.f32.mrf.mxu2 }
 0x148   :  { %790 = vst.msk [vmem:[%s1825_s3 + $0x38] sm:$0xff] %vm782_vm2, %v773_v39 }
 0x149   :  { %v646_v42 = vadd.f32 %v645_v12, %v581_v29 }
 0x14b   :  { %v711_v56 = vadd.f32 %v710_v55, %v646_v42 }
 0x14c   :  { %v518_v49 = vpop.f32.mrf.mxu3  ;;  %v648_v5 = vpop.f32.mrf.mxu1 }
 0x14d   :  { %vm742_vm10 = vcmp.ge.f32.partialorder %v711_v56, 0.0  ;;  %v758_v48 = vmul.f32 0.01, %v711_v56  ;;  %v519_v59 = vadd.f32 %v518_v49, %v1631_v51 }
 0x14e   :  { %v586_v60 = vpop.f32.mrf.mxu0 }
 0x14f   :  { %v774_v36 = vsel %vm742_vm10, %v711_v56, %v758_v48  ;;  %v584_v2 = vadd.f32 %v583_v53, %v519_v59  ;;  %v713_v62 = vpop.f32.mrf.mxu2 }
 0x150   :  { %791 = vst.msk [vmem:[%s1825_s3 + $0x40] sm:$0xff] %vm782_vm2, %v774_v36 }
 0x151   :  { %v649_v63 = vadd.f32 %v648_v5, %v584_v2 }
 0x153   :  { %v714_v21 = vadd.f32 %v713_v62, %v649_v63 }
 0x154   :  { %v521_v1 = vpop.f32.mrf.mxu3  ;;  %v651_v7 = vpop.f32.mrf.mxu1 }
 0x155   :  { %vm743_vm11 = vcmp.ge.f32.partialorder %v714_v21, 0.0  ;;  %v759_v8 = vmul.f32 0.01, %v714_v21  ;;  %v522_v11 = vadd.f32 %v521_v1, %v1649_v58 }
 0x156   :  { %v589_v14 = vpop.f32.mrf.mxu0 }
 0x157   :  { %v775_v16 = vsel %vm743_vm11, %v714_v21, %v759_v8  ;;  %v587_v51 = vadd.f32 %v586_v60, %v522_v11  ;;  %v716_v17 = vpop.f32.mrf.mxu2 }
 0x158   :  { %792 = vst.msk [vmem:[%s1825_s3 + $0x48] sm:$0xff] %vm782_vm2, %v775_v16 }
 0x159   :  { %v652_v19 = vadd.f32 %v651_v7, %v587_v51 }
 0x15b   :  { %v717_v23 = vadd.f32 %v716_v17, %v652_v19 }
 0x15c   :  { %v524_v47 = vpop.f32.mrf.mxu3  ;;  %v654_v25 = vpop.f32.mrf.mxu1 }
 0x15d   :  { %vm744_vm12 = vcmp.ge.f32.partialorder %v717_v23, 0.0  ;;  %v760_v26 = vmul.f32 0.01, %v717_v23  ;;  %v525_v28 = vadd.f32 %v524_v47, %v1667_v10 }
 0x15e   :  { %v592_v54 = vpop.f32.mrf.mxu0 }
 0x15f   :  { %v776_v32 = vsel %vm744_vm12, %v717_v23, %v760_v26  ;;  %v590_v58 = vadd.f32 %v589_v14, %v525_v28  ;;  %v719_v22 = vpop.f32.mrf.mxu2 }
 0x160   :  { %793 = vst.msk [vmem:[%s1825_s3 + $0x50] sm:$0xff] %vm782_vm2, %v776_v32 }
 0x161   :  { %v655_v34 = vadd.f32 %v654_v25, %v590_v58 }
 0x163   :  { %v720_v0 = vadd.f32 %v719_v22, %v655_v34 }
 0x164   :  { %v527_v35 = vpop.f32.mrf.mxu3  ;;  %v657_v37 = vpop.f32.mrf.mxu1 }
 0x165   :  { %vm745_vm13 = vcmp.ge.f32.partialorder %v720_v0, 0.0  ;;  %v761_v40 = vmul.f32 0.01, %v720_v0  ;;  %v528_v43 = vadd.f32 %v527_v35, %v1683_v31 }
 0x166   :  { %v595_v38 = vpop.f32.mrf.mxu0 }
 0x167   :  { %v777_v24 = vsel %vm745_vm13, %v720_v0, %v761_v40  ;;  %v593_v61 = vadd.f32 %v592_v54, %v528_v43  ;;  %v722_v10 = vpop.f32.mrf.mxu2 }
 0x168   :  { %794 = vst.msk [vmem:[%s1825_s3 + $0x58] sm:$0xff] %vm782_vm2, %v777_v24 }
 0x169   :  { %v658_v20 = vadd.f32 %v657_v37, %v593_v61 }
 0x16b   :  { %v723_v44 = vadd.f32 %v722_v10, %v658_v20 }
 0x16c   :  { %v530_v3 = vpop.f32.mrf.mxu3  ;;  %v660_v45 = vpop.f32.mrf.mxu1 }
 0x16d   :  { %vm746_vm14 = vcmp.ge.f32.partialorder %v723_v44, 0.0  ;;  %v762_v9 = vmul.f32 0.01, %v723_v44  ;;  %v531_v46 = vadd.f32 %v530_v3, %v1701_v6 }
 0x16e   :  { %v598_v50 = vpop.f32.mrf.mxu0 }
 0x16f   :  { %v778_v15 = vsel %vm746_vm14, %v723_v44, %v762_v9  ;;  %v596_v57 = vadd.f32 %v595_v38, %v531_v46  ;;  %v725_v31 = vpop.f32.mrf.mxu2 }
 0x170   :  { %795 = vst.msk [vmem:[%s1825_s3 + $0x60] sm:$0xff] %vm782_vm2, %v778_v15 }
 0x171   :  { %v661_v13 = vadd.f32 %v660_v45, %v596_v57 }
 0x173   :  { %v726_v18 = vadd.f32 %v725_v31, %v661_v13 }
 0x174   :  { %v533_v52 = vpop.f32.mrf.mxu3  ;;  %v663_v27 = vpop.f32.mrf.mxu1 }
 0x175   :  { %vm747_vm15 = vcmp.ge.f32.partialorder %v726_v18, 0.0  ;;  %v763_v12 = vmul.f32 0.01, %v726_v18  ;;  %v534_v41 = vadd.f32 %v533_v52, %v1719_v33 }
 0x176   :  { %v601_v42 = vpop.f32.mrf.mxu0 }
 0x177   :  { %v779_v30 = vsel %vm747_vm15, %v726_v18, %v763_v12  ;;  %v599_v53 = vadd.f32 %v598_v50, %v534_v41  ;;  %v728_v6 = vpop.f32.mrf.mxu2 }
 0x178   :  { %796 = vst.msk [vmem:[%s1825_s3 + $0x68] sm:$0xff] %vm782_vm2, %v779_v30 }
 0x179   :  { %v664_v39 = vadd.f32 %v663_v27, %v599_v53 }
 0x17b   :  { %v729_v29 = vadd.f32 %v728_v6, %v664_v39 }
 0x17c   :  { %v536_v55 = vpop.f32.mrf.mxu3  ;;  %v666_v5 = vpop.f32.mrf.mxu1 }
 0x17d   :  { %vm748_vm0 = vcmp.ge.f32.partialorder %v729_v29, 0.0  ;;  %v764_v56 = vmul.f32 0.01, %v729_v29  ;;  %v537_v49 = vadd.f32 %v536_v55, %v1732_v4 }
 0x17f   :  { %v780_v48 = vsel %vm748_vm0, %v729_v29, %v764_v56  ;;  %v602_v59 = vadd.f32 %v601_v42, %v537_v49  ;;  %v731_v33 = vpop.f32.mrf.mxu2 }
 0x180   :  { %797 = vst.msk [vmem:[%s1825_s3 + $0x70] sm:$0xff] %vm782_vm2, %v780_v48 }
 0x181   :  { %v667_v60 = vadd.f32 %v666_v5, %v602_v59 }
 0x183   :  { %v732_v36 = vadd.f32 %v731_v33, %v667_v60 }
 0x185   :  { %vm749_vm1 = vcmp.ge.f32.partialorder %v732_v36, 0.0  ;;  %v765_v2 = vmul.f32 0.01, %v732_v36 }
 0x187   :  { %v781_v62 = vsel %vm749_vm1, %v732_v36, %v765_v2 }
 0x188   :  { %798 = vst.msk [vmem:[%s1825_s3 + $0x78] sm:$0xff] %vm782_vm2, %v781_v62 }

// kernel: cae4_forward.20
= control target key start
LH: loop header
LB: loop body
LE: loop exit
PB: predicated region body
PF: predicated region fallthrough
CT: control target
= control target key end

     0   :  { %vm324_vm0 = vcmask 130048   ;;  %vm1545_vm2 = vcmask 64512   ;;  %s3018_s1 = inlined_call_operand.vmem [shape: f32[400,8], index: 1, kind: input, shape index: {}]   ;;  %s3019_s0 = inlined_call_operand.vmem [shape: f32[512,400], index: 0, kind: input, shape index: {}]   ;;  %s3020_s2 = inlined_call_operand.vmem [shape: f32[1,8], index: 2, kind: input, shape index: {}]   ;;  %s3021_s3 = inlined_call_operand.vmem [shape: f32[512,8], index: 3, kind: output, shape index: {}]  }
   0x1   :  { %v317_v0 = vld [vmem:[%s3018_s1 + $0x178] sm:$0xff]  ;;  %v316_v2 = vld [vmem:[%s3018_s1 + $0x170] sm:$0xff]  ;;  %v315_v5 = vld [vmem:[%s3018_s1 + $0x168] sm:$0xff] }
   0x2   :  { %v285_v1 = vld [vmem:[%s3018_s1 + $0x78] sm:$0xff]  ;;  %935 = vmatpush.msra.mxu2 %v317_v0  ;;  %v284_v3 = vld [vmem:[%s3018_s1 + $0x70] sm:$0xff]  ;;  %v283_v6 = vld [vmem:[%s3018_s1 + $0x68] sm:$0xff] }
   0x3   :  { %517 = vmatpush.msra.mxu0 %v285_v1  ;;  %v301_v4 = vld [vmem:[%s3018_s1 + $0xf8] sm:$0xff]  ;;  %v300_v7 = vld [vmem:[%s3018_s1 + $0xf0] sm:$0xff]  ;;  %v299_v8 = vld [vmem:[%s3018_s1 + $0xe8] sm:$0xff] }
   0x4   :  { %726 = vmatpush.msra.mxu1 %v301_v4  ;;  %936 = vmatpush.msra.mxu2 %v316_v2  ;;  %v314_v9 = vld [vmem:[%s3018_s1 + $0x160] sm:$0xff]  ;;  %v313_v12 = vld [vmem:[%s3018_s1 + $0x158] sm:$0xff]  ;;  %v312_v15 = vld [vmem:[%s3018_s1 + $0x150] sm:$0xff] }
   0x5   :  { %518 = vmatpush.msra.mxu0 %v284_v3  ;;  %v282_v10 = vld [vmem:[%s3018_s1 + $0x60] sm:$0xff]  ;;  %v281_v13 = vld [vmem:[%s3018_s1 + $0x58] sm:$0xff]  ;;  %v280_v16 = vld [vmem:[%s3018_s1 + $0x50] sm:$0xff] }
   0x6   :  { %727 = vmatpush.msra.mxu1 %v300_v7  ;;  %937 = vmatpush.msra.mxu2 %v315_v5  ;;  %v298_v11 = vld [vmem:[%s3018_s1 + $0xe0] sm:$0xff]  ;;  %v297_v14 = vld [vmem:[%s3018_s1 + $0xd8] sm:$0xff]  ;;  %v296_v17 = vld [vmem:[%s3018_s1 + $0xd0] sm:$0xff] }
   0x7   :  { %519 = vmatpush.msra.mxu0 %v283_v6  ;;  %v311_v18 = vld [vmem:[%s3018_s1 + $0x148] sm:$0xff]  ;;  %v310_v21 = vld [vmem:[%s3018_s1 + $0x140] sm:$0xff]  ;;  %v309_v24 = vld [vmem:[%s3018_s1 + $0x138] sm:$0xff] }
   0x8   :  { %728 = vmatpush.msra.mxu1 %v299_v8  ;;  %938 = vmatpush.msra.mxu2 %v314_v9  ;;  %v279_v19 = vld [vmem:[%s3018_s1 + $0x48] sm:$0xff]  ;;  %v278_v22 = vld [vmem:[%s3018_s1 + $0x40] sm:$0xff]  ;;  %v277_v25 = vld [vmem:[%s3018_s1 + $0x38] sm:$0xff] }
   0x9   :  { %520 = vmatpush.msra.mxu0 %v282_v10  ;;  %v295_v20 = vld [vmem:[%s3018_s1 + $0xc8] sm:$0xff]  ;;  %v294_v23 = vld [vmem:[%s3018_s1 + $0xc0] sm:$0xff]  ;;  %v293_v26 = vld [vmem:[%s3018_s1 + $0xb8] sm:$0xff] }
   0xa   :  { %729 = vmatpush.msra.mxu1 %v298_v11  ;;  %939 = vmatpush.msra.mxu2 %v313_v12  ;;  %v319_v27 = vld [vmem:[%s3018_s1 + $0x188] sm:$0xff]  ;;  %v308_v28 = vld [vmem:[%s3018_s1 + $0x130] sm:$0xff]  ;;  %v318_v30 = vld [vmem:[%s3018_s1 + $0x180] sm:$0xff] }
   0xb   :  { %521 = vmatpush.msra.mxu0 %v281_v13  ;;  %v276_v29 = vld [vmem:[%s3018_s1 + $0x30] sm:$0xff]  ;;  %1158 = vmatpush.msra.mxu3 %v319_v27  ;;  %v17_v32 = vld [vmem:[%s3019_s0 + $0x18] sm:$0xff]  ;;  %v307_v33 = vld [vmem:[%s3018_s1 + $0x128] sm:$0xff] }
   0xc   :  { %730 = vmatpush.msra.mxu1 %v297_v14  ;;  %940 = vmatpush.msra.mxu2 %v312_v15  ;;  %v292_v31 = vld [vmem:[%s3018_s1 + $0xb0] sm:$0xff]  ;;  %v275_v34 = vld [vmem:[%s3018_s1 + $0x28] sm:$0xff]  ;;  %v306_v36 = vld [vmem:[%s3018_s1 + $0x120] sm:$0xff] }
   0xd   :  { %522 = vmatpush.msra.mxu0 %v280_v16  ;;  %1159 = vmatpush.msra.mxu3 %v318_v30  ;;  %v291_v35 = vld [vmem:[%s3018_s1 + $0xa8] sm:$0xff]  ;;  %v274_v37 = vld [vmem:[%s3018_s1 + $0x20] sm:$0xff]  ;;  %v305_v39 = vld [vmem:[%s3018_s1 + $0x118] sm:$0xff] }
   0xe   :  { %731 = vmatpush.msra.mxu1 %v296_v17  ;;  %941 = vmatpush.msra.mxu2 %v311_v18  ;;  %v290_v38 = vld [vmem:[%s3018_s1 + $0xa0] sm:$0xff]  ;;  %v273_v40 = vld [vmem:[%s3018_s1 + $0x18] sm:$0xff]  ;;  %v304_v42 = vld [vmem:[%s3018_s1 + $0x110] sm:$0xff] }
   0xf   :  { %523 = vmatpush.msra.mxu0 %v279_v19  ;;  %1614 = vmatmul.msk.f32.vlgmr.msra.gmra.mxu3 %vm324_vm0, %v17_v32  ;;  %v289_v41 = vld [vmem:[%s3018_s1 + $0x98] sm:$0xff]  ;;  %v272_v43 = vld [vmem:[%s3018_s1 + $0x10] sm:$0xff]  ;;  %v303_v46 = vld [vmem:[%s3018_s1 + $0x108] sm:$0xff] }
  0x10   :  { %732 = vmatpush.msra.mxu1 %v295_v20  ;;  %942 = vmatpush.msra.mxu2 %v310_v21  ;;  %v288_v44 = vld [vmem:[%s3018_s1 + $0x90] sm:$0xff]  ;;  %v21_v45 = vld [vmem:[%s3019_s0 + $0x38] sm:$0xff]  ;;  %v271_v47 = vld [vmem:[%s3018_s1 + $0x8] sm:$0xff] }
  0x11   :  { %524 = vmatpush.msra.mxu0 %v278_v22  ;;  %v287_v48 = vld [vmem:[%s3018_s1 + $0x88] sm:$0xff]  ;;  %v302_v49 = vld [vmem:[%s3018_s1 + $0x100] sm:$0xff]  ;;  %v16_v51 = vld [vmem:[%s3019_s0 + $0x10] sm:$0xff] }
  0x12   :  { %733 = vmatpush.msra.mxu1 %v294_v23  ;;  %943 = vmatpush.msra.mxu2 %v309_v24  ;;  %v270_v50 = vld [vmem:[%s3018_s1] sm:$0xff]  ;;  %v15_v54 = vld [vmem:[%s3019_s0 + $0x8] sm:$0xff]  ;;  %v25_v55 = vld [vmem:[%s3019_s0 + $0x58] sm:$0xff] }
  0x13   :  { %525 = vmatpush.msra.mxu0 %v277_v25  ;;  %v14_v52 = vld [vmem:[%s3019_s0] sm:$0xff]  ;;  %v20_v56 = vld [vmem:[%s3019_s0 + $0x30] sm:$0xff]  ;;  %v19_v58 = vld [vmem:[%s3019_s0 + $0x28] sm:$0xff] }
  0x14   :  { %734 = vmatpush.msra.mxu1 %v293_v26  ;;  %944 = vmatpush.msra.mxu2 %v308_v28  ;;  %v286_v53 = vld [vmem:[%s3018_s1 + $0x80] sm:$0xff]  ;;  %v29_v59 = vld [vmem:[%s3019_s0 + $0x78] sm:$0xff]  ;;  %v24_v60 = vld [vmem:[%s3019_s0 + $0x50] sm:$0xff] }
  0x15   :  { %526 = vmatpush.msra.mxu0 %v276_v29  ;;  %v18_v57 = vld [vmem:[%s3019_s0 + $0x20] sm:$0xff]  ;;  %v23_v62 = vld [vmem:[%s3019_s0 + $0x48] sm:$0xff]  ;;  %v33_v63 = vld [vmem:[%s3019_s0 + $0x98] sm:$0xff] }
  0x16   :  { %735 = vmatpush.msra.mxu1 %v292_v31  ;;  %945 = vmatpush.msra.mxu2 %v307_v33  ;;  %v22_v61 = vld [vmem:[%s3019_s0 + $0x40] sm:$0xff]  ;;  %v28_v0 = vld [vmem:[%s3019_s0 + $0x70] sm:$0xff]  ;;  %v27_v2 = vld [vmem:[%s3019_s0 + $0x68] sm:$0xff] }
  0x17   :  { %527 = vmatpush.msra.mxu0 %v275_v34  ;;  %1615 = vmatmul.msk.f32.gmra.mxu3 %vm324_vm0, %v21_v45  ;;  %v26_v1 = vld [vmem:[%s3019_s0 + $0x60] sm:$0xff]  ;;  %v37_v3 = vld [vmem:[%s3019_s0 + $0xb8] sm:$0xff]  ;;  %v32_v4 = vld [vmem:[%s3019_s0 + $0x90] sm:$0xff] }
  0x18   :  { %736 = vmatpush.msra.mxu1 %v291_v35  ;;  %946 = vmatpush.msra.mxu2 %v306_v36  ;;  %v30_v5 = vld [vmem:[%s3019_s0 + $0x80] sm:$0xff]  ;;  %v31_v6 = vld [vmem:[%s3019_s0 + $0x88] sm:$0xff]  ;;  %v41_v7 = vld [vmem:[%s3019_s0 + $0xd8] sm:$0xff] }
  0x19   :  { %528 = vmatpush.msra.mxu0 %v274_v37  ;;  %v36_v8 = vld [vmem:[%s3019_s0 + $0xb0] sm:$0xff]  ;;  %v34_v9 = vld [vmem:[%s3019_s0 + $0xa0] sm:$0xff]  ;;  %v35_v10 = vld [vmem:[%s3019_s0 + $0xa8] sm:$0xff] }
  0x1a   :  { %737 = vmatpush.msra.mxu1 %v290_v38  ;;  %947 = vmatpush.msra.mxu2 %v305_v39  ;;  %v45_v11 = vld [vmem:[%s3019_s0 + $0xf8] sm:$0xff]  ;;  %v40_v12 = vld [vmem:[%s3019_s0 + $0xd0] sm:$0xff]  ;;  %v38_v13 = vld [vmem:[%s3019_s0 + $0xc0] sm:$0xff] }
  0x1b   :  { %529 = vmatpush.msra.mxu0 %v273_v40  ;;  %v39_v14 = vld [vmem:[%s3019_s0 + $0xc8] sm:$0xff]  ;;  %v49_v15 = vld [vmem:[%s3019_s0 + $0x118] sm:$0xff]  ;;  %v44_v16 = vld [vmem:[%s3019_s0 + $0xf0] sm:$0xff] }
  0x1c   :  { %738 = vmatpush.msra.mxu1 %v289_v41  ;;  %948 = vmatpush.msra.mxu2 %v304_v42  ;;  %v42_v17 = vld [vmem:[%s3019_s0 + $0xe0] sm:$0xff]  ;;  %v43_v18 = vld [vmem:[%s3019_s0 + $0xe8] sm:$0xff]  ;;  %v53_v19 = vld [vmem:[%s3019_s0 + $0x138] sm:$0xff] }
  0x1d   :  { %530 = vmatpush.msra.mxu0 %v272_v43  ;;  %v48_v20 = vld [vmem:[%s3019_s0 + $0x110] sm:$0xff]  ;;  %v46_v21 = vld [vmem:[%s3019_s0 + $0x100] sm:$0xff]  ;;  %v47_v22 = vld [vmem:[%s3019_s0 + $0x108] sm:$0xff] }
  0x1e   :  { %739 = vmatpush.msra.mxu1 %v288_v44  ;;  %949 = vmatpush.msra.mxu2 %v303_v46  ;;  %v57_v23 = vld [vmem:[%s3019_s0 + $0x158] sm:$0xff]  ;;  %v52_v24 = vld [vmem:[%s3019_s0 + $0x130] sm:$0xff]  ;;  %v50_v25 = vld [vmem:[%s3019_s0 + $0x120] sm:$0xff] }
  0x1f   :  { %531 = vmatpush.msra.mxu0 %v271_v47  ;;  %1616 = vmatmul.msk.f32.gmra.mxu3 %vm324_vm0, %v25_v55  ;;  %v51_v26 = vld [vmem:[%s3019_s0 + $0x128] sm:$0xff]  ;;  %v61_v27 = vld [vmem:[%s3019_s0 + $0x178] sm:$0xff]  ;;  %v56_v28 = vld [vmem:[%s3019_s0 + $0x150] sm:$0xff] }
  0x20   :  { %740 = vmatpush.msra.mxu1 %v287_v48  ;;  %950 = vmatpush.msra.mxu2 %v302_v49  ;;  %v54_v29 = vld [vmem:[%s3019_s0 + $0x140] sm:$0xff]  ;;  %v55_v30 = vld [vmem:[%s3019_s0 + $0x148] sm:$0xff]  ;;  %v65_v31 = vld [vmem:[%s3019_s0 + $0x198] sm:$0xff] }
  0x21   :  { %532 = vmatpush.msra.mxu0 %v270_v50  ;;  %951 = vmatmul.f32.vlgmr.msra.gmra.mxu2 %v16_v51  ;;  %v60_v32 = vld [vmem:[%s3019_s0 + $0x170] sm:$0xff]  ;;  %v58_v33 = vld [vmem:[%s3019_s0 + $0x160] sm:$0xff]  ;;  %v59_v34 = vld [vmem:[%s3019_s0 + $0x168] sm:$0xff] }
  0x22   :  { %533 = vmatmul.f32.vlgmr.msra.gmra.mxu0 %v14_v52  ;;  %741 = vmatpush.msra.mxu1 %v286_v53  ;;  %v69_v35 = vld [vmem:[%s3019_s0 + $0x1b8] sm:$0xff]  ;;  %v64_v36 = vld [vmem:[%s3019_s0 + $0x190] sm:$0xff]  ;;  %v62_v37 = vld [vmem:[%s3019_s0 + $0x180] sm:$0xff] }
  0x23   :  { %742 = vmatmul.f32.vlgmr.msra.gmra.mxu1 %v15_v54  ;;  %v63_v38 = vld [vmem:[%s3019_s0 + $0x188] sm:$0xff]  ;;  %v73_v39 = vld [vmem:[%s3019_s0 + $0x1d8] sm:$0xff]  ;;  %v68_v40 = vld [vmem:[%s3019_s0 + $0x1b0] sm:$0xff] }
  0x24   :  { %v66_v41 = vld [vmem:[%s3019_s0 + $0x1a0] sm:$0xff]  ;;  %v67_v42 = vld [vmem:[%s3019_s0 + $0x1a8] sm:$0xff]  ;;  %v77_v43 = vld [vmem:[%s3019_s0 + $0x1f8] sm:$0xff] }
  0x25   :  { %v72_v44 = vld [vmem:[%s3019_s0 + $0x1d0] sm:$0xff]  ;;  %v70_v45 = vld [vmem:[%s3019_s0 + $0x1c0] sm:$0xff]  ;;  %v71_v46 = vld [vmem:[%s3019_s0 + $0x1c8] sm:$0xff] }
  0x26   :  { %v81_v47 = vld [vmem:[%s3019_s0 + $0x218] sm:$0xff]  ;;  %v76_v48 = vld [vmem:[%s3019_s0 + $0x1f0] sm:$0xff]  ;;  %v74_v49 = vld [vmem:[%s3019_s0 + $0x1e0] sm:$0xff] }
  0x27   :  { %1617 = vmatmul.msk.f32.gmra.mxu3 %vm324_vm0, %v29_v59  ;;  %v75_v50 = vld [vmem:[%s3019_s0 + $0x1e8] sm:$0xff]  ;;  %v85_v52 = vld [vmem:[%s3019_s0 + $0x238] sm:$0xff]  ;;  %v2069_v53 = vld [vmem:[%s3020_s2] ss:$0 sm:$0xff] }
  0x28   :  { %v80_v55 = vld [vmem:[%s3019_s0 + $0x210] sm:$0xff]  ;;  %v79_v59 = vld [vmem:[%s3019_s0 + $0x208] sm:$0xff] }
  0x29   :  { %954 = vmatmul.f32.gmra.mxu2 %v20_v56  ;;  %v78_v56 = vld [vmem:[%s3019_s0 + $0x200] sm:$0xff] }
  0x2a   :  { %536 = vmatmul.f32.gmra.mxu0 %v18_v57 }
  0x2b   :  { %745 = vmatmul.f32.gmra.mxu1 %v19_v58 }
  0x2f   :  { %1618 = vmatmul.msk.f32.gmra.mxu3 %vm324_vm0, %v33_v63 }
  0x31   :  { %957 = vmatmul.f32.gmra.mxu2 %v24_v60 }
  0x32   :  { %539 = vmatmul.f32.gmra.mxu0 %v22_v61 }
  0x33   :  { %748 = vmatmul.f32.gmra.mxu1 %v23_v62  ;;  %v89_v62 = vld [vmem:[%s3019_s0 + $0x258] sm:$0xff] }
  0x37   :  { %1619 = vmatmul.msk.f32.gmra.mxu3 %vm324_vm0, %v37_v3  ;;  %v82_v3 = vld [vmem:[%s3019_s0 + $0x220] sm:$0xff] }
  0x39   :  { %960 = vmatmul.f32.gmra.mxu2 %v28_v0 }
  0x3a   :  { %542 = vmatmul.f32.gmra.mxu0 %v26_v1 }
  0x3b   :  { %751 = vmatmul.f32.gmra.mxu1 %v27_v2  ;;  %v84_v2 = vld [vmem:[%s3019_s0 + $0x230] sm:$0xff] }
  0x3f   :  { %1620 = vmatmul.msk.f32.gmra.mxu3 %vm324_vm0, %v41_v7  ;;  %v83_v7 = vld [vmem:[%s3019_s0 + $0x228] sm:$0xff] }
  0x41   :  { %963 = vmatmul.f32.gmra.mxu2 %v32_v4 }
  0x42   :  { %545 = vmatmul.f32.gmra.mxu0 %v30_v5 }
  0x43   :  { %754 = vmatmul.f32.gmra.mxu1 %v31_v6 }
  0x47   :  { %1621 = vmatmul.msk.f32.gmra.mxu3 %vm324_vm0, %v45_v11  ;;  %v93_v11 = vld [vmem:[%s3019_s0 + $0x278] sm:$0xff] }
  0x49   :  { %966 = vmatmul.f32.gmra.mxu2 %v36_v8 }
  0x4a   :  { %548 = vmatmul.f32.gmra.mxu0 %v34_v9 }
  0x4b   :  { %757 = vmatmul.f32.gmra.mxu1 %v35_v10 }
  0x4f   :  { %1622 = vmatmul.msk.f32.gmra.mxu3 %vm324_vm0, %v49_v15 }
  0x51   :  { %969 = vmatmul.f32.gmra.mxu2 %v40_v12 }
  0x52   :  { %551 = vmatmul.f32.gmra.mxu0 %v38_v13 }
  0x53   :  { %760 = vmatmul.f32.gmra.mxu1 %v39_v14 }
  0x57   :  { %1623 = vmatmul.msk.f32.gmra.mxu3 %vm324_vm0, %v53_v19 }
  0x59   :  { %972 = vmatmul.f32.gmra.mxu2 %v44_v16  ;;  %v88_v16 = vld [vmem:[%s3019_s0 + $0x250] sm:$0xff] }
  0x5a   :  { %554 = vmatmul.f32.gmra.mxu0 %v42_v17  ;;  %v86_v17 = vld [vmem:[%s3019_s0 + $0x240] sm:$0xff] }
  0x5b   :  { %763 = vmatmul.f32.gmra.mxu1 %v43_v18 }
  0x5f   :  { %1624 = vmatmul.msk.f32.gmra.mxu3 %vm324_vm0, %v57_v23 }
  0x61   :  { %975 = vmatmul.f32.gmra.mxu2 %v48_v20 }
  0x62   :  { %557 = vmatmul.f32.gmra.mxu0 %v46_v21  ;;  %v87_v21 = vld [vmem:[%s3019_s0 + $0x248] sm:$0xff] }
  0x63   :  { %766 = vmatmul.f32.gmra.mxu1 %v47_v22 }
  0x67   :  { %1625 = vmatmul.msk.f32.gmra.mxu3 %vm324_vm0, %v61_v27 }
  0x69   :  { %978 = vmatmul.f32.gmra.mxu2 %v52_v24 }
  0x6a   :  { %560 = vmatmul.f32.gmra.mxu0 %v50_v25  ;;  %v97_v25 = vld [vmem:[%s3019_s0 + $0x298] sm:$0xff] }
  0x6b   :  { %769 = vmatmul.f32.gmra.mxu1 %v51_v26 }
  0x6f   :  { %1626 = vmatmul.msk.f32.gmra.mxu3 %vm324_vm0, %v65_v31  ;;  %v90_v31 = vld [vmem:[%s3019_s0 + $0x260] sm:$0xff] }
  0x71   :  { %981 = vmatmul.f32.gmra.mxu2 %v56_v28 }
  0x72   :  { %563 = vmatmul.f32.gmra.mxu0 %v54_v29 }
  0x73   :  { %772 = vmatmul.f32.gmra.mxu1 %v55_v30  ;;  %v92_v30 = vld [vmem:[%s3019_s0 + $0x270] sm:$0xff] }
  0x77   :  { %1627 = vmatmul.msk.f32.gmra.mxu3 %vm324_vm0, %v69_v35  ;;  %v91_v35 = vld [vmem:[%s3019_s0 + $0x268] sm:$0xff] }
  0x79   :  { %984 = vmatmul.f32.gmra.mxu2 %v60_v32 }
  0x7a   :  { %566 = vmatmul.f32.gmra.mxu0 %v58_v33 }
  0x7b   :  { %775 = vmatmul.f32.gmra.mxu1 %v59_v34 }
  0x7f   :  { %1628 = vmatmul.msk.f32.gmra.mxu3 %vm324_vm0, %v73_v39  ;;  %v101_v39 = vld [vmem:[%s3019_s0 + $0x2b8] sm:$0xff] }
  0x81   :  { %987 = vmatmul.f32.gmra.mxu2 %v64_v36 }
  0x82   :  { %569 = vmatmul.f32.gmra.mxu0 %v62_v37 }
  0x83   :  { %778 = vmatmul.f32.gmra.mxu1 %v63_v38 }
  0x87   :  { %1629 = vmatmul.msk.f32.gmra.mxu3 %vm324_vm0, %v77_v43 }
  0x89   :  { %990 = vmatmul.f32.gmra.mxu2 %v68_v40 }
  0x8a   :  { %572 = vmatmul.f32.gmra.mxu0 %v66_v41 }
  0x8b   :  { %781 = vmatmul.f32.gmra.mxu1 %v67_v42 }
  0x8f   :  { %1630 = vmatmul.msk.f32.gmra.mxu3 %vm324_vm0, %v81_v47 }
  0x91   :  { %993 = vmatmul.f32.gmra.mxu2 %v72_v44  ;;  %v96_v44 = vld [vmem:[%s3019_s0 + $0x290] sm:$0xff] }
  0x92   :  { %575 = vmatmul.f32.gmra.mxu0 %v70_v45  ;;  %v1161_v51 = vpop.f32.mrf.mxu3  ;;  %v94_v45 = vld [vmem:[%s3019_s0 + $0x280] sm:$0xff] }
  0x93   :  { %784 = vmatmul.f32.gmra.mxu1 %v71_v46 }
  0x97   :  { %1631 = vmatmul.msk.f32.gmra.mxu3 %vm324_vm0, %v85_v52 }
  0x99   :  { %996 = vmatmul.f32.gmra.mxu2 %v76_v48 }
  0x9a   :  { %578 = vmatmul.f32.gmra.mxu0 %v74_v49  ;;  %v1164_v60 = vpop.f32.mrf.mxu3  ;;  %v95_v49 = vld [vmem:[%s3019_s0 + $0x288] sm:$0xff] }
  0x9b   :  { %787 = vmatmul.f32.gmra.mxu1 %v75_v50 }
  0x9f   :  { %v534_v54 = vpop.f32.mrf.mxu0  ;;  %1632 = vmatmul.msk.f32.gmra.mxu3 %vm324_vm0, %v89_v62 }
  0xa0   :  { %v535_v57 = vadd.f32 %v2069_v53, %v534_v54  ;;  %v743_v58 = vpop.f32.mrf.mxu1  ;;  %v105_v54 = vld [vmem:[%s3019_s0 + $0x2d8] sm:$0xff] }
  0xa1   :  { %999 = vmatmul.f32.gmra.mxu2 %v80_v55 }
  0xa2   :  { %v744_v61 = vadd.f32 %v743_v58, %v535_v57  ;;  %581 = vmatmul.f32.gmra.mxu0 %v78_v56  ;;  %v1167_v8 = vpop.f32.mrf.mxu3 }
  0xa3   :  { %790 = vmatmul.f32.gmra.mxu1 %v79_v59  ;;  %v100_v59 = vld [vmem:[%s3019_s0 + $0x2b0] sm:$0xff] }
  0xa4   :  { %v952_v63 = vpop.f32.mrf.mxu2 }
  0xa5   :  { %v953_v0 = vadd.f32 %v952_v63, %v744_v61 }
  0xa7   :  { %v537_v1 = vpop.f32.mrf.mxu0  ;;  %v1162_v4 = vadd.f32 %v1161_v51, %v953_v0  ;;  %1633 = vmatmul.msk.f32.gmra.mxu3 %vm324_vm0, %v93_v11  ;;  %v99_v0 = vld [vmem:[%s3019_s0 + $0x2a8] sm:$0xff] }
  0xa8   :  { %v538_v5 = vadd.f32 %v2069_v53, %v537_v1  ;;  %v746_v6 = vpop.f32.mrf.mxu1 }
  0xa9   :  { %vm1353_vm1 = vcmp.ge.f32.partialorder %v1162_v4, 0.0  ;;  %v1417_v9 = vmul.f32 0.01, %v1162_v4  ;;  %1002 = vmatmul.f32.gmra.mxu2 %v84_v2 }
  0xaa   :  { %v747_v10 = vadd.f32 %v746_v6, %v538_v5  ;;  %584 = vmatmul.f32.gmra.mxu0 %v82_v3  ;;  %v1170_v22 = vpop.f32.mrf.mxu3 }
  0xab   :  { %v1481_v12 = vsel %vm1353_vm1, %v1162_v4, %v1417_v9  ;;  %793 = vmatmul.f32.gmra.mxu1 %v83_v7  ;;  %v109_v4 = vld [vmem:[%s3019_s0 + $0x2f8] sm:$0xff]  ;;  %v104_v9 = vld [vmem:[%s3019_s0 + $0x2d0] sm:$0xff] }
  0xac   :  { %1546 = vst.msk [vmem:[%s3021_s3] sm:$0xff] %vm1545_vm2, %v1481_v12  ;;  %v955_v13 = vpop.f32.mrf.mxu2 }
  0xad   :  { %v956_v14 = vadd.f32 %v955_v13, %v747_v10  ;;  %v102_v10 = vld [vmem:[%s3019_s0 + $0x2c0] sm:$0xff] }
  0xaf   :  { %v540_v15 = vpop.f32.mrf.mxu0  ;;  %v1165_v18 = vadd.f32 %v1164_v60, %v956_v14  ;;  %1634 = vmatmul.msk.f32.gmra.mxu3 %vm324_vm0, %v97_v25  ;;  %v98_v60 = vld [vmem:[%s3019_s0 + $0x2a0] sm:$0xff]  ;;  %v103_v14 = vld [vmem:[%s3019_s0 + $0x2c8] sm:$0xff] }
  0xb0   :  { %v541_v19 = vadd.f32 %v2069_v53, %v540_v15  ;;  %v749_v20 = vpop.f32.mrf.mxu1 }
  0xb1   :  { %vm1354_vm3 = vcmp.ge.f32.partialorder %v1165_v18, 0.0  ;;  %v1418_v23 = vmul.f32 0.01, %v1165_v18  ;;  %1005 = vmatmul.f32.gmra.mxu2 %v88_v16 }
  0xb2   :  { %v750_v24 = vadd.f32 %v749_v20, %v541_v19  ;;  %587 = vmatmul.f32.gmra.mxu0 %v86_v17  ;;  %v1173_v36 = vpop.f32.mrf.mxu3 }
  0xb3   :  { %v1482_v26 = vsel %vm1354_vm3, %v1165_v18, %v1418_v23  ;;  %796 = vmatmul.f32.gmra.mxu1 %v87_v21  ;;  %v113_v18 = vld [vmem:[%s3019_s0 + $0x318] sm:$0xff]  ;;  %v108_v23 = vld [vmem:[%s3019_s0 + $0x2f0] sm:$0xff] }
  0xb4   :  { %1547 = vst.msk [vmem:[%s3021_s3 + $0x8] sm:$0xff] %vm1545_vm2, %v1482_v26  ;;  %v958_v27 = vpop.f32.mrf.mxu2 }
  0xb5   :  { %v959_v28 = vadd.f32 %v958_v27, %v750_v24  ;;  %v106_v24 = vld [vmem:[%s3019_s0 + $0x2e0] sm:$0xff] }
  0xb7   :  { %v543_v29 = vpop.f32.mrf.mxu0  ;;  %v1168_v32 = vadd.f32 %v1167_v8, %v959_v28  ;;  %1635 = vmatmul.msk.f32.gmra.mxu3 %vm324_vm0, %v101_v39  ;;  %v107_v28 = vld [vmem:[%s3019_s0 + $0x2e8] sm:$0xff] }
  0xb8   :  { %v544_v33 = vadd.f32 %v2069_v53, %v543_v29  ;;  %v752_v34 = vpop.f32.mrf.mxu1 }
  0xb9   :  { %vm1355_vm4 = vcmp.ge.f32.partialorder %v1168_v32, 0.0  ;;  %v1419_v37 = vmul.f32 0.01, %v1168_v32  ;;  %1008 = vmatmul.f32.gmra.mxu2 %v92_v30 }
  0xba   :  { %v753_v38 = vadd.f32 %v752_v34, %v544_v33  ;;  %590 = vmatmul.f32.gmra.mxu0 %v90_v31  ;;  %v1176_v50 = vpop.f32.mrf.mxu3 }
  0xbb   :  { %v1483_v40 = vsel %vm1355_vm4, %v1168_v32, %v1419_v37  ;;  %799 = vmatmul.f32.gmra.mxu1 %v91_v35  ;;  %v117_v32 = vld [vmem:[%s3019_s0 + $0x338] sm:$0xff]  ;;  %v112_v37 = vld [vmem:[%s3019_s0 + $0x310] sm:$0xff] }
  0xbc   :  { %1548 = vst.msk [vmem:[%s3021_s3 + $0x10] sm:$0xff] %vm1545_vm2, %v1483_v40  ;;  %v961_v41 = vpop.f32.mrf.mxu2 }
  0xbd   :  { %v962_v42 = vadd.f32 %v961_v41, %v753_v38  ;;  %v110_v38 = vld [vmem:[%s3019_s0 + $0x300] sm:$0xff] }
  0xbf   :  { %v546_v43 = vpop.f32.mrf.mxu0  ;;  %v1171_v46 = vadd.f32 %v1170_v22, %v962_v42  ;;  %1636 = vmatmul.msk.f32.gmra.mxu3 %vm324_vm0, %v105_v54  ;;  %v111_v42 = vld [vmem:[%s3019_s0 + $0x308] sm:$0xff] }
  0xc0   :  { %v547_v47 = vadd.f32 %v2069_v53, %v546_v43  ;;  %v755_v48 = vpop.f32.mrf.mxu1 }
  0xc1   :  { %vm1356_vm5 = vcmp.ge.f32.partialorder %v1171_v46, 0.0  ;;  %v1420_v51 = vmul.f32 0.01, %v1171_v46  ;;  %1011 = vmatmul.f32.gmra.mxu2 %v96_v44 }
  0xc2   :  { %v756_v52 = vadd.f32 %v755_v48, %v547_v47  ;;  %593 = vmatmul.f32.gmra.mxu0 %v94_v45  ;;  %v1179_v1 = vpop.f32.mrf.mxu3 }
  0xc3   :  { %v1484_v55 = vsel %vm1356_vm5, %v1171_v46, %v1420_v51  ;;  %802 = vmatmul.f32.gmra.mxu1 %v95_v49  ;;  %v121_v46 = vld [vmem:[%s3019_s0 + $0x358] sm:$0xff]  ;;  %v116_v51 = vld [vmem:[%s3019_s0 + $0x330] sm:$0xff] }
  0xc4   :  { %1549 = vst.msk [vmem:[%s3021_s3 + $0x18] sm:$0xff] %vm1545_vm2, %v1484_v55  ;;  %v964_v56 = vpop.f32.mrf.mxu2 }
  0xc5   :  { %v965_v57 = vadd.f32 %v964_v56, %v756_v52  ;;  %v114_v52 = vld [vmem:[%s3019_s0 + $0x320] sm:$0xff] }
  0xc7   :  { %v549_v58 = vpop.f32.mrf.mxu0  ;;  %v1174_v61 = vadd.f32 %v1173_v36, %v965_v57  ;;  %1637 = vmatmul.msk.f32.gmra.mxu3 %vm324_vm0, %v109_v4  ;;  %v115_v57 = vld [vmem:[%s3019_s0 + $0x328] sm:$0xff] }
  0xc8   :  { %v550_v62 = vadd.f32 %v2069_v53, %v549_v58  ;;  %v758_v63 = vpop.f32.mrf.mxu1 }
  0xc9   :  { %vm1357_vm6 = vcmp.ge.f32.partialorder %v1174_v61, 0.0  ;;  %v1421_v2 = vmul.f32 0.01, %v1174_v61  ;;  %1014 = vmatmul.f32.gmra.mxu2 %v100_v59 }
  0xca   :  { %v759_v3 = vadd.f32 %v758_v63, %v550_v62  ;;  %596 = vmatmul.f32.gmra.mxu0 %v98_v60  ;;  %v1182_v15 = vpop.f32.mrf.mxu3 }
  0xcb   :  { %v1485_v5 = vsel %vm1357_vm6, %v1174_v61, %v1421_v2  ;;  %805 = vmatmul.f32.gmra.mxu1 %v99_v0  ;;  %v125_v61 = vld [vmem:[%s3019_s0 + $0x378] sm:$0xff]  ;;  %v120_v2 = vld [vmem:[%s3019_s0 + $0x350] sm:$0xff] }
  0xcc   :  { %1550 = vst.msk [vmem:[%s3021_s3 + $0x20] sm:$0xff] %vm1545_vm2, %v1485_v5  ;;  %v967_v6 = vpop.f32.mrf.mxu2 }
  0xcd   :  { %v968_v7 = vadd.f32 %v967_v6, %v759_v3  ;;  %v118_v3 = vld [vmem:[%s3019_s0 + $0x340] sm:$0xff] }
  0xcf   :  { %v552_v8 = vpop.f32.mrf.mxu0  ;;  %v1177_v11 = vadd.f32 %v1176_v50, %v968_v7  ;;  %1638 = vmatmul.msk.f32.gmra.mxu3 %vm324_vm0, %v113_v18  ;;  %v119_v7 = vld [vmem:[%s3019_s0 + $0x348] sm:$0xff] }
  0xd0   :  { %v553_v12 = vadd.f32 %v2069_v53, %v552_v8  ;;  %v761_v13 = vpop.f32.mrf.mxu1 }
  0xd1   :  { %vm1358_vm7 = vcmp.ge.f32.partialorder %v1177_v11, 0.0  ;;  %v1422_v16 = vmul.f32 0.01, %v1177_v11  ;;  %1017 = vmatmul.f32.gmra.mxu2 %v104_v9 }
  0xd2   :  { %v762_v17 = vadd.f32 %v761_v13, %v553_v12  ;;  %599 = vmatmul.f32.gmra.mxu0 %v102_v10  ;;  %v1185_v29 = vpop.f32.mrf.mxu3 }
  0xd3   :  { %v1486_v19 = vsel %vm1358_vm7, %v1177_v11, %v1422_v16  ;;  %808 = vmatmul.f32.gmra.mxu1 %v103_v14  ;;  %v129_v11 = vld [vmem:[%s3019_s0 + $0x398] sm:$0xff]  ;;  %v124_v16 = vld [vmem:[%s3019_s0 + $0x370] sm:$0xff] }
  0xd4   :  { %1551 = vst.msk [vmem:[%s3021_s3 + $0x28] sm:$0xff] %vm1545_vm2, %v1486_v19  ;;  %v970_v20 = vpop.f32.mrf.mxu2 }
  0xd5   :  { %v971_v21 = vadd.f32 %v970_v20, %v762_v17  ;;  %v122_v17 = vld [vmem:[%s3019_s0 + $0x360] sm:$0xff] }
  0xd7   :  { %v555_v22 = vpop.f32.mrf.mxu0  ;;  %v1180_v25 = vadd.f32 %v1179_v1, %v971_v21  ;;  %1639 = vmatmul.msk.f32.gmra.mxu3 %vm324_vm0, %v117_v32  ;;  %v123_v21 = vld [vmem:[%s3019_s0 + $0x368] sm:$0xff] }
  0xd8   :  { %v556_v26 = vadd.f32 %v2069_v53, %v555_v22  ;;  %v764_v27 = vpop.f32.mrf.mxu1 }
  0xd9   :  { %vm1359_vm8 = vcmp.ge.f32.partialorder %v1180_v25, 0.0  ;;  %v1423_v30 = vmul.f32 0.01, %v1180_v25  ;;  %1020 = vmatmul.f32.gmra.mxu2 %v108_v23 }
  0xda   :  { %v765_v31 = vadd.f32 %v764_v27, %v556_v26  ;;  %602 = vmatmul.f32.gmra.mxu0 %v106_v24  ;;  %v1188_v43 = vpop.f32.mrf.mxu3 }
  0xdb   :  { %v1487_v33 = vsel %vm1359_vm8, %v1180_v25, %v1423_v30  ;;  %811 = vmatmul.f32.gmra.mxu1 %v107_v28  ;;  %v133_v25 = vld [vmem:[%s3019_s0 + $0x3b8] sm:$0xff]  ;;  %v128_v30 = vld [vmem:[%s3019_s0 + $0x390] sm:$0xff] }
  0xdc   :  { %1552 = vst.msk [vmem:[%s3021_s3 + $0x30] sm:$0xff] %vm1545_vm2, %v1487_v33  ;;  %v973_v34 = vpop.f32.mrf.mxu2 }
  0xdd   :  { %v974_v35 = vadd.f32 %v973_v34, %v765_v31  ;;  %v126_v31 = vld [vmem:[%s3019_s0 + $0x380] sm:$0xff] }
  0xdf   :  { %v558_v36 = vpop.f32.mrf.mxu0  ;;  %v1183_v39 = vadd.f32 %v1182_v15, %v974_v35  ;;  %1640 = vmatmul.msk.f32.gmra.mxu3 %vm324_vm0, %v121_v46  ;;  %v127_v35 = vld [vmem:[%s3019_s0 + $0x388] sm:$0xff] }
  0xe0   :  { %v559_v40 = vadd.f32 %v2069_v53, %v558_v36  ;;  %v767_v41 = vpop.f32.mrf.mxu1 }
  0xe1   :  { %vm1360_vm9 = vcmp.ge.f32.partialorder %v1183_v39, 0.0  ;;  %v1424_v44 = vmul.f32 0.01, %v1183_v39  ;;  %1023 = vmatmul.f32.gmra.mxu2 %v112_v37 }
  0xe2   :  { %v768_v45 = vadd.f32 %v767_v41, %v559_v40  ;;  %605 = vmatmul.f32.gmra.mxu0 %v110_v38  ;;  %v1191_v58 = vpop.f32.mrf.mxu3 }
  0xe3   :  { %v1488_v47 = vsel %vm1360_vm9, %v1183_v39, %v1424_v44  ;;  %814 = vmatmul.f32.gmra.mxu1 %v111_v42  ;;  %v137_v39 = vld [vmem:[%s3019_s0 + $0x3d8] sm:$0xff]  ;;  %v132_v44 = vld [vmem:[%s3019_s0 + $0x3b0] sm:$0xff] }
  0xe4   :  { %1553 = vst.msk [vmem:[%s3021_s3 + $0x38] sm:$0xff] %vm1545_vm2, %v1488_v47  ;;  %v976_v48 = vpop.f32.mrf.mxu2 }
  0xe5   :  { %v977_v49 = vadd.f32 %v976_v48, %v768_v45  ;;  %v130_v45 = vld [vmem:[%s3019_s0 + $0x3a0] sm:$0xff] }
  0xe7   :  { %v561_v50 = vpop.f32.mrf.mxu0  ;;  %v1186_v54 = vadd.f32 %v1185_v29, %v977_v49  ;;  %1641 = vmatmul.msk.f32.gmra.mxu3 %vm324_vm0, %v125_v61  ;;  %v131_v49 = vld [vmem:[%s3019_s0 + $0x3a8] sm:$0xff] }
  0xe8   :  { %v562_v55 = vadd.f32 %v2069_v53, %v561_v50  ;;  %v770_v56 = vpop.f32.mrf.mxu1 }
  0xe9   :  { %vm1361_vm10 = vcmp.ge.f32.partialorder %v1186_v54, 0.0  ;;  %v1425_v59 = vmul.f32 0.01, %v1186_v54  ;;  %1026 = vmatmul.f32.gmra.mxu2 %v116_v51 }
  0xea   :  { %v771_v60 = vadd.f32 %v770_v56, %v562_v55  ;;  %608 = vmatmul.f32.gmra.mxu0 %v114_v52  ;;  %v1194_v8 = vpop.f32.mrf.mxu3 }
  0xeb   :  { %v1489_v62 = vsel %vm1361_vm10, %v1186_v54, %v1425_v59  ;;  %817 = vmatmul.f32.gmra.mxu1 %v115_v57  ;;  %v141_v54 = vld [vmem:[%s3019_s0 + $0x3f8] sm:$0xff]  ;;  %v136_v59 = vld [vmem:[%s3019_s0 + $0x3d0] sm:$0xff] }
  0xec   :  { %1554 = vst.msk [vmem:[%s3021_s3 + $0x40] sm:$0xff] %vm1545_vm2, %v1489_v62  ;;  %v979_v63 = vpop.f32.mrf.mxu2 }
  0xed   :  { %v980_v0 = vadd.f32 %v979_v63, %v771_v60  ;;  %v134_v60 = vld [vmem:[%s3019_s0 + $0x3c0] sm:$0xff] }
  0xef   :  { %v564_v1 = vpop.f32.mrf.mxu0  ;;  %v1189_v4 = vadd.f32 %v1188_v43, %v980_v0  ;;  %1642 = vmatmul.msk.f32.gmra.mxu3 %vm324_vm0, %v129_v11  ;;  %v135_v0 = vld [vmem:[%s3019_s0 + $0x3c8] sm:$0xff] }
  0xf0   :  { %v565_v5 = vadd.f32 %v2069_v53, %v564_v1  ;;  %v773_v6 = vpop.f32.mrf.mxu1 }
  0xf1   :  { %vm1362_vm11 = vcmp.ge.f32.partialorder %v1189_v4, 0.0  ;;  %v1426_v9 = vmul.f32 0.01, %v1189_v4  ;;  %1029 = vmatmul.f32.gmra.mxu2 %v120_v2 }
  0xf2   :  { %v774_v10 = vadd.f32 %v773_v6, %v565_v5  ;;  %611 = vmatmul.f32.gmra.mxu0 %v118_v3  ;;  %v1197_v22 = vpop.f32.mrf.mxu3 }
  0xf3   :  { %v1490_v12 = vsel %vm1362_vm11, %v1189_v4, %v1426_v9  ;;  %820 = vmatmul.f32.gmra.mxu1 %v119_v7  ;;  %v145_v4 = vld [vmem:[%s3019_s0 + $0x418] sm:$0xff]  ;;  %v140_v9 = vld [vmem:[%s3019_s0 + $0x3f0] sm:$0xff] }
  0xf4   :  { %1555 = vst.msk [vmem:[%s3021_s3 + $0x48] sm:$0xff] %vm1545_vm2, %v1490_v12  ;;  %v982_v13 = vpop.f32.mrf.mxu2 }
  0xf5   :  { %v983_v14 = vadd.f32 %v982_v13, %v774_v10  ;;  %v138_v10 = vld [vmem:[%s3019_s0 + $0x3e0] sm:$0xff] }
  0xf7   :  { %v567_v15 = vpop.f32.mrf.mxu0  ;;  %v1192_v18 = vadd.f32 %v1191_v58, %v983_v14  ;;  %1643 = vmatmul.msk.f32.gmra.mxu3 %vm324_vm0, %v133_v25  ;;  %v139_v14 = vld [vmem:[%s3019_s0 + $0x3e8] sm:$0xff] }
  0xf8   :  { %v568_v19 = vadd.f32 %v2069_v53, %v567_v15  ;;  %v776_v20 = vpop.f32.mrf.mxu1 }
  0xf9   :  { %vm1363_vm12 = vcmp.ge.f32.partialorder %v1192_v18, 0.0  ;;  %v1427_v23 = vmul.f32 0.01, %v1192_v18  ;;  %1032 = vmatmul.f32.gmra.mxu2 %v124_v16 }
  0xfa   :  { %v777_v24 = vadd.f32 %v776_v20, %v568_v19  ;;  %614 = vmatmul.f32.gmra.mxu0 %v122_v17  ;;  %v1200_v36 = vpop.f32.mrf.mxu3 }
  0xfb   :  { %v1491_v26 = vsel %vm1363_vm12, %v1192_v18, %v1427_v23  ;;  %823 = vmatmul.f32.gmra.mxu1 %v123_v21  ;;  %v149_v18 = vld [vmem:[%s3019_s0 + $0x438] sm:$0xff]  ;;  %v144_v23 = vld [vmem:[%s3019_s0 + $0x410] sm:$0xff] }
  0xfc   :  { %1556 = vst.msk [vmem:[%s3021_s3 + $0x50] sm:$0xff] %vm1545_vm2, %v1491_v26  ;;  %v985_v27 = vpop.f32.mrf.mxu2 }
  0xfd   :  { %v986_v28 = vadd.f32 %v985_v27, %v777_v24  ;;  %v142_v24 = vld [vmem:[%s3019_s0 + $0x400] sm:$0xff] }
  0xff   :  { %v570_v29 = vpop.f32.mrf.mxu0  ;;  %v1195_v32 = vadd.f32 %v1194_v8, %v986_v28  ;;  %1644 = vmatmul.msk.f32.gmra.mxu3 %vm324_vm0, %v137_v39  ;;  %v143_v28 = vld [vmem:[%s3019_s0 + $0x408] sm:$0xff] }
 0x100   :  { %v571_v33 = vadd.f32 %v2069_v53, %v570_v29  ;;  %v779_v34 = vpop.f32.mrf.mxu1 }
 0x101   :  { %vm1364_vm13 = vcmp.ge.f32.partialorder %v1195_v32, 0.0  ;;  %v1428_v37 = vmul.f32 0.01, %v1195_v32  ;;  %1035 = vmatmul.f32.gmra.mxu2 %v128_v30 }
 0x102   :  { %v780_v38 = vadd.f32 %v779_v34, %v571_v33  ;;  %617 = vmatmul.f32.gmra.mxu0 %v126_v31  ;;  %v1203_v50 = vpop.f32.mrf.mxu3 }
 0x103   :  { %v1492_v40 = vsel %vm1364_vm13, %v1195_v32, %v1428_v37  ;;  %826 = vmatmul.f32.gmra.mxu1 %v127_v35  ;;  %v153_v32 = vld [vmem:[%s3019_s0 + $0x458] sm:$0xff]  ;;  %v148_v37 = vld [vmem:[%s3019_s0 + $0x430] sm:$0xff] }
 0x104   :  { %1557 = vst.msk [vmem:[%s3021_s3 + $0x58] sm:$0xff] %vm1545_vm2, %v1492_v40  ;;  %v988_v41 = vpop.f32.mrf.mxu2 }
 0x105   :  { %v989_v42 = vadd.f32 %v988_v41, %v780_v38  ;;  %v146_v38 = vld [vmem:[%s3019_s0 + $0x420] sm:$0xff] }
 0x107   :  { %v573_v43 = vpop.f32.mrf.mxu0  ;;  %v1198_v46 = vadd.f32 %v1197_v22, %v989_v42  ;;  %1645 = vmatmul.msk.f32.gmra.mxu3 %vm324_vm0, %v141_v54  ;;  %v147_v42 = vld [vmem:[%s3019_s0 + $0x428] sm:$0xff] }
 0x108   :  { %v574_v47 = vadd.f32 %v2069_v53, %v573_v43  ;;  %v782_v48 = vpop.f32.mrf.mxu1 }
 0x109   :  { %vm1365_vm14 = vcmp.ge.f32.partialorder %v1198_v46, 0.0  ;;  %v1429_v51 = vmul.f32 0.01, %v1198_v46  ;;  %1038 = vmatmul.f32.gmra.mxu2 %v132_v44 }
 0x10a   :  { %v783_v52 = vadd.f32 %v782_v48, %v574_v47  ;;  %620 = vmatmul.f32.gmra.mxu0 %v130_v45  ;;  %v1206_v1 = vpop.f32.mrf.mxu3 }
 0x10b   :  { %v1493_v55 = vsel %vm1365_vm14, %v1198_v46, %v1429_v51  ;;  %829 = vmatmul.f32.gmra.mxu1 %v131_v49  ;;  %v157_v46 = vld [vmem:[%s3019_s0 + $0x478] sm:$0xff]  ;;  %v152_v51 = vld [vmem:[%s3019_s0 + $0x450] sm:$0xff] }
 0x10c   :  { %1558 = vst.msk [vmem:[%s3021_s3 + $0x60] sm:$0xff] %vm1545_vm2, %v1493_v55  ;;  %v991_v56 = vpop.f32.mrf.mxu2 }
 0x10d   :  { %v992_v57 = vadd.f32 %v991_v56, %v783_v52  ;;  %v150_v52 = vld [vmem:[%s3019_s0 + $0x440] sm:$0xff] }
 0x10f   :  { %v576_v58 = vpop.f32.mrf.mxu0  ;;  %v1201_v61 = vadd.f32 %v1200_v36, %v992_v57  ;;  %1646 = vmatmul.msk.f32.gmra.mxu3 %vm324_vm0, %v145_v4  ;;  %v151_v57 = vld [vmem:[%s3019_s0 + $0x448] sm:$0xff] }
 0x110   :  { %v577_v62 = vadd.f32 %v2069_v53, %v576_v58  ;;  %v785_v63 = vpop.f32.mrf.mxu1 }
 0x111   :  { %vm1366_vm15 = vcmp.ge.f32.partialorder %v1201_v61, 0.0  ;;  %v1430_v2 = vmul.f32 0.01, %v1201_v61  ;;  %1041 = vmatmul.f32.gmra.mxu2 %v136_v59 }
 0x112   :  { %v786_v3 = vadd.f32 %v785_v63, %v577_v62  ;;  %623 = vmatmul.f32.gmra.mxu0 %v134_v60  ;;  %v1209_v15 = vpop.f32.mrf.mxu3 }
 0x113   :  { %v1494_v5 = vsel %vm1366_vm15, %v1201_v61, %v1430_v2  ;;  %832 = vmatmul.f32.gmra.mxu1 %v135_v0  ;;  %v161_v61 = vld [vmem:[%s3019_s0 + $0x498] sm:$0xff]  ;;  %v156_v2 = vld [vmem:[%s3019_s0 + $0x470] sm:$0xff] }
 0x114   :  { %1559 = vst.msk [vmem:[%s3021_s3 + $0x68] sm:$0xff] %vm1545_vm2, %v1494_v5  ;;  %v994_v6 = vpop.f32.mrf.mxu2 }
 0x115   :  { %v995_v7 = vadd.f32 %v994_v6, %v786_v3  ;;  %v154_v3 = vld [vmem:[%s3019_s0 + $0x460] sm:$0xff] }
 0x117   :  { %v579_v8 = vpop.f32.mrf.mxu0  ;;  %v1204_v11 = vadd.f32 %v1203_v50, %v995_v7  ;;  %1647 = vmatmul.msk.f32.gmra.mxu3 %vm324_vm0, %v149_v18  ;;  %v155_v7 = vld [vmem:[%s3019_s0 + $0x468] sm:$0xff] }
 0x118   :  { %v580_v12 = vadd.f32 %v2069_v53, %v579_v8  ;;  %v788_v13 = vpop.f32.mrf.mxu1 }
 0x119   :  { %vm1367_vm1 = vcmp.ge.f32.partialorder %v1204_v11, 0.0  ;;  %v1431_v16 = vmul.f32 0.01, %v1204_v11  ;;  %1044 = vmatmul.f32.gmra.mxu2 %v140_v9 }
 0x11a   :  { %v789_v17 = vadd.f32 %v788_v13, %v580_v12  ;;  %626 = vmatmul.f32.gmra.mxu0 %v138_v10  ;;  %v1212_v29 = vpop.f32.mrf.mxu3 }
 0x11b   :  { %v1495_v19 = vsel %vm1367_vm1, %v1204_v11, %v1431_v16  ;;  %835 = vmatmul.f32.gmra.mxu1 %v139_v14  ;;  %v165_v11 = vld [vmem:[%s3019_s0 + $0x4b8] sm:$0xff]  ;;  %v160_v16 = vld [vmem:[%s3019_s0 + $0x490] sm:$0xff] }
 0x11c   :  { %1560 = vst.msk [vmem:[%s3021_s3 + $0x70] sm:$0xff] %vm1545_vm2, %v1495_v19  ;;  %v997_v20 = vpop.f32.mrf.mxu2 }
 0x11d   :  { %v998_v21 = vadd.f32 %v997_v20, %v789_v17  ;;  %v158_v17 = vld [vmem:[%s3019_s0 + $0x480] sm:$0xff] }
 0x11f   :  { %v582_v22 = vpop.f32.mrf.mxu0  ;;  %v1207_v25 = vadd.f32 %v1206_v1, %v998_v21  ;;  %1648 = vmatmul.msk.f32.gmra.mxu3 %vm324_vm0, %v153_v32  ;;  %v159_v21 = vld [vmem:[%s3019_s0 + $0x488] sm:$0xff] }
 0x120   :  { %v583_v26 = vadd.f32 %v2069_v53, %v582_v22  ;;  %v791_v27 = vpop.f32.mrf.mxu1 }
 0x121   :  { %vm1368_vm3 = vcmp.ge.f32.partialorder %v1207_v25, 0.0  ;;  %v1432_v30 = vmul.f32 0.01, %v1207_v25  ;;  %1047 = vmatmul.f32.gmra.mxu2 %v144_v23 }
 0x122   :  { %v792_v31 = vadd.f32 %v791_v27, %v583_v26  ;;  %629 = vmatmul.f32.gmra.mxu0 %v142_v24  ;;  %v1215_v43 = vpop.f32.mrf.mxu3 }
 0x123   :  { %v1496_v33 = vsel %vm1368_vm3, %v1207_v25, %v1432_v30  ;;  %838 = vmatmul.f32.gmra.mxu1 %v143_v28  ;;  %v169_v25 = vld [vmem:[%s3019_s0 + $0x4d8] sm:$0xff]  ;;  %v164_v30 = vld [vmem:[%s3019_s0 + $0x4b0] sm:$0xff] }
 0x124   :  { %1561 = vst.msk [vmem:[%s3021_s3 + $0x78] sm:$0xff] %vm1545_vm2, %v1496_v33  ;;  %v1000_v34 = vpop.f32.mrf.mxu2 }
 0x125   :  { %v1001_v35 = vadd.f32 %v1000_v34, %v792_v31  ;;  %v162_v31 = vld [vmem:[%s3019_s0 + $0x4a0] sm:$0xff] }
 0x127   :  { %v585_v36 = vpop.f32.mrf.mxu0  ;;  %v1210_v39 = vadd.f32 %v1209_v15, %v1001_v35  ;;  %1649 = vmatmul.msk.f32.gmra.mxu3 %vm324_vm0, %v157_v46  ;;  %v163_v35 = vld [vmem:[%s3019_s0 + $0x4a8] sm:$0xff] }
 0x128   :  { %v586_v40 = vadd.f32 %v2069_v53, %v585_v36  ;;  %v794_v41 = vpop.f32.mrf.mxu1 }
 0x129   :  { %vm1369_vm4 = vcmp.ge.f32.partialorder %v1210_v39, 0.0  ;;  %v1433_v44 = vmul.f32 0.01, %v1210_v39  ;;  %1050 = vmatmul.f32.gmra.mxu2 %v148_v37 }
 0x12a   :  { %v795_v45 = vadd.f32 %v794_v41, %v586_v40  ;;  %632 = vmatmul.f32.gmra.mxu0 %v146_v38  ;;  %v1218_v58 = vpop.f32.mrf.mxu3 }
 0x12b   :  { %v1497_v47 = vsel %vm1369_vm4, %v1210_v39, %v1433_v44  ;;  %841 = vmatmul.f32.gmra.mxu1 %v147_v42  ;;  %v173_v39 = vld [vmem:[%s3019_s0 + $0x4f8] sm:$0xff]  ;;  %v168_v44 = vld [vmem:[%s3019_s0 + $0x4d0] sm:$0xff] }
 0x12c   :  { %1562 = vst.msk [vmem:[%s3021_s3 + $0x80] sm:$0xff] %vm1545_vm2, %v1497_v47  ;;  %v1003_v48 = vpop.f32.mrf.mxu2 }
 0x12d   :  { %v1004_v49 = vadd.f32 %v1003_v48, %v795_v45  ;;  %v166_v45 = vld [vmem:[%s3019_s0 + $0x4c0] sm:$0xff] }
 0x12f   :  { %v588_v50 = vpop.f32.mrf.mxu0  ;;  %v1213_v54 = vadd.f32 %v1212_v29, %v1004_v49  ;;  %1650 = vmatmul.msk.f32.gmra.mxu3 %vm324_vm0, %v161_v61  ;;  %v167_v49 = vld [vmem:[%s3019_s0 + $0x4c8] sm:$0xff] }
 0x130   :  { %v589_v55 = vadd.f32 %v2069_v53, %v588_v50  ;;  %v797_v56 = vpop.f32.mrf.mxu1 }
 0x131   :  { %vm1370_vm5 = vcmp.ge.f32.partialorder %v1213_v54, 0.0  ;;  %v1434_v59 = vmul.f32 0.01, %v1213_v54  ;;  %1053 = vmatmul.f32.gmra.mxu2 %v152_v51 }
 0x132   :  { %v798_v60 = vadd.f32 %v797_v56, %v589_v55  ;;  %635 = vmatmul.f32.gmra.mxu0 %v150_v52  ;;  %v1221_v8 = vpop.f32.mrf.mxu3 }
 0x133   :  { %v1498_v62 = vsel %vm1370_vm5, %v1213_v54, %v1434_v59  ;;  %844 = vmatmul.f32.gmra.mxu1 %v151_v57  ;;  %v177_v54 = vld [vmem:[%s3019_s0 + $0x518] sm:$0xff]  ;;  %v172_v59 = vld [vmem:[%s3019_s0 + $0x4f0] sm:$0xff] }
 0x134   :  { %1563 = vst.msk [vmem:[%s3021_s3 + $0x88] sm:$0xff] %vm1545_vm2, %v1498_v62  ;;  %v1006_v63 = vpop.f32.mrf.mxu2 }
 0x135   :  { %v1007_v0 = vadd.f32 %v1006_v63, %v798_v60  ;;  %v170_v60 = vld [vmem:[%s3019_s0 + $0x4e0] sm:$0xff] }
 0x137   :  { %v591_v1 = vpop.f32.mrf.mxu0  ;;  %v1216_v4 = vadd.f32 %v1215_v43, %v1007_v0  ;;  %1651 = vmatmul.msk.f32.gmra.mxu3 %vm324_vm0, %v165_v11  ;;  %v171_v0 = vld [vmem:[%s3019_s0 + $0x4e8] sm:$0xff] }
 0x138   :  { %v592_v5 = vadd.f32 %v2069_v53, %v591_v1  ;;  %v800_v6 = vpop.f32.mrf.mxu1 }
 0x139   :  { %vm1371_vm6 = vcmp.ge.f32.partialorder %v1216_v4, 0.0  ;;  %v1435_v9 = vmul.f32 0.01, %v1216_v4  ;;  %1056 = vmatmul.f32.gmra.mxu2 %v156_v2 }
 0x13a   :  { %v801_v10 = vadd.f32 %v800_v6, %v592_v5  ;;  %638 = vmatmul.f32.gmra.mxu0 %v154_v3  ;;  %v1224_v22 = vpop.f32.mrf.mxu3 }
 0x13b   :  { %v1499_v12 = vsel %vm1371_vm6, %v1216_v4, %v1435_v9  ;;  %847 = vmatmul.f32.gmra.mxu1 %v155_v7  ;;  %v181_v4 = vld [vmem:[%s3019_s0 + $0x538] sm:$0xff]  ;;  %v176_v9 = vld [vmem:[%s3019_s0 + $0x510] sm:$0xff] }
 0x13c   :  { %1564 = vst.msk [vmem:[%s3021_s3 + $0x90] sm:$0xff] %vm1545_vm2, %v1499_v12  ;;  %v1009_v13 = vpop.f32.mrf.mxu2 }
 0x13d   :  { %v1010_v14 = vadd.f32 %v1009_v13, %v801_v10  ;;  %v174_v10 = vld [vmem:[%s3019_s0 + $0x500] sm:$0xff] }
 0x13f   :  { %v594_v15 = vpop.f32.mrf.mxu0  ;;  %v1219_v18 = vadd.f32 %v1218_v58, %v1010_v14  ;;  %1652 = vmatmul.msk.f32.gmra.mxu3 %vm324_vm0, %v169_v25  ;;  %v175_v14 = vld [vmem:[%s3019_s0 + $0x508] sm:$0xff] }
 0x140   :  { %v595_v19 = vadd.f32 %v2069_v53, %v594_v15  ;;  %v803_v20 = vpop.f32.mrf.mxu1 }
 0x141   :  { %vm1372_vm7 = vcmp.ge.f32.partialorder %v1219_v18, 0.0  ;;  %v1436_v23 = vmul.f32 0.01, %v1219_v18  ;;  %1059 = vmatmul.f32.gmra.mxu2 %v160_v16 }
 0x142   :  { %v804_v24 = vadd.f32 %v803_v20, %v595_v19  ;;  %641 = vmatmul.f32.gmra.mxu0 %v158_v17  ;;  %v1227_v36 = vpop.f32.mrf.mxu3 }
 0x143   :  { %v1500_v26 = vsel %vm1372_vm7, %v1219_v18, %v1436_v23  ;;  %850 = vmatmul.f32.gmra.mxu1 %v159_v21  ;;  %v185_v18 = vld [vmem:[%s3019_s0 + $0x558] sm:$0xff]  ;;  %v180_v23 = vld [vmem:[%s3019_s0 + $0x530] sm:$0xff] }
 0x144   :  { %1565 = vst.msk [vmem:[%s3021_s3 + $0x98] sm:$0xff] %vm1545_vm2, %v1500_v26  ;;  %v1012_v27 = vpop.f32.mrf.mxu2 }
 0x145   :  { %v1013_v28 = vadd.f32 %v1012_v27, %v804_v24  ;;  %v178_v24 = vld [vmem:[%s3019_s0 + $0x520] sm:$0xff] }
 0x147   :  { %v597_v29 = vpop.f32.mrf.mxu0  ;;  %v1222_v32 = vadd.f32 %v1221_v8, %v1013_v28  ;;  %1653 = vmatmul.msk.f32.gmra.mxu3 %vm324_vm0, %v173_v39  ;;  %v179_v28 = vld [vmem:[%s3019_s0 + $0x528] sm:$0xff]  ;;  %v2545_v39 = vld [vmem:[%s3020_s2] ss:$0 sm:$0xff] }
 0x148   :  { %v598_v33 = vadd.f32 %v2069_v53, %v597_v29  ;;  %v806_v34 = vpop.f32.mrf.mxu1 }
 0x149   :  { %vm1373_vm8 = vcmp.ge.f32.partialorder %v1222_v32, 0.0  ;;  %v1437_v37 = vmul.f32 0.01, %v1222_v32  ;;  %1062 = vmatmul.f32.gmra.mxu2 %v164_v30 }
 0x14a   :  { %v807_v38 = vadd.f32 %v806_v34, %v598_v33  ;;  %644 = vmatmul.f32.gmra.mxu0 %v162_v31  ;;  %v1230_v50 = vpop.f32.mrf.mxu3 }
 0x14b   :  { %v1501_v40 = vsel %vm1373_vm8, %v1222_v32, %v1437_v37  ;;  %853 = vmatmul.f32.gmra.mxu1 %v163_v35  ;;  %v189_v32 = vld [vmem:[%s3019_s0 + $0x578] sm:$0xff]  ;;  %v182_v37 = vld [vmem:[%s3019_s0 + $0x540] sm:$0xff] }
 0x14c   :  { %1566 = vst.msk [vmem:[%s3021_s3 + $0xa0] sm:$0xff] %vm1545_vm2, %v1501_v40  ;;  %v1015_v41 = vpop.f32.mrf.mxu2 }
 0x14d   :  { %v1016_v42 = vadd.f32 %v1015_v41, %v807_v38 }
 0x14f   :  { %v600_v43 = vpop.f32.mrf.mxu0  ;;  %v1225_v46 = vadd.f32 %v1224_v22, %v1016_v42  ;;  %1654 = vmatmul.msk.f32.gmra.mxu3 %vm324_vm0, %v177_v54  ;;  %v183_v42 = vld [vmem:[%s3019_s0 + $0x548] sm:$0xff] }
 0x150   :  { %v601_v47 = vadd.f32 %v2069_v53, %v600_v43  ;;  %v809_v48 = vpop.f32.mrf.mxu1 }
 0x151   :  { %vm1374_vm9 = vcmp.ge.f32.partialorder %v1225_v46, 0.0  ;;  %v1438_v51 = vmul.f32 0.01, %v1225_v46  ;;  %1065 = vmatmul.f32.gmra.mxu2 %v168_v44 }
 0x152   :  { %v810_v52 = vadd.f32 %v809_v48, %v601_v47  ;;  %647 = vmatmul.f32.gmra.mxu0 %v166_v45  ;;  %v1233_v1 = vpop.f32.mrf.mxu3 }
 0x153   :  { %v1502_v55 = vsel %vm1374_vm9, %v1225_v46, %v1438_v51  ;;  %856 = vmatmul.f32.gmra.mxu1 %v167_v49  ;;  %v193_v46 = vld [vmem:[%s3019_s0 + $0x598] sm:$0xff]  ;;  %v188_v51 = vld [vmem:[%s3019_s0 + $0x570] sm:$0xff] }
 0x154   :  { %1567 = vst.msk [vmem:[%s3021_s3 + $0xa8] sm:$0xff] %vm1545_vm2, %v1502_v55  ;;  %v1018_v56 = vpop.f32.mrf.mxu2 }
 0x155   :  { %v1019_v57 = vadd.f32 %v1018_v56, %v810_v52  ;;  %v186_v52 = vld [vmem:[%s3019_s0 + $0x560] sm:$0xff] }
 0x157   :  { %v603_v58 = vpop.f32.mrf.mxu0  ;;  %v1228_v61 = vadd.f32 %v1227_v36, %v1019_v57  ;;  %1655 = vmatmul.msk.f32.gmra.mxu3 %vm324_vm0, %v181_v4  ;;  %v184_v36 = vld [vmem:[%s3019_s0 + $0x550] sm:$0xff]  ;;  %v187_v57 = vld [vmem:[%s3019_s0 + $0x568] sm:$0xff] }
 0x158   :  { %v604_v62 = vadd.f32 %v2069_v53, %v603_v58  ;;  %v812_v63 = vpop.f32.mrf.mxu1 }
 0x159   :  { %vm1375_vm10 = vcmp.ge.f32.partialorder %v1228_v61, 0.0  ;;  %v1439_v2 = vmul.f32 0.01, %v1228_v61  ;;  %1068 = vmatmul.f32.gmra.mxu2 %v172_v59 }
 0x15a   :  { %v813_v3 = vadd.f32 %v812_v63, %v604_v62  ;;  %650 = vmatmul.f32.gmra.mxu0 %v170_v60  ;;  %v1236_v15 = vpop.f32.mrf.mxu3 }
 0x15b   :  { %v1503_v5 = vsel %vm1375_vm10, %v1228_v61, %v1439_v2  ;;  %859 = vmatmul.f32.gmra.mxu1 %v171_v0  ;;  %v197_v61 = vld [vmem:[%s3019_s0 + $0x5b8] sm:$0xff]  ;;  %v192_v2 = vld [vmem:[%s3019_s0 + $0x590] sm:$0xff] }
 0x15c   :  { %1568 = vst.msk [vmem:[%s3021_s3 + $0xb0] sm:$0xff] %vm1545_vm2, %v1503_v5  ;;  %v1021_v6 = vpop.f32.mrf.mxu2 }
 0x15d   :  { %v1022_v7 = vadd.f32 %v1021_v6, %v813_v3  ;;  %v190_v3 = vld [vmem:[%s3019_s0 + $0x580] sm:$0xff] }
 0x15f   :  { %v606_v8 = vpop.f32.mrf.mxu0  ;;  %v1231_v11 = vadd.f32 %v1230_v50, %v1022_v7  ;;  %1656 = vmatmul.msk.f32.gmra.mxu3 %vm324_vm0, %v185_v18  ;;  %v191_v7 = vld [vmem:[%s3019_s0 + $0x588] sm:$0xff] }
 0x160   :  { %v607_v12 = vadd.f32 %v2069_v53, %v606_v8  ;;  %v815_v13 = vpop.f32.mrf.mxu1 }
 0x161   :  { %vm1376_vm11 = vcmp.ge.f32.partialorder %v1231_v11, 0.0  ;;  %v1440_v16 = vmul.f32 0.01, %v1231_v11  ;;  %1071 = vmatmul.f32.gmra.mxu2 %v176_v9 }
 0x162   :  { %v816_v17 = vadd.f32 %v815_v13, %v607_v12  ;;  %653 = vmatmul.f32.gmra.mxu0 %v174_v10  ;;  %v1239_v29 = vpop.f32.mrf.mxu3 }
 0x163   :  { %v1504_v19 = vsel %vm1376_vm11, %v1231_v11, %v1440_v16  ;;  %862 = vmatmul.f32.gmra.mxu1 %v175_v14  ;;  %v201_v11 = vld [vmem:[%s3019_s0 + $0x5d8] sm:$0xff]  ;;  %v196_v16 = vld [vmem:[%s3019_s0 + $0x5b0] sm:$0xff] }
 0x164   :  { %1569 = vst.msk [vmem:[%s3021_s3 + $0xb8] sm:$0xff] %vm1545_vm2, %v1504_v19  ;;  %v1024_v20 = vpop.f32.mrf.mxu2 }
 0x165   :  { %v1025_v21 = vadd.f32 %v1024_v20, %v816_v17  ;;  %v194_v17 = vld [vmem:[%s3019_s0 + $0x5a0] sm:$0xff] }
 0x167   :  { %v609_v22 = vpop.f32.mrf.mxu0  ;;  %v1234_v25 = vadd.f32 %v1233_v1, %v1025_v21  ;;  %1657 = vmatmul.msk.f32.gmra.mxu3 %vm324_vm0, %v189_v32  ;;  %v195_v21 = vld [vmem:[%s3019_s0 + $0x5a8] sm:$0xff] }
 0x168   :  { %v610_v26 = vadd.f32 %v2069_v53, %v609_v22  ;;  %v818_v27 = vpop.f32.mrf.mxu1 }
 0x169   :  { %vm1377_vm12 = vcmp.ge.f32.partialorder %v1234_v25, 0.0  ;;  %v1441_v30 = vmul.f32 0.01, %v1234_v25  ;;  %1074 = vmatmul.f32.gmra.mxu2 %v180_v23 }
 0x16a   :  { %v819_v31 = vadd.f32 %v818_v27, %v610_v26  ;;  %656 = vmatmul.f32.gmra.mxu0 %v178_v24  ;;  %v1242_v43 = vpop.f32.mrf.mxu3 }
 0x16b   :  { %v1505_v33 = vsel %vm1377_vm12, %v1234_v25, %v1441_v30  ;;  %865 = vmatmul.f32.gmra.mxu1 %v179_v28  ;;  %v205_v25 = vld [vmem:[%s3019_s0 + $0x5f8] sm:$0xff]  ;;  %v200_v30 = vld [vmem:[%s3019_s0 + $0x5d0] sm:$0xff] }
 0x16c   :  { %1570 = vst.msk [vmem:[%s3021_s3 + $0xc0] sm:$0xff] %vm1545_vm2, %v1505_v33  ;;  %v1027_v53 = vpop.f32.mrf.mxu2 }
 0x16d   :  { %v1028_v34 = vadd.f32 %v1027_v53, %v819_v31  ;;  %v198_v31 = vld [vmem:[%s3019_s0 + $0x5c0] sm:$0xff] }
 0x16f   :  { %v612_v35 = vpop.f32.mrf.mxu0  ;;  %v1237_v38 = vadd.f32 %v1236_v15, %v1028_v34  ;;  %1658 = vmatmul.msk.f32.gmra.mxu3 %vm324_vm0, %v193_v46  ;;  %v199_v34 = vld [vmem:[%s3019_s0 + $0x5c8] sm:$0xff] }
 0x170   :  { %v613_v40 = vadd.f32 %v2545_v39, %v612_v35  ;;  %v821_v41 = vpop.f32.mrf.mxu1 }
 0x171   :  { %vm1378_vm13 = vcmp.ge.f32.partialorder %v1237_v38, 0.0  ;;  %v1442_v44 = vmul.f32 0.01, %v1237_v38  ;;  %1077 = vmatmul.f32.gmra.mxu2 %v184_v36 }
 0x172   :  { %v822_v45 = vadd.f32 %v821_v41, %v613_v40  ;;  %659 = vmatmul.f32.gmra.mxu0 %v182_v37  ;;  %v1245_v58 = vpop.f32.mrf.mxu3 }
 0x173   :  { %v1506_v47 = vsel %vm1378_vm13, %v1237_v38, %v1442_v44  ;;  %868 = vmatmul.f32.gmra.mxu1 %v183_v42  ;;  %v209_v38 = vld [vmem:[%s3019_s0 + $0x618] sm:$0xff]  ;;  %v204_v44 = vld [vmem:[%s3019_s0 + $0x5f0] sm:$0xff] }
 0x174   :  { %1571 = vst.msk [vmem:[%s3021_s3 + $0xc8] sm:$0xff] %vm1545_vm2, %v1506_v47  ;;  %v1030_v48 = vpop.f32.mrf.mxu2 }
 0x175   :  { %v1031_v49 = vadd.f32 %v1030_v48, %v822_v45  ;;  %v202_v45 = vld [vmem:[%s3019_s0 + $0x5e0] sm:$0xff] }
 0x177   :  { %v615_v50 = vpop.f32.mrf.mxu0  ;;  %v1240_v54 = vadd.f32 %v1239_v29, %v1031_v49  ;;  %1659 = vmatmul.msk.f32.gmra.mxu3 %vm324_vm0, %v197_v61  ;;  %v203_v49 = vld [vmem:[%s3019_s0 + $0x5e8] sm:$0xff] }
 0x178   :  { %v616_v55 = vadd.f32 %v2545_v39, %v615_v50  ;;  %v824_v56 = vpop.f32.mrf.mxu1 }
 0x179   :  { %vm1379_vm14 = vcmp.ge.f32.partialorder %v1240_v54, 0.0  ;;  %v1443_v59 = vmul.f32 0.01, %v1240_v54  ;;  %1080 = vmatmul.f32.gmra.mxu2 %v188_v51 }
 0x17a   :  { %v825_v60 = vadd.f32 %v824_v56, %v616_v55  ;;  %662 = vmatmul.f32.gmra.mxu0 %v186_v52  ;;  %v1248_v8 = vpop.f32.mrf.mxu3 }
 0x17b   :  { %v1507_v62 = vsel %vm1379_vm14, %v1240_v54, %v1443_v59  ;;  %871 = vmatmul.f32.gmra.mxu1 %v187_v57  ;;  %v213_v54 = vld [vmem:[%s3019_s0 + $0x638] sm:$0xff]  ;;  %v208_v59 = vld [vmem:[%s3019_s0 + $0x610] sm:$0xff] }
 0x17c   :  { %1572 = vst.msk [vmem:[%s3021_s3 + $0xd0] sm:$0xff] %vm1545_vm2, %v1507_v62  ;;  %v1033_v63 = vpop.f32.mrf.mxu2 }
 0x17d   :  { %v1034_v0 = vadd.f32 %v1033_v63, %v825_v60  ;;  %v206_v60 = vld [vmem:[%s3019_s0 + $0x600] sm:$0xff] }
 0x17f   :  { %v618_v1 = vpop.f32.mrf.mxu0  ;;  %v1243_v4 = vadd.f32 %v1242_v43, %v1034_v0  ;;  %1660 = vmatmul.msk.f32.gmra.mxu3 %vm324_vm0, %v201_v11  ;;  %v207_v0 = vld [vmem:[%s3019_s0 + $0x608] sm:$0xff] }
 0x180   :  { %v619_v5 = vadd.f32 %v2545_v39, %v618_v1  ;;  %v827_v6 = vpop.f32.mrf.mxu1 }
 0x181   :  { %vm1380_vm15 = vcmp.ge.f32.partialorder %v1243_v4, 0.0  ;;  %v1444_v9 = vmul.f32 0.01, %v1243_v4  ;;  %1083 = vmatmul.f32.gmra.mxu2 %v192_v2 }
 0x182   :  { %v828_v10 = vadd.f32 %v827_v6, %v619_v5  ;;  %665 = vmatmul.f32.gmra.mxu0 %v190_v3  ;;  %v1251_v22 = vpop.f32.mrf.mxu3 }
 0x183   :  { %v1508_v12 = vsel %vm1380_vm15, %v1243_v4, %v1444_v9  ;;  %874 = vmatmul.f32.gmra.mxu1 %v191_v7  ;;  %v217_v4 = vld [vmem:[%s3019_s0 + $0x658] sm:$0xff]  ;;  %v212_v9 = vld [vmem:[%s3019_s0 + $0x630] sm:$0xff] }
 0x184   :  { %1573 = vst.msk [vmem:[%s3021_s3 + $0xd8] sm:$0xff] %vm1545_vm2, %v1508_v12  ;;  %v1036_v13 = vpop.f32.mrf.mxu2 }
 0x185   :  { %v1037_v14 = vadd.f32 %v1036_v13, %v828_v10  ;;  %v210_v10 = vld [vmem:[%s3019_s0 + $0x620] sm:$0xff] }
 0x187   :  { %v621_v15 = vpop.f32.mrf.mxu0  ;;  %v1246_v18 = vadd.f32 %v1245_v58, %v1037_v14  ;;  %1661 = vmatmul.msk.f32.gmra.mxu3 %vm324_vm0, %v205_v25  ;;  %v211_v14 = vld [vmem:[%s3019_s0 + $0x628] sm:$0xff] }
 0x188   :  { %v622_v19 = vadd.f32 %v2545_v39, %v621_v15  ;;  %v830_v20 = vpop.f32.mrf.mxu1 }
 0x189   :  { %vm1381_vm1 = vcmp.ge.f32.partialorder %v1246_v18, 0.0  ;;  %v1445_v23 = vmul.f32 0.01, %v1246_v18  ;;  %1086 = vmatmul.f32.gmra.mxu2 %v196_v16 }
 0x18a   :  { %v831_v24 = vadd.f32 %v830_v20, %v622_v19  ;;  %668 = vmatmul.f32.gmra.mxu0 %v194_v17  ;;  %v1254_v35 = vpop.f32.mrf.mxu3 }
 0x18b   :  { %v1509_v26 = vsel %vm1381_vm1, %v1246_v18, %v1445_v23  ;;  %877 = vmatmul.f32.gmra.mxu1 %v195_v21  ;;  %v221_v18 = vld [vmem:[%s3019_s0 + $0x678] sm:$0xff]  ;;  %v216_v23 = vld [vmem:[%s3019_s0 + $0x650] sm:$0xff] }
 0x18c   :  { %1574 = vst.msk [vmem:[%s3021_s3 + $0xe0] sm:$0xff] %vm1545_vm2, %v1509_v26  ;;  %v1039_v27 = vpop.f32.mrf.mxu2 }
 0x18d   :  { %v1040_v28 = vadd.f32 %v1039_v27, %v831_v24  ;;  %v214_v24 = vld [vmem:[%s3019_s0 + $0x640] sm:$0xff] }
 0x18f   :  { %v624_v29 = vpop.f32.mrf.mxu0  ;;  %v1249_v32 = vadd.f32 %v1248_v8, %v1040_v28  ;;  %1662 = vmatmul.msk.f32.gmra.mxu3 %vm324_vm0, %v209_v38  ;;  %v215_v28 = vld [vmem:[%s3019_s0 + $0x648] sm:$0xff] }
 0x190   :  { %v625_v33 = vadd.f32 %v2545_v39, %v624_v29  ;;  %v833_v53 = vpop.f32.mrf.mxu1 }
 0x191   :  { %vm1382_vm3 = vcmp.ge.f32.partialorder %v1249_v32, 0.0  ;;  %v1446_v36 = vmul.f32 0.01, %v1249_v32  ;;  %1089 = vmatmul.f32.gmra.mxu2 %v200_v30 }
 0x192   :  { %v834_v37 = vadd.f32 %v833_v53, %v625_v33  ;;  %671 = vmatmul.f32.gmra.mxu0 %v198_v31  ;;  %v1257_v50 = vpop.f32.mrf.mxu3 }
 0x193   :  { %v1510_v40 = vsel %vm1382_vm3, %v1249_v32, %v1446_v36  ;;  %880 = vmatmul.f32.gmra.mxu1 %v199_v34  ;;  %v225_v32 = vld [vmem:[%s3019_s0 + $0x698] sm:$0xff]  ;;  %v220_v36 = vld [vmem:[%s3019_s0 + $0x670] sm:$0xff] }
 0x194   :  { %1575 = vst.msk [vmem:[%s3021_s3 + $0xe8] sm:$0xff] %vm1545_vm2, %v1510_v40  ;;  %v1042_v41 = vpop.f32.mrf.mxu2 }
 0x195   :  { %v1043_v42 = vadd.f32 %v1042_v41, %v834_v37  ;;  %v218_v37 = vld [vmem:[%s3019_s0 + $0x660] sm:$0xff] }
 0x197   :  { %v627_v43 = vpop.f32.mrf.mxu0  ;;  %v1252_v46 = vadd.f32 %v1251_v22, %v1043_v42  ;;  %1663 = vmatmul.msk.f32.gmra.mxu3 %vm324_vm0, %v213_v54  ;;  %v219_v42 = vld [vmem:[%s3019_s0 + $0x668] sm:$0xff] }
 0x198   :  { %v628_v47 = vadd.f32 %v2545_v39, %v627_v43  ;;  %v836_v48 = vpop.f32.mrf.mxu1 }
 0x199   :  { %vm1383_vm4 = vcmp.ge.f32.partialorder %v1252_v46, 0.0  ;;  %v1447_v51 = vmul.f32 0.01, %v1252_v46  ;;  %1092 = vmatmul.f32.gmra.mxu2 %v204_v44 }
 0x19a   :  { %v837_v52 = vadd.f32 %v836_v48, %v628_v47  ;;  %674 = vmatmul.f32.gmra.mxu0 %v202_v45  ;;  %v1260_v1 = vpop.f32.mrf.mxu3 }
 0x19b   :  { %v1511_v55 = vsel %vm1383_vm4, %v1252_v46, %v1447_v51  ;;  %883 = vmatmul.f32.gmra.mxu1 %v203_v49  ;;  %v229_v46 = vld [vmem:[%s3019_s0 + $0x6b8] sm:$0xff]  ;;  %v224_v51 = vld [vmem:[%s3019_s0 + $0x690] sm:$0xff] }
 0x19c   :  { %1576 = vst.msk [vmem:[%s3021_s3 + $0xf0] sm:$0xff] %vm1545_vm2, %v1511_v55  ;;  %v1045_v56 = vpop.f32.mrf.mxu2 }
 0x19d   :  { %v1046_v57 = vadd.f32 %v1045_v56, %v837_v52  ;;  %v222_v52 = vld [vmem:[%s3019_s0 + $0x680] sm:$0xff] }
 0x19f   :  { %v630_v58 = vpop.f32.mrf.mxu0  ;;  %v1255_v61 = vadd.f32 %v1254_v35, %v1046_v57  ;;  %1664 = vmatmul.msk.f32.gmra.mxu3 %vm324_vm0, %v217_v4  ;;  %v223_v57 = vld [vmem:[%s3019_s0 + $0x688] sm:$0xff] }
 0x1a0   :  { %v631_v62 = vadd.f32 %v2545_v39, %v630_v58  ;;  %v839_v63 = vpop.f32.mrf.mxu1 }
 0x1a1   :  { %vm1384_vm5 = vcmp.ge.f32.partialorder %v1255_v61, 0.0  ;;  %v1448_v2 = vmul.f32 0.01, %v1255_v61  ;;  %1095 = vmatmul.f32.gmra.mxu2 %v208_v59 }
 0x1a2   :  { %v840_v3 = vadd.f32 %v839_v63, %v631_v62  ;;  %677 = vmatmul.f32.gmra.mxu0 %v206_v60  ;;  %v1263_v15 = vpop.f32.mrf.mxu3 }
 0x1a3   :  { %v1512_v5 = vsel %vm1384_vm5, %v1255_v61, %v1448_v2  ;;  %886 = vmatmul.f32.gmra.mxu1 %v207_v0  ;;  %v233_v61 = vld [vmem:[%s3019_s0 + $0x6d8] sm:$0xff]  ;;  %v228_v2 = vld [vmem:[%s3019_s0 + $0x6b0] sm:$0xff] }
 0x1a4   :  { %1577 = vst.msk [vmem:[%s3021_s3 + $0xf8] sm:$0xff] %vm1545_vm2, %v1512_v5  ;;  %v1048_v6 = vpop.f32.mrf.mxu2 }
 0x1a5   :  { %v1049_v7 = vadd.f32 %v1048_v6, %v840_v3  ;;  %v226_v3 = vld [vmem:[%s3019_s0 + $0x6a0] sm:$0xff] }
 0x1a7   :  { %v633_v8 = vpop.f32.mrf.mxu0  ;;  %v1258_v11 = vadd.f32 %v1257_v50, %v1049_v7  ;;  %1665 = vmatmul.msk.f32.gmra.mxu3 %vm324_vm0, %v221_v18  ;;  %v227_v7 = vld [vmem:[%s3019_s0 + $0x6a8] sm:$0xff] }
 0x1a8   :  { %v634_v12 = vadd.f32 %v2545_v39, %v633_v8  ;;  %v842_v13 = vpop.f32.mrf.mxu1 }
 0x1a9   :  { %vm1385_vm6 = vcmp.ge.f32.partialorder %v1258_v11, 0.0  ;;  %v1449_v16 = vmul.f32 0.01, %v1258_v11  ;;  %1098 = vmatmul.f32.gmra.mxu2 %v212_v9 }
 0x1aa   :  { %v843_v17 = vadd.f32 %v842_v13, %v634_v12  ;;  %680 = vmatmul.f32.gmra.mxu0 %v210_v10  ;;  %v1266_v29 = vpop.f32.mrf.mxu3 }
 0x1ab   :  { %v1513_v19 = vsel %vm1385_vm6, %v1258_v11, %v1449_v16  ;;  %889 = vmatmul.f32.gmra.mxu1 %v211_v14  ;;  %v237_v11 = vld [vmem:[%s3019_s0 + $0x6f8] sm:$0xff]  ;;  %v232_v16 = vld [vmem:[%s3019_s0 + $0x6d0] sm:$0xff] }
 0x1ac   :  { %1578 = vst.msk [vmem:[%s3021_s3 + $0x100] sm:$0xff] %vm1545_vm2, %v1513_v19  ;;  %v1051_v20 = vpop.f32.mrf.mxu2 }
 0x1ad   :  { %v1052_v21 = vadd.f32 %v1051_v20, %v843_v17  ;;  %v230_v17 = vld [vmem:[%s3019_s0 + $0x6c0] sm:$0xff] }
 0x1af   :  { %v636_v22 = vpop.f32.mrf.mxu0  ;;  %v1261_v25 = vadd.f32 %v1260_v1, %v1052_v21  ;;  %1666 = vmatmul.msk.f32.gmra.mxu3 %vm324_vm0, %v225_v32  ;;  %v231_v21 = vld [vmem:[%s3019_s0 + $0x6c8] sm:$0xff] }
 0x1b0   :  { %v637_v26 = vadd.f32 %v2545_v39, %v636_v22  ;;  %v845_v27 = vpop.f32.mrf.mxu1 }
 0x1b1   :  { %vm1386_vm7 = vcmp.ge.f32.partialorder %v1261_v25, 0.0  ;;  %v1450_v30 = vmul.f32 0.01, %v1261_v25  ;;  %1101 = vmatmul.f32.gmra.mxu2 %v216_v23 }
 0x1b2   :  { %v846_v31 = vadd.f32 %v845_v27, %v637_v26  ;;  %683 = vmatmul.f32.gmra.mxu0 %v214_v24  ;;  %v1269_v43 = vpop.f32.mrf.mxu3 }
 0x1b3   :  { %v1514_v33 = vsel %vm1386_vm7, %v1261_v25, %v1450_v30  ;;  %892 = vmatmul.f32.gmra.mxu1 %v215_v28  ;;  %v241_v25 = vld [vmem:[%s3019_s0 + $0x718] sm:$0xff]  ;;  %v236_v30 = vld [vmem:[%s3019_s0 + $0x6f0] sm:$0xff] }
 0x1b4   :  { %1579 = vst.msk [vmem:[%s3021_s3 + $0x108] sm:$0xff] %vm1545_vm2, %v1514_v33  ;;  %v1054_v53 = vpop.f32.mrf.mxu2 }
 0x1b5   :  { %v1055_v34 = vadd.f32 %v1054_v53, %v846_v31  ;;  %v234_v31 = vld [vmem:[%s3019_s0 + $0x6e0] sm:$0xff] }
 0x1b7   :  { %v639_v35 = vpop.f32.mrf.mxu0  ;;  %v1264_v38 = vadd.f32 %v1263_v15, %v1055_v34  ;;  %1667 = vmatmul.msk.f32.gmra.mxu3 %vm324_vm0, %v229_v46  ;;  %v235_v34 = vld [vmem:[%s3019_s0 + $0x6e8] sm:$0xff] }
 0x1b8   :  { %v640_v40 = vadd.f32 %v2545_v39, %v639_v35  ;;  %v848_v41 = vpop.f32.mrf.mxu1 }
 0x1b9   :  { %vm1387_vm8 = vcmp.ge.f32.partialorder %v1264_v38, 0.0  ;;  %v1451_v44 = vmul.f32 0.01, %v1264_v38  ;;  %1104 = vmatmul.f32.gmra.mxu2 %v220_v36 }
 0x1ba   :  { %v849_v45 = vadd.f32 %v848_v41, %v640_v40  ;;  %686 = vmatmul.f32.gmra.mxu0 %v218_v37  ;;  %v1272_v58 = vpop.f32.mrf.mxu3 }
 0x1bb   :  { %v1515_v47 = vsel %vm1387_vm8, %v1264_v38, %v1451_v44  ;;  %895 = vmatmul.f32.gmra.mxu1 %v219_v42  ;;  %v245_v38 = vld [vmem:[%s3019_s0 + $0x738] sm:$0xff]  ;;  %v240_v44 = vld [vmem:[%s3019_s0 + $0x710] sm:$0xff] }
 0x1bc   :  { %1580 = vst.msk [vmem:[%s3021_s3 + $0x110] sm:$0xff] %vm1545_vm2, %v1515_v47  ;;  %v1057_v48 = vpop.f32.mrf.mxu2 }
 0x1bd   :  { %v1058_v49 = vadd.f32 %v1057_v48, %v849_v45  ;;  %v238_v45 = vld [vmem:[%s3019_s0 + $0x700] sm:$0xff] }
 0x1bf   :  { %v642_v50 = vpop.f32.mrf.mxu0  ;;  %v1267_v54 = vadd.f32 %v1266_v29, %v1058_v49  ;;  %1668 = vmatmul.msk.f32.gmra.mxu3 %vm324_vm0, %v233_v61  ;;  %v239_v49 = vld [vmem:[%s3019_s0 + $0x708] sm:$0xff] }
 0x1c0   :  { %v643_v55 = vadd.f32 %v2545_v39, %v642_v50  ;;  %v851_v56 = vpop.f32.mrf.mxu1 }
 0x1c1   :  { %vm1388_vm9 = vcmp.ge.f32.partialorder %v1267_v54, 0.0  ;;  %v1452_v59 = vmul.f32 0.01, %v1267_v54  ;;  %1107 = vmatmul.f32.gmra.mxu2 %v224_v51 }
 0x1c2   :  { %v852_v60 = vadd.f32 %v851_v56, %v643_v55  ;;  %689 = vmatmul.f32.gmra.mxu0 %v222_v52  ;;  %v1275_v8 = vpop.f32.mrf.mxu3 }
 0x1c3   :  { %v1516_v62 = vsel %vm1388_vm9, %v1267_v54, %v1452_v59  ;;  %898 = vmatmul.f32.gmra.mxu1 %v223_v57  ;;  %v249_v54 = vld [vmem:[%s3019_s0 + $0x758] sm:$0xff]  ;;  %v244_v59 = vld [vmem:[%s3019_s0 + $0x730] sm:$0xff] }
 0x1c4   :  { %1581 = vst.msk [vmem:[%s3021_s3 + $0x118] sm:$0xff] %vm1545_vm2, %v1516_v62  ;;  %v1060_v63 = vpop.f32.mrf.mxu2 }
 0x1c5   :  { %v1061_v0 = vadd.f32 %v1060_v63, %v852_v60  ;;  %v242_v60 = vld [vmem:[%s3019_s0 + $0x720] sm:$0xff] }
 0x1c7   :  { %v645_v1 = vpop.f32.mrf.mxu0  ;;  %v1270_v4 = vadd.f32 %v1269_v43, %v1061_v0  ;;  %1669 = vmatmul.msk.f32.gmra.mxu3 %vm324_vm0, %v237_v11  ;;  %v243_v0 = vld [vmem:[%s3019_s0 + $0x728] sm:$0xff] }
 0x1c8   :  { %v646_v5 = vadd.f32 %v2545_v39, %v645_v1  ;;  %v854_v6 = vpop.f32.mrf.mxu1 }
 0x1c9   :  { %vm1389_vm10 = vcmp.ge.f32.partialorder %v1270_v4, 0.0  ;;  %v1453_v9 = vmul.f32 0.01, %v1270_v4  ;;  %1110 = vmatmul.f32.gmra.mxu2 %v228_v2 }
 0x1ca   :  { %v855_v10 = vadd.f32 %v854_v6, %v646_v5  ;;  %692 = vmatmul.f32.gmra.mxu0 %v226_v3  ;;  %v1278_v22 = vpop.f32.mrf.mxu3 }
 0x1cb   :  { %v1517_v12 = vsel %vm1389_vm10, %v1270_v4, %v1453_v9  ;;  %901 = vmatmul.f32.gmra.mxu1 %v227_v7  ;;  %v253_v4 = vld [vmem:[%s3019_s0 + $0x778] sm:$0xff]  ;;  %v248_v9 = vld [vmem:[%s3019_s0 + $0x750] sm:$0xff] }
 0x1cc   :  { %1582 = vst.msk [vmem:[%s3021_s3 + $0x120] sm:$0xff] %vm1545_vm2, %v1517_v12  ;;  %v1063_v13 = vpop.f32.mrf.mxu2 }
 0x1cd   :  { %v1064_v14 = vadd.f32 %v1063_v13, %v855_v10  ;;  %v246_v10 = vld [vmem:[%s3019_s0 + $0x740] sm:$0xff] }
 0x1cf   :  { %v648_v15 = vpop.f32.mrf.mxu0  ;;  %v1273_v18 = vadd.f32 %v1272_v58, %v1064_v14  ;;  %1670 = vmatmul.msk.f32.gmra.mxu3 %vm324_vm0, %v241_v25  ;;  %v247_v14 = vld [vmem:[%s3019_s0 + $0x748] sm:$0xff] }
 0x1d0   :  { %v649_v19 = vadd.f32 %v2545_v39, %v648_v15  ;;  %v857_v20 = vpop.f32.mrf.mxu1 }
 0x1d1   :  { %vm1390_vm11 = vcmp.ge.f32.partialorder %v1273_v18, 0.0  ;;  %v1454_v23 = vmul.f32 0.01, %v1273_v18  ;;  %1113 = vmatmul.f32.gmra.mxu2 %v232_v16 }
 0x1d2   :  { %v858_v24 = vadd.f32 %v857_v20, %v649_v19  ;;  %695 = vmatmul.f32.gmra.mxu0 %v230_v17  ;;  %v1281_v35 = vpop.f32.mrf.mxu3 }
 0x1d3   :  { %v1518_v26 = vsel %vm1390_vm11, %v1273_v18, %v1454_v23  ;;  %904 = vmatmul.f32.gmra.mxu1 %v231_v21  ;;  %v257_v18 = vld [vmem:[%s3019_s0 + $0x798] sm:$0xff]  ;;  %v252_v23 = vld [vmem:[%s3019_s0 + $0x770] sm:$0xff] }
 0x1d4   :  { %1583 = vst.msk [vmem:[%s3021_s3 + $0x128] sm:$0xff] %vm1545_vm2, %v1518_v26  ;;  %v1066_v27 = vpop.f32.mrf.mxu2 }
 0x1d5   :  { %v1067_v28 = vadd.f32 %v1066_v27, %v858_v24  ;;  %v250_v24 = vld [vmem:[%s3019_s0 + $0x760] sm:$0xff] }
 0x1d7   :  { %v651_v29 = vpop.f32.mrf.mxu0  ;;  %v1276_v32 = vadd.f32 %v1275_v8, %v1067_v28  ;;  %1671 = vmatmul.msk.f32.gmra.mxu3 %vm324_vm0, %v245_v38  ;;  %v251_v28 = vld [vmem:[%s3019_s0 + $0x768] sm:$0xff] }
 0x1d8   :  { %v652_v33 = vadd.f32 %v2545_v39, %v651_v29  ;;  %v860_v53 = vpop.f32.mrf.mxu1 }
 0x1d9   :  { %vm1391_vm12 = vcmp.ge.f32.partialorder %v1276_v32, 0.0  ;;  %v1455_v36 = vmul.f32 0.01, %v1276_v32  ;;  %1116 = vmatmul.f32.gmra.mxu2 %v236_v30 }
 0x1da   :  { %v861_v37 = vadd.f32 %v860_v53, %v652_v33  ;;  %698 = vmatmul.f32.gmra.mxu0 %v234_v31  ;;  %v1284_v50 = vpop.f32.mrf.mxu3 }
 0x1db   :  { %v1519_v40 = vsel %vm1391_vm12, %v1276_v32, %v1455_v36  ;;  %907 = vmatmul.f32.gmra.mxu1 %v235_v34  ;;  %v261_v32 = vld [vmem:[%s3019_s0 + $0x7b8] sm:$0xff]  ;;  %v256_v36 = vld [vmem:[%s3019_s0 + $0x790] sm:$0xff] }
 0x1dc   :  { %1584 = vst.msk [vmem:[%s3021_s3 + $0x130] sm:$0xff] %vm1545_vm2, %v1519_v40  ;;  %v1069_v41 = vpop.f32.mrf.mxu2 }
 0x1dd   :  { %v1070_v42 = vadd.f32 %v1069_v41, %v861_v37  ;;  %v254_v37 = vld [vmem:[%s3019_s0 + $0x780] sm:$0xff] }
 0x1df   :  { %v654_v43 = vpop.f32.mrf.mxu0  ;;  %v1279_v46 = vadd.f32 %v1278_v22, %v1070_v42  ;;  %1672 = vmatmul.msk.f32.gmra.mxu3 %vm324_vm0, %v249_v54  ;;  %v255_v42 = vld [vmem:[%s3019_s0 + $0x788] sm:$0xff] }
 0x1e0   :  { %v655_v47 = vadd.f32 %v2545_v39, %v654_v43  ;;  %v863_v48 = vpop.f32.mrf.mxu1 }
 0x1e1   :  { %vm1392_vm13 = vcmp.ge.f32.partialorder %v1279_v46, 0.0  ;;  %v1456_v51 = vmul.f32 0.01, %v1279_v46  ;;  %1119 = vmatmul.f32.gmra.mxu2 %v240_v44 }
 0x1e2   :  { %v864_v52 = vadd.f32 %v863_v48, %v655_v47  ;;  %701 = vmatmul.f32.gmra.mxu0 %v238_v45  ;;  %v1287_v1 = vpop.f32.mrf.mxu3 }
 0x1e3   :  { %v1520_v55 = vsel %vm1392_vm13, %v1279_v46, %v1456_v51  ;;  %910 = vmatmul.f32.gmra.mxu1 %v239_v49  ;;  %v265_v46 = vld [vmem:[%s3019_s0 + $0x7d8] sm:$0xff]  ;;  %v260_v51 = vld [vmem:[%s3019_s0 + $0x7b0] sm:$0xff] }
 0x1e4   :  { %1585 = vst.msk [vmem:[%s3021_s3 + $0x138] sm:$0xff] %vm1545_vm2, %v1520_v55  ;;  %v1072_v56 = vpop.f32.mrf.mxu2 }
 0x1e5   :  { %v1073_v57 = vadd.f32 %v1072_v56, %v864_v52  ;;  %v258_v52 = vld [vmem:[%s3019_s0 + $0x7a0] sm:$0xff] }
 0x1e7   :  { %v657_v58 = vpop.f32.mrf.mxu0  ;;  %v1282_v61 = vadd.f32 %v1281_v35, %v1073_v57  ;;  %1673 = vmatmul.msk.f32.gmra.mxu3 %vm324_vm0, %v253_v4  ;;  %v259_v57 = vld [vmem:[%s3019_s0 + $0x7a8] sm:$0xff] }
 0x1e8   :  { %v658_v62 = vadd.f32 %v2545_v39, %v657_v58  ;;  %v866_v63 = vpop.f32.mrf.mxu1 }
 0x1e9   :  { %vm1393_vm14 = vcmp.ge.f32.partialorder %v1282_v61, 0.0  ;;  %v1457_v2 = vmul.f32 0.01, %v1282_v61  ;;  %1122 = vmatmul.f32.gmra.mxu2 %v244_v59 }
 0x1ea   :  { %v867_v3 = vadd.f32 %v866_v63, %v658_v62  ;;  %704 = vmatmul.f32.gmra.mxu0 %v242_v60  ;;  %v1290_v15 = vpop.f32.mrf.mxu3 }
 0x1eb   :  { %v1521_v5 = vsel %vm1393_vm14, %v1282_v61, %v1457_v2  ;;  %913 = vmatmul.f32.gmra.mxu1 %v243_v0  ;;  %v269_v61 = vld [vmem:[%s3019_s0 + $0x7f8] sm:$0xff]  ;;  %v264_v2 = vld [vmem:[%s3019_s0 + $0x7d0] sm:$0xff] }
 0x1ec   :  { %1586 = vst.msk [vmem:[%s3021_s3 + $0x140] sm:$0xff] %vm1545_vm2, %v1521_v5  ;;  %v1075_v6 = vpop.f32.mrf.mxu2 }
 0x1ed   :  { %v1076_v7 = vadd.f32 %v1075_v6, %v867_v3  ;;  %v262_v3 = vld [vmem:[%s3019_s0 + $0x7c0] sm:$0xff] }
 0x1ef   :  { %v660_v8 = vpop.f32.mrf.mxu0  ;;  %v1285_v11 = vadd.f32 %v1284_v50, %v1076_v7  ;;  %1674 = vmatmul.msk.f32.gmra.mxu3 %vm324_vm0, %v257_v18  ;;  %v263_v7 = vld [vmem:[%s3019_s0 + $0x7c8] sm:$0xff] }
 0x1f0   :  { %v661_v12 = vadd.f32 %v2545_v39, %v660_v8  ;;  %v869_v13 = vpop.f32.mrf.mxu1 }
 0x1f1   :  { %vm1394_vm15 = vcmp.ge.f32.partialorder %v1285_v11, 0.0  ;;  %v1458_v16 = vmul.f32 0.01, %v1285_v11  ;;  %1125 = vmatmul.f32.gmra.mxu2 %v248_v9 }
 0x1f2   :  { %v870_v17 = vadd.f32 %v869_v13, %v661_v12  ;;  %707 = vmatmul.f32.gmra.mxu0 %v246_v10  ;;  %v1293_v29 = vpop.f32.mrf.mxu3 }
 0x1f3   :  { %v1522_v19 = vsel %vm1394_vm15, %v1285_v11, %v1458_v16  ;;  %916 = vmatmul.f32.gmra.mxu1 %v247_v14  ;;  %v266_v16 = vld [vmem:[%s3019_s0 + $0x7e0] sm:$0xff] }
 0x1f4   :  { %1587 = vst.msk [vmem:[%s3021_s3 + $0x148] sm:$0xff] %vm1545_vm2, %v1522_v19  ;;  %v1078_v20 = vpop.f32.mrf.mxu2 }
 0x1f5   :  { %v1079_v21 = vadd.f32 %v1078_v20, %v870_v17  ;;  %v267_v20 = vld [vmem:[%s3019_s0 + $0x7e8] sm:$0xff] }
 0x1f7   :  { %v663_v22 = vpop.f32.mrf.mxu0  ;;  %v1288_v25 = vadd.f32 %v1287_v1, %v1079_v21  ;;  %1675 = vmatmul.msk.f32.gmra.mxu3 %vm324_vm0, %v261_v32 }
 0x1f8   :  { %v664_v26 = vadd.f32 %v2545_v39, %v663_v22  ;;  %v872_v27 = vpop.f32.mrf.mxu1 }
 0x1f9   :  { %vm1395_vm1 = vcmp.ge.f32.partialorder %v1288_v25, 0.0  ;;  %v1459_v30 = vmul.f32 0.01, %v1288_v25  ;;  %1128 = vmatmul.f32.gmra.mxu2 %v252_v23 }
 0x1fa   :  { %v873_v31 = vadd.f32 %v872_v27, %v664_v26  ;;  %710 = vmatmul.f32.gmra.mxu0 %v250_v24  ;;  %v1296_v43 = vpop.f32.mrf.mxu3 }
 0x1fb   :  { %v1523_v33 = vsel %vm1395_vm1, %v1288_v25, %v1459_v30  ;;  %919 = vmatmul.f32.gmra.mxu1 %v251_v28 }
 0x1fc   :  { %1588 = vst.msk [vmem:[%s3021_s3 + $0x150] sm:$0xff] %vm1545_vm2, %v1523_v33  ;;  %v1081_v53 = vpop.f32.mrf.mxu2 }
 0x1fd   :  { %v1082_v34 = vadd.f32 %v1081_v53, %v873_v31 }
 0x1ff   :  { %v666_v35 = vpop.f32.mrf.mxu0  ;;  %v1291_v38 = vadd.f32 %v1290_v15, %v1082_v34  ;;  %1676 = vmatmul.msk.f32.gmra.mxu3 %vm324_vm0, %v265_v46  ;;  %v268_v15 = vld [vmem:[%s3019_s0 + $0x7f0] sm:$0xff] }
 0x200   :  { %v667_v40 = vadd.f32 %v2545_v39, %v666_v35  ;;  %v875_v41 = vpop.f32.mrf.mxu1 }
 0x201   :  { %vm1396_vm3 = vcmp.ge.f32.partialorder %v1291_v38, 0.0  ;;  %v1460_v44 = vmul.f32 0.01, %v1291_v38  ;;  %1131 = vmatmul.f32.gmra.mxu2 %v256_v36 }
 0x202   :  { %v876_v45 = vadd.f32 %v875_v41, %v667_v40  ;;  %713 = vmatmul.f32.gmra.mxu0 %v254_v37  ;;  %v1299_v58 = vpop.f32.mrf.mxu3 }
 0x203   :  { %v1524_v47 = vsel %vm1396_vm3, %v1291_v38, %v1460_v44  ;;  %922 = vmatmul.f32.gmra.mxu1 %v255_v42 }
 0x204   :  { %1589 = vst.msk [vmem:[%s3021_s3 + $0x158] sm:$0xff] %vm1545_vm2, %v1524_v47  ;;  %v1084_v48 = vpop.f32.mrf.mxu2 }
 0x205   :  { %v1085_v49 = vadd.f32 %v1084_v48, %v876_v45 }
 0x207   :  { %v669_v50 = vpop.f32.mrf.mxu0  ;;  %v1294_v54 = vadd.f32 %v1293_v29, %v1085_v49  ;;  %1677 = vmatmul.msk.f32.gmra.mxu3 %vm324_vm0, %v269_v61 }
 0x208   :  { %v670_v55 = vadd.f32 %v2545_v39, %v669_v50  ;;  %v878_v56 = vpop.f32.mrf.mxu1 }
 0x209   :  { %vm1397_vm4 = vcmp.ge.f32.partialorder %v1294_v54, 0.0  ;;  %v1461_v59 = vmul.f32 0.01, %v1294_v54  ;;  %1134 = vmatmul.f32.gmra.mxu2 %v260_v51 }
 0x20a   :  { %v879_v60 = vadd.f32 %v878_v56, %v670_v55  ;;  %716 = vmatmul.f32.gmra.mxu0 %v258_v52  ;;  %v1302_v8 = vpop.f32.mrf.mxu3 }
 0x20b   :  { %v1525_v62 = vsel %vm1397_vm4, %v1294_v54, %v1461_v59  ;;  %925 = vmatmul.f32.gmra.mxu1 %v259_v57 }
 0x20c   :  { %1590 = vst.msk [vmem:[%s3021_s3 + $0x160] sm:$0xff] %vm1545_vm2, %v1525_v62  ;;  %v1087_v63 = vpop.f32.mrf.mxu2 }
 0x20d   :  { %v1088_v0 = vadd.f32 %v1087_v63, %v879_v60 }
 0x20f   :  { %v672_v1 = vpop.f32.mrf.mxu0  ;;  %v1297_v4 = vadd.f32 %v1296_v43, %v1088_v0 }
 0x210   :  { %v673_v5 = vadd.f32 %v2545_v39, %v672_v1  ;;  %v881_v6 = vpop.f32.mrf.mxu1 }
 0x211   :  { %vm1398_vm5 = vcmp.ge.f32.partialorder %v1297_v4, 0.0  ;;  %v1462_v9 = vmul.f32 0.01, %v1297_v4  ;;  %1137 = vmatmul.f32.gmra.mxu2 %v264_v2 }
 0x212   :  { %v882_v10 = vadd.f32 %v881_v6, %v673_v5  ;;  %719 = vmatmul.f32.gmra.mxu0 %v262_v3  ;;  %v1305_v21 = vpop.f32.mrf.mxu3 }
 0x213   :  { %v1526_v11 = vsel %vm1398_vm5, %v1297_v4, %v1462_v9  ;;  %928 = vmatmul.f32.gmra.mxu1 %v263_v7 }
 0x214   :  { %1591 = vst.msk [vmem:[%s3021_s3 + $0x168] sm:$0xff] %vm1545_vm2, %v1526_v11  ;;  %v1090_v12 = vpop.f32.mrf.mxu2 }
 0x215   :  { %v1091_v13 = vadd.f32 %v1090_v12, %v882_v10 }
 0x217   :  { %v675_v14 = vpop.f32.mrf.mxu0  ;;  %v1300_v17 = vadd.f32 %v1299_v58, %v1091_v13 }
 0x218   :  { %v676_v18 = vadd.f32 %v2545_v39, %v675_v14  ;;  %v884_v19 = vpop.f32.mrf.mxu1 }
 0x219   :  { %vm1399_vm0 = vcmp.ge.f32.partialorder %v1300_v17, 0.0  ;;  %v1463_v22 = vmul.f32 0.01, %v1300_v17  ;;  %1140 = vmatmul.f32.gmra.mxu2 %v268_v15 }
 0x21a   :  { %v885_v23 = vadd.f32 %v884_v19, %v676_v18  ;;  %722 = vmatmul.f32.gmra.mxu0 %v266_v16  ;;  %v1308_v31 = vpop.f32.mrf.mxu3 }
 0x21b   :  { %v1527_v24 = vsel %vm1399_vm0, %v1300_v17, %v1463_v22  ;;  %931 = vmatmul.f32.gmra.mxu1 %v267_v20 }
 0x21c   :  { %1592 = vst.msk [vmem:[%s3021_s3 + $0x170] sm:$0xff] %vm1545_vm2, %v1527_v24  ;;  %v1093_v25 = vpop.f32.mrf.mxu2 }
 0x21d   :  { %v1094_v26 = vadd.f32 %v1093_v25, %v885_v23 }
 0x21f   :  { %v678_v27 = vpop.f32.mrf.mxu0  ;;  %v1303_v28 = vadd.f32 %v1302_v8, %v1094_v26 }
 0x220   :  { %v679_v29 = vadd.f32 %v2545_v39, %v678_v27  ;;  %v887_v30 = vpop.f32.mrf.mxu1 }
 0x221   :  { %vm1400_vm6 = vcmp.ge.f32.partialorder %v1303_v28, 0.0  ;;  %v1464_v32 = vmul.f32 0.01, %v1303_v28 }
 0x222   :  { %v888_v33 = vadd.f32 %v887_v30, %v679_v29  ;;  %v1311_v41 = vpop.f32.mrf.mxu3 }
 0x223   :  { %v1528_v53 = vsel %vm1400_vm6, %v1303_v28, %v1464_v32 }
 0x224   :  { %1593 = vst.msk [vmem:[%s3021_s3 + $0x178] sm:$0xff] %vm1545_vm2, %v1528_v53  ;;  %v1096_v34 = vpop.f32.mrf.mxu2 }
 0x225   :  { %v1097_v35 = vadd.f32 %v1096_v34, %v888_v33 }
 0x227   :  { %v681_v36 = vpop.f32.mrf.mxu0  ;;  %v1306_v37 = vadd.f32 %v1305_v21, %v1097_v35  ;;  %v2967_v35 = vld [vmem:[%s3020_s2] ss:$0 sm:$0xff] }
 0x228   :  { %v682_v38 = vadd.f32 %v2545_v39, %v681_v36  ;;  %v890_v40 = vpop.f32.mrf.mxu1 }
 0x229   :  { %vm1401_vm7 = vcmp.ge.f32.partialorder %v1306_v37, 0.0  ;;  %v1465_v42 = vmul.f32 0.01, %v1306_v37 }
 0x22a   :  { %v891_v43 = vadd.f32 %v890_v40, %v682_v38  ;;  %v1314_v51 = vpop.f32.mrf.mxu3 }
 0x22b   :  { %v1529_v44 = vsel %vm1401_vm7, %v1306_v37, %v1465_v42 }
 0x22c   :  { %1594 = vst.msk [vmem:[%s3021_s3 + $0x180] sm:$0xff] %vm1545_vm2, %v1529_v44  ;;  %v1099_v45 = vpop.f32.mrf.mxu2 }
 0x22d   :  { %v1100_v46 = vadd.f32 %v1099_v45, %v891_v43 }
 0x22f   :  { %v684_v47 = vpop.f32.mrf.mxu0  ;;  %v1309_v48 = vadd.f32 %v1308_v31, %v1100_v46 }
 0x230   :  { %v685_v49 = vadd.f32 %v2545_v39, %v684_v47  ;;  %v893_v50 = vpop.f32.mrf.mxu1 }
 0x231   :  { %vm1402_vm8 = vcmp.ge.f32.partialorder %v1309_v48, 0.0  ;;  %v1466_v52 = vmul.f32 0.01, %v1309_v48 }
 0x232   :  { %v894_v54 = vadd.f32 %v893_v50, %v685_v49  ;;  %v1317_v62 = vpop.f32.mrf.mxu3 }
 0x233   :  { %v1530_v55 = vsel %vm1402_vm8, %v1309_v48, %v1466_v52 }
 0x234   :  { %1595 = vst.msk [vmem:[%s3021_s3 + $0x188] sm:$0xff] %vm1545_vm2, %v1530_v55  ;;  %v1102_v56 = vpop.f32.mrf.mxu2 }
 0x235   :  { %v1103_v57 = vadd.f32 %v1102_v56, %v894_v54 }
 0x237   :  { %v687_v58 = vpop.f32.mrf.mxu0  ;;  %v1312_v59 = vadd.f32 %v1311_v41, %v1103_v57 }
 0x238   :  { %v688_v60 = vadd.f32 %v2545_v39, %v687_v58  ;;  %v896_v61 = vpop.f32.mrf.mxu1 }
 0x239   :  { %vm1403_vm9 = vcmp.ge.f32.partialorder %v1312_v59, 0.0  ;;  %v1467_v63 = vmul.f32 0.01, %v1312_v59 }
 0x23a   :  { %v897_v0 = vadd.f32 %v896_v61, %v688_v60  ;;  %v1320_v8 = vpop.f32.mrf.mxu3 }
 0x23b   :  { %v1531_v1 = vsel %vm1403_vm9, %v1312_v59, %v1467_v63 }
 0x23c   :  { %1596 = vst.msk [vmem:[%s3021_s3 + $0x190] sm:$0xff] %vm1545_vm2, %v1531_v1  ;;  %v1105_v2 = vpop.f32.mrf.mxu2 }
 0x23d   :  { %v1106_v3 = vadd.f32 %v1105_v2, %v897_v0 }
 0x23f   :  { %v690_v4 = vpop.f32.mrf.mxu0  ;;  %v1315_v5 = vadd.f32 %v1314_v51, %v1106_v3 }
 0x240   :  { %v691_v6 = vadd.f32 %v2545_v39, %v690_v4  ;;  %v899_v7 = vpop.f32.mrf.mxu1 }
 0x241   :  { %vm1404_vm10 = vcmp.ge.f32.partialorder %v1315_v5, 0.0  ;;  %v1468_v9 = vmul.f32 0.01, %v1315_v5 }
 0x242   :  { %v900_v10 = vadd.f32 %v899_v7, %v691_v6  ;;  %v1323_v18 = vpop.f32.mrf.mxu3 }
 0x243   :  { %v1532_v11 = vsel %vm1404_vm10, %v1315_v5, %v1468_v9 }
 0x244   :  { %1597 = vst.msk [vmem:[%s3021_s3 + $0x198] sm:$0xff] %vm1545_vm2, %v1532_v11  ;;  %v1108_v12 = vpop.f32.mrf.mxu2 }
 0x245   :  { %v1109_v13 = vadd.f32 %v1108_v12, %v900_v10 }
 0x247   :  { %v693_v14 = vpop.f32.mrf.mxu0  ;;  %v1318_v15 = vadd.f32 %v1317_v62, %v1109_v13 }
 0x248   :  { %v694_v16 = vadd.f32 %v2545_v39, %v693_v14  ;;  %v902_v17 = vpop.f32.mrf.mxu1 }
 0x249   :  { %vm1405_vm11 = vcmp.ge.f32.partialorder %v1318_v15, 0.0  ;;  %v1469_v19 = vmul.f32 0.01, %v1318_v15 }
 0x24a   :  { %v903_v20 = vadd.f32 %v902_v17, %v694_v16  ;;  %v1326_v28 = vpop.f32.mrf.mxu3 }
 0x24b   :  { %v1533_v21 = vsel %vm1405_vm11, %v1318_v15, %v1469_v19 }
 0x24c   :  { %1598 = vst.msk [vmem:[%s3021_s3 + $0x1a0] sm:$0xff] %vm1545_vm2, %v1533_v21  ;;  %v1111_v22 = vpop.f32.mrf.mxu2 }
 0x24d   :  { %v1112_v23 = vadd.f32 %v1111_v22, %v903_v20 }
 0x24f   :  { %v696_v24 = vpop.f32.mrf.mxu0  ;;  %v1321_v25 = vadd.f32 %v1320_v8, %v1112_v23 }
 0x250   :  { %v697_v26 = vadd.f32 %v2545_v39, %v696_v24  ;;  %v905_v27 = vpop.f32.mrf.mxu1 }
 0x251   :  { %vm1406_vm12 = vcmp.ge.f32.partialorder %v1321_v25, 0.0  ;;  %v1470_v29 = vmul.f32 0.01, %v1321_v25 }
 0x252   :  { %v906_v30 = vadd.f32 %v905_v27, %v697_v26  ;;  %v1329_v37 = vpop.f32.mrf.mxu3 }
 0x253   :  { %v1534_v31 = vsel %vm1406_vm12, %v1321_v25, %v1470_v29 }
 0x254   :  { %1599 = vst.msk [vmem:[%s3021_s3 + $0x1a8] sm:$0xff] %vm1545_vm2, %v1534_v31  ;;  %v1114_v32 = vpop.f32.mrf.mxu2 }
 0x255   :  { %v1115_v33 = vadd.f32 %v1114_v32, %v906_v30 }
 0x257   :  { %v699_v53 = vpop.f32.mrf.mxu0  ;;  %v1324_v34 = vadd.f32 %v1323_v18, %v1115_v33 }
 0x258   :  { %v700_v39 = vadd.f32 %v2967_v35, %v699_v53  ;;  %v908_v36 = vpop.f32.mrf.mxu1 }
 0x259   :  { %vm1407_vm13 = vcmp.ge.f32.partialorder %v1324_v34, 0.0  ;;  %v1471_v38 = vmul.f32 0.01, %v1324_v34 }
 0x25a   :  { %v909_v40 = vadd.f32 %v908_v36, %v700_v39  ;;  %v1332_v48 = vpop.f32.mrf.mxu3 }
 0x25b   :  { %v1535_v41 = vsel %vm1407_vm13, %v1324_v34, %v1471_v38 }
 0x25c   :  { %1600 = vst.msk [vmem:[%s3021_s3 + $0x1b0] sm:$0xff] %vm1545_vm2, %v1535_v41  ;;  %v1117_v42 = vpop.f32.mrf.mxu2 }
 0x25d   :  { %v1118_v43 = vadd.f32 %v1117_v42, %v909_v40 }
 0x25f   :  { %v702_v44 = vpop.f32.mrf.mxu0  ;;  %v1327_v45 = vadd.f32 %v1326_v28, %v1118_v43 }
 0x260   :  { %v703_v46 = vadd.f32 %v2967_v35, %v702_v44  ;;  %v911_v47 = vpop.f32.mrf.mxu1 }
 0x261   :  { %vm1408_vm14 = vcmp.ge.f32.partialorder %v1327_v45, 0.0  ;;  %v1472_v49 = vmul.f32 0.01, %v1327_v45 }
 0x262   :  { %v912_v50 = vadd.f32 %v911_v47, %v703_v46  ;;  %v1335_v61 = vpop.f32.mrf.mxu3 }
 0x263   :  { %v1536_v51 = vsel %vm1408_vm14, %v1327_v45, %v1472_v49 }
 0x264   :  { %1601 = vst.msk [vmem:[%s3021_s3 + $0x1b8] sm:$0xff] %vm1545_vm2, %v1536_v51  ;;  %v1120_v52 = vpop.f32.mrf.mxu2 }
 0x265   :  { %v1121_v54 = vadd.f32 %v1120_v52, %v912_v50 }
 0x267   :  { %v705_v55 = vpop.f32.mrf.mxu0  ;;  %v1330_v56 = vadd.f32 %v1329_v37, %v1121_v54 }
 0x268   :  { %v706_v57 = vadd.f32 %v2967_v35, %v705_v55  ;;  %v914_v58 = vpop.f32.mrf.mxu1 }
 0x269   :  { %vm1409_vm15 = vcmp.ge.f32.partialorder %v1330_v56, 0.0  ;;  %v1473_v59 = vmul.f32 0.01, %v1330_v56 }
 0x26a   :  { %v915_v60 = vadd.f32 %v914_v58, %v706_v57  ;;  %v1338_v9 = vpop.f32.mrf.mxu3 }
 0x26b   :  { %v1537_v62 = vsel %vm1409_vm15, %v1330_v56, %v1473_v59 }
 0x26c   :  { %1602 = vst.msk [vmem:[%s3021_s3 + $0x1c0] sm:$0xff] %vm1545_vm2, %v1537_v62  ;;  %v1123_v63 = vpop.f32.mrf.mxu2 }
 0x26d   :  { %v1124_v0 = vadd.f32 %v1123_v63, %v915_v60 }
 0x26f   :  { %v708_v1 = vpop.f32.mrf.mxu0  ;;  %v1333_v2 = vadd.f32 %v1332_v48, %v1124_v0 }
 0x270   :  { %v709_v3 = vadd.f32 %v2967_v35, %v708_v1  ;;  %v917_v4 = vpop.f32.mrf.mxu1 }
 0x271   :  { %vm1410_vm1 = vcmp.ge.f32.partialorder %v1333_v2, 0.0  ;;  %v1474_v5 = vmul.f32 0.01, %v1333_v2 }
 0x272   :  { %v918_v6 = vadd.f32 %v917_v4, %v709_v3  ;;  %v1341_v21 = vpop.f32.mrf.mxu3 }
 0x273   :  { %v1538_v7 = vsel %vm1410_vm1, %v1333_v2, %v1474_v5 }
 0x274   :  { %1603 = vst.msk [vmem:[%s3021_s3 + $0x1c8] sm:$0xff] %vm1545_vm2, %v1538_v7  ;;  %v1126_v8 = vpop.f32.mrf.mxu2 }
 0x275   :  { %v1127_v10 = vadd.f32 %v1126_v8, %v918_v6 }
 0x277   :  { %v711_v11 = vpop.f32.mrf.mxu0  ;;  %v1336_v12 = vadd.f32 %v1335_v61, %v1127_v10 }
 0x278   :  { %v712_v13 = vadd.f32 %v2967_v35, %v711_v11  ;;  %v920_v14 = vpop.f32.mrf.mxu1 }
 0x279   :  { %vm1411_vm3 = vcmp.ge.f32.partialorder %v1336_v12, 0.0  ;;  %v1475_v15 = vmul.f32 0.01, %v1336_v12 }
 0x27a   :  { %v921_v16 = vadd.f32 %v920_v14, %v712_v13  ;;  %v1344_v53 = vpop.f32.mrf.mxu3 }
 0x27b   :  { %v1539_v17 = vsel %vm1411_vm3, %v1336_v12, %v1475_v15 }
 0x27c   :  { %1604 = vst.msk [vmem:[%s3021_s3 + $0x1d0] sm:$0xff] %vm1545_vm2, %v1539_v17  ;;  %v1129_v18 = vpop.f32.mrf.mxu2 }
 0x27d   :  { %v1130_v19 = vadd.f32 %v1129_v18, %v921_v16 }
 0x27f   :  { %v714_v20 = vpop.f32.mrf.mxu0  ;;  %v1339_v22 = vadd.f32 %v1338_v9, %v1130_v19 }
 0x280   :  { %v715_v23 = vadd.f32 %v2967_v35, %v714_v20  ;;  %v923_v24 = vpop.f32.mrf.mxu1 }
 0x281   :  { %vm1412_vm4 = vcmp.ge.f32.partialorder %v1339_v22, 0.0  ;;  %v1476_v25 = vmul.f32 0.01, %v1339_v22 }
 0x282   :  { %v924_v26 = vadd.f32 %v923_v24, %v715_v23  ;;  %v1347_v46 = vpop.f32.mrf.mxu3 }
 0x283   :  { %v1540_v27 = vsel %vm1412_vm4, %v1339_v22, %v1476_v25 }
 0x284   :  { %1605 = vst.msk [vmem:[%s3021_s3 + $0x1d8] sm:$0xff] %vm1545_vm2, %v1540_v27  ;;  %v1132_v28 = vpop.f32.mrf.mxu2 }
 0x285   :  { %v1133_v29 = vadd.f32 %v1132_v28, %v924_v26 }
 0x287   :  { %v717_v30 = vpop.f32.mrf.mxu0  ;;  %v1342_v31 = vadd.f32 %v1341_v21, %v1133_v29 }
 0x288   :  { %v718_v32 = vadd.f32 %v2967_v35, %v717_v30  ;;  %v926_v33 = vpop.f32.mrf.mxu1 }
 0x289   :  { %vm1413_vm5 = vcmp.ge.f32.partialorder %v1342_v31, 0.0  ;;  %v1477_v34 = vmul.f32 0.01, %v1342_v31 }
 0x28a   :  { %v927_v39 = vadd.f32 %v926_v33, %v718_v32  ;;  %v1350_v59 = vpop.f32.mrf.mxu3 }
 0x28b   :  { %v1541_v36 = vsel %vm1413_vm5, %v1342_v31, %v1477_v34 }
 0x28c   :  { %1606 = vst.msk [vmem:[%s3021_s3 + $0x1e0] sm:$0xff] %vm1545_vm2, %v1541_v36  ;;  %v1135_v37 = vpop.f32.mrf.mxu2 }
 0x28d   :  { %v1136_v38 = vadd.f32 %v1135_v37, %v927_v39 }
 0x28f   :  { %v720_v40 = vpop.f32.mrf.mxu0  ;;  %v1345_v41 = vadd.f32 %v1344_v53, %v1136_v38 }
 0x290   :  { %v721_v42 = vadd.f32 %v2967_v35, %v720_v40  ;;  %v929_v43 = vpop.f32.mrf.mxu1 }
 0x291   :  { %vm1414_vm0 = vcmp.ge.f32.partialorder %v1345_v41, 0.0  ;;  %v1478_v44 = vmul.f32 0.01, %v1345_v41 }
 0x292   :  { %v930_v45 = vadd.f32 %v929_v43, %v721_v42 }
 0x293   :  { %v1542_v47 = vsel %vm1414_vm0, %v1345_v41, %v1478_v44 }
 0x294   :  { %1607 = vst.msk [vmem:[%s3021_s3 + $0x1e8] sm:$0xff] %vm1545_vm2, %v1542_v47  ;;  %v1138_v48 = vpop.f32.mrf.mxu2 }
 0x295   :  { %v1139_v49 = vadd.f32 %v1138_v48, %v930_v45 }
 0x297   :  { %v723_v50 = vpop.f32.mrf.mxu0  ;;  %v1348_v51 = vadd.f32 %v1347_v46, %v1139_v49 }
 0x298   :  { %v724_v52 = vadd.f32 %v2967_v35, %v723_v50  ;;  %v932_v54 = vpop.f32.mrf.mxu1 }
 0x299   :  { %vm1415_vm6 = vcmp.ge.f32.partialorder %v1348_v51, 0.0  ;;  %v1479_v55 = vmul.f32 0.01, %v1348_v51 }
 0x29a   :  { %v933_v56 = vadd.f32 %v932_v54, %v724_v52 }
 0x29b   :  { %v1543_v57 = vsel %vm1415_vm6, %v1348_v51, %v1479_v55 }
 0x29c   :  { %1608 = vst.msk [vmem:[%s3021_s3 + $0x1f0] sm:$0xff] %vm1545_vm2, %v1543_v57  ;;  %v1141_v58 = vpop.f32.mrf.mxu2 }
 0x29d   :  { %v1142_v60 = vadd.f32 %v1141_v58, %v933_v56 }
 0x29f   :  { %v1351_v61 = vadd.f32 %v1350_v59, %v1142_v60 }
 0x2a1   :  { %vm1416_vm7 = vcmp.ge.f32.partialorder %v1351_v61, 0.0  ;;  %v1480_v62 = vmul.f32 0.01, %v1351_v61 }
 0x2a3   :  { %v1544_v63 = vsel %vm1416_vm7, %v1351_v61, %v1480_v62 }
 0x2a4   :  { %1609 = vst.msk [vmem:[%s3021_s3 + $0x1f8] sm:$0xff] %vm1545_vm2, %v1544_v63 }

// kernel: cae4_forward.21
= control target key start
LH: loop header
LB: loop body
LE: loop exit
PB: predicated region body
PF: predicated region fallthrough
CT: control target
= control target key end

     0   :  { %s1205_s12 = smov 0   ;;  %s1727_s0 = inlined_call_operand.vmem [shape: f32[2048,200], index: 0, kind: input, shape index: {}]   ;;  %s1728_s1 = inlined_call_operand.vmem [shape: f32[200,3], index: 1, kind: input, shape index: {}]   ;;  %s1729_s2 = inlined_call_operand.vmem [shape: f32[1,3], index: 2, kind: input, shape index: {}]   ;;  %s1730_s3 = inlined_call_operand.vmem [shape: f32[2048,3], index: 3, kind: output, shape index: {}]  }
   0x1 LB: > { %s1066_s13 = sadd.s32 4294967295, %s1183_s12   ;;  %p1070_p0 = scmp.ge.s32.totalorder %s1183_s12, 1  ;;  %s1183_s12 = sphi %s1205_s12, %s13_s12  }
   0x2   : > { %p139_p1 = scmp.lt.s32.totalorder %s1183_s12, 5 }
   0x4   : > { %p140_p2 = pnand %p1070_p0, %p139_p1 }
   0x5   : > { %s1071_s20 = sshll.u32 (!%p140_p2), %s1066_s13, 6 }
   0x6   : > { %143 = sbr.rel (%p140_p2) target bundleno = 436 (0x1b4), region = 32  ;;  %p165_p3 = scmp.lt.s32.totalorder (!%p140_p2), %s1071_s20, 255 }
   0xb   : > { %v320_v0 = vld [vmem:[%s1728_s1 + $0x78] sm:$0xff]  ;;  %v329_v1 = vld [vmem:[%s1728_s1 + $0xc0] sm:$0xff]  ;;  %v319_v2 = vld [vmem:[%s1728_s1 + $0x70] sm:$0xff]  ;;  %s1732_s20 = smov (!%p165_p3, %s1071_s20), 255  ;;  %vm334_vm0 = vcmask 588800   ;;  %vm945_vm1 = vcmask 23552  }
   0xc   : > { %1143 = vmatpush.msra.mxu2 %v320_v0  ;;  %743 = vmatpush.msra.mxu1 %v329_v1  ;;  %v328_v3 = vld [vmem:[%s1728_s1 + $0xb8] sm:$0xff]  ;;  %v318_v4 = vld [vmem:[%s1728_s1 + $0x68] sm:$0xff]  ;;  %v327_v5 = vld [vmem:[%s1728_s1 + $0xb0] sm:$0xff]  ;;  %s1142_s13 = sshll.u32 %s1732_s20, 4  ;;  %s1075_s21 = sshll.u32 %s1732_s20, 3 }
   0xd   : > { %527 = vmatpush.msra.mxu0 %v320_v0  ;;  %1159 = vmatpush.msra.mxu3 %v329_v1  ;;  %v317_v6 = vld [vmem:[%s1728_s1 + $0x60] sm:$0xff]  ;;  %v326_v7 = vld [vmem:[%s1728_s1 + $0xa8] sm:$0xff]  ;;  %v316_v8 = vld [vmem:[%s1728_s1 + $0x58] sm:$0xff]  ;;  %s1267_s25 = scalar_lea.vmem %s1727_s0, %s1142_s13  ;;  %s1413_s24 = scalar_lea.vmem %s1730_s3, %s1075_s21 }
   0xe   : > { %1144 = vmatpush.msra.mxu2 %v319_v2  ;;  %744 = vmatpush.msra.mxu1 %v328_v3  ;;  %v325_v9 = vld [vmem:[%s1728_s1 + $0xa0] sm:$0xff]  ;;  %v315_v10 = vld [vmem:[%s1728_s1 + $0x50] sm:$0xff]  ;;  %v324_v11 = vld [vmem:[%s1728_s1 + $0x98] sm:$0xff] }
   0xf   : > { %528 = vmatpush.msra.mxu0 %v319_v2  ;;  %1160 = vmatpush.msra.mxu3 %v328_v3  ;;  %v314_v12 = vld [vmem:[%s1728_s1 + $0x48] sm:$0xff]  ;;  %v323_v13 = vld [vmem:[%s1728_s1 + $0x90] sm:$0xff]  ;;  %v313_v14 = vld [vmem:[%s1728_s1 + $0x40] sm:$0xff] }
  0x10   : > { %1145 = vmatpush.msra.mxu2 %v318_v4  ;;  %745 = vmatpush.msra.mxu1 %v327_v5  ;;  %v322_v15 = vld [vmem:[%s1728_s1 + $0x88] sm:$0xff]  ;;  %v312_v16 = vld [vmem:[%s1728_s1 + $0x38] sm:$0xff]  ;;  %v321_v17 = vld [vmem:[%s1728_s1 + $0x80] sm:$0xff] }
  0x11   : > { %529 = vmatpush.msra.mxu0 %v318_v4  ;;  %1161 = vmatpush.msra.mxu3 %v327_v5  ;;  %v178_v18 = vld [vmem:[%s1267_s25 + $0x8] sm:$0xff]  ;;  %v311_v19 = vld [vmem:[%s1728_s1 + $0x30] sm:$0xff]  ;;  %v244_v20 = vld [vmem:[%s1267_s25 + $0x218] sm:$0xff] }
  0x12   : > { %1146 = vmatpush.msra.mxu2 %v317_v6  ;;  %746 = vmatpush.msra.mxu1 %v326_v7  ;;  %v310_v21 = vld [vmem:[%s1728_s1 + $0x28] sm:$0xff]  ;;  %v309_v22 = vld [vmem:[%s1728_s1 + $0x20] sm:$0xff]  ;;  %v308_v23 = vld [vmem:[%s1728_s1 + $0x18] sm:$0xff] }
  0x13   : > { %530 = vmatpush.msra.mxu0 %v317_v6  ;;  %1162 = vmatpush.msra.mxu3 %v326_v7  ;;  %v180_v24 = vld [vmem:[%s1267_s25 + $0x18] sm:$0xff]  ;;  %v307_v25 = vld [vmem:[%s1728_s1 + $0x10] sm:$0xff]  ;;  %v246_v26 = vld [vmem:[%s1267_s25 + $0x228] sm:$0xff] }
  0x14   : > { %1147 = vmatpush.msra.mxu2 %v316_v8  ;;  %747 = vmatpush.msra.mxu1 %v325_v9  ;;  %v306_v27 = vld [vmem:[%s1728_s1 + $0x8] sm:$0xff]  ;;  %v305_v28 = vld [vmem:[%s1728_s1] sm:$0xff]  ;;  %v239_v29 = vld [vmem:[%s1267_s25 + $0x1f0] sm:$0xff] }
  0x15   : > { %531 = vmatpush.msra.mxu0 %v316_v8  ;;  %1163 = vmatpush.msra.mxu3 %v325_v9  ;;  %v177_v30 = vld [vmem:[%s1267_s25] sm:$0xff]  ;;  %v182_v31 = vld [vmem:[%s1267_s25 + $0x28] sm:$0xff]  ;;  %v248_v32 = vld [vmem:[%s1267_s25 + $0x238] sm:$0xff] }
  0x16   : > { %1148 = vmatpush.msra.mxu2 %v315_v10  ;;  %748 = vmatpush.msra.mxu1 %v324_v11  ;;  %v241_v33 = vld [vmem:[%s1267_s25 + $0x200] sm:$0xff]  ;;  %v179_v34 = vld [vmem:[%s1267_s25 + $0x10] sm:$0xff]  ;;  %v184_v35 = vld [vmem:[%s1267_s25 + $0x38] sm:$0xff] }
  0x17   : > { %532 = vmatpush.msra.mxu0 %v315_v10  ;;  %1164 = vmatpush.msra.mxu3 %v324_v11  ;;  %v250_v36 = vld [vmem:[%s1267_s25 + $0x248] sm:$0xff]  ;;  %v243_v37 = vld [vmem:[%s1267_s25 + $0x210] sm:$0xff]  ;;  %v181_v38 = vld [vmem:[%s1267_s25 + $0x20] sm:$0xff] }
  0x18   : > { %1149 = vmatpush.msra.mxu2 %v314_v12  ;;  %749 = vmatpush.msra.mxu1 %v323_v13  ;;  %v186_v39 = vld [vmem:[%s1267_s25 + $0x48] sm:$0xff]  ;;  %v252_v40 = vld [vmem:[%s1267_s25 + $0x258] sm:$0xff]  ;;  %v245_v41 = vld [vmem:[%s1267_s25 + $0x220] sm:$0xff] }
  0x19   : > { %533 = vmatpush.msra.mxu0 %v314_v12  ;;  %1165 = vmatpush.msra.mxu3 %v323_v13  ;;  %v183_v42 = vld [vmem:[%s1267_s25 + $0x30] sm:$0xff]  ;;  %v188_v43 = vld [vmem:[%s1267_s25 + $0x58] sm:$0xff]  ;;  %v254_v44 = vld [vmem:[%s1267_s25 + $0x268] sm:$0xff] }
  0x1a   : > { %1150 = vmatpush.msra.mxu2 %v313_v14  ;;  %750 = vmatpush.msra.mxu1 %v322_v15  ;;  %v247_v45 = vld [vmem:[%s1267_s25 + $0x230] sm:$0xff]  ;;  %v185_v46 = vld [vmem:[%s1267_s25 + $0x40] sm:$0xff]  ;;  %v190_v47 = vld [vmem:[%s1267_s25 + $0x68] sm:$0xff] }
  0x1b   : > { %534 = vmatpush.msra.mxu0 %v313_v14  ;;  %1166 = vmatpush.msra.mxu3 %v322_v15  ;;  %v256_v48 = vld [vmem:[%s1267_s25 + $0x278] sm:$0xff]  ;;  %v249_v49 = vld [vmem:[%s1267_s25 + $0x240] sm:$0xff]  ;;  %v187_v50 = vld [vmem:[%s1267_s25 + $0x50] sm:$0xff] }
  0x1c   : > { %1151 = vmatpush.msra.mxu2 %v312_v16  ;;  %751 = vmatpush.msra.mxu1 %v321_v17  ;;  %v192_v51 = vld [vmem:[%s1267_s25 + $0x78] sm:$0xff]  ;;  %v258_v52 = vld [vmem:[%s1267_s25 + $0x288] sm:$0xff]  ;;  %v251_v53 = vld [vmem:[%s1267_s25 + $0x250] sm:$0xff] }
  0x1d   : > { %1076 = vmatmul.msk.f32.vlgmr.msra.gmra.mxu1 %vm334_vm0, %v178_v18  ;;  %535 = vmatpush.msra.mxu0 %v312_v16  ;;  %v189_v54 = vld [vmem:[%s1267_s25 + $0x60] sm:$0xff]  ;;  %v194_v55 = vld [vmem:[%s1267_s25 + $0x88] sm:$0xff]  ;;  %v260_v56 = vld [vmem:[%s1267_s25 + $0x298] sm:$0xff] }
  0x1e   : > { %1152 = vmatpush.msra.mxu2 %v311_v19  ;;  %1167 = vmatpush.msra.mxu3 %v321_v17  ;;  %v253_v57 = vld [vmem:[%s1267_s25 + $0x260] sm:$0xff]  ;;  %v191_v58 = vld [vmem:[%s1267_s25 + $0x70] sm:$0xff]  ;;  %v196_v59 = vld [vmem:[%s1267_s25 + $0x98] sm:$0xff] }
  0x1f   : > { %536 = vmatpush.msra.mxu0 %v311_v19  ;;  %1109 = vmatmul.msk.f32.vlgmr.msra.gmra.mxu3 %vm334_vm0, %v244_v20  ;;  %v262_v60 = vld [vmem:[%s1267_s25 + $0x2a8] sm:$0xff]  ;;  %v255_v61 = vld [vmem:[%s1267_s25 + $0x270] sm:$0xff]  ;;  %v193_v62 = vld [vmem:[%s1267_s25 + $0x80] sm:$0xff] }
  0x20   : > { %1153 = vmatpush.msra.mxu2 %v310_v21  ;;  %v198_v63 = vld [vmem:[%s1267_s25 + $0xa8] sm:$0xff]  ;;  %v264_v0 = vld [vmem:[%s1267_s25 + $0x2b8] sm:$0xff]  ;;  %v257_v1 = vld [vmem:[%s1267_s25 + $0x280] sm:$0xff] }
  0x21   : > { %537 = vmatpush.msra.mxu0 %v310_v21  ;;  %v195_v2 = vld [vmem:[%s1267_s25 + $0x90] sm:$0xff]  ;;  %v200_v3 = vld [vmem:[%s1267_s25 + $0xb8] sm:$0xff]  ;;  %v266_v4 = vld [vmem:[%s1267_s25 + $0x2c8] sm:$0xff] }
  0x22   : > { %1154 = vmatpush.msra.mxu2 %v309_v22  ;;  %v259_v5 = vld [vmem:[%s1267_s25 + $0x290] sm:$0xff]  ;;  %v197_v6 = vld [vmem:[%s1267_s25 + $0xa0] sm:$0xff]  ;;  %v202_v7 = vld [vmem:[%s1267_s25 + $0xc8] sm:$0xff] }
  0x23   : > { %538 = vmatpush.msra.mxu0 %v309_v22  ;;  %v268_v8 = vld [vmem:[%s1267_s25 + $0x2d8] sm:$0xff]  ;;  %v261_v9 = vld [vmem:[%s1267_s25 + $0x2a0] sm:$0xff]  ;;  %v199_v10 = vld [vmem:[%s1267_s25 + $0xb0] sm:$0xff] }
  0x24   : > { %1155 = vmatpush.msra.mxu2 %v308_v23  ;;  %v204_v11 = vld [vmem:[%s1267_s25 + $0xd8] sm:$0xff]  ;;  %v270_v12 = vld [vmem:[%s1267_s25 + $0x2e8] sm:$0xff]  ;;  %v263_v13 = vld [vmem:[%s1267_s25 + $0x2b0] sm:$0xff] }
  0x25   : > { %1077 = vmatmul.msk.f32.gmra.mxu1 %vm334_vm0, %v180_v24  ;;  %539 = vmatpush.msra.mxu0 %v308_v23  ;;  %v201_v14 = vld [vmem:[%s1267_s25 + $0xc0] sm:$0xff]  ;;  %v206_v15 = vld [vmem:[%s1267_s25 + $0xe8] sm:$0xff]  ;;  %v272_v16 = vld [vmem:[%s1267_s25 + $0x2f8] sm:$0xff] }
  0x26   : > { %1156 = vmatpush.msra.mxu2 %v307_v25  ;;  %v265_v17 = vld [vmem:[%s1267_s25 + $0x2c0] sm:$0xff]  ;;  %v203_v18 = vld [vmem:[%s1267_s25 + $0xd0] sm:$0xff]  ;;  %v208_v19 = vld [vmem:[%s1267_s25 + $0xf8] sm:$0xff] }
  0x27   : > { %540 = vmatpush.msra.mxu0 %v307_v25  ;;  %1110 = vmatmul.msk.f32.gmra.mxu3 %vm334_vm0, %v246_v26  ;;  %v274_v20 = vld [vmem:[%s1267_s25 + $0x308] sm:$0xff]  ;;  %v267_v21 = vld [vmem:[%s1267_s25 + $0x2d0] sm:$0xff]  ;;  %v205_v22 = vld [vmem:[%s1267_s25 + $0xe0] sm:$0xff] }
  0x28   : > { %1157 = vmatpush.msra.mxu2 %v306_v27  ;;  %v210_v24 = vld [vmem:[%s1267_s25 + $0x108] sm:$0xff]  ;;  %v276_v25 = vld [vmem:[%s1267_s25 + $0x318] sm:$0xff]  ;;  %v269_v26 = vld [vmem:[%s1267_s25 + $0x2e0] sm:$0xff] }
  0x29   : > { %541 = vmatpush.msra.mxu0 %v306_v27  ;;  %v207_v27 = vld [vmem:[%s1267_s25 + $0xf0] sm:$0xff] }
  0x2a   : > { %1158 = vmatpush.msra.mxu2 %v305_v28 }
  0x2b   : > { %636 = vmatmul.f32.vlgmr.msra.gmra.mxu2 %v239_v29  ;;  %542 = vmatpush.msra.mxu0 %v305_v28  ;;  %v212_v29 = vld [vmem:[%s1267_s25 + $0x118] sm:$0xff] }
  0x2c   : > { %543 = vmatmul.f32.vlgmr.msra.gmra.mxu0 %v177_v30 }
  0x2d   : > { %1078 = vmatmul.msk.f32.gmra.mxu1 %vm334_vm0, %v182_v31  ;;  %v278_v31 = vld [vmem:[%s1267_s25 + $0x328] sm:$0xff] }
  0x2f   : > { %1111 = vmatmul.msk.f32.gmra.mxu3 %vm334_vm0, %v248_v32  ;;  %v1402_v32 = vld [vmem:[%s1729_s2] ss:$0 sm:$0xff] }
  0x33   : > { %639 = vmatmul.f32.gmra.mxu2 %v241_v33  ;;  %v271_v33 = vld [vmem:[%s1267_s25 + $0x2f0] sm:$0xff] }
  0x34   : > { %546 = vmatmul.f32.gmra.mxu0 %v179_v34 }
  0x35   : > { %1079 = vmatmul.msk.f32.gmra.mxu1 %vm334_vm0, %v184_v35  ;;  %v209_v35 = vld [vmem:[%s1267_s25 + $0x100] sm:$0xff] }
  0x37   : > { %1112 = vmatmul.msk.f32.gmra.mxu3 %vm334_vm0, %v250_v36 }
  0x3b   : > { %642 = vmatmul.f32.gmra.mxu2 %v243_v37  ;;  %v214_v37 = vld [vmem:[%s1267_s25 + $0x128] sm:$0xff] }
  0x3c   : > { %549 = vmatmul.f32.gmra.mxu0 %v181_v38 }
  0x3d   : > { %1080 = vmatmul.msk.f32.gmra.mxu1 %vm334_vm0, %v186_v39 }
  0x3f   : > { %1113 = vmatmul.msk.f32.gmra.mxu3 %vm334_vm0, %v252_v40 }
  0x43   : > { %645 = vmatmul.f32.gmra.mxu2 %v245_v41  ;;  %v280_v41 = vld [vmem:[%s1267_s25 + $0x338] sm:$0xff] }
  0x44   : > { %552 = vmatmul.f32.gmra.mxu0 %v183_v42 }
  0x45   : > { %1081 = vmatmul.msk.f32.gmra.mxu1 %vm334_vm0, %v188_v43  ;;  %v273_v43 = vld [vmem:[%s1267_s25 + $0x300] sm:$0xff] }
  0x47   : > { %1114 = vmatmul.msk.f32.gmra.mxu3 %vm334_vm0, %v254_v44 }
  0x4b   : > { %648 = vmatmul.f32.gmra.mxu2 %v247_v45  ;;  %v211_v45 = vld [vmem:[%s1267_s25 + $0x110] sm:$0xff] }
  0x4c   : > { %555 = vmatmul.f32.gmra.mxu0 %v185_v46 }
  0x4d   : > { %1082 = vmatmul.msk.f32.gmra.mxu1 %vm334_vm0, %v190_v47  ;;  %v216_v47 = vld [vmem:[%s1267_s25 + $0x138] sm:$0xff] }
  0x4f   : > { %1115 = vmatmul.msk.f32.gmra.mxu3 %vm334_vm0, %v256_v48 }
  0x53   : > { %651 = vmatmul.f32.gmra.mxu2 %v249_v49 }
  0x54   : > { %558 = vmatmul.f32.gmra.mxu0 %v187_v50 }
  0x55   : > { %1083 = vmatmul.msk.f32.gmra.mxu1 %vm334_vm0, %v192_v51  ;;  %v282_v51 = vld [vmem:[%s1267_s25 + $0x348] sm:$0xff] }
  0x57   : > { %1116 = vmatmul.msk.f32.gmra.mxu3 %vm334_vm0, %v258_v52 }
  0x5b   : > { %654 = vmatmul.f32.gmra.mxu2 %v251_v53  ;;  %v275_v53 = vld [vmem:[%s1267_s25 + $0x310] sm:$0xff] }
  0x5c   : > { %561 = vmatmul.f32.gmra.mxu0 %v189_v54 }
  0x5d   : > { %1084 = vmatmul.msk.f32.gmra.mxu1 %vm334_vm0, %v194_v55  ;;  %v213_v55 = vld [vmem:[%s1267_s25 + $0x120] sm:$0xff] }
  0x5f   : > { %1117 = vmatmul.msk.f32.gmra.mxu3 %vm334_vm0, %v260_v56 }
  0x63   : > { %657 = vmatmul.f32.gmra.mxu2 %v253_v57  ;;  %v218_v57 = vld [vmem:[%s1267_s25 + $0x148] sm:$0xff] }
  0x64   : > { %564 = vmatmul.f32.gmra.mxu0 %v191_v58 }
  0x65   : > { %1085 = vmatmul.msk.f32.gmra.mxu1 %vm334_vm0, %v196_v59 }
  0x67   : > { %1118 = vmatmul.msk.f32.gmra.mxu3 %vm334_vm0, %v262_v60 }
  0x6b   : > { %660 = vmatmul.f32.gmra.mxu2 %v255_v61  ;;  %v284_v61 = vld [vmem:[%s1267_s25 + $0x358] sm:$0xff] }
  0x6c   : > { %567 = vmatmul.f32.gmra.mxu0 %v193_v62 }
  0x6d   : > { %1086 = vmatmul.msk.f32.gmra.mxu1 %vm334_vm0, %v198_v63 }
  0x6f   : > { %1119 = vmatmul.msk.f32.gmra.mxu3 %vm334_vm0, %v264_v0  ;;  %v277_v0 = vld [vmem:[%s1267_s25 + $0x320] sm:$0xff] }
  0x73   : > { %663 = vmatmul.f32.gmra.mxu2 %v257_v1 }
  0x74   : > { %570 = vmatmul.f32.gmra.mxu0 %v195_v2 }
  0x75   : > { %1087 = vmatmul.msk.f32.gmra.mxu1 %vm334_vm0, %v200_v3  ;;  %v215_v3 = vld [vmem:[%s1267_s25 + $0x130] sm:$0xff] }
  0x77   : > { %1120 = vmatmul.msk.f32.gmra.mxu3 %vm334_vm0, %v266_v4 }
  0x7b   : > { %666 = vmatmul.f32.gmra.mxu2 %v259_v5  ;;  %v220_v5 = vld [vmem:[%s1267_s25 + $0x158] sm:$0xff] }
  0x7c   : > { %573 = vmatmul.f32.gmra.mxu0 %v197_v6 }
  0x7d   : > { %1088 = vmatmul.msk.f32.gmra.mxu1 %vm334_vm0, %v202_v7 }
  0x7f   : > { %1121 = vmatmul.msk.f32.gmra.mxu3 %vm334_vm0, %v268_v8 }
  0x83   : > { %669 = vmatmul.f32.gmra.mxu2 %v261_v9  ;;  %v286_v9 = vld [vmem:[%s1267_s25 + $0x368] sm:$0xff] }
  0x84   : > { %576 = vmatmul.f32.gmra.mxu0 %v199_v10 }
  0x85   : > { %1089 = vmatmul.msk.f32.gmra.mxu1 %vm334_vm0, %v204_v11 }
  0x87   : > { %1122 = vmatmul.msk.f32.gmra.mxu3 %vm334_vm0, %v270_v12  ;;  %v279_v12 = vld [vmem:[%s1267_s25 + $0x330] sm:$0xff] }
  0x8b   : > { %672 = vmatmul.f32.gmra.mxu2 %v263_v13 }
  0x8c   : > { %579 = vmatmul.f32.gmra.mxu0 %v201_v14 }
  0x8d   : > { %1090 = vmatmul.msk.f32.gmra.mxu1 %vm334_vm0, %v206_v15  ;;  %v217_v15 = vld [vmem:[%s1267_s25 + $0x140] sm:$0xff] }
  0x8f   : > { %1123 = vmatmul.msk.f32.gmra.mxu3 %vm334_vm0, %v272_v16 }
  0x93   : > { %675 = vmatmul.f32.gmra.mxu2 %v265_v17  ;;  %v222_v17 = vld [vmem:[%s1267_s25 + $0x168] sm:$0xff] }
  0x94   : > { %582 = vmatmul.f32.gmra.mxu0 %v203_v18 }
  0x95   : > { %1091 = vmatmul.msk.f32.gmra.mxu1 %vm334_vm0, %v208_v19 }
  0x97   : > { %1124 = vmatmul.msk.f32.gmra.mxu3 %vm334_vm0, %v274_v20 }
  0x9a   : > { %v753_v23 = vpop.f32.mrf.mxu1 }
  0x9b   : > { %678 = vmatmul.f32.gmra.mxu2 %v267_v21  ;;  %v288_v21 = vld [vmem:[%s1267_s25 + $0x378] sm:$0xff] }
  0x9c   : > { %585 = vmatmul.f32.gmra.mxu0 %v205_v22 }
  0x9d   : > { %1092 = vmatmul.msk.f32.gmra.mxu1 %vm334_vm0, %v210_v24  ;;  %v281_v24 = vld [vmem:[%s1267_s25 + $0x340] sm:$0xff] }
  0x9f   : > { %1125 = vmatmul.msk.f32.gmra.mxu3 %vm334_vm0, %v276_v25 }
  0xa2   : > { %v756_v28 = vpop.f32.mrf.mxu1  ;;  %v852_v30 = vpop.f32.mrf.mxu3 }
  0xa3   : > { %681 = vmatmul.f32.gmra.mxu2 %v269_v26 }
  0xa4   : > { %588 = vmatmul.f32.gmra.mxu0 %v207_v27  ;;  %v219_v27 = vld [vmem:[%s1267_s25 + $0x150] sm:$0xff] }
  0xa5   : > { %1093 = vmatmul.msk.f32.gmra.mxu1 %vm334_vm0, %v212_v29  ;;  %v224_v29 = vld [vmem:[%s1267_s25 + $0x178] sm:$0xff] }
  0xa7   : > { %1126 = vmatmul.msk.f32.gmra.mxu3 %vm334_vm0, %v278_v31 }
  0xa9   : > { %v544_v34 = vpop.f32.mrf.mxu0 }
  0xaa   : > { %v759_v36 = vpop.f32.mrf.mxu1  ;;  %v545_v38 = vadd.f32 %v1402_v32, %v544_v34  ;;  %v855_v39 = vpop.f32.mrf.mxu3  ;;  %v290_v34 = vld [vmem:[%s1267_s25 + $0x388] sm:$0xff] }
  0xab   : > { %684 = vmatmul.f32.gmra.mxu2 %v271_v33 }
  0xac   : > { %v754_v40 = vadd.f32 %v753_v23, %v545_v38  ;;  %591 = vmatmul.f32.gmra.mxu0 %v209_v35 }
  0xad   : > { %1094 = vmatmul.msk.f32.gmra.mxu1 %vm334_vm0, %v214_v37  ;;  %v283_v37 = vld [vmem:[%s1267_s25 + $0x350] sm:$0xff] }
  0xae   : > { %946 = vst.msk [vmem:[%s1413_s24] sm:$0xff] %vm945_vm1, %v754_v40  ;;  %v1419_v42 = vpop.f32.mrf.mxu2  ;;  %v221_v40 = vld [vmem:[%s1267_s25 + $0x160] sm:$0xff] }
  0xaf   : > { %1127 = vmatmul.msk.f32.gmra.mxu3 %vm334_vm0, %v280_v41 }
  0xb1   : > { %v547_v44 = vpop.f32.mrf.mxu0 }
  0xb2   : > { %v762_v46 = vpop.f32.mrf.mxu1  ;;  %v548_v48 = vadd.f32 %v1402_v32, %v547_v44  ;;  %v858_v49 = vpop.f32.mrf.mxu3 }
  0xb3   : > { %687 = vmatmul.f32.gmra.mxu2 %v273_v43  ;;  %v226_v43 = vld [vmem:[%s1267_s25 + $0x188] sm:$0xff] }
  0xb4   : > { %v757_v50 = vadd.f32 %v756_v28, %v548_v48  ;;  %594 = vmatmul.f32.gmra.mxu0 %v211_v45 }
  0xb5   : > { %1095 = vmatmul.msk.f32.gmra.mxu1 %vm334_vm0, %v216_v47  ;;  %v292_v47 = vld [vmem:[%s1267_s25 + $0x398] sm:$0xff] }
  0xb6   : > { %947 = vst.msk [vmem:[%s1413_s24 + $0x8] sm:$0xff] %vm945_vm1, %v757_v50  ;;  %v1430_v52 = vpop.f32.mrf.mxu2  ;;  %v285_v50 = vld [vmem:[%s1267_s25 + $0x360] sm:$0xff] }
  0xb7   : > { %1128 = vmatmul.msk.f32.gmra.mxu3 %vm334_vm0, %v282_v51 }
  0xb9   : > { %v550_v54 = vpop.f32.mrf.mxu0 }
  0xba   : > { %v765_v56 = vpop.f32.mrf.mxu1  ;;  %v551_v58 = vadd.f32 %v1402_v32, %v550_v54  ;;  %v1437_v59 = vpop.f32.mrf.mxu3  ;;  %v223_v54 = vld [vmem:[%s1267_s25 + $0x170] sm:$0xff] }
  0xbb   : > { %690 = vmatmul.f32.gmra.mxu2 %v275_v53 }
  0xbc   : > { %v760_v60 = vadd.f32 %v759_v36, %v551_v58  ;;  %597 = vmatmul.f32.gmra.mxu0 %v213_v55 }
  0xbd   : > { %1096 = vmatmul.msk.f32.gmra.mxu1 %vm334_vm0, %v218_v57 }
  0xbe   : > { %948 = vst.msk [vmem:[%s1413_s24 + $0x10] sm:$0xff] %vm945_vm1, %v760_v60  ;;  %v643_v62 = vpop.f32.mrf.mxu2  ;;  %v294_v60 = vld [vmem:[%s1267_s25 + $0x3a8] sm:$0xff] }
  0xbf   : > { %v644_v63 = vadd.f32 %v1402_v32, %v643_v62  ;;  %1129 = vmatmul.msk.f32.gmra.mxu3 %vm334_vm0, %v284_v61 }
  0xc1   : > { %v853_v1 = vadd.f32 %v852_v30, %v644_v63  ;;  %v553_v2 = vpop.f32.mrf.mxu0  ;;  %v287_v63 = vld [vmem:[%s1267_s25 + $0x370] sm:$0xff] }
  0xc2   : > { %v768_v4 = vpop.f32.mrf.mxu1  ;;  %v554_v6 = vadd.f32 %v1402_v32, %v553_v2  ;;  %v1449_v7 = vpop.f32.mrf.mxu3  ;;  %v225_v2 = vld [vmem:[%s1267_s25 + $0x180] sm:$0xff] }
  0xc3   : > { %979 = vst.msk [vmem:[%s1413_s24 + $0x108] sm:$0xff] %vm945_vm1, %v853_v1  ;;  %693 = vmatmul.f32.gmra.mxu2 %v277_v0 }
  0xc4   : > { %v763_v8 = vadd.f32 %v762_v46, %v554_v6  ;;  %600 = vmatmul.f32.gmra.mxu0 %v215_v3 }
  0xc5   : > { %1097 = vmatmul.msk.f32.gmra.mxu1 %vm334_vm0, %v220_v5 }
  0xc6   : > { %949 = vst.msk [vmem:[%s1413_s24 + $0x18] sm:$0xff] %vm945_vm1, %v763_v8  ;;  %v646_v10 = vpop.f32.mrf.mxu2  ;;  %v296_v8 = vld [vmem:[%s1267_s25 + $0x3b8] sm:$0xff] }
  0xc7   : > { %v647_v11 = vadd.f32 %v1402_v32, %v646_v10  ;;  %1130 = vmatmul.msk.f32.gmra.mxu3 %vm334_vm0, %v286_v9 }
  0xc9   : > { %v856_v13 = vadd.f32 %v855_v39, %v647_v11  ;;  %v556_v14 = vpop.f32.mrf.mxu0  ;;  %v289_v11 = vld [vmem:[%s1267_s25 + $0x380] sm:$0xff] }
  0xca   : > { %v771_v16 = vpop.f32.mrf.mxu1  ;;  %v557_v18 = vadd.f32 %v1402_v32, %v556_v14  ;;  %v1463_v19 = vpop.f32.mrf.mxu3  ;;  %v227_v14 = vld [vmem:[%s1267_s25 + $0x190] sm:$0xff] }
  0xcb   : > { %980 = vst.msk [vmem:[%s1413_s24 + $0x110] sm:$0xff] %vm945_vm1, %v856_v13  ;;  %696 = vmatmul.f32.gmra.mxu2 %v279_v12 }
  0xcc   : > { %v766_v20 = vadd.f32 %v765_v56, %v557_v18  ;;  %603 = vmatmul.f32.gmra.mxu0 %v217_v15  ;;  %v228_v56 = vld [vmem:[%s1267_s25 + $0x198] sm:$0xff] }
  0xcd   : > { %1098 = vmatmul.msk.f32.gmra.mxu1 %vm334_vm0, %v222_v17 }
  0xce   : > { %950 = vst.msk [vmem:[%s1413_s24 + $0x20] sm:$0xff] %vm945_vm1, %v766_v20  ;;  %v649_v22 = vpop.f32.mrf.mxu2  ;;  %v298_v20 = vld [vmem:[%s1267_s25 + $0x3c8] sm:$0xff] }
  0xcf   : > { %v650_v23 = vadd.f32 %v1402_v32, %v649_v22  ;;  %1131 = vmatmul.msk.f32.gmra.mxu3 %vm334_vm0, %v288_v21 }
  0xd1   : > { %v859_v25 = vadd.f32 %v858_v49, %v650_v23  ;;  %v559_v26 = vpop.f32.mrf.mxu0  ;;  %v291_v23 = vld [vmem:[%s1267_s25 + $0x390] sm:$0xff] }
  0xd2   : > { %v774_v28 = vpop.f32.mrf.mxu1  ;;  %v560_v30 = vadd.f32 %v1402_v32, %v559_v26  ;;  %v1477_v31 = vpop.f32.mrf.mxu3  ;;  %v229_v26 = vld [vmem:[%s1267_s25 + $0x1a0] sm:$0xff] }
  0xd3   : > { %981 = vst.msk [vmem:[%s1413_s24 + $0x118] sm:$0xff] %vm945_vm1, %v859_v25  ;;  %699 = vmatmul.f32.gmra.mxu2 %v281_v24 }
  0xd4   : > { %v769_v33 = vadd.f32 %v768_v4, %v560_v30  ;;  %606 = vmatmul.f32.gmra.mxu0 %v219_v27  ;;  %v230_v4 = vld [vmem:[%s1267_s25 + $0x1a8] sm:$0xff] }
  0xd5   : > { %1099 = vmatmul.msk.f32.gmra.mxu1 %vm334_vm0, %v224_v29 }
  0xd6   : > { %951 = vst.msk [vmem:[%s1413_s24 + $0x28] sm:$0xff] %vm945_vm1, %v769_v33  ;;  %v652_v35 = vpop.f32.mrf.mxu2  ;;  %v300_v33 = vld [vmem:[%s1267_s25 + $0x3d8] sm:$0xff] }
  0xd7   : > { %v653_v36 = vadd.f32 %v1402_v32, %v652_v35  ;;  %1132 = vmatmul.msk.f32.gmra.mxu3 %vm334_vm0, %v290_v34 }
  0xd9   : > { %v862_v38 = vadd.f32 %v1437_v59, %v653_v36  ;;  %v562_v39 = vpop.f32.mrf.mxu0  ;;  %v293_v36 = vld [vmem:[%s1267_s25 + $0x3a0] sm:$0xff] }
  0xda   : > { %v777_v41 = vpop.f32.mrf.mxu1  ;;  %v563_v44 = vadd.f32 %v1402_v32, %v562_v39  ;;  %v1492_v45 = vpop.f32.mrf.mxu3  ;;  %v231_v39 = vld [vmem:[%s1267_s25 + $0x1b0] sm:$0xff] }
  0xdb   : > { %982 = vst.msk [vmem:[%s1413_s24 + $0x120] sm:$0xff] %vm945_vm1, %v862_v38  ;;  %702 = vmatmul.f32.gmra.mxu2 %v283_v37 }
  0xdc   : > { %v772_v46 = vadd.f32 %v771_v16, %v563_v44  ;;  %609 = vmatmul.f32.gmra.mxu0 %v221_v40  ;;  %v232_v16 = vld [vmem:[%s1267_s25 + $0x1b8] sm:$0xff] }
  0xdd   : > { %1100 = vmatmul.msk.f32.gmra.mxu1 %vm334_vm0, %v226_v43 }
  0xde   : > { %952 = vst.msk [vmem:[%s1413_s24 + $0x30] sm:$0xff] %vm945_vm1, %v772_v46  ;;  %v655_v48 = vpop.f32.mrf.mxu2  ;;  %v302_v46 = vld [vmem:[%s1267_s25 + $0x3e8] sm:$0xff] }
  0xdf   : > { %v656_v49 = vadd.f32 %v1402_v32, %v655_v48  ;;  %1133 = vmatmul.msk.f32.gmra.mxu3 %vm334_vm0, %v292_v47 }
  0xe1   : > { %v865_v51 = vadd.f32 %v1449_v7, %v656_v49  ;;  %v565_v53 = vpop.f32.mrf.mxu0  ;;  %v295_v49 = vld [vmem:[%s1267_s25 + $0x3b0] sm:$0xff] }
  0xe2   : > { %v780_v55 = vpop.f32.mrf.mxu1  ;;  %v566_v57 = vadd.f32 %v1402_v32, %v565_v53  ;;  %v1507_v58 = vpop.f32.mrf.mxu3  ;;  %v233_v53 = vld [vmem:[%s1267_s25 + $0x1c0] sm:$0xff] }
  0xe3   : > { %983 = vst.msk [vmem:[%s1413_s24 + $0x128] sm:$0xff] %vm945_vm1, %v865_v51  ;;  %705 = vmatmul.f32.gmra.mxu2 %v285_v50 }
  0xe4   : > { %v775_v59 = vadd.f32 %v774_v28, %v566_v57  ;;  %612 = vmatmul.f32.gmra.mxu0 %v223_v54  ;;  %v234_v28 = vld [vmem:[%s1267_s25 + $0x1c8] sm:$0xff] }
  0xe5   : > { %1101 = vmatmul.msk.f32.gmra.mxu1 %vm334_vm0, %v228_v56 }
  0xe6   : > { %953 = vst.msk [vmem:[%s1413_s24 + $0x38] sm:$0xff] %vm945_vm1, %v775_v59  ;;  %v658_v61 = vpop.f32.mrf.mxu2  ;;  %v304_v59 = vld [vmem:[%s1267_s25 + $0x3f8] sm:$0xff] }
  0xe7   : > { %v659_v62 = vadd.f32 %v1402_v32, %v658_v61  ;;  %1134 = vmatmul.msk.f32.gmra.mxu3 %vm334_vm0, %v294_v60 }
  0xe9   : > { %v868_v0 = vadd.f32 %v1463_v19, %v659_v62  ;;  %v568_v1 = vpop.f32.mrf.mxu0  ;;  %v297_v62 = vld [vmem:[%s1267_s25 + $0x3c0] sm:$0xff] }
  0xea   : > { %v783_v3 = vpop.f32.mrf.mxu1  ;;  %v569_v5 = vadd.f32 %v1402_v32, %v568_v1  ;;  %v1522_v6 = vpop.f32.mrf.mxu3  ;;  %v235_v1 = vld [vmem:[%s1267_s25 + $0x1d0] sm:$0xff] }
  0xeb   : > { %984 = vst.msk [vmem:[%s1413_s24 + $0x130] sm:$0xff] %vm945_vm1, %v868_v0  ;;  %708 = vmatmul.f32.gmra.mxu2 %v287_v63 }
  0xec   : > { %v778_v7 = vadd.f32 %v777_v41, %v569_v5  ;;  %615 = vmatmul.f32.gmra.mxu0 %v225_v2  ;;  %v236_v41 = vld [vmem:[%s1267_s25 + $0x1d8] sm:$0xff] }
  0xed   : > { %1102 = vmatmul.msk.f32.gmra.mxu1 %vm334_vm0, %v230_v4 }
  0xee   : > { %954 = vst.msk [vmem:[%s1413_s24 + $0x40] sm:$0xff] %vm945_vm1, %v778_v7  ;;  %v661_v9 = vpop.f32.mrf.mxu2 }
  0xef   : > { %v662_v10 = vadd.f32 %v1402_v32, %v661_v9  ;;  %1135 = vmatmul.msk.f32.gmra.mxu3 %vm334_vm0, %v296_v8  ;;  %v299_v9 = vld [vmem:[%s1267_s25 + $0x3d0] sm:$0xff] }
  0xf1   : > { %v871_v12 = vadd.f32 %v1477_v31, %v662_v10  ;;  %v571_v13 = vpop.f32.mrf.mxu0 }
  0xf2   : > { %v786_v15 = vpop.f32.mrf.mxu1  ;;  %v572_v17 = vadd.f32 %v1402_v32, %v571_v13  ;;  %v1537_v18 = vpop.f32.mrf.mxu3 }
  0xf3   : > { %985 = vst.msk [vmem:[%s1413_s24 + $0x138] sm:$0xff] %vm945_vm1, %v871_v12  ;;  %711 = vmatmul.f32.gmra.mxu2 %v289_v11  ;;  %v237_v12 = vld [vmem:[%s1267_s25 + $0x1e0] sm:$0xff] }
  0xf4   : > { %v781_v19 = vadd.f32 %v780_v55, %v572_v17  ;;  %618 = vmatmul.f32.gmra.mxu0 %v227_v14  ;;  %v238_v55 = vld [vmem:[%s1267_s25 + $0x1e8] sm:$0xff] }
  0xf5   : > { %1103 = vmatmul.msk.f32.gmra.mxu1 %vm334_vm0, %v232_v16  ;;  %v242_v14 = vld [vmem:[%s1267_s25 + $0x208] sm:$0xff] }
  0xf6   : > { %955 = vst.msk [vmem:[%s1413_s24 + $0x48] sm:$0xff] %vm945_vm1, %v781_v19  ;;  %v664_v21 = vpop.f32.mrf.mxu2 }
  0xf7   : > { %v665_v22 = vadd.f32 %v1402_v32, %v664_v21  ;;  %1136 = vmatmul.msk.f32.gmra.mxu3 %vm334_vm0, %v298_v20  ;;  %v301_v20 = vld [vmem:[%s1267_s25 + $0x3e0] sm:$0xff] }
  0xf9   : > { %v874_v24 = vadd.f32 %v1492_v45, %v665_v22  ;;  %v574_v25 = vpop.f32.mrf.mxu0 }
  0xfa   : > { %v789_v27 = vpop.f32.mrf.mxu1  ;;  %v575_v29 = vadd.f32 %v1402_v32, %v574_v25  ;;  %v1552_v30 = vpop.f32.mrf.mxu3 }
  0xfb   : > { %986 = vst.msk [vmem:[%s1413_s24 + $0x140] sm:$0xff] %vm945_vm1, %v874_v24  ;;  %714 = vmatmul.f32.gmra.mxu2 %v291_v23 }
  0xfc   : > { %v784_v31 = vadd.f32 %v783_v3, %v575_v29  ;;  %621 = vmatmul.f32.gmra.mxu0 %v229_v26  ;;  %v240_v3 = vld [vmem:[%s1267_s25 + $0x1f8] sm:$0xff]  ;;  %v303_v29 = vld [vmem:[%s1267_s25 + $0x3f0] sm:$0xff] }
  0xfd   : > { %1104 = vmatmul.msk.f32.gmra.mxu1 %vm334_vm0, %v234_v28 }
  0xfe   : > { %956 = vst.msk [vmem:[%s1413_s24 + $0x50] sm:$0xff] %vm945_vm1, %v784_v31  ;;  %v667_v34 = vpop.f32.mrf.mxu2 }
  0xff   : > { %v668_v35 = vadd.f32 %v1402_v32, %v667_v34  ;;  %1137 = vmatmul.msk.f32.gmra.mxu3 %vm334_vm0, %v300_v33 }
 0x101   : > { %v877_v37 = vadd.f32 %v1507_v58, %v668_v35  ;;  %v577_v38 = vpop.f32.mrf.mxu0 }
 0x102   : > { %v792_v40 = vpop.f32.mrf.mxu1  ;;  %v578_v43 = vadd.f32 %v1402_v32, %v577_v38  ;;  %v888_v44 = vpop.f32.mrf.mxu3 }
 0x103   : > { %987 = vst.msk [vmem:[%s1413_s24 + $0x148] sm:$0xff] %vm945_vm1, %v877_v37  ;;  %717 = vmatmul.f32.gmra.mxu2 %v293_v36 }
 0x104   : > { %v787_v45 = vadd.f32 %v786_v15, %v578_v43  ;;  %624 = vmatmul.f32.gmra.mxu0 %v231_v39 }
 0x105   : > { %1105 = vmatmul.msk.f32.gmra.mxu1 %vm334_vm0, %v236_v41 }
 0x106   : > { %957 = vst.msk [vmem:[%s1413_s24 + $0x58] sm:$0xff] %vm945_vm1, %v787_v45  ;;  %v670_v47 = vpop.f32.mrf.mxu2 }
 0x107   : > { %v671_v48 = vadd.f32 %v1402_v32, %v670_v47  ;;  %1138 = vmatmul.msk.f32.gmra.mxu3 %vm334_vm0, %v302_v46 }
 0x109   : > { %v880_v50 = vadd.f32 %v1522_v6, %v671_v48  ;;  %v580_v51 = vpop.f32.mrf.mxu0 }
 0x10a   : > { %v795_v54 = vpop.f32.mrf.mxu1  ;;  %v581_v56 = vadd.f32 %v1402_v32, %v580_v51  ;;  %v891_v57 = vpop.f32.mrf.mxu3 }
 0x10b   : > { %988 = vst.msk [vmem:[%s1413_s24 + $0x150] sm:$0xff] %vm945_vm1, %v880_v50  ;;  %720 = vmatmul.f32.gmra.mxu2 %v295_v49 }
 0x10c   : > { %v790_v58 = vadd.f32 %v789_v27, %v581_v56  ;;  %627 = vmatmul.f32.gmra.mxu0 %v233_v53 }
 0x10d   : > { %1106 = vmatmul.msk.f32.gmra.mxu1 %vm334_vm0, %v238_v55 }
 0x10e   : > { %958 = vst.msk [vmem:[%s1413_s24 + $0x60] sm:$0xff] %vm945_vm1, %v790_v58  ;;  %v673_v60 = vpop.f32.mrf.mxu2 }
 0x10f   : > { %v674_v61 = vadd.f32 %v1402_v32, %v673_v60  ;;  %1139 = vmatmul.msk.f32.gmra.mxu3 %vm334_vm0, %v304_v59 }
 0x111   : > { %v883_v63 = vadd.f32 %v1537_v18, %v674_v61  ;;  %v583_v0 = vpop.f32.mrf.mxu0 }
 0x112   : > { %v798_v2 = vpop.f32.mrf.mxu1  ;;  %v584_v4 = vadd.f32 %v1402_v32, %v583_v0  ;;  %v894_v5 = vpop.f32.mrf.mxu3 }
 0x113   : > { %989 = vst.msk [vmem:[%s1413_s24 + $0x158] sm:$0xff] %vm945_vm1, %v883_v63  ;;  %723 = vmatmul.f32.gmra.mxu2 %v297_v62 }
 0x114   : > { %v793_v6 = vadd.f32 %v792_v40, %v584_v4  ;;  %630 = vmatmul.f32.gmra.mxu0 %v235_v1 }
 0x115   : > { %1107 = vmatmul.msk.f32.gmra.mxu1 %vm334_vm0, %v240_v3 }
 0x116   : > { %959 = vst.msk [vmem:[%s1413_s24 + $0x68] sm:$0xff] %vm945_vm1, %v793_v6  ;;  %v676_v7 = vpop.f32.mrf.mxu2 }
 0x117   : > { %v677_v8 = vadd.f32 %v1402_v32, %v676_v7 }
 0x119   : > { %v886_v10 = vadd.f32 %v1552_v30, %v677_v8  ;;  %v586_v11 = vpop.f32.mrf.mxu0 }
 0x11a   : > { %v801_v13 = vpop.f32.mrf.mxu1  ;;  %v587_v15 = vadd.f32 %v1402_v32, %v586_v11  ;;  %v897_v16 = vpop.f32.mrf.mxu3 }
 0x11b   : > { %990 = vst.msk [vmem:[%s1413_s24 + $0x160] sm:$0xff] %vm945_vm1, %v886_v10  ;;  %726 = vmatmul.f32.gmra.mxu2 %v299_v9 }
 0x11c   : > { %v796_v17 = vadd.f32 %v795_v54, %v587_v15  ;;  %633 = vmatmul.f32.gmra.mxu0 %v237_v12 }
 0x11d   : > { %1108 = vmatmul.msk.f32.gmra.mxu1 %vm334_vm0, %v242_v14 }
 0x11e   : > { %960 = vst.msk [vmem:[%s1413_s24 + $0x70] sm:$0xff] %vm945_vm1, %v796_v17  ;;  %v679_v18 = vpop.f32.mrf.mxu2 }
 0x11f   : > { %v680_v19 = vadd.f32 %v1402_v32, %v679_v18 }
 0x121   : > { %v889_v21 = vadd.f32 %v888_v44, %v680_v19  ;;  %v589_v22 = vpop.f32.mrf.mxu0 }
 0x122   : > { %v804_v23 = vpop.f32.mrf.mxu1  ;;  %v590_v24 = vadd.f32 %v1402_v32, %v589_v22  ;;  %v900_v25 = vpop.f32.mrf.mxu3 }
 0x123   : > { %991 = vst.msk [vmem:[%s1413_s24 + $0x168] sm:$0xff] %vm945_vm1, %v889_v21  ;;  %729 = vmatmul.f32.gmra.mxu2 %v301_v20 }
 0x124   : > { %v799_v26 = vadd.f32 %v798_v2, %v590_v24 }
 0x126   : > { %961 = vst.msk [vmem:[%s1413_s24 + $0x78] sm:$0xff] %vm945_vm1, %v799_v26  ;;  %v682_v27 = vpop.f32.mrf.mxu2 }
 0x127   : > { %v683_v28 = vadd.f32 %v1402_v32, %v682_v27 }
 0x129   : > { %v892_v30 = vadd.f32 %v891_v57, %v683_v28  ;;  %v592_v31 = vpop.f32.mrf.mxu0 }
 0x12a   : > { %v807_v33 = vpop.f32.mrf.mxu1  ;;  %v593_v34 = vadd.f32 %v1402_v32, %v592_v31  ;;  %v903_v36 = vpop.f32.mrf.mxu3 }
 0x12b   : > { %992 = vst.msk [vmem:[%s1413_s24 + $0x170] sm:$0xff] %vm945_vm1, %v892_v30  ;;  %732 = vmatmul.f32.gmra.mxu2 %v303_v29 }
 0x12c   : > { %v802_v35 = vadd.f32 %v801_v13, %v593_v34 }
 0x12e   : > { %962 = vst.msk [vmem:[%s1413_s24 + $0x80] sm:$0xff] %vm945_vm1, %v802_v35  ;;  %v685_v37 = vpop.f32.mrf.mxu2 }
 0x12f   : > { %v686_v38 = vadd.f32 %v1402_v32, %v685_v37 }
 0x131   : > { %v895_v39 = vadd.f32 %v894_v5, %v686_v38  ;;  %v595_v40 = vpop.f32.mrf.mxu0 }
 0x132   : > { %v810_v41 = vpop.f32.mrf.mxu1  ;;  %v596_v43 = vadd.f32 %v1402_v32, %v595_v40  ;;  %v906_v46 = vpop.f32.mrf.mxu3 }
 0x133   : > { %993 = vst.msk [vmem:[%s1413_s24 + $0x178] sm:$0xff] %vm945_vm1, %v895_v39 }
 0x134   : > { %v805_v44 = vadd.f32 %v804_v23, %v596_v43 }
 0x136   : > { %963 = vst.msk [vmem:[%s1413_s24 + $0x88] sm:$0xff] %vm945_vm1, %v805_v44  ;;  %v688_v45 = vpop.f32.mrf.mxu2 }
 0x137   : > { %v689_v47 = vadd.f32 %v1402_v32, %v688_v45 }
 0x139   : > { %v898_v48 = vadd.f32 %v897_v16, %v689_v47  ;;  %v598_v49 = vpop.f32.mrf.mxu0 }
 0x13a   : > { %v813_v50 = vpop.f32.mrf.mxu1  ;;  %v599_v51 = vadd.f32 %v1402_v32, %v598_v49  ;;  %v909_v56 = vpop.f32.mrf.mxu3 }
 0x13b   : > { %994 = vst.msk [vmem:[%s1413_s24 + $0x180] sm:$0xff] %vm945_vm1, %v898_v48 }
 0x13c   : > { %v808_v53 = vadd.f32 %v807_v33, %v599_v51 }
 0x13e   : > { %964 = vst.msk [vmem:[%s1413_s24 + $0x90] sm:$0xff] %vm945_vm1, %v808_v53  ;;  %v691_v54 = vpop.f32.mrf.mxu2 }
 0x13f   : > { %v692_v55 = vadd.f32 %v1402_v32, %v691_v54 }
 0x141   : > { %v901_v57 = vadd.f32 %v900_v25, %v692_v55  ;;  %v601_v58 = vpop.f32.mrf.mxu0 }
 0x142   : > { %v816_v59 = vpop.f32.mrf.mxu1  ;;  %v602_v60 = vadd.f32 %v1402_v32, %v601_v58  ;;  %v912_v4 = vpop.f32.mrf.mxu3 }
 0x143   : > { %995 = vst.msk [vmem:[%s1413_s24 + $0x188] sm:$0xff] %vm945_vm1, %v901_v57 }
 0x144   : > { %v811_v61 = vadd.f32 %v810_v41, %v602_v60 }
 0x146   : > { %965 = vst.msk [vmem:[%s1413_s24 + $0x98] sm:$0xff] %vm945_vm1, %v811_v61  ;;  %v694_v62 = vpop.f32.mrf.mxu2 }
 0x147   : > { %v695_v63 = vadd.f32 %v1402_v32, %v694_v62 }
 0x149   : > { %v904_v0 = vadd.f32 %v903_v36, %v695_v63  ;;  %v604_v1 = vpop.f32.mrf.mxu0 }
 0x14a   : > { %v819_v2 = vpop.f32.mrf.mxu1  ;;  %v605_v3 = vadd.f32 %v1402_v32, %v604_v1  ;;  %v915_v13 = vpop.f32.mrf.mxu3 }
 0x14b   : > { %996 = vst.msk [vmem:[%s1413_s24 + $0x190] sm:$0xff] %vm945_vm1, %v904_v0 }
 0x14c   : > { %v814_v5 = vadd.f32 %v813_v50, %v605_v3 }
 0x14e   : > { %966 = vst.msk [vmem:[%s1413_s24 + $0xa0] sm:$0xff] %vm945_vm1, %v814_v5  ;;  %v697_v6 = vpop.f32.mrf.mxu2 }
 0x14f   : > { %v698_v7 = vadd.f32 %v1402_v32, %v697_v6 }
 0x151   : > { %v907_v8 = vadd.f32 %v906_v46, %v698_v7  ;;  %v607_v9 = vpop.f32.mrf.mxu0 }
 0x152   : > { %v822_v10 = vpop.f32.mrf.mxu1  ;;  %v608_v11 = vadd.f32 %v1402_v32, %v607_v9  ;;  %v918_v22 = vpop.f32.mrf.mxu3 }
 0x153   : > { %997 = vst.msk [vmem:[%s1413_s24 + $0x198] sm:$0xff] %vm945_vm1, %v907_v8 }
 0x154   : > { %v817_v12 = vadd.f32 %v816_v59, %v608_v11 }
 0x156   : > { %967 = vst.msk [vmem:[%s1413_s24 + $0xa8] sm:$0xff] %vm945_vm1, %v817_v12  ;;  %v700_v14 = vpop.f32.mrf.mxu2 }
 0x157   : > { %v701_v15 = vadd.f32 %v1402_v32, %v700_v14 }
 0x159   : > { %v910_v16 = vadd.f32 %v909_v56, %v701_v15  ;;  %v610_v17 = vpop.f32.mrf.mxu0 }
 0x15a   : > { %v825_v18 = vpop.f32.mrf.mxu1  ;;  %v611_v19 = vadd.f32 %v1402_v32, %v610_v17  ;;  %v921_v31 = vpop.f32.mrf.mxu3 }
 0x15b   : > { %998 = vst.msk [vmem:[%s1413_s24 + $0x1a0] sm:$0xff] %vm945_vm1, %v910_v16 }
 0x15c   : > { %v820_v20 = vadd.f32 %v819_v2, %v611_v19 }
 0x15e   : > { %968 = vst.msk [vmem:[%s1413_s24 + $0xb0] sm:$0xff] %vm945_vm1, %v820_v20  ;;  %v703_v21 = vpop.f32.mrf.mxu2 }
 0x15f   : > { %v704_v23 = vadd.f32 %v1402_v32, %v703_v21 }
 0x161   : > { %v913_v24 = vadd.f32 %v912_v4, %v704_v23  ;;  %v613_v25 = vpop.f32.mrf.mxu0 }
 0x162   : > { %v828_v26 = vpop.f32.mrf.mxu1  ;;  %v614_v27 = vadd.f32 %v1402_v32, %v613_v25  ;;  %v924_v45 = vpop.f32.mrf.mxu3 }
 0x163   : > { %999 = vst.msk [vmem:[%s1413_s24 + $0x1a8] sm:$0xff] %vm945_vm1, %v913_v24 }
 0x164   : > { %v823_v28 = vadd.f32 %v822_v10, %v614_v27  ;;  %v638_v10 = vadd.f32 %v1402_v32, %v1419_v42 }
 0x166   : > { %969 = vst.msk [vmem:[%s1413_s24 + $0xb8] sm:$0xff] %vm945_vm1, %v823_v28  ;;  %v706_v29 = vpop.f32.mrf.mxu2 }
 0x167   : > { %v707_v30 = vadd.f32 %v1402_v32, %v706_v29 }
 0x169   : > { %v916_v33 = vadd.f32 %v915_v13, %v707_v30  ;;  %v616_v34 = vpop.f32.mrf.mxu0 }
 0x16a   : > { %v831_v35 = vpop.f32.mrf.mxu1  ;;  %v617_v36 = vadd.f32 %v1402_v32, %v616_v34  ;;  %v927_v55 = vpop.f32.mrf.mxu3 }
 0x16b   : > { %1000 = vst.msk [vmem:[%s1413_s24 + $0x1b0] sm:$0xff] %vm945_vm1, %v916_v33 }
 0x16c   : > { %v826_v37 = vadd.f32 %v825_v18, %v617_v36  ;;  %v641_v18 = vadd.f32 %v1402_v32, %v1430_v52 }
 0x16e   : > { %970 = vst.msk [vmem:[%s1413_s24 + $0xc0] sm:$0xff] %vm945_vm1, %v826_v37  ;;  %v709_v38 = vpop.f32.mrf.mxu2 }
 0x16f   : > { %v710_v39 = vadd.f32 %v1402_v32, %v709_v38 }
 0x171   : > { %v919_v40 = vadd.f32 %v918_v22, %v710_v39  ;;  %v619_v41 = vpop.f32.mrf.mxu0 }
 0x172   : > { %v834_v43 = vpop.f32.mrf.mxu1  ;;  %v620_v44 = vadd.f32 %v1402_v32, %v619_v41  ;;  %v930_v0 = vpop.f32.mrf.mxu3 }
 0x173   : > { %1001 = vst.msk [vmem:[%s1413_s24 + $0x1b8] sm:$0xff] %vm945_vm1, %v919_v40 }
 0x174   : > { %v829_v46 = vadd.f32 %v828_v26, %v620_v44 }
 0x176   : > { %971 = vst.msk [vmem:[%s1413_s24 + $0xc8] sm:$0xff] %vm945_vm1, %v829_v46  ;;  %v712_v47 = vpop.f32.mrf.mxu2 }
 0x177   : > { %v713_v48 = vadd.f32 %v1402_v32, %v712_v47 }
 0x179   : > { %v922_v49 = vadd.f32 %v921_v31, %v713_v48  ;;  %v622_v50 = vpop.f32.mrf.mxu0 }
 0x17a   : > { %v837_v51 = vpop.f32.mrf.mxu1  ;;  %v623_v53 = vadd.f32 %v1402_v32, %v622_v50  ;;  %v933_v9 = vpop.f32.mrf.mxu3 }
 0x17b   : > { %1002 = vst.msk [vmem:[%s1413_s24 + $0x1c0] sm:$0xff] %vm945_vm1, %v922_v49 }
 0x17c   : > { %v832_v54 = vadd.f32 %v831_v35, %v623_v53 }
 0x17e   : > { %972 = vst.msk [vmem:[%s1413_s24 + $0xd0] sm:$0xff] %vm945_vm1, %v832_v54  ;;  %v715_v56 = vpop.f32.mrf.mxu2 }
 0x17f   : > { %v716_v57 = vadd.f32 %v1402_v32, %v715_v56 }
 0x181   : > { %v925_v58 = vadd.f32 %v924_v45, %v716_v57  ;;  %v625_v59 = vpop.f32.mrf.mxu0 }
 0x182   : > { %v840_v60 = vpop.f32.mrf.mxu1  ;;  %v626_v61 = vadd.f32 %v1402_v32, %v625_v59  ;;  %v936_v23 = vpop.f32.mrf.mxu3 }
 0x183   : > { %1003 = vst.msk [vmem:[%s1413_s24 + $0x1c8] sm:$0xff] %vm945_vm1, %v925_v58 }
 0x184   : > { %v835_v62 = vadd.f32 %v834_v43, %v626_v61 }
 0x186   : > { %973 = vst.msk [vmem:[%s1413_s24 + $0xd8] sm:$0xff] %vm945_vm1, %v835_v62  ;;  %v718_v63 = vpop.f32.mrf.mxu2 }
 0x187   : > { %v719_v1 = vadd.f32 %v1402_v32, %v718_v63 }
 0x189   : > { %v928_v2 = vadd.f32 %v927_v55, %v719_v1  ;;  %v628_v3 = vpop.f32.mrf.mxu0 }
 0x18a   : > { %v843_v4 = vpop.f32.mrf.mxu1  ;;  %v629_v5 = vadd.f32 %v1402_v32, %v628_v3  ;;  %v939_v28 = vpop.f32.mrf.mxu3 }
 0x18b   : > { %1004 = vst.msk [vmem:[%s1413_s24 + $0x1d0] sm:$0xff] %vm945_vm1, %v928_v2 }
 0x18c   : > { %v838_v6 = vadd.f32 %v837_v51, %v629_v5 }
 0x18e   : > { %974 = vst.msk [vmem:[%s1413_s24 + $0xe0] sm:$0xff] %vm945_vm1, %v838_v6  ;;  %v721_v7 = vpop.f32.mrf.mxu2 }
 0x18f   : > { %v722_v8 = vadd.f32 %v1402_v32, %v721_v7 }
 0x191   : > { %v931_v11 = vadd.f32 %v930_v0, %v722_v8  ;;  %v631_v12 = vpop.f32.mrf.mxu0 }
 0x192   : > { %v846_v13 = vpop.f32.mrf.mxu1  ;;  %v632_v14 = vadd.f32 %v1402_v32, %v631_v12  ;;  %v942_v34 = vpop.f32.mrf.mxu3 }
 0x193   : > { %1005 = vst.msk [vmem:[%s1413_s24 + $0x1d8] sm:$0xff] %vm945_vm1, %v931_v11  ;;  %v847_v15 = vadd.f32 %v846_v13, %v638_v10 }
 0x194   : > { %v841_v16 = vadd.f32 %v840_v60, %v632_v14 }
 0x195   : > { %977 = vst.msk [vmem:[%s1413_s24 + $0xf8] sm:$0xff] %vm945_vm1, %v847_v15 }
 0x196   : > { %975 = vst.msk [vmem:[%s1413_s24 + $0xe8] sm:$0xff] %vm945_vm1, %v841_v16  ;;  %v724_v17 = vpop.f32.mrf.mxu2 }
 0x197   : > { %v725_v42 = vadd.f32 %v1402_v32, %v724_v17 }
 0x199   : > { %v934_v19 = vadd.f32 %v933_v9, %v725_v42  ;;  %v634_v20 = vpop.f32.mrf.mxu0 }
 0x19a   : > { %v849_v21 = vpop.f32.mrf.mxu1  ;;  %v635_v22 = vadd.f32 %v1402_v32, %v634_v20 }
 0x19b   : > { %1006 = vst.msk [vmem:[%s1413_s24 + $0x1e0] sm:$0xff] %vm945_vm1, %v934_v19  ;;  %v850_v24 = vadd.f32 %v849_v21, %v641_v18 }
 0x19c   : > { %v844_v25 = vadd.f32 %v843_v4, %v635_v22 }
 0x19d   : > { %978 = vst.msk [vmem:[%s1413_s24 + $0x100] sm:$0xff] %vm945_vm1, %v850_v24 }
 0x19e   : > { %976 = vst.msk [vmem:[%s1413_s24 + $0xf0] sm:$0xff] %vm945_vm1, %v844_v25  ;;  %v727_v26 = vpop.f32.mrf.mxu2 }
 0x19f   : > { %v728_v27 = vadd.f32 %v1402_v32, %v727_v26 }
 0x1a1   : > { %v937_v52 = vadd.f32 %v936_v23, %v728_v27 }
 0x1a3   : > { %1007 = vst.msk [vmem:[%s1413_s24 + $0x1e8] sm:$0xff] %vm945_vm1, %v937_v52 }
 0x1a6   : > { %v730_v29 = vpop.f32.mrf.mxu2 }
 0x1a7   : > { %v731_v30 = vadd.f32 %v1402_v32, %v730_v29 }
 0x1a9   : > { %v940_v31 = vadd.f32 %v939_v28, %v731_v30 }
 0x1ab   : > { %1008 = vst.msk [vmem:[%s1413_s24 + $0x1f0] sm:$0xff] %vm945_vm1, %v940_v31 }
 0x1ae   : > { %v733_v33 = vpop.f32.mrf.mxu2 }
 0x1af   : > { %v734_v35 = vadd.f32 %v1402_v32, %v733_v33 }
 0x1b1   : > { %v943_v36 = vadd.f32 %v942_v34, %v734_v35 }
 0x1b3   : > { %1009 = vst.msk [vmem:[%s1413_s24 + $0x1f8] sm:$0xff] %vm945_vm1, %v943_v36 }
 0x1b4 PF: > { %s13_s12 = sadd.s32 1, %s1183_s12  }
 0x1b5   : > { %p10_p4 = scmp.ge.s32.totalorder %s13_s12, 6  }
 0x1b7   :  { %12 = sbr.rel (!%p10_p4) target bundleno = 1 (0x1), region = 62 }

// kernel: cae4_forward.16
= control target key start
LH: loop header
LB: loop body
LE: loop exit
PB: predicated region body
PF: predicated region fallthrough
CT: control target
= control target key end

     0   :  { %8 = vsyncpa [#allocation3], 0  ;;  %vm26_vm0 = vcmask 1041408   ;;  %vm17_vm1 = vcmask 80896   ;;  %s189_s0 = inlined_call_operand.vmem [shape: f32[2,10], index: 0, kind: input, shape index: {}]   ;;  %s190_s1 = inlined_call_operand.vmem [shape: f32[10,10], index: 1, kind: input, shape index: {}]   ;;  %s191_s2 = inlined_call_operand.vmem [shape: f32[1,10], index: 2, kind: input, shape index: {}]   ;;  %s192_s3 = inlined_call_operand.hbm [shape: f32[2,10], index: 3, kind: output, shape index: {}]  }
   0x1   :  { %v22_v0 = vld [vmem:[%s190_s1 + $0x8] sm:$0x3]  ;;  %v21_v1 = vld [vmem:[%s190_s1] sm:$0xff] }
   0x2   :  { %111 = vmatpush.msk.msra.mxu0 %vm26_vm0, %v22_v0  ;;  %v15_v2 = vld [vmem:[%s189_s0] sm:$0xff] }
   0x3   :  { %v16_v3 = vmul.f32 %v15_v2, %v15_v2  ;;  %v116_v5 = vld [vmem:[%s191_s2] ss:$0 sm:$0xff] }
   0x4   :  { %45 = vmatpush.msra.mxu0 %v21_v1 }
   0x5   :  { %112 = vmatmul.msk.f32.vlgmr.msra.gmra.mxu0 %vm17_vm1, %v15_v2  ;;  %v18_v4 = vsel %vm17_vm1, %v16_v3, 0.0 }
   0x6   :  { %19 = vadd.xlane.f32.xlu0 %v18_v4 }
  0x79   :  { %v20_v6 = vpop.xlane.xlu0 %19 }
  0x7a   :  { %v54_v7 = vadd.f32 %v116_v5, %v20_v6 }
  0x82   :  { %v47_v8 = vpop.f32.mrf.mxu0 }
  0x83   :  { %v55_v9 = vmul.f32 2.0, %v47_v8 }
  0x85   :  { %v56_v10 = vsub.f32 %v54_v7, %v55_v9 }
  0x87   :  { %v57_v11 = vmax.f32 %v56_v10, 0.0 }
  0x89   :  { %v58_v12 = vadd.f32 1.0, %v57_v11 }
  0x8b   :  { %117 = vrcp.f32 %v58_v12  ;;  %v70_v16 = vand.u32 2147483648, %v58_v12  ;;  %v68_v18 = vand.u32 2147483647, %v58_v12  ;;  %vm64_vm3 = vweird.f32 %v58_v12 }
  0x8d   :  { %v71_v20 = vor.u32 1.1754944e-38, %v70_v16  ;;  %vm69_vm5 = vcmp.eq.f32.partialorder %v68_v18, 8.507059e+37 }
  0x91   :  { %v118_v13 = vpop.eup %117 }
  0x92   :  { %v60_v14 = vmul.f32 %v118_v13, %v58_v12  ;;  %vm65_vm2 = vweird.f32 %v118_v13 }
  0x93   :  { %vm66_vm4 = vmor %vm64_vm3, %vm65_vm2 }
  0x94   :  { %v61_v15 = vsub.f32 1.0, %v60_v14 }
  0x96   :  { %v62_v17 = vmul.f32 %v118_v13, %v61_v15 }
  0x98   :  { %v63_v19 = vadd.f32 %v118_v13, %v62_v17 }
  0x9a   :  { %v67_v21 = vsel %vm66_vm4, %v118_v13, %v63_v19 }
  0x9b   :  { %v72_v22 = vsel %vm69_vm5, %v71_v20, %v67_v21 }
  0x9c   :  { %v74_v23 = vsel %vm17_vm1, %v72_v22, 0.0 }
  0x9d   :  { %75 = vadd.xlane.f32.xlu0 %v74_v23 }
 0x110   :  { %v76_v24 = vpop.xlane.xlu0 %75 }
 0x111   :  { %119 = vrcp.f32 %v76_v24  ;;  %v88_v28 = vand.u32 2147483648, %v76_v24  ;;  %v86_v30 = vand.u32 2147483647, %v76_v24  ;;  %vm82_vm7 = vweird.f32 %v76_v24 }
 0x113   :  { %v89_v32 = vor.u32 1.1754944e-38, %v88_v28  ;;  %vm87_vm9 = vcmp.eq.f32.partialorder %v86_v30, 8.507059e+37 }
 0x117   :  { %v120_v25 = vpop.eup %119 }
 0x118   :  { %v78_v26 = vmul.f32 %v120_v25, %v76_v24  ;;  %vm83_vm6 = vweird.f32 %v120_v25 }
 0x119   :  { %vm84_vm8 = vmor %vm82_vm7, %vm83_vm6 }
 0x11a   :  { %v79_v27 = vsub.f32 1.0, %v78_v26 }
 0x11c   :  { %v80_v29 = vmul.f32 %v120_v25, %v79_v27 }
 0x11e   :  { %v81_v31 = vadd.f32 %v120_v25, %v80_v29 }
 0x120   :  { %v85_v33 = vsel %vm84_vm8, %v120_v25, %v81_v31 }
 0x121   :  { %v90_v34 = vsel %vm87_vm9, %v89_v32, %v85_v33 }
 0x122   :  { %v91_v35 = vmul.f32 %v90_v34, %v72_v22 }
 0x124   :  { %92 = vst.msk [vmem:[#allocation2] sm:$0xff] %vm17_vm1, %v91_v35 }
 0x125   :  { %96 = vsyncadd [#allocation3], 96  ;;  %s99_s2 = sshll.u32 %s192_s3, 4  ;;  %s147_s20 = smov [#allocation2]   ;;  %s100_s2 = int_to_ptr.hbm [resolvable:$true] %s99_s2 }
 0x126   :  { %s97_s21 = sshll.u32 %s147_s20, 4  ;;  %s148_s22 = smov 32   ;;  %s98_s21 = int_to_ptr.vmem [resolvable:$true] %s97_s21 }
 0x127   :  { %s149_s23 = smov 2  }
 0x128   :  { %105 = dma.vmem_to_hbm [thread:$0]  %s98_s21, 32, %s100_s2, [#allocation3], %s148_s22, %s148_s22, %s149_s23  }
 0x129   :  { %145 = dma.done.wait [#allocation3], 128  }
 0x12a   :  { %146 = vsyncadd [#allocation3], 4294967168 }
 0x12b   :  { %110 = vsyncpa [#allocation3], 1 }

</bundles_post_ra>
